<compile_context>
chip_gen: v5e
topology: v5e:2x2
jax: 0.10.0
libtpu: 0.0.40
codegen_flags: <defaults>
</compile_context>

<pallas_src>
import functools

import jax
import jax.numpy as jnp
from jax.experimental import pallas as pl
from jax.experimental.pallas import tpu as pltpu


def _round_up(x, m):
    return (x + m - 1) // m * m


# --------------------------- GEMM + bias (MXU) --------------------------------
def _matmul_bias_kernel(a_ref, w_ref, b_ref, o_ref):
    acc = jnp.dot(a_ref[...], w_ref[...], preferred_element_type=jnp.float32)
    o_ref[...] = (acc + b_ref[...]).astype(o_ref.dtype)


def matmul_bias(a, w, b, *, tm=256):
    """a: (M, K) f32, w: (K, N) f32, b: (N,) f32 -> (M, N) f32.

    M is tiled with a parallel grid (zero-padded to a tile multiple); K and N
    are zero-padded to multiples of 128 so loads/stores are lane-dense.
    """
    M, K = a.shape
    K2, Nc = w.shape
    assert K == K2 and b.shape == (Nc,)
    Kp = _round_up(K, 128)
    Np = _round_up(Nc, 128)
    Mp = _round_up(M, tm)

    a_p = jnp.pad(a, ((0, Mp - M), (0, Kp - K))) if (Mp != M or Kp != K) else a
    w_p = jnp.pad(w, ((0, Kp - K), (0, Np - Nc))) if (Kp != K or Np != Nc) else w
    b_p = (jnp.pad(b, ((0, Np - Nc),)) if Np != Nc else b).reshape(1, Np)

    # TODO(synk): for large hidden dims, tile K with an f32 accumulator
    # (pl.when init/finalize) so the resident (Kp, Np) weight block stays
    # within v7x's 64 MiB VMEM; unnecessary at these sizes.
    out = pl.pallas_call(
        _matmul_bias_kernel,
        out_shape=jax.ShapeDtypeStruct((Mp, Np), jnp.float32),
        grid_spec=pltpu.PrefetchScalarGridSpec(
            num_scalar_prefetch=0,
            grid=(Mp // tm,),
            in_specs=[
                pl.BlockSpec((tm, Kp), lambda i: (i, 0)),
                pl.BlockSpec((Kp, Np), lambda i: (0, 0)),
                pl.BlockSpec((1, Np), lambda i: (0, 0)),
            ],
            out_specs=pl.BlockSpec((tm, Np), lambda i: (i, 0)),
        ),
        compiler_params=pltpu.CompilerParams(
            dimension_semantics=("parallel",)),
    )(a_p, w_p, b_p)
    if Mp != M or Np != Nc:
        out = out[:M, :Nc]
    return out


# ------------- depthwise 3x3 conv + bias + exact GELU (VPU, fused) ------------
_SQRT_HALF = 0.7071067811865476


def _erf(x):
    # Abramowitz & Stegun 7.1.26 rational approximation, |err| <= 1.5e-7.
    # (exact-erf GELU without relying on an erf lowering inside Mosaic)
    p = 0.3275911
    a1, a2, a3, a4, a5 = (0.254829592, -0.284496736, 1.421413741,
                          -1.453152027, 1.061405429)
    ax = jnp.abs(x)
    t = 1.0 / (1.0 + p * ax)
    poly = ((((a5 * t + a4) * t + a3) * t + a2) * t + a1) * t
    y = 1.0 - poly * jnp.exp(-ax * ax)
    return jnp.where(x < 0.0, -y, y)


def _gelu_exact(x):
    return 0.5 * x * (1.0 + _erf(x * _SQRT_HALF))


def _dwconv_gelu_kernel(xp_ref, w_ref, b_ref, o_ref, *, h, w):
    # xp_ref: (1, h+2, w+2, C) zero-padded tile; 9-tap shift-and-accumulate.
    c = o_ref.shape[-1]
    acc = jnp.zeros((h, w, c), jnp.float32)
    for dy in range(3):
        for dx in range(3):
            acc = acc + xp_ref[0, dy:dy + h, dx:dx + w, :] * w_ref[dy, dx, :]
    acc = acc + b_ref[0, :]
    o_ref[0] = _gelu_exact(acc).astype(o_ref.dtype)


def dwconv3x3_gelu(xp, wk, bias):
    """xp: (B, h+2, w+2, C) zero-padded NHWC, wk: (3, 3, C), bias: (1, C)."""
    B, hp2, wp2, C = xp.shape
    h, w = hp2 - 2, wp2 - 2
    # TODO(synk): tile the row axis (with a 1-row halo) for very large feature
    # maps; whole-image blocks are well within VMEM at these sizes.
    return pl.pallas_call(
        functools.partial(_dwconv_gelu_kernel, h=h, w=w),
        out_shape=jax.ShapeDtypeStruct((B, h, w, C), jnp.float32),
        grid_spec=pltpu.PrefetchScalarGridSpec(
            num_scalar_prefetch=0,
            grid=(B,),
            in_specs=[
                pl.BlockSpec((1, hp2, wp2, C), lambda b: (b, 0, 0, 0)),
                pl.BlockSpec((3, 3, C), lambda b: (0, 0, 0)),
                pl.BlockSpec((1, C), lambda b: (0, 0)),
            ],
            out_specs=pl.BlockSpec((1, h, w, C), lambda b: (b, 0, 0, 0)),
        ),
        compiler_params=pltpu.CompilerParams(
            dimension_semantics=("parallel",)),
    )(xp, wk, bias)


# -------------------------------- forward -------------------------------------
def _scale_sizes(H, W, N):
    # Mirrors DWConv.forward exactly (including the H//4*(H//4) split size).
    c1s = H * W
    c2s = (H // 2) * (W // 2)
    c3s = (H // 4) * (H // 4)
    c4s = N - c1s - c2s - c3s
    assert c4s == (H // 8) * (W // 8), "sequence length inconsistent with H, W"
    return [(H, W, c1s), (H // 2, W // 2, c2s),
            (H // 4, W // 4, c3s), (H // 8, W // 8, c4s)]


def conv_ffn_forward(params, x, H, W):
    """ConvFFN.forward. Dropout has p=0.0 (module default) => identity."""
    B, N, Cin = x.shape
    hidden = params["w1"].shape[1]
    Cout = params["w2"].shape[1]
    Cpad = _round_up(hidden, 128)  # lane-dense hidden width, carried end-to-end

    # fc1 (bias fused into the GEMM); keep the hidden axis padded to Cpad.
    w1p = jnp.pad(params["w1"], ((0, 0), (0, Cpad - hidden)))
    b1p = jnp.pad(params["b1"], ((0, Cpad - hidden),))
    y = matmul_bias(x.reshape(B * N, Cin), w1p, b1p).reshape(B, N, Cpad)

    # Per-scale depthwise 3x3 conv (+bias +GELU fused).  Padded channels carry
    # zero weight/bias, so they remain exactly zero (GELU(0) == 0).
    wdw = jnp.pad(params["w_dw"], ((0, 0), (0, 0), (0, Cpad - hidden)))
    bdw = jnp.pad(params["b_dw"], ((0, Cpad - hidden),)).reshape(1, Cpad)

    # TODO(synk): the sequence split / NHWC reshape / spatial zero-pad / concat
    # are layout glue left to XLA (no clean rectangular-tile Pallas expression).
    pieces, off = [], 0
    for (h, w, n) in _scale_sizes(H, W, N):
        xs = y[:, off:off + n, :].reshape(B, h, w, Cpad)
        xp = jnp.pad(xs, ((0, 0), (1, 1), (1, 1), (0, 0)))
        pieces.append(dwconv3x3_gelu(xp, wdw, bdw).reshape(B, n, Cpad))
        off += n
    z = jnp.concatenate(pieces, axis=1).reshape(B * N, Cpad)

    # fc2 (dropout p=0 -> identity); pad K rows to Cpad (zeros, no effect).
    w2p = jnp.pad(params["w2"], ((0, Cpad - hidden), (0, 0)))
    out = matmul_bias(z, w2p, params["b2"])
    return out.reshape(B, N, Cout)


# --------------------------- pure-JAX reference --------------------------------
def reference_forward(params, x, H, W):
    hp = jax.lax.Precision.HIGHEST
    B, N, _ = x.shape
    hidden = params["w1"].shape[1]
    y = jnp.matmul(x, params["w1"], precision=hp) + params["b1"]
    wdw = params["w_dw"].reshape(3, 3, 1, hidden)
    pieces, off = [], 0
    for (h, w, n) in _scale_sizes(H, W, N):
        xs = y[:, off:off + n, :].reshape(B, h, w, hidden)
        cv = jax.lax.conv_general_dilated(
            xs, wdw, (1, 1), "SAME",
            dimension_numbers=("NHWC", "HWIO", "NHWC"),
            feature_group_count=hidden, precision=hp) + params["b_dw"]
        pieces.append(cv.reshape(B, n, hidden))
        off += n
    z = jax.nn.gelu(jnp.concatenate(pieces, axis=1), approximate=False)
    return jnp.matmul(z, params["w2"], precision=hp) + params["b2"]


# ------------------------- deterministic parameters ----------------------------
def init_params(key, in_features, hidden_features, out_features):
    k1, k2, k3, k4, k5, k6 = jax.random.split(key, 6)
    s = 0.05
    return {
        "w1": jax.random.normal(k1, (in_features, hidden_features), jnp.float32) * s,
        "b1": jax.random.normal(k2, (hidden_features,), jnp.float32) * s,
        # depthwise conv weights stored (ky, kx, C):  w_dw[ky,kx,c] == torch_w[c,0,ky,kx]
        "w_dw": jax.random.normal(k3, (3, 3, hidden_features), jnp.float32) * s,
        "b_dw": jax.random.normal(k4, (hidden_features,), jnp.float32) * s,
        "w2": jax.random.normal(k5, (hidden_features, out_features), jnp.float32) * s,
        "b2": jax.random.normal(k6, (out_features,), jnp.float32) * s,
    }


if __name__ == "__main__":
    B, H, W = 2, 16, 16
    in_features, hidden_features = 64, 128
    out_features = in_features  # ConvFFN default (out_features or in_features)

    N = H * W + (H // 2) * (W // 2) + (H // 4) * (H // 4) + (H // 8) * (W // 8)  # 340

    key = jax.random.PRNGKey(0)
    kp, kx = jax.random.split(key)
    params = init_params(kp, in_features, hidden_features, out_features)
    x = jax.random.normal(kx, (B, N, in_features), jnp.float32)

    fwd = jax.jit(functools.partial(conv_ffn_forward, H=H, W=W))
    out = jax.block_until_ready(fwd(params, x))
    assert out.shape == (B, N, out_features), out.shape
    assert bool(jnp.all(jnp.isfinite(out)))

    # correctness check against a pure-JAX (XLA) reference
    ref = jax.block_until_ready(reference_forward(params, x, H, W))
    rel = float(jnp.linalg.norm(out - ref) / (jnp.linalg.norm(ref) + 1e-12))
    assert rel < 1e-2, f"relative error vs reference: {rel}"

    print("KERNEL_OK")
</pallas_src>

<mosaic_0001>
module attributes {stable_mosaic.version = 11 : i64} {
  func.func @_matmul_bias_kernel(%arg0: i32, %arg1: memref<256x128xf32, #tpu.memory_space<vmem>>, %arg2: memref<128x128xf32, #tpu.memory_space<vmem>>, %arg3: memref<1x128xf32, #tpu.memory_space<vmem>>, %arg4: memref<256x128xf32, #tpu.memory_space<vmem>>) attributes {dimension_semantics = [#tpu.dimension_semantics<parallel>], iteration_bounds = array<i64: 3>, scalar_prefetch = 0 : i64, scratch_operands = 0 : i64, tpu.core_type = #tpu.core_type<tc>, window_params = [{transform_indices = @transform_0, window_bounds = array<i64: 256, 128>}, {pipeline_mode = #tpu.pipeline_mode<synchronous>, transform_indices = @transform_1, window_bounds = array<i64: 128, 128>}, {pipeline_mode = #tpu.pipeline_mode<synchronous>, transform_indices = @transform_2, window_bounds = array<i64: 1, 128>}, {transform_indices = @transform_3, window_bounds = array<i64: 256, 128>}]} {
    %c0 = arith.constant 0 : index
    %c0_0 = arith.constant 0 : index
    %0 = vector.load %arg1[%c0, %c0_0] : memref<256x128xf32, #tpu.memory_space<vmem>>, vector<256x128xf32>
    %c0_1 = arith.constant 0 : index
    %c0_2 = arith.constant 0 : index
    %1 = vector.load %arg2[%c0_1, %c0_2] : memref<128x128xf32, #tpu.memory_space<vmem>>, vector<128x128xf32>
    %cst = arith.constant dense<0.000000e+00> : vector<256x128xf32>
    %2 = tpu.matmul %0, %1, %cst {dimension_numbers = #tpu.dot_dimension_numbers<[1], [0], [0], [1], [0, 0, 1, 1], [], []>} : vector<256x128xf32>, vector<128x128xf32>, vector<256x128xf32> -> vector<256x128xf32>
    %c0_3 = arith.constant 0 : index
    %c0_4 = arith.constant 0 : index
    %3 = vector.load %arg3[%c0_3, %c0_4] : memref<1x128xf32, #tpu.memory_space<vmem>>, vector<1x128xf32>
    %4 = vector.broadcast %3 : vector<1x128xf32> to vector<256x128xf32>
    %5 = arith.addf %2, %4 : vector<256x128xf32>
    %c0_5 = arith.constant 0 : index
    %c0_6 = arith.constant 0 : index
    %6 = vector.load %arg4[%c0_5, %c0_6] : memref<256x128xf32, #tpu.memory_space<vmem>>, vector<256x128xf32>
    tpu.vector_store %arg4[%c0_5, %c0_6], %5 {strides = array<i32>} : memref<256x128xf32, #tpu.memory_space<vmem>>, vector<256x128xf32>,
    return
  }
  func.func @transform_0(%arg0: i32) -> (i32, i32) {
    %c0_i32 = arith.constant 0 : i32
    %c0_i32_0 = arith.constant 0 : i32
    return %arg0, %c0_i32 : i32, i32
  }
  func.func @transform_1(%arg0: i32) -> (i32, i32) {
    %c0_i32 = arith.constant 0 : i32
    %c0_i32_0 = arith.constant 0 : i32
    %c0_i32_1 = arith.constant 0 : i32
    return %c0_i32, %c0_i32_0 : i32, i32
  }
  func.func @transform_2(%arg0: i32) -> (i32, i32) {
    %c0_i32 = arith.constant 0 : i32
    %c0_i32_0 = arith.constant 0 : i32
    %c0_i32_1 = arith.constant 0 : i32
    return %c0_i32, %c0_i32_0 : i32, i32
  }
  func.func @transform_3(%arg0: i32) -> (i32, i32) {
    %c0_i32 = arith.constant 0 : i32
    %c0_i32_0 = arith.constant 0 : i32
    return %arg0, %c0_i32 : i32, i32
  }
}

module attributes {stable_mosaic.version = 11 : i64} {
  func.func @_dwconv_gelu_kernel(%arg0: i32, %arg1: memref<1x4x4x128xf32, #tpu.memory_space<vmem>>, %arg2: memref<3x3x128xf32, #tpu.memory_space<vmem>>, %arg3: memref<1x128xf32, #tpu.memory_space<vmem>>, %arg4: memref<1x2x2x128xf32, #tpu.memory_space<vmem>>) attributes {dimension_semantics = [#tpu.dimension_semantics<parallel>], iteration_bounds = array<i64: 2>, scalar_prefetch = 0 : i64, scratch_operands = 0 : i64, tpu.core_type = #tpu.core_type<tc>, window_params = [{transform_indices = @transform_0, window_bounds = array<i64: 1, 4, 4, 128>}, {pipeline_mode = #tpu.pipeline_mode<synchronous>, transform_indices = @transform_1, window_bounds = array<i64: 3, 3, 128>}, {pipeline_mode = #tpu.pipeline_mode<synchronous>, transform_indices = @transform_2, window_bounds = array<i64: 1, 128>}, {transform_indices = @transform_3, window_bounds = array<i64: 1, 2, 2, 128>}]} {
    %cst = arith.constant 0.000000e+00 : f32
    %0 = vector.broadcast %cst : f32 to vector<2x2x128xf32>
    %c0 = arith.constant 0 : index
    %c0_0 = arith.constant 0 : index
    %c0_1 = arith.constant 0 : index
    %c0_2 = arith.constant 0 : index
    %1 = vector.load %arg1[%c0, %c0_0, %c0_1, %c0_2] : memref<1x4x4x128xf32, #tpu.memory_space<vmem>>, vector<1x2x2x128xf32>
    %2 = vector.shape_cast %1 : vector<1x2x2x128xf32> to vector<2x2x128xf32>
    %c0_3 = arith.constant 0 : index
    %c0_4 = arith.constant 0 : index
    %c0_5 = arith.constant 0 : index
    %3 = vector.load %arg2[%c0_3, %c0_4, %c0_5] : memref<3x3x128xf32, #tpu.memory_space<vmem>>, vector<1x1x128xf32>
    %4 = vector.shape_cast %3 : vector<1x1x128xf32> to vector<128xf32>
    %5 = vector.shape_cast %4 : vector<128xf32> to vector<1x1x128xf32>
    %6 = vector.broadcast %5 : vector<1x1x128xf32> to vector<2x2x128xf32>
    %7 = arith.mulf %2, %6 : vector<2x2x128xf32>
    %8 = arith.addf %0, %7 : vector<2x2x128xf32>
    %c0_6 = arith.constant 0 : index
    %c0_7 = arith.constant 0 : index
    %c1 = arith.constant 1 : index
    %c0_8 = arith.constant 0 : index
    %9 = vector.load %arg1[%c0_6, %c0_7, %c1, %c0_8] : memref<1x4x4x128xf32, #tpu.memory_space<vmem>>, vector<1x2x2x128xf32>
    %10 = vector.shape_cast %9 : vector<1x2x2x128xf32> to vector<2x2x128xf32>
    %c0_9 = arith.constant 0 : index
    %c1_10 = arith.constant 1 : index
    %c0_11 = arith.constant 0 : index
    %11 = vector.load %arg2[%c0_9, %c1_10, %c0_11] : memref<3x3x128xf32, #tpu.memory_space<vmem>>, vector<1x1x128xf32>
    %12 = vector.shape_cast %11 : vector<1x1x128xf32> to vector<128xf32>
    %13 = vector.shape_cast %12 : vector<128xf32> to vector<1x1x128xf32>
    %14 = vector.broadcast %13 : vector<1x1x128xf32> to vector<2x2x128xf32>
    %15 = arith.mulf %10, %14 : vector<2x2x128xf32>
    %16 = arith.addf %8, %15 : vector<2x2x128xf32>
    %c0_12 = arith.constant 0 : index
    %c0_13 = arith.constant 0 : index
    %c2 = arith.constant 2 : index
    %c0_14 = arith.constant 0 : index
    %17 = vector.load %arg1[%c0_12, %c0_13, %c2, %c0_14] : memref<1x4x4x128xf32, #tpu.memory_space<vmem>>, vector<1x2x2x128xf32>
    %18 = vector.shape_cast %17 : vector<1x2x2x128xf32> to vector<2x2x128xf32>
    %c0_15 = arith.constant 0 : index
    %c2_16 = arith.constant 2 : index
    %c0_17 = arith.constant 0 : index
    %19 = vector.load %arg2[%c0_15, %c2_16, %c0_17] : memref<3x3x128xf32, #tpu.memory_space<vmem>>, vector<1x1x128xf32>
    %20 = vector.shape_cast %19 : vector<1x1x128xf32> to vector<128xf32>
    %21 = vector.shape_cast %20 : vector<128xf32> to vector<1x1x128xf32>
    %22 = vector.broadcast %21 : vector<1x1x128xf32> to vector<2x2x128xf32>
    %23 = arith.mulf %18, %22 : vector<2x2x128xf32>
    %24 = arith.addf %16, %23 : vector<2x2x128xf32>
    %c0_18 = arith.constant 0 : index
    %c1_19 = arith.constant 1 : index
    %c0_20 = arith.constant 0 : index
    %c0_21 = arith.constant 0 : index
    %25 = vector.load %arg1[%c0_18, %c1_19, %c0_20, %c0_21] : memref<1x4x4x128xf32, #tpu.memory_space<vmem>>, vector<1x2x2x128xf32>
    %26 = vector.shape_cast %25 : vector<1x2x2x128xf32> to vector<2x2x128xf32>
    %c1_22 = arith.constant 1 : index
    %c0_23 = arith.constant 0 : index
    %c0_24 = arith.constant 0 : index
    %27 = vector.load %arg2[%c1_22, %c0_23, %c0_24] : memref<3x3x128xf32, #tpu.memory_space<vmem>>, vector<1x1x128xf32>
    %28 = vector.shape_cast %27 : vector<1x1x128xf32> to vector<128xf32>
    %29 = vector.shape_cast %28 : vector<128xf32> to vector<1x1x128xf32>
    %30 = vector.broadcast %29 : vector<1x1x128xf32> to vector<2x2x128xf32>
    %31 = arith.mulf %26, %30 : vector<2x2x128xf32>
    %32 = arith.addf %24, %31 : vector<2x2x128xf32>
    %c0_25 = arith.constant 0 : index
    %c1_26 = arith.constant 1 : index
    %c1_27 = arith.constant 1 : index
    %c0_28 = arith.constant 0 : index
    %33 = vector.load %arg1[%c0_25, %c1_26, %c1_27, %c0_28] : memref<1x4x4x128xf32, #tpu.memory_space<vmem>>, vector<1x2x2x128xf32>
    %34 = vector.shape_cast %33 : vector<1x2x2x128xf32> to vector<2x2x128xf32>
    %c1_29 = arith.constant 1 : index
    %c1_30 = arith.constant 1 : index
    %c0_31 = arith.constant 0 : index
    %35 = vector.load %arg2[%c1_29, %c1_30, %c0_31] : memref<3x3x128xf32, #tpu.memory_space<vmem>>, vector<1x1x128xf32>
    %36 = vector.shape_cast %35 : vector<1x1x128xf32> to vector<128xf32>
    %37 = vector.shape_cast %36 : vector<128xf32> to vector<1x1x128xf32>
    %38 = vector.broadcast %37 : vector<1x1x128xf32> to vector<2x2x128xf32>
    %39 = arith.mulf %34, %38 : vector<2x2x128xf32>
    %40 = arith.addf %32, %39 : vector<2x2x128xf32>
    %c0_32 = arith.constant 0 : index
    %c1_33 = arith.constant 1 : index
    %c2_34 = arith.constant 2 : index
    %c0_35 = arith.constant 0 : index
    %41 = vector.load %arg1[%c0_32, %c1_33, %c2_34, %c0_35] : memref<1x4x4x128xf32, #tpu.memory_space<vmem>>, vector<1x2x2x128xf32>
    %42 = vector.shape_cast %41 : vector<1x2x2x128xf32> to vector<2x2x128xf32>
    %c1_36 = arith.constant 1 : index
    %c2_37 = arith.constant 2 : index
    %c0_38 = arith.constant 0 : index
    %43 = vector.load %arg2[%c1_36, %c2_37, %c0_38] : memref<3x3x128xf32, #tpu.memory_space<vmem>>, vector<1x1x128xf32>
    %44 = vector.shape_cast %43 : vector<1x1x128xf32> to vector<128xf32>
    %45 = vector.shape_cast %44 : vector<128xf32> to vector<1x1x128xf32>
    %46 = vector.broadcast %45 : vector<1x1x128xf32> to vector<2x2x128xf32>
    %47 = arith.mulf %42, %46 : vector<2x2x128xf32>
    %48 = arith.addf %40, %47 : vector<2x2x128xf32>
    %c0_39 = arith.constant 0 : index
    %c2_40 = arith.constant 2 : index
    %c0_41 = arith.constant 0 : index
    %c0_42 = arith.constant 0 : index
    %49 = vector.load %arg1[%c0_39, %c2_40, %c0_41, %c0_42] : memref<1x4x4x128xf32, #tpu.memory_space<vmem>>, vector<1x2x2x128xf32>
    %50 = vector.shape_cast %49 : vector<1x2x2x128xf32> to vector<2x2x128xf32>
    %c2_43 = arith.constant 2 : index
    %c0_44 = arith.constant 0 : index
    %c0_45 = arith.constant 0 : index
    %51 = vector.load %arg2[%c2_43, %c0_44, %c0_45] : memref<3x3x128xf32, #tpu.memory_space<vmem>>, vector<1x1x128xf32>
    %52 = vector.shape_cast %51 : vector<1x1x128xf32> to vector<128xf32>
    %53 = vector.shape_cast %52 : vector<128xf32> to vector<1x1x128xf32>
    %54 = vector.broadcast %53 : vector<1x1x128xf32> to vector<2x2x128xf32>
    %55 = arith.mulf %50, %54 : vector<2x2x128xf32>
    %56 = arith.addf %48, %55 : vector<2x2x128xf32>
    %c0_46 = arith.constant 0 : index
    %c2_47 = arith.constant 2 : index
    %c1_48 = arith.constant 1 : index
    %c0_49 = arith.constant 0 : index
    %57 = vector.load %arg1[%c0_46, %c2_47, %c1_48, %c0_49] : memref<1x4x4x128xf32, #tpu.memory_space<vmem>>, vector<1x2x2x128xf32>
    %58 = vector.shape_cast %57 : vector<1x2x2x128xf32> to vector<2x2x128xf32>
    %c2_50 = arith.constant 2 : index
    %c1_51 = arith.constant 1 : index
    %c0_52 = arith.constant 0 : index
    %59 = vector.load %arg2[%c2_50, %c1_51, %c0_52] : memref<3x3x128xf32, #tpu.memory_space<vmem>>, vector<1x1x128xf32>
    %60 = vector.shape_cast %59 : vector<1x1x128xf32> to vector<128xf32>
    %61 = vector.shape_cast %60 : vector<128xf32> to vector<1x1x128xf32>
    %62 = vector.broadcast %61 : vector<1x1x128xf32> to vector<2x2x128xf32>
    %63 = arith.mulf %58, %62 : vector<2x2x128xf32>
    %64 = arith.addf %56, %63 : vector<2x2x128xf32>
    %c0_53 = arith.constant 0 : index
    %c2_54 = arith.constant 2 : index
    %c2_55 = arith.constant 2 : index
    %c0_56 = arith.constant 0 : index
    %65 = vector.load %arg1[%c0_53, %c2_54, %c2_55, %c0_56] : memref<1x4x4x128xf32, #tpu.memory_space<vmem>>, vector<1x2x2x128xf32>
    %66 = vector.shape_cast %65 : vector<1x2x2x128xf32> to vector<2x2x128xf32>
    %c2_57 = arith.constant 2 : index
    %c2_58 = arith.constant 2 : index
    %c0_59 = arith.constant 0 : index
    %67 = vector.load %arg2[%c2_57, %c2_58, %c0_59] : memref<3x3x128xf32, #tpu.memory_space<vmem>>, vector<1x1x128xf32>
    %68 = vector.shape_cast %67 : vector<1x1x128xf32> to vector<128xf32>
    %69 = vector.shape_cast %68 : vector<128xf32> to vector<1x1x128xf32>
    %70 = vector.broadcast %69 : vector<1x1x128xf32> to vector<2x2x128xf32>
    %71 = arith.mulf %66, %70 : vector<2x2x128xf32>
    %72 = arith.addf %64, %71 : vector<2x2x128xf32>
    %c0_60 = arith.constant 0 : index
    %c0_61 = arith.constant 0 : index
    %73 = vector.load %arg3[%c0_60, %c0_61] : memref<1x128xf32, #tpu.memory_space<vmem>>, vector<1x128xf32>
    %74 = vector.shape_cast %73 : vector<1x128xf32> to vector<128xf32>
    %75 = vector.shape_cast %74 : vector<128xf32> to vector<1x1x128xf32>
    %76 = vector.broadcast %75 : vector<1x1x128xf32> to vector<2x2x128xf32>
    %77 = arith.addf %72, %76 : vector<2x2x128xf32>
    %cst_62 = arith.constant 5.000000e-01 : f32
    %78 = vector.broadcast %cst_62 : f32 to vector<2x2x128xf32>
    %79 = arith.mulf %78, %77 : vector<2x2x128xf32>
    %cst_63 = arith.constant 0.707106769 : f32
    %80 = vector.broadcast %cst_63 : f32 to vector<2x2x128xf32>
    %81 = arith.mulf %77, %80 : vector<2x2x128xf32>
    %82 = math.absf %81 : vector<2x2x128xf32>
    %cst_64 = arith.constant 0.327591091 : f32
    %83 = vector.broadcast %cst_64 : f32 to vector<2x2x128xf32>
    %84 = arith.mulf %83, %82 : vector<2x2x128xf32>
    %cst_65 = arith.constant 1.000000e+00 : f32
    %85 = vector.broadcast %cst_65 : f32 to vector<2x2x128xf32>
    %86 = arith.addf %85, %84 : vector<2x2x128xf32>
    %cst_66 = arith.constant 1.000000e+00 : f32
    %87 = vector.broadcast %cst_66 : f32 to vector<2x2x128xf32>
    %88 = arith.divf %87, %86 : vector<2x2x128xf32>
    %cst_67 = arith.constant 1.06140542 : f32
    %89 = vector.broadcast %cst_67 : f32 to vector<2x2x128xf32>
    %90 = arith.mulf %89, %88 : vector<2x2x128xf32>
    %cst_68 = arith.constant -1.45315206 : f32
    %91 = vector.broadcast %cst_68 : f32 to vector<2x2x128xf32>
    %92 = arith.addf %90, %91 : vector<2x2x128xf32>
    %93 = arith.mulf %92, %88 : vector<2x2x128xf32>
    %cst_69 = arith.constant 1.42141378 : f32
    %94 = vector.broadcast %cst_69 : f32 to vector<2x2x128xf32>
    %95 = arith.addf %93, %94 : vector<2x2x128xf32>
    %96 = arith.mulf %95, %88 : vector<2x2x128xf32>
    %cst_70 = arith.constant -0.284496725 : f32
    %97 = vector.broadcast %cst_70 : f32 to vector<2x2x128xf32>
    %98 = arith.addf %96, %97 : vector<2x2x128xf32>
    %99 = arith.mulf %98, %88 : vector<2x2x128xf32>
    %cst_71 = arith.constant 0.254829586 : f32
    %100 = vector.broadcast %cst_71 : f32 to vector<2x2x128xf32>
    %101 = arith.addf %99, %100 : vector<2x2x128xf32>
    %102 = arith.mulf %101, %88 : vector<2x2x128xf32>
    %cst_72 = arith.constant 0.000000e+00 : f32
    %103 = vector.broadcast %cst_72 : f32 to vector<2x2x128xf32>
    %104 = arith.subf %103, %82 : vector<2x2x128xf32>
    %105 = arith.mulf %104, %82 : vector<2x2x128xf32>
    %106 = math.exp %105 : vector<2x2x128xf32>
    %107 = arith.mulf %102, %106 : vector<2x2x128xf32>
    %cst_73 = arith.constant 1.000000e+00 : f32
    %108 = vector.broadcast %cst_73 : f32 to vector<2x2x128xf32>
    %109 = arith.subf %108, %107 : vector<2x2x128xf32>
    %cst_74 = arith.constant 0.000000e+00 : f32
    %110 = vector.broadcast %cst_74 : f32 to vector<2x2x128xf32>
    %111 = arith.cmpf olt, %81, %110 : vector<2x2x128xf32>
    %cst_75 = arith.constant 0.000000e+00 : f32
    %112 = vector.broadcast %cst_75 : f32 to vector<2x2x128xf32>
    %113 = arith.subf %112, %109 : vector<2x2x128xf32>
    %114 = arith.select %111, %113, %109 : vector<2x2x128xi1>, vector<2x2x128xf32>
    %cst_76 = arith.constant 1.000000e+00 : f32
    %115 = vector.broadcast %cst_76 : f32 to vector<2x2x128xf32>
    %116 = arith.addf %115, %114 : vector<2x2x128xf32>
    %117 = arith.mulf %79, %116 : vector<2x2x128xf32>
    %c0_77 = arith.constant 0 : index
    %c0_78 = arith.constant 0 : index
    %c0_79 = arith.constant 0 : index
    %c0_80 = arith.constant 0 : index
    %118 = vector.load %arg4[%c0_77, %c0_78, %c0_79, %c0_80] : memref<1x2x2x128xf32, #tpu.memory_space<vmem>>, vector<1x2x2x128xf32>
    %119 = vector.shape_cast %118 : vector<1x2x2x128xf32> to vector<2x2x128xf32>
    %120 = vector.shape_cast %117 : vector<2x2x128xf32> to vector<1x2x2x128xf32>
    tpu.vector_store %arg4[%c0_77, %c0_78, %c0_79, %c0_80], %120 {strides = array<i32>} : memref<1x2x2x128xf32, #tpu.memory_space<vmem>>, vector<1x2x2x128xf32>,
    return
  }
  func.func @transform_0(%arg0: i32) -> (i32, i32, i32, i32) {
    %c0_i32 = arith.constant 0 : i32
    %c0_i32_0 = arith.constant 0 : i32
    %c0_i32_1 = arith.constant 0 : i32
    %c0_i32_2 = arith.constant 0 : i32
    return %arg0, %c0_i32, %c0_i32_0, %c0_i32_1 : i32, i32, i32, i32
  }
  func.func @transform_1(%arg0: i32) -> (i32, i32, i32) {
    %c0_i32 = arith.constant 0 : i32
    %c0_i32_0 = arith.constant 0 : i32
    %c0_i32_1 = arith.constant 0 : i32
    %c0_i32_2 = arith.constant 0 : i32
    return %c0_i32, %c0_i32_0, %c0_i32_1 : i32, i32, i32
  }
  func.func @transform_2(%arg0: i32) -> (i32, i32) {
    %c0_i32 = arith.constant 0 : i32
    %c0_i32_0 = arith.constant 0 : i32
    %c0_i32_1 = arith.constant 0 : i32
    return %c0_i32, %c0_i32_0 : i32, i32
  }
  func.func @transform_3(%arg0: i32) -> (i32, i32, i32, i32) {
    %c0_i32 = arith.constant 0 : i32
    %c0_i32_0 = arith.constant 0 : i32
    %c0_i32_1 = arith.constant 0 : i32
    %c0_i32_2 = arith.constant 0 : i32
    return %arg0, %c0_i32, %c0_i32_0, %c0_i32_1 : i32, i32, i32, i32
  }
}

module attributes {stable_mosaic.version = 11 : i64} {
  func.func @_dwconv_gelu_kernel(%arg0: i32, %arg1: memref<1x6x6x128xf32, #tpu.memory_space<vmem>>, %arg2: memref<3x3x128xf32, #tpu.memory_space<vmem>>, %arg3: memref<1x128xf32, #tpu.memory_space<vmem>>, %arg4: memref<1x4x4x128xf32, #tpu.memory_space<vmem>>) attributes {dimension_semantics = [#tpu.dimension_semantics<parallel>], iteration_bounds = array<i64: 2>, scalar_prefetch = 0 : i64, scratch_operands = 0 : i64, tpu.core_type = #tpu.core_type<tc>, window_params = [{transform_indices = @transform_0, window_bounds = array<i64: 1, 6, 6, 128>}, {pipeline_mode = #tpu.pipeline_mode<synchronous>, transform_indices = @transform_1, window_bounds = array<i64: 3, 3, 128>}, {pipeline_mode = #tpu.pipeline_mode<synchronous>, transform_indices = @transform_2, window_bounds = array<i64: 1, 128>}, {transform_indices = @transform_3, window_bounds = array<i64: 1, 4, 4, 128>}]} {
    %cst = arith.constant 0.000000e+00 : f32
    %0 = vector.broadcast %cst : f32 to vector<4x4x128xf32>
    %c0 = arith.constant 0 : index
    %c0_0 = arith.constant 0 : index
    %c0_1 = arith.constant 0 : index
    %c0_2 = arith.constant 0 : index
    %1 = vector.load %arg1[%c0, %c0_0, %c0_1, %c0_2] : memref<1x6x6x128xf32, #tpu.memory_space<vmem>>, vector<1x4x4x128xf32>
    %2 = vector.shape_cast %1 : vector<1x4x4x128xf32> to vector<4x4x128xf32>
    %c0_3 = arith.constant 0 : index
    %c0_4 = arith.constant 0 : index
    %c0_5 = arith.constant 0 : index
    %3 = vector.load %arg2[%c0_3, %c0_4, %c0_5] : memref<3x3x128xf32, #tpu.memory_space<vmem>>, vector<1x1x128xf32>
    %4 = vector.shape_cast %3 : vector<1x1x128xf32> to vector<128xf32>
    %5 = vector.shape_cast %4 : vector<128xf32> to vector<1x1x128xf32>
    %6 = vector.broadcast %5 : vector<1x1x128xf32> to vector<4x4x128xf32>
    %7 = arith.mulf %2, %6 : vector<4x4x128xf32>
    %8 = arith.addf %0, %7 : vector<4x4x128xf32>
    %c0_6 = arith.constant 0 : index
    %c0_7 = arith.constant 0 : index
    %c1 = arith.constant 1 : index
    %c0_8 = arith.constant 0 : index
    %9 = vector.load %arg1[%c0_6, %c0_7, %c1, %c0_8] : memref<1x6x6x128xf32, #tpu.memory_space<vmem>>, vector<1x4x4x128xf32>
    %10 = vector.shape_cast %9 : vector<1x4x4x128xf32> to vector<4x4x128xf32>
    %c0_9 = arith.constant 0 : index
    %c1_10 = arith.constant 1 : index
    %c0_11 = arith.constant 0 : index
    %11 = vector.load %arg2[%c0_9, %c1_10, %c0_11] : memref<3x3x128xf32, #tpu.memory_space<vmem>>, vector<1x1x128xf32>
    %12 = vector.shape_cast %11 : vector<1x1x128xf32> to vector<128xf32>
    %13 = vector.shape_cast %12 : vector<128xf32> to vector<1x1x128xf32>
    %14 = vector.broadcast %13 : vector<1x1x128xf32> to vector<4x4x128xf32>
    %15 = arith.mulf %10, %14 : vector<4x4x128xf32>
    %16 = arith.addf %8, %15 : vector<4x4x128xf32>
    %c0_12 = arith.constant 0 : index
    %c0_13 = arith.constant 0 : index
    %c2 = arith.constant 2 : index
    %c0_14 = arith.constant 0 : index
    %17 = vector.load %arg1[%c0_12, %c0_13, %c2, %c0_14] : memref<1x6x6x128xf32, #tpu.memory_space<vmem>>, vector<1x4x4x128xf32>
    %18 = vector.shape_cast %17 : vector<1x4x4x128xf32> to vector<4x4x128xf32>
    %c0_15 = arith.constant 0 : index
    %c2_16 = arith.constant 2 : index
    %c0_17 = arith.constant 0 : index
    %19 = vector.load %arg2[%c0_15, %c2_16, %c0_17] : memref<3x3x128xf32, #tpu.memory_space<vmem>>, vector<1x1x128xf32>
    %20 = vector.shape_cast %19 : vector<1x1x128xf32> to vector<128xf32>
    %21 = vector.shape_cast %20 : vector<128xf32> to vector<1x1x128xf32>
    %22 = vector.broadcast %21 : vector<1x1x128xf32> to vector<4x4x128xf32>
    %23 = arith.mulf %18, %22 : vector<4x4x128xf32>
    %24 = arith.addf %16, %23 : vector<4x4x128xf32>
    %c0_18 = arith.constant 0 : index
    %c1_19 = arith.constant 1 : index
    %c0_20 = arith.constant 0 : index
    %c0_21 = arith.constant 0 : index
    %25 = vector.load %arg1[%c0_18, %c1_19, %c0_20, %c0_21] : memref<1x6x6x128xf32, #tpu.memory_space<vmem>>, vector<1x4x4x128xf32>
    %26 = vector.shape_cast %25 : vector<1x4x4x128xf32> to vector<4x4x128xf32>
    %c1_22 = arith.constant 1 : index
    %c0_23 = arith.constant 0 : index
    %c0_24 = arith.constant 0 : index
    %27 = vector.load %arg2[%c1_22, %c0_23, %c0_24] : memref<3x3x128xf32, #tpu.memory_space<vmem>>, vector<1x1x128xf32>
    %28 = vector.shape_cast %27 : vector<1x1x128xf32> to vector<128xf32>
    %29 = vector.shape_cast %28 : vector<128xf32> to vector<1x1x128xf32>
    %30 = vector.broadcast %29 : vector<1x1x128xf32> to vector<4x4x128xf32>
    %31 = arith.mulf %26, %30 : vector<4x4x128xf32>
    %32 = arith.addf %24, %31 : vector<4x4x128xf32>
    %c0_25 = arith.constant 0 : index
    %c1_26 = arith.constant 1 : index
    %c1_27 = arith.constant 1 : index
    %c0_28 = arith.constant 0 : index
    %33 = vector.load %arg1[%c0_25, %c1_26, %c1_27, %c0_28] : memref<1x6x6x128xf32, #tpu.memory_space<vmem>>, vector<1x4x4x128xf32>
    %34 = vector.shape_cast %33 : vector<1x4x4x128xf32> to vector<4x4x128xf32>
    %c1_29 = arith.constant 1 : index
    %c1_30 = arith.constant 1 : index
    %c0_31 = arith.constant 0 : index
    %35 = vector.load %arg2[%c1_29, %c1_30, %c0_31] : memref<3x3x128xf32, #tpu.memory_space<vmem>>, vector<1x1x128xf32>
    %36 = vector.shape_cast %35 : vector<1x1x128xf32> to vector<128xf32>
    %37 = vector.shape_cast %36 : vector<128xf32> to vector<1x1x128xf32>
    %38 = vector.broadcast %37 : vector<1x1x128xf32> to vector<4x4x128xf32>
    %39 = arith.mulf %34, %38 : vector<4x4x128xf32>
    %40 = arith.addf %32, %39 : vector<4x4x128xf32>
    %c0_32 = arith.constant 0 : index
    %c1_33 = arith.constant 1 : index
    %c2_34 = arith.constant 2 : index
    %c0_35 = arith.constant 0 : index
    %41 = vector.load %arg1[%c0_32, %c1_33, %c2_34, %c0_35] : memref<1x6x6x128xf32, #tpu.memory_space<vmem>>, vector<1x4x4x128xf32>
    %42 = vector.shape_cast %41 : vector<1x4x4x128xf32> to vector<4x4x128xf32>
    %c1_36 = arith.constant 1 : index
    %c2_37 = arith.constant 2 : index
    %c0_38 = arith.constant 0 : index
    %43 = vector.load %arg2[%c1_36, %c2_37, %c0_38] : memref<3x3x128xf32, #tpu.memory_space<vmem>>, vector<1x1x128xf32>
    %44 = vector.shape_cast %43 : vector<1x1x128xf32> to vector<128xf32>
    %45 = vector.shape_cast %44 : vector<128xf32> to vector<1x1x128xf32>
    %46 = vector.broadcast %45 : vector<1x1x128xf32> to vector<4x4x128xf32>
    %47 = arith.mulf %42, %46 : vector<4x4x128xf32>
    %48 = arith.addf %40, %47 : vector<4x4x128xf32>
    %c0_39 = arith.constant 0 : index
    %c2_40 = arith.constant 2 : index
    %c0_41 = arith.constant 0 : index
    %c0_42 = arith.constant 0 : index
    %49 = vector.load %arg1[%c0_39, %c2_40, %c0_41, %c0_42] : memref<1x6x6x128xf32, #tpu.memory_space<vmem>>, vector<1x4x4x128xf32>
    %50 = vector.shape_cast %49 : vector<1x4x4x128xf32> to vector<4x4x128xf32>
    %c2_43 = arith.constant 2 : index
    %c0_44 = arith.constant 0 : index
    %c0_45 = arith.constant 0 : index
    %51 = vector.load %arg2[%c2_43, %c0_44, %c0_45] : memref<3x3x128xf32, #tpu.memory_space<vmem>>, vector<1x1x128xf32>
    %52 = vector.shape_cast %51 : vector<1x1x128xf32> to vector<128xf32>
    %53 = vector.shape_cast %52 : vector<128xf32> to vector<1x1x128xf32>
    %54 = vector.broadcast %53 : vector<1x1x128xf32> to vector<4x4x128xf32>
    %55 = arith.mulf %50, %54 : vector<4x4x128xf32>
    %56 = arith.addf %48, %55 : vector<4x4x128xf32>
    %c0_46 = arith.constant 0 : index
    %c2_47 = arith.constant 2 : index
    %c1_48 = arith.constant 1 : index
    %c0_49 = arith.constant 0 : index
    %57 = vector.load %arg1[%c0_46, %c2_47, %c1_48, %c0_49] : memref<1x6x6x128xf32, #tpu.memory_space<vmem>>, vector<1x4x4x128xf32>
    %58 = vector.shape_cast %57 : vector<1x4x4x128xf32> to vector<4x4x128xf32>
    %c2_50 = arith.constant 2 : index
    %c1_51 = arith.constant 1 : index
    %c0_52 = arith.constant 0 : index
    %59 = vector.load %arg2[%c2_50, %c1_51, %c0_52] : memref<3x3x128xf32, #tpu.memory_space<vmem>>, vector<1x1x128xf32>
    %60 = vector.shape_cast %59 : vector<1x1x128xf32> to vector<128xf32>
    %61 = vector.shape_cast %60 : vector<128xf32> to vector<1x1x128xf32>
    %62 = vector.broadcast %61 : vector<1x1x128xf32> to vector<4x4x128xf32>
    %63 = arith.mulf %58, %62 : vector<4x4x128xf32>
    %64 = arith.addf %56, %63 : vector<4x4x128xf32>
    %c0_53 = arith.constant 0 : index
    %c2_54 = arith.constant 2 : index
    %c2_55 = arith.constant 2 : index
    %c0_56 = arith.constant 0 : index
    %65 = vector.load %arg1[%c0_53, %c2_54, %c2_55, %c0_56] : memref<1x6x6x128xf32, #tpu.memory_space<vmem>>, vector<1x4x4x128xf32>
    %66 = vector.shape_cast %65 : vector<1x4x4x128xf32> to vector<4x4x128xf32>
    %c2_57 = arith.constant 2 : index
    %c2_58 = arith.constant 2 : index
    %c0_59 = arith.constant 0 : index
    %67 = vector.load %arg2[%c2_57, %c2_58, %c0_59] : memref<3x3x128xf32, #tpu.memory_space<vmem>>, vector<1x1x128xf32>
    %68 = vector.shape_cast %67 : vector<1x1x128xf32> to vector<128xf32>
    %69 = vector.shape_cast %68 : vector<128xf32> to vector<1x1x128xf32>
    %70 = vector.broadcast %69 : vector<1x1x128xf32> to vector<4x4x128xf32>
    %71 = arith.mulf %66, %70 : vector<4x4x128xf32>
    %72 = arith.addf %64, %71 : vector<4x4x128xf32>
    %c0_60 = arith.constant 0 : index
    %c0_61 = arith.constant 0 : index
    %73 = vector.load %arg3[%c0_60, %c0_61] : memref<1x128xf32, #tpu.memory_space<vmem>>, vector<1x128xf32>
    %74 = vector.shape_cast %73 : vector<1x128xf32> to vector<128xf32>
    %75 = vector.shape_cast %74 : vector<128xf32> to vector<1x1x128xf32>
    %76 = vector.broadcast %75 : vector<1x1x128xf32> to vector<4x4x128xf32>
    %77 = arith.addf %72, %76 : vector<4x4x128xf32>
    %cst_62 = arith.constant 5.000000e-01 : f32
    %78 = vector.broadcast %cst_62 : f32 to vector<4x4x128xf32>
    %79 = arith.mulf %78, %77 : vector<4x4x128xf32>
    %cst_63 = arith.constant 0.707106769 : f32
    %80 = vector.broadcast %cst_63 : f32 to vector<4x4x128xf32>
    %81 = arith.mulf %77, %80 : vector<4x4x128xf32>
    %82 = math.absf %81 : vector<4x4x128xf32>
    %cst_64 = arith.constant 0.327591091 : f32
    %83 = vector.broadcast %cst_64 : f32 to vector<4x4x128xf32>
    %84 = arith.mulf %83, %82 : vector<4x4x128xf32>
    %cst_65 = arith.constant 1.000000e+00 : f32
    %85 = vector.broadcast %cst_65 : f32 to vector<4x4x128xf32>
    %86 = arith.addf %85, %84 : vector<4x4x128xf32>
    %cst_66 = arith.constant 1.000000e+00 : f32
    %87 = vector.broadcast %cst_66 : f32 to vector<4x4x128xf32>
    %88 = arith.divf %87, %86 : vector<4x4x128xf32>
    %cst_67 = arith.constant 1.06140542 : f32
    %89 = vector.broadcast %cst_67 : f32 to vector<4x4x128xf32>
    %90 = arith.mulf %89, %88 : vector<4x4x128xf32>
    %cst_68 = arith.constant -1.45315206 : f32
    %91 = vector.broadcast %cst_68 : f32 to vector<4x4x128xf32>
    %92 = arith.addf %90, %91 : vector<4x4x128xf32>
    %93 = arith.mulf %92, %88 : vector<4x4x128xf32>
    %cst_69 = arith.constant 1.42141378 : f32
    %94 = vector.broadcast %cst_69 : f32 to vector<4x4x128xf32>
    %95 = arith.addf %93, %94 : vector<4x4x128xf32>
    %96 = arith.mulf %95, %88 : vector<4x4x128xf32>
    %cst_70 = arith.constant -0.284496725 : f32
    %97 = vector.broadcast %cst_70 : f32 to vector<4x4x128xf32>
    %98 = arith.addf %96, %97 : vector<4x4x128xf32>
    %99 = arith.mulf %98, %88 : vector<4x4x128xf32>
    %cst_71 = arith.constant 0.254829586 : f32
    %100 = vector.broadcast %cst_71 : f32 to vector<4x4x128xf32>
    %101 = arith.addf %99, %100 : vector<4x4x128xf32>
    %102 = arith.mulf %101, %88 : vector<4x4x128xf32>
    %cst_72 = arith.constant 0.000000e+00 : f32
    %103 = vector.broadcast %cst_72 : f32 to vector<4x4x128xf32>
    %104 = arith.subf %103, %82 : vector<4x4x128xf32>
    %105 = arith.mulf %104, %82 : vector<4x4x128xf32>
    %106 = math.exp %105 : vector<4x4x128xf32>
    %107 = arith.mulf %102, %106 : vector<4x4x128xf32>
    %cst_73 = arith.constant 1.000000e+00 : f32
    %108 = vector.broadcast %cst_73 : f32 to vector<4x4x128xf32>
    %109 = arith.subf %108, %107 : vector<4x4x128xf32>
    %cst_74 = arith.constant 0.000000e+00 : f32
    %110 = vector.broadcast %cst_74 : f32 to vector<4x4x128xf32>
    %111 = arith.cmpf olt, %81, %110 : vector<4x4x128xf32>
    %cst_75 = arith.constant 0.000000e+00 : f32
    %112 = vector.broadcast %cst_75 : f32 to vector<4x4x128xf32>
    %113 = arith.subf %112, %109 : vector<4x4x128xf32>
    %114 = arith.select %111, %113, %109 : vector<4x4x128xi1>, vector<4x4x128xf32>
    %cst_76 = arith.constant 1.000000e+00 : f32
    %115 = vector.broadcast %cst_76 : f32 to vector<4x4x128xf32>
    %116 = arith.addf %115, %114 : vector<4x4x128xf32>
    %117 = arith.mulf %79, %116 : vector<4x4x128xf32>
    %c0_77 = arith.constant 0 : index
    %c0_78 = arith.constant 0 : index
    %c0_79 = arith.constant 0 : index
    %c0_80 = arith.constant 0 : index
    %118 = vector.load %arg4[%c0_77, %c0_78, %c0_79, %c0_80] : memref<1x4x4x128xf32, #tpu.memory_space<vmem>>, vector<1x4x4x128xf32>
    %119 = vector.shape_cast %118 : vector<1x4x4x128xf32> to vector<4x4x128xf32>
    %120 = vector.shape_cast %117 : vector<4x4x128xf32> to vector<1x4x4x128xf32>
    tpu.vector_store %arg4[%c0_77, %c0_78, %c0_79, %c0_80], %120 {strides = array<i32>} : memref<1x4x4x128xf32, #tpu.memory_space<vmem>>, vector<1x4x4x128xf32>,
    return
  }
  func.func @transform_0(%arg0: i32) -> (i32, i32, i32, i32) {
    %c0_i32 = arith.constant 0 : i32
    %c0_i32_0 = arith.constant 0 : i32
    %c0_i32_1 = arith.constant 0 : i32
    %c0_i32_2 = arith.constant 0 : i32
    return %arg0, %c0_i32, %c0_i32_0, %c0_i32_1 : i32, i32, i32, i32
  }
  func.func @transform_1(%arg0: i32) -> (i32, i32, i32) {
    %c0_i32 = arith.constant 0 : i32
    %c0_i32_0 = arith.constant 0 : i32
    %c0_i32_1 = arith.constant 0 : i32
    %c0_i32_2 = arith.constant 0 : i32
    return %c0_i32, %c0_i32_0, %c0_i32_1 : i32, i32, i32
  }
  func.func @transform_2(%arg0: i32) -> (i32, i32) {
    %c0_i32 = arith.constant 0 : i32
    %c0_i32_0 = arith.constant 0 : i32
    %c0_i32_1 = arith.constant 0 : i32
    return %c0_i32, %c0_i32_0 : i32, i32
  }
  func.func @transform_3(%arg0: i32) -> (i32, i32, i32, i32) {
    %c0_i32 = arith.constant 0 : i32
    %c0_i32_0 = arith.constant 0 : i32
    %c0_i32_1 = arith.constant 0 : i32
    %c0_i32_2 = arith.constant 0 : i32
    return %arg0, %c0_i32, %c0_i32_0, %c0_i32_1 : i32, i32, i32, i32
  }
}

module attributes {stable_mosaic.version = 11 : i64} {
  func.func @_dwconv_gelu_kernel(%arg0: i32, %arg1: memref<1x10x10x128xf32, #tpu.memory_space<vmem>>, %arg2: memref<3x3x128xf32, #tpu.memory_space<vmem>>, %arg3: memref<1x128xf32, #tpu.memory_space<vmem>>, %arg4: memref<1x8x8x128xf32, #tpu.memory_space<vmem>>) attributes {dimension_semantics = [#tpu.dimension_semantics<parallel>], iteration_bounds = array<i64: 2>, scalar_prefetch = 0 : i64, scratch_operands = 0 : i64, tpu.core_type = #tpu.core_type<tc>, window_params = [{transform_indices = @transform_0, window_bounds = array<i64: 1, 10, 10, 128>}, {pipeline_mode = #tpu.pipeline_mode<synchronous>, transform_indices = @transform_1, window_bounds = array<i64: 3, 3, 128>}, {pipeline_mode = #tpu.pipeline_mode<synchronous>, transform_indices = @transform_2, window_bounds = array<i64: 1, 128>}, {transform_indices = @transform_3, window_bounds = array<i64: 1, 8, 8, 128>}]} {
    %cst = arith.constant 0.000000e+00 : f32
    %0 = vector.broadcast %cst : f32 to vector<8x8x128xf32>
    %c0 = arith.constant 0 : index
    %c0_0 = arith.constant 0 : index
    %c0_1 = arith.constant 0 : index
    %c0_2 = arith.constant 0 : index
    %1 = vector.load %arg1[%c0, %c0_0, %c0_1, %c0_2] : memref<1x10x10x128xf32, #tpu.memory_space<vmem>>, vector<1x8x8x128xf32>
    %2 = vector.shape_cast %1 : vector<1x8x8x128xf32> to vector<8x8x128xf32>
    %c0_3 = arith.constant 0 : index
    %c0_4 = arith.constant 0 : index
    %c0_5 = arith.constant 0 : index
    %3 = vector.load %arg2[%c0_3, %c0_4, %c0_5] : memref<3x3x128xf32, #tpu.memory_space<vmem>>, vector<1x1x128xf32>
    %4 = vector.shape_cast %3 : vector<1x1x128xf32> to vector<128xf32>
    %5 = vector.shape_cast %4 : vector<128xf32> to vector<1x1x128xf32>
    %6 = vector.broadcast %5 : vector<1x1x128xf32> to vector<8x8x128xf32>
    %7 = arith.mulf %2, %6 : vector<8x8x128xf32>
    %8 = arith.addf %0, %7 : vector<8x8x128xf32>
    %c0_6 = arith.constant 0 : index
    %c0_7 = arith.constant 0 : index
    %c1 = arith.constant 1 : index
    %c0_8 = arith.constant 0 : index
    %9 = vector.load %arg1[%c0_6, %c0_7, %c1, %c0_8] : memref<1x10x10x128xf32, #tpu.memory_space<vmem>>, vector<1x8x8x128xf32>
    %10 = vector.shape_cast %9 : vector<1x8x8x128xf32> to vector<8x8x128xf32>
    %c0_9 = arith.constant 0 : index
    %c1_10 = arith.constant 1 : index
    %c0_11 = arith.constant 0 : index
    %11 = vector.load %arg2[%c0_9, %c1_10, %c0_11] : memref<3x3x128xf32, #tpu.memory_space<vmem>>, vector<1x1x128xf32>
    %12 = vector.shape_cast %11 : vector<1x1x128xf32> to vector<128xf32>
    %13 = vector.shape_cast %12 : vector<128xf32> to vector<1x1x128xf32>
    %14 = vector.broadcast %13 : vector<1x1x128xf32> to vector<8x8x128xf32>
    %15 = arith.mulf %10, %14 : vector<8x8x128xf32>
    %16 = arith.addf %8, %15 : vector<8x8x128xf32>
    %c0_12 = arith.constant 0 : index
    %c0_13 = arith.constant 0 : index
    %c2 = arith.constant 2 : index
    %c0_14 = arith.constant 0 : index
    %17 = vector.load %arg1[%c0_12, %c0_13, %c2, %c0_14] : memref<1x10x10x128xf32, #tpu.memory_space<vmem>>, vector<1x8x8x128xf32>
    %18 = vector.shape_cast %17 : vector<1x8x8x128xf32> to vector<8x8x128xf32>
    %c0_15 = arith.constant 0 : index
    %c2_16 = arith.constant 2 : index
    %c0_17 = arith.constant 0 : index
    %19 = vector.load %arg2[%c0_15, %c2_16, %c0_17] : memref<3x3x128xf32, #tpu.memory_space<vmem>>, vector<1x1x128xf32>
    %20 = vector.shape_cast %19 : vector<1x1x128xf32> to vector<128xf32>
    %21 = vector.shape_cast %20 : vector<128xf32> to vector<1x1x128xf32>
    %22 = vector.broadcast %21 : vector<1x1x128xf32> to vector<8x8x128xf32>
    %23 = arith.mulf %18, %22 : vector<8x8x128xf32>
    %24 = arith.addf %16, %23 : vector<8x8x128xf32>
    %c0_18 = arith.constant 0 : index
    %c1_19 = arith.constant 1 : index
    %c0_20 = arith.constant 0 : index
    %c0_21 = arith.constant 0 : index
    %25 = vector.load %arg1[%c0_18, %c1_19, %c0_20, %c0_21] : memref<1x10x10x128xf32, #tpu.memory_space<vmem>>, vector<1x8x8x128xf32>
    %26 = vector.shape_cast %25 : vector<1x8x8x128xf32> to vector<8x8x128xf32>
    %c1_22 = arith.constant 1 : index
    %c0_23 = arith.constant 0 : index
    %c0_24 = arith.constant 0 : index
    %27 = vector.load %arg2[%c1_22, %c0_23, %c0_24] : memref<3x3x128xf32, #tpu.memory_space<vmem>>, vector<1x1x128xf32>
    %28 = vector.shape_cast %27 : vector<1x1x128xf32> to vector<128xf32>
    %29 = vector.shape_cast %28 : vector<128xf32> to vector<1x1x128xf32>
    %30 = vector.broadcast %29 : vector<1x1x128xf32> to vector<8x8x128xf32>
    %31 = arith.mulf %26, %30 : vector<8x8x128xf32>
    %32 = arith.addf %24, %31 : vector<8x8x128xf32>
    %c0_25 = arith.constant 0 : index
    %c1_26 = arith.constant 1 : index
    %c1_27 = arith.constant 1 : index
    %c0_28 = arith.constant 0 : index
    %33 = vector.load %arg1[%c0_25, %c1_26, %c1_27, %c0_28] : memref<1x10x10x128xf32, #tpu.memory_space<vmem>>, vector<1x8x8x128xf32>
    %34 = vector.shape_cast %33 : vector<1x8x8x128xf32> to vector<8x8x128xf32>
    %c1_29 = arith.constant 1 : index
    %c1_30 = arith.constant 1 : index
    %c0_31 = arith.constant 0 : index
    %35 = vector.load %arg2[%c1_29, %c1_30, %c0_31] : memref<3x3x128xf32, #tpu.memory_space<vmem>>, vector<1x1x128xf32>
    %36 = vector.shape_cast %35 : vector<1x1x128xf32> to vector<128xf32>
    %37 = vector.shape_cast %36 : vector<128xf32> to vector<1x1x128xf32>
    %38 = vector.broadcast %37 : vector<1x1x128xf32> to vector<8x8x128xf32>
    %39 = arith.mulf %34, %38 : vector<8x8x128xf32>
    %40 = arith.addf %32, %39 : vector<8x8x128xf32>
    %c0_32 = arith.constant 0 : index
    %c1_33 = arith.constant 1 : index
    %c2_34 = arith.constant 2 : index
    %c0_35 = arith.constant 0 : index
    %41 = vector.load %arg1[%c0_32, %c1_33, %c2_34, %c0_35] : memref<1x10x10x128xf32, #tpu.memory_space<vmem>>, vector<1x8x8x128xf32>
    %42 = vector.shape_cast %41 : vector<1x8x8x128xf32> to vector<8x8x128xf32>
    %c1_36 = arith.constant 1 : index
    %c2_37 = arith.constant 2 : index
    %c0_38 = arith.constant 0 : index
    %43 = vector.load %arg2[%c1_36, %c2_37, %c0_38] : memref<3x3x128xf32, #tpu.memory_space<vmem>>, vector<1x1x128xf32>
    %44 = vector.shape_cast %43 : vector<1x1x128xf32> to vector<128xf32>
    %45 = vector.shape_cast %44 : vector<128xf32> to vector<1x1x128xf32>
    %46 = vector.broadcast %45 : vector<1x1x128xf32> to vector<8x8x128xf32>
    %47 = arith.mulf %42, %46 : vector<8x8x128xf32>
    %48 = arith.addf %40, %47 : vector<8x8x128xf32>
    %c0_39 = arith.constant 0 : index
    %c2_40 = arith.constant 2 : index
    %c0_41 = arith.constant 0 : index
    %c0_42 = arith.constant 0 : index
    %49 = vector.load %arg1[%c0_39, %c2_40, %c0_41, %c0_42] : memref<1x10x10x128xf32, #tpu.memory_space<vmem>>, vector<1x8x8x128xf32>
    %50 = vector.shape_cast %49 : vector<1x8x8x128xf32> to vector<8x8x128xf32>
    %c2_43 = arith.constant 2 : index
    %c0_44 = arith.constant 0 : index
    %c0_45 = arith.constant 0 : index
    %51 = vector.load %arg2[%c2_43, %c0_44, %c0_45] : memref<3x3x128xf32, #tpu.memory_space<vmem>>, vector<1x1x128xf32>
    %52 = vector.shape_cast %51 : vector<1x1x128xf32> to vector<128xf32>
    %53 = vector.shape_cast %52 : vector<128xf32> to vector<1x1x128xf32>
    %54 = vector.broadcast %53 : vector<1x1x128xf32> to vector<8x8x128xf32>
    %55 = arith.mulf %50, %54 : vector<8x8x128xf32>
    %56 = arith.addf %48, %55 : vector<8x8x128xf32>
    %c0_46 = arith.constant 0 : index
    %c2_47 = arith.constant 2 : index
    %c1_48 = arith.constant 1 : index
    %c0_49 = arith.constant 0 : index
    %57 = vector.load %arg1[%c0_46, %c2_47, %c1_48, %c0_49] : memref<1x10x10x128xf32, #tpu.memory_space<vmem>>, vector<1x8x8x128xf32>
    %58 = vector.shape_cast %57 : vector<1x8x8x128xf32> to vector<8x8x128xf32>
    %c2_50 = arith.constant 2 : index
    %c1_51 = arith.constant 1 : index
    %c0_52 = arith.constant 0 : index
    %59 = vector.load %arg2[%c2_50, %c1_51, %c0_52] : memref<3x3x128xf32, #tpu.memory_space<vmem>>, vector<1x1x128xf32>
    %60 = vector.shape_cast %59 : vector<1x1x128xf32> to vector<128xf32>
    %61 = vector.shape_cast %60 : vector<128xf32> to vector<1x1x128xf32>
    %62 = vector.broadcast %61 : vector<1x1x128xf32> to vector<8x8x128xf32>
    %63 = arith.mulf %58, %62 : vector<8x8x128xf32>
    %64 = arith.addf %56, %63 : vector<8x8x128xf32>
    %c0_53 = arith.constant 0 : index
    %c2_54 = arith.constant 2 : index
    %c2_55 = arith.constant 2 : index
    %c0_56 = arith.constant 0 : index
    %65 = vector.load %arg1[%c0_53, %c2_54, %c2_55, %c0_56] : memref<1x10x10x128xf32, #tpu.memory_space<vmem>>, vector<1x8x8x128xf32>
    %66 = vector.shape_cast %65 : vector<1x8x8x128xf32> to vector<8x8x128xf32>
    %c2_57 = arith.constant 2 : index
    %c2_58 = arith.constant 2 : index
    %c0_59 = arith.constant 0 : index
    %67 = vector.load %arg2[%c2_57, %c2_58, %c0_59] : memref<3x3x128xf32, #tpu.memory_space<vmem>>, vector<1x1x128xf32>
    %68 = vector.shape_cast %67 : vector<1x1x128xf32> to vector<128xf32>
    %69 = vector.shape_cast %68 : vector<128xf32> to vector<1x1x128xf32>
    %70 = vector.broadcast %69 : vector<1x1x128xf32> to vector<8x8x128xf32>
    %71 = arith.mulf %66, %70 : vector<8x8x128xf32>
    %72 = arith.addf %64, %71 : vector<8x8x128xf32>
    %c0_60 = arith.constant 0 : index
    %c0_61 = arith.constant 0 : index
    %73 = vector.load %arg3[%c0_60, %c0_61] : memref<1x128xf32, #tpu.memory_space<vmem>>, vector<1x128xf32>
    %74 = vector.shape_cast %73 : vector<1x128xf32> to vector<128xf32>
    %75 = vector.shape_cast %74 : vector<128xf32> to vector<1x1x128xf32>
    %76 = vector.broadcast %75 : vector<1x1x128xf32> to vector<8x8x128xf32>
    %77 = arith.addf %72, %76 : vector<8x8x128xf32>
    %cst_62 = arith.constant 5.000000e-01 : f32
    %78 = vector.broadcast %cst_62 : f32 to vector<8x8x128xf32>
    %79 = arith.mulf %78, %77 : vector<8x8x128xf32>
    %cst_63 = arith.constant 0.707106769 : f32
    %80 = vector.broadcast %cst_63 : f32 to vector<8x8x128xf32>
    %81 = arith.mulf %77, %80 : vector<8x8x128xf32>
    %82 = math.absf %81 : vector<8x8x128xf32>
    %cst_64 = arith.constant 0.327591091 : f32
    %83 = vector.broadcast %cst_64 : f32 to vector<8x8x128xf32>
    %84 = arith.mulf %83, %82 : vector<8x8x128xf32>
    %cst_65 = arith.constant 1.000000e+00 : f32
    %85 = vector.broadcast %cst_65 : f32 to vector<8x8x128xf32>
    %86 = arith.addf %85, %84 : vector<8x8x128xf32>
    %cst_66 = arith.constant 1.000000e+00 : f32
    %87 = vector.broadcast %cst_66 : f32 to vector<8x8x128xf32>
    %88 = arith.divf %87, %86 : vector<8x8x128xf32>
    %cst_67 = arith.constant 1.06140542 : f32
    %89 = vector.broadcast %cst_67 : f32 to vector<8x8x128xf32>
    %90 = arith.mulf %89, %88 : vector<8x8x128xf32>
    %cst_68 = arith.constant -1.45315206 : f32
    %91 = vector.broadcast %cst_68 : f32 to vector<8x8x128xf32>
    %92 = arith.addf %90, %91 : vector<8x8x128xf32>
    %93 = arith.mulf %92, %88 : vector<8x8x128xf32>
    %cst_69 = arith.constant 1.42141378 : f32
    %94 = vector.broadcast %cst_69 : f32 to vector<8x8x128xf32>
    %95 = arith.addf %93, %94 : vector<8x8x128xf32>
    %96 = arith.mulf %95, %88 : vector<8x8x128xf32>
    %cst_70 = arith.constant -0.284496725 : f32
    %97 = vector.broadcast %cst_70 : f32 to vector<8x8x128xf32>
    %98 = arith.addf %96, %97 : vector<8x8x128xf32>
    %99 = arith.mulf %98, %88 : vector<8x8x128xf32>
    %cst_71 = arith.constant 0.254829586 : f32
    %100 = vector.broadcast %cst_71 : f32 to vector<8x8x128xf32>
    %101 = arith.addf %99, %100 : vector<8x8x128xf32>
    %102 = arith.mulf %101, %88 : vector<8x8x128xf32>
    %cst_72 = arith.constant 0.000000e+00 : f32
    %103 = vector.broadcast %cst_72 : f32 to vector<8x8x128xf32>
    %104 = arith.subf %103, %82 : vector<8x8x128xf32>
    %105 = arith.mulf %104, %82 : vector<8x8x128xf32>
    %106 = math.exp %105 : vector<8x8x128xf32>
    %107 = arith.mulf %102, %106 : vector<8x8x128xf32>
    %cst_73 = arith.constant 1.000000e+00 : f32
    %108 = vector.broadcast %cst_73 : f32 to vector<8x8x128xf32>
    %109 = arith.subf %108, %107 : vector<8x8x128xf32>
    %cst_74 = arith.constant 0.000000e+00 : f32
    %110 = vector.broadcast %cst_74 : f32 to vector<8x8x128xf32>
    %111 = arith.cmpf olt, %81, %110 : vector<8x8x128xf32>
    %cst_75 = arith.constant 0.000000e+00 : f32
    %112 = vector.broadcast %cst_75 : f32 to vector<8x8x128xf32>
    %113 = arith.subf %112, %109 : vector<8x8x128xf32>
    %114 = arith.select %111, %113, %109 : vector<8x8x128xi1>, vector<8x8x128xf32>
    %cst_76 = arith.constant 1.000000e+00 : f32
    %115 = vector.broadcast %cst_76 : f32 to vector<8x8x128xf32>
    %116 = arith.addf %115, %114 : vector<8x8x128xf32>
    %117 = arith.mulf %79, %116 : vector<8x8x128xf32>
    %c0_77 = arith.constant 0 : index
    %c0_78 = arith.constant 0 : index
    %c0_79 = arith.constant 0 : index
    %c0_80 = arith.constant 0 : index
    %118 = vector.load %arg4[%c0_77, %c0_78, %c0_79, %c0_80] : memref<1x8x8x128xf32, #tpu.memory_space<vmem>>, vector<1x8x8x128xf32>
    %119 = vector.shape_cast %118 : vector<1x8x8x128xf32> to vector<8x8x128xf32>
    %120 = vector.shape_cast %117 : vector<8x8x128xf32> to vector<1x8x8x128xf32>
    tpu.vector_store %arg4[%c0_77, %c0_78, %c0_79, %c0_80], %120 {strides = array<i32>} : memref<1x8x8x128xf32, #tpu.memory_space<vmem>>, vector<1x8x8x128xf32>,
    return
  }
  func.func @transform_0(%arg0: i32) -> (i32, i32, i32, i32) {
    %c0_i32 = arith.constant 0 : i32
    %c0_i32_0 = arith.constant 0 : i32
    %c0_i32_1 = arith.constant 0 : i32
    %c0_i32_2 = arith.constant 0 : i32
    return %arg0, %c0_i32, %c0_i32_0, %c0_i32_1 : i32, i32, i32, i32
  }
  func.func @transform_1(%arg0: i32) -> (i32, i32, i32) {
    %c0_i32 = arith.constant 0 : i32
    %c0_i32_0 = arith.constant 0 : i32
    %c0_i32_1 = arith.constant 0 : i32
    %c0_i32_2 = arith.constant 0 : i32
    return %c0_i32, %c0_i32_0, %c0_i32_1 : i32, i32, i32
  }
  func.func @transform_2(%arg0: i32) -> (i32, i32) {
    %c0_i32 = arith.constant 0 : i32
    %c0_i32_0 = arith.constant 0 : i32
    %c0_i32_1 = arith.constant 0 : i32
    return %c0_i32, %c0_i32_0 : i32, i32
  }
  func.func @transform_3(%arg0: i32) -> (i32, i32, i32, i32) {
    %c0_i32 = arith.constant 0 : i32
    %c0_i32_0 = arith.constant 0 : i32
    %c0_i32_1 = arith.constant 0 : i32
    %c0_i32_2 = arith.constant 0 : i32
    return %arg0, %c0_i32, %c0_i32_0, %c0_i32_1 : i32, i32, i32, i32
  }
}

module attributes {stable_mosaic.version = 11 : i64} {
  func.func @_dwconv_gelu_kernel(%arg0: i32, %arg1: memref<1x18x18x128xf32, #tpu.memory_space<vmem>>, %arg2: memref<3x3x128xf32, #tpu.memory_space<vmem>>, %arg3: memref<1x128xf32, #tpu.memory_space<vmem>>, %arg4: memref<1x16x16x128xf32, #tpu.memory_space<vmem>>) attributes {dimension_semantics = [#tpu.dimension_semantics<parallel>], iteration_bounds = array<i64: 2>, scalar_prefetch = 0 : i64, scratch_operands = 0 : i64, tpu.core_type = #tpu.core_type<tc>, window_params = [{transform_indices = @transform_0, window_bounds = array<i64: 1, 18, 18, 128>}, {pipeline_mode = #tpu.pipeline_mode<synchronous>, transform_indices = @transform_1, window_bounds = array<i64: 3, 3, 128>}, {pipeline_mode = #tpu.pipeline_mode<synchronous>, transform_indices = @transform_2, window_bounds = array<i64: 1, 128>}, {transform_indices = @transform_3, window_bounds = array<i64: 1, 16, 16, 128>}]} {
    %cst = arith.constant 0.000000e+00 : f32
    %0 = vector.broadcast %cst : f32 to vector<16x16x128xf32>
    %c0 = arith.constant 0 : index
    %c0_0 = arith.constant 0 : index
    %c0_1 = arith.constant 0 : index
    %c0_2 = arith.constant 0 : index
    %1 = vector.load %arg1[%c0, %c0_0, %c0_1, %c0_2] : memref<1x18x18x128xf32, #tpu.memory_space<vmem>>, vector<1x16x16x128xf32>
    %2 = vector.shape_cast %1 : vector<1x16x16x128xf32> to vector<16x16x128xf32>
    %c0_3 = arith.constant 0 : index
    %c0_4 = arith.constant 0 : index
    %c0_5 = arith.constant 0 : index
    %3 = vector.load %arg2[%c0_3, %c0_4, %c0_5] : memref<3x3x128xf32, #tpu.memory_space<vmem>>, vector<1x1x128xf32>
    %4 = vector.shape_cast %3 : vector<1x1x128xf32> to vector<128xf32>
    %5 = vector.shape_cast %4 : vector<128xf32> to vector<1x1x128xf32>
    %6 = vector.broadcast %5 : vector<1x1x128xf32> to vector<16x16x128xf32>
    %7 = arith.mulf %2, %6 : vector<16x16x128xf32>
    %8 = arith.addf %0, %7 : vector<16x16x128xf32>
    %c0_6 = arith.constant 0 : index
    %c0_7 = arith.constant 0 : index
    %c1 = arith.constant 1 : index
    %c0_8 = arith.constant 0 : index
    %9 = vector.load %arg1[%c0_6, %c0_7, %c1, %c0_8] : memref<1x18x18x128xf32, #tpu.memory_space<vmem>>, vector<1x16x16x128xf32>
    %10 = vector.shape_cast %9 : vector<1x16x16x128xf32> to vector<16x16x128xf32>
    %c0_9 = arith.constant 0 : index
    %c1_10 = arith.constant 1 : index
    %c0_11 = arith.constant 0 : index
    %11 = vector.load %arg2[%c0_9, %c1_10, %c0_11] : memref<3x3x128xf32, #tpu.memory_space<vmem>>, vector<1x1x128xf32>
    %12 = vector.shape_cast %11 : vector<1x1x128xf32> to vector<128xf32>
    %13 = vector.shape_cast %12 : vector<128xf32> to vector<1x1x128xf32>
    %14 = vector.broadcast %13 : vector<1x1x128xf32> to vector<16x16x128xf32>
    %15 = arith.mulf %10, %14 : vector<16x16x128xf32>
    %16 = arith.addf %8, %15 : vector<16x16x128xf32>
    %c0_12 = arith.constant 0 : index
    %c0_13 = arith.constant 0 : index
    %c2 = arith.constant 2 : index
    %c0_14 = arith.constant 0 : index
    %17 = vector.load %arg1[%c0_12, %c0_13, %c2, %c0_14] : memref<1x18x18x128xf32, #tpu.memory_space<vmem>>, vector<1x16x16x128xf32>
    %18 = vector.shape_cast %17 : vector<1x16x16x128xf32> to vector<16x16x128xf32>
    %c0_15 = arith.constant 0 : index
    %c2_16 = arith.constant 2 : index
    %c0_17 = arith.constant 0 : index
    %19 = vector.load %arg2[%c0_15, %c2_16, %c0_17] : memref<3x3x128xf32, #tpu.memory_space<vmem>>, vector<1x1x128xf32>
    %20 = vector.shape_cast %19 : vector<1x1x128xf32> to vector<128xf32>
    %21 = vector.shape_cast %20 : vector<128xf32> to vector<1x1x128xf32>
    %22 = vector.broadcast %21 : vector<1x1x128xf32> to vector<16x16x128xf32>
    %23 = arith.mulf %18, %22 : vector<16x16x128xf32>
    %24 = arith.addf %16, %23 : vector<16x16x128xf32>
    %c0_18 = arith.constant 0 : index
    %c1_19 = arith.constant 1 : index
    %c0_20 = arith.constant 0 : index
    %c0_21 = arith.constant 0 : index
    %25 = vector.load %arg1[%c0_18, %c1_19, %c0_20, %c0_21] : memref<1x18x18x128xf32, #tpu.memory_space<vmem>>, vector<1x16x16x128xf32>
    %26 = vector.shape_cast %25 : vector<1x16x16x128xf32> to vector<16x16x128xf32>
    %c1_22 = arith.constant 1 : index
    %c0_23 = arith.constant 0 : index
    %c0_24 = arith.constant 0 : index
    %27 = vector.load %arg2[%c1_22, %c0_23, %c0_24] : memref<3x3x128xf32, #tpu.memory_space<vmem>>, vector<1x1x128xf32>
    %28 = vector.shape_cast %27 : vector<1x1x128xf32> to vector<128xf32>
    %29 = vector.shape_cast %28 : vector<128xf32> to vector<1x1x128xf32>
    %30 = vector.broadcast %29 : vector<1x1x128xf32> to vector<16x16x128xf32>
    %31 = arith.mulf %26, %30 : vector<16x16x128xf32>
    %32 = arith.addf %24, %31 : vector<16x16x128xf32>
    %c0_25 = arith.constant 0 : index
    %c1_26 = arith.constant 1 : index
    %c1_27 = arith.constant 1 : index
    %c0_28 = arith.constant 0 : index
    %33 = vector.load %arg1[%c0_25, %c1_26, %c1_27, %c0_28] : memref<1x18x18x128xf32, #tpu.memory_space<vmem>>, vector<1x16x16x128xf32>
    %34 = vector.shape_cast %33 : vector<1x16x16x128xf32> to vector<16x16x128xf32>
    %c1_29 = arith.constant 1 : index
    %c1_30 = arith.constant 1 : index
    %c0_31 = arith.constant 0 : index
    %35 = vector.load %arg2[%c1_29, %c1_30, %c0_31] : memref<3x3x128xf32, #tpu.memory_space<vmem>>, vector<1x1x128xf32>
    %36 = vector.shape_cast %35 : vector<1x1x128xf32> to vector<128xf32>
    %37 = vector.shape_cast %36 : vector<128xf32> to vector<1x1x128xf32>
    %38 = vector.broadcast %37 : vector<1x1x128xf32> to vector<16x16x128xf32>
    %39 = arith.mulf %34, %38 : vector<16x16x128xf32>
    %40 = arith.addf %32, %39 : vector<16x16x128xf32>
    %c0_32 = arith.constant 0 : index
    %c1_33 = arith.constant 1 : index
    %c2_34 = arith.constant 2 : index
    %c0_35 = arith.constant 0 : index
    %41 = vector.load %arg1[%c0_32, %c1_33, %c2_34, %c0_35] : memref<1x18x18x128xf32, #tpu.memory_space<vmem>>, vector<1x16x16x128xf32>
    %42 = vector.shape_cast %41 : vector<1x16x16x128xf32> to vector<16x16x128xf32>
    %c1_36 = arith.constant 1 : index
    %c2_37 = arith.constant 2 : index
    %c0_38 = arith.constant 0 : index
    %43 = vector.load %arg2[%c1_36, %c2_37, %c0_38] : memref<3x3x128xf32, #tpu.memory_space<vmem>>, vector<1x1x128xf32>
    %44 = vector.shape_cast %43 : vector<1x1x128xf32> to vector<128xf32>
    %45 = vector.shape_cast %44 : vector<128xf32> to vector<1x1x128xf32>
    %46 = vector.broadcast %45 : vector<1x1x128xf32> to vector<16x16x128xf32>
    %47 = arith.mulf %42, %46 : vector<16x16x128xf32>
    %48 = arith.addf %40, %47 : vector<16x16x128xf32>
    %c0_39 = arith.constant 0 : index
    %c2_40 = arith.constant 2 : index
    %c0_41 = arith.constant 0 : index
    %c0_42 = arith.constant 0 : index
    %49 = vector.load %arg1[%c0_39, %c2_40, %c0_41, %c0_42] : memref<1x18x18x128xf32, #tpu.memory_space<vmem>>, vector<1x16x16x128xf32>
    %50 = vector.shape_cast %49 : vector<1x16x16x128xf32> to vector<16x16x128xf32>
    %c2_43 = arith.constant 2 : index
    %c0_44 = arith.constant 0 : index
    %c0_45 = arith.constant 0 : index
    %51 = vector.load %arg2[%c2_43, %c0_44, %c0_45] : memref<3x3x128xf32, #tpu.memory_space<vmem>>, vector<1x1x128xf32>
    %52 = vector.shape_cast %51 : vector<1x1x128xf32> to vector<128xf32>
    %53 = vector.shape_cast %52 : vector<128xf32> to vector<1x1x128xf32>
    %54 = vector.broadcast %53 : vector<1x1x128xf32> to vector<16x16x128xf32>
    %55 = arith.mulf %50, %54 : vector<16x16x128xf32>
    %56 = arith.addf %48, %55 : vector<16x16x128xf32>
    %c0_46 = arith.constant 0 : index
    %c2_47 = arith.constant 2 : index
    %c1_48 = arith.constant 1 : index
    %c0_49 = arith.constant 0 : index
    %57 = vector.load %arg1[%c0_46, %c2_47, %c1_48, %c0_49] : memref<1x18x18x128xf32, #tpu.memory_space<vmem>>, vector<1x16x16x128xf32>
    %58 = vector.shape_cast %57 : vector<1x16x16x128xf32> to vector<16x16x128xf32>
    %c2_50 = arith.constant 2 : index
    %c1_51 = arith.constant 1 : index
    %c0_52 = arith.constant 0 : index
    %59 = vector.load %arg2[%c2_50, %c1_51, %c0_52] : memref<3x3x128xf32, #tpu.memory_space<vmem>>, vector<1x1x128xf32>
    %60 = vector.shape_cast %59 : vector<1x1x128xf32> to vector<128xf32>
    %61 = vector.shape_cast %60 : vector<128xf32> to vector<1x1x128xf32>
    %62 = vector.broadcast %61 : vector<1x1x128xf32> to vector<16x16x128xf32>
    %63 = arith.mulf %58, %62 : vector<16x16x128xf32>
    %64 = arith.addf %56, %63 : vector<16x16x128xf32>
    %c0_53 = arith.constant 0 : index
    %c2_54 = arith.constant 2 : index
    %c2_55 = arith.constant 2 : index
    %c0_56 = arith.constant 0 : index
    %65 = vector.load %arg1[%c0_53, %c2_54, %c2_55, %c0_56] : memref<1x18x18x128xf32, #tpu.memory_space<vmem>>, vector<1x16x16x128xf32>
    %66 = vector.shape_cast %65 : vector<1x16x16x128xf32> to vector<16x16x128xf32>
    %c2_57 = arith.constant 2 : index
    %c2_58 = arith.constant 2 : index
    %c0_59 = arith.constant 0 : index
    %67 = vector.load %arg2[%c2_57, %c2_58, %c0_59] : memref<3x3x128xf32, #tpu.memory_space<vmem>>, vector<1x1x128xf32>
    %68 = vector.shape_cast %67 : vector<1x1x128xf32> to vector<128xf32>
    %69 = vector.shape_cast %68 : vector<128xf32> to vector<1x1x128xf32>
    %70 = vector.broadcast %69 : vector<1x1x128xf32> to vector<16x16x128xf32>
    %71 = arith.mulf %66, %70 : vector<16x16x128xf32>
    %72 = arith.addf %64, %71 : vector<16x16x128xf32>
    %c0_60 = arith.constant 0 : index
    %c0_61 = arith.constant 0 : index
    %73 = vector.load %arg3[%c0_60, %c0_61] : memref<1x128xf32, #tpu.memory_space<vmem>>, vector<1x128xf32>
    %74 = vector.shape_cast %73 : vector<1x128xf32> to vector<128xf32>
    %75 = vector.shape_cast %74 : vector<128xf32> to vector<1x1x128xf32>
    %76 = vector.broadcast %75 : vector<1x1x128xf32> to vector<16x16x128xf32>
    %77 = arith.addf %72, %76 : vector<16x16x128xf32>
    %cst_62 = arith.constant 5.000000e-01 : f32
    %78 = vector.broadcast %cst_62 : f32 to vector<16x16x128xf32>
    %79 = arith.mulf %78, %77 : vector<16x16x128xf32>
    %cst_63 = arith.constant 0.707106769 : f32
    %80 = vector.broadcast %cst_63 : f32 to vector<16x16x128xf32>
    %81 = arith.mulf %77, %80 : vector<16x16x128xf32>
    %82 = math.absf %81 : vector<16x16x128xf32>
    %cst_64 = arith.constant 0.327591091 : f32
    %83 = vector.broadcast %cst_64 : f32 to vector<16x16x128xf32>
    %84 = arith.mulf %83, %82 : vector<16x16x128xf32>
    %cst_65 = arith.constant 1.000000e+00 : f32
    %85 = vector.broadcast %cst_65 : f32 to vector<16x16x128xf32>
    %86 = arith.addf %85, %84 : vector<16x16x128xf32>
    %cst_66 = arith.constant 1.000000e+00 : f32
    %87 = vector.broadcast %cst_66 : f32 to vector<16x16x128xf32>
    %88 = arith.divf %87, %86 : vector<16x16x128xf32>
    %cst_67 = arith.constant 1.06140542 : f32
    %89 = vector.broadcast %cst_67 : f32 to vector<16x16x128xf32>
    %90 = arith.mulf %89, %88 : vector<16x16x128xf32>
    %cst_68 = arith.constant -1.45315206 : f32
    %91 = vector.broadcast %cst_68 : f32 to vector<16x16x128xf32>
    %92 = arith.addf %90, %91 : vector<16x16x128xf32>
    %93 = arith.mulf %92, %88 : vector<16x16x128xf32>
    %cst_69 = arith.constant 1.42141378 : f32
    %94 = vector.broadcast %cst_69 : f32 to vector<16x16x128xf32>
    %95 = arith.addf %93, %94 : vector<16x16x128xf32>
    %96 = arith.mulf %95, %88 : vector<16x16x128xf32>
    %cst_70 = arith.constant -0.284496725 : f32
    %97 = vector.broadcast %cst_70 : f32 to vector<16x16x128xf32>
    %98 = arith.addf %96, %97 : vector<16x16x128xf32>
    %99 = arith.mulf %98, %88 : vector<16x16x128xf32>
    %cst_71 = arith.constant 0.254829586 : f32
    %100 = vector.broadcast %cst_71 : f32 to vector<16x16x128xf32>
    %101 = arith.addf %99, %100 : vector<16x16x128xf32>
    %102 = arith.mulf %101, %88 : vector<16x16x128xf32>
    %cst_72 = arith.constant 0.000000e+00 : f32
    %103 = vector.broadcast %cst_72 : f32 to vector<16x16x128xf32>
    %104 = arith.subf %103, %82 : vector<16x16x128xf32>
    %105 = arith.mulf %104, %82 : vector<16x16x128xf32>
    %106 = math.exp %105 : vector<16x16x128xf32>
    %107 = arith.mulf %102, %106 : vector<16x16x128xf32>
    %cst_73 = arith.constant 1.000000e+00 : f32
    %108 = vector.broadcast %cst_73 : f32 to vector<16x16x128xf32>
    %109 = arith.subf %108, %107 : vector<16x16x128xf32>
    %cst_74 = arith.constant 0.000000e+00 : f32
    %110 = vector.broadcast %cst_74 : f32 to vector<16x16x128xf32>
    %111 = arith.cmpf olt, %81, %110 : vector<16x16x128xf32>
    %cst_75 = arith.constant 0.000000e+00 : f32
    %112 = vector.broadcast %cst_75 : f32 to vector<16x16x128xf32>
    %113 = arith.subf %112, %109 : vector<16x16x128xf32>
    %114 = arith.select %111, %113, %109 : vector<16x16x128xi1>, vector<16x16x128xf32>
    %cst_76 = arith.constant 1.000000e+00 : f32
    %115 = vector.broadcast %cst_76 : f32 to vector<16x16x128xf32>
    %116 = arith.addf %115, %114 : vector<16x16x128xf32>
    %117 = arith.mulf %79, %116 : vector<16x16x128xf32>
    %c0_77 = arith.constant 0 : index
    %c0_78 = arith.constant 0 : index
    %c0_79 = arith.constant 0 : index
    %c0_80 = arith.constant 0 : index
    %118 = vector.load %arg4[%c0_77, %c0_78, %c0_79, %c0_80] : memref<1x16x16x128xf32, #tpu.memory_space<vmem>>, vector<1x16x16x128xf32>
    %119 = vector.shape_cast %118 : vector<1x16x16x128xf32> to vector<16x16x128xf32>
    %120 = vector.shape_cast %117 : vector<16x16x128xf32> to vector<1x16x16x128xf32>
    tpu.vector_store %arg4[%c0_77, %c0_78, %c0_79, %c0_80], %120 {strides = array<i32>} : memref<1x16x16x128xf32, #tpu.memory_space<vmem>>, vector<1x16x16x128xf32>,
    return
  }
  func.func @transform_0(%arg0: i32) -> (i32, i32, i32, i32) {
    %c0_i32 = arith.constant 0 : i32
    %c0_i32_0 = arith.constant 0 : i32
    %c0_i32_1 = arith.constant 0 : i32
    %c0_i32_2 = arith.constant 0 : i32
    return %arg0, %c0_i32, %c0_i32_0, %c0_i32_1 : i32, i32, i32, i32
  }
  func.func @transform_1(%arg0: i32) -> (i32, i32, i32) {
    %c0_i32 = arith.constant 0 : i32
    %c0_i32_0 = arith.constant 0 : i32
    %c0_i32_1 = arith.constant 0 : i32
    %c0_i32_2 = arith.constant 0 : i32
    return %c0_i32, %c0_i32_0, %c0_i32_1 : i32, i32, i32
  }
  func.func @transform_2(%arg0: i32) -> (i32, i32) {
    %c0_i32 = arith.constant 0 : i32
    %c0_i32_0 = arith.constant 0 : i32
    %c0_i32_1 = arith.constant 0 : i32
    return %c0_i32, %c0_i32_0 : i32, i32
  }
  func.func @transform_3(%arg0: i32) -> (i32, i32, i32, i32) {
    %c0_i32 = arith.constant 0 : i32
    %c0_i32_0 = arith.constant 0 : i32
    %c0_i32_1 = arith.constant 0 : i32
    %c0_i32_2 = arith.constant 0 : i32
    return %arg0, %c0_i32, %c0_i32_0, %c0_i32_1 : i32, i32, i32, i32
  }
}

</mosaic_0001>

<bundles_post_ra>
// kernel: conv_ffn_forward.9
= control target key start
LH: loop header
LB: loop body
LE: loop exit
PB: predicated region body
PF: predicated region fallthrough
CT: control target
= control target key end

     0   :  { %s632_s12 = smov 0   ;;  %s807_s0 = inlined_call_operand.vmem [shape: f32[2,6,6,128], index: 0, kind: input, shape index: {}]   ;;  %s808_s1 = inlined_call_operand.vmem [shape: f32[3,3,128], index: 1, kind: input, shape index: {}]   ;;  %s809_s2 = inlined_call_operand.vmem [shape: f32[1,128], index: 2, kind: input, shape index: {}]   ;;  %s810_s3 = inlined_call_operand.vmem [shape: f32[2,4,4,128], index: 3, kind: output, shape index: {}]  }
   0x1 LB: > { %s528_s13 = sadd.s32 4294967295, %s610_s12   ;;  %p532_p0 = scmp.ge.s32.totalorder %s610_s12, 1  ;;  %s610_s12 = sphi %s632_s12, %s13_s12  }
   0x2   : > { %p137_p1 = scmp.lt.s32.totalorder %s610_s12, 3 }
   0x4   : > { %p138_p2 = pnand %p532_p0, %p137_p1 }
   0x5   : > { %p161_p3 = scmp.lt.s32.totalorder (!%p138_p2), %s528_s13, 1 }
   0x6   : > { %141 = sbr.rel (%p138_p2) target bundleno = 95 (0x5f), region = 32 }
   0xb   : > { %s822_s13 = smov (!%p161_p3, %s528_s13), 1  ;;  %v578_v0 = vld [vmem:[%s808_s1] ss:$0 sm:$0xff]  ;;  %v579_v1 = vld [vmem:[%s808_s1 + $0x1] ss:$0 sm:$0xff] }
   0xc   : > { %s569_s14 = smul.u32 48, %s822_s13  ;;  %v580_v2 = vld [vmem:[%s808_s1 + $0x2] ss:$0 sm:$0xff]  ;;  %v581_v3 = vld [vmem:[%s808_s1 + $0x4] ss:$0 sm:$0xff]  ;;  %s568_s11 = sshll.u32 %s822_s13, 4 }
   0xd   : > { %v582_v13 = vld [vmem:[%s808_s1 + $0x5] ss:$0 sm:$0xff]  ;;  %v583_v26 = vld [vmem:[%s808_s1 + $0x6] ss:$0 sm:$0xff]  ;;  %v584_v54 = vld [vmem:[%s808_s1 + $0x8] ss:$0 sm:$0xff]  ;;  %s170_s13 = scalar_lea.vmem %s810_s3, %s568_s11 }
   0xe   : > { %s652_s21 = scalar_lea.vmem %s807_s0, %s569_s14 }
   0xf   : > { %v171_v4 = vld [vmem:[%s652_s21] sm:$0xf]  ;;  %v172_v5 = vld [vmem:[%s652_s21 + $0x8] sm:$0xf]  ;;  %v173_v6 = vld [vmem:[%s652_s21 + $0x10] sm:$0xf] }
  0x10   : > { %v174_v7 = vld [vmem:[%s652_s21 + $0x18] sm:$0xf]  ;;  %v177_v8 = vmul.f32 %v578_v0, %v171_v4  ;;  %v178_v9 = vmul.f32 %v578_v0, %v172_v5  ;;  %v179_v10 = vmul.f32 %v578_v0, %v173_v6  ;;  %v185_v11 = vld [vmem:[%s652_s21 + $0x1] sm:$0xf]  ;;  %v186_v12 = vld [vmem:[%s652_s21 + $0x9] sm:$0xf] }
  0x11   : > { %v180_v14 = vmul.f32 %v578_v0, %v174_v7  ;;  %v187_v15 = vld [vmem:[%s652_s21 + $0x11] sm:$0xf]  ;;  %v188_v16 = vld [vmem:[%s652_s21 + $0x19] sm:$0xf]  ;;  %v191_v17 = vmul.f32 %v579_v1, %v185_v11  ;;  %v192_v18 = vmul.f32 %v579_v1, %v186_v12  ;;  %v199_v19 = vld [vmem:[%s652_s21 + $0x2] sm:$0xf] }
  0x12   : > { %v193_v20 = vmul.f32 %v579_v1, %v187_v15  ;;  %v194_v21 = vmul.f32 %v579_v1, %v188_v16  ;;  %v200_v22 = vld [vmem:[%s652_s21 + $0xa] sm:$0xf]  ;;  %v201_v23 = vld [vmem:[%s652_s21 + $0x12] sm:$0xf]  ;;  %v202_v24 = vld [vmem:[%s652_s21 + $0x1a] sm:$0xf]  ;;  %v205_v25 = vmul.f32 %v580_v2, %v199_v19 }
  0x13   : > { %v195_v27 = vadd.f32 %v191_v17, %v177_v8  ;;  %v196_v28 = vadd.f32 %v192_v18, %v178_v9  ;;  %v206_v29 = vmul.f32 %v580_v2, %v200_v22  ;;  %v207_v30 = vmul.f32 %v580_v2, %v201_v23  ;;  %v536_v31 = vld [vmem:[%s652_s21 + $0x8] sm:$0xf]  ;;  %v537_v32 = vld [vmem:[%s652_s21 + $0x10] sm:$0xf]  ;;  %v538_v33 = vld [vmem:[%s652_s21 + $0x18] sm:$0xf] }
  0x14   : > { %v197_v34 = vadd.f32 %v193_v20, %v179_v10  ;;  %v198_v35 = vadd.f32 %v194_v21, %v180_v14  ;;  %v208_v36 = vmul.f32 %v580_v2, %v202_v24  ;;  %v539_v37 = vld [vmem:[%s652_s21 + $0x20] sm:$0xf]  ;;  %v221_v38 = vmul.f32 %v581_v3, %v536_v31  ;;  %v541_v39 = vld [vmem:[%s652_s21 + $0x9] sm:$0xf]  ;;  %v542_v40 = vld [vmem:[%s652_s21 + $0x11] sm:$0xf] }
  0x15   : > { %v209_v41 = vadd.f32 %v205_v25, %v195_v27  ;;  %v210_v42 = vadd.f32 %v206_v29, %v196_v28  ;;  %v222_v43 = vmul.f32 %v581_v3, %v537_v32  ;;  %v223_v44 = vmul.f32 %v581_v3, %v538_v33  ;;  %v543_v45 = vld [vmem:[%s652_s21 + $0x19] sm:$0xf]  ;;  %v544_v46 = vld [vmem:[%s652_s21 + $0x21] sm:$0xf]  ;;  %v546_v47 = vld [vmem:[%s652_s21 + $0xa] sm:$0xf] }
  0x16   : > { %v211_v48 = vadd.f32 %v207_v30, %v197_v34  ;;  %v212_v49 = vadd.f32 %v208_v36, %v198_v35  ;;  %v224_v50 = vmul.f32 %v581_v3, %v539_v37  ;;  %v235_v51 = vmul.f32 %v582_v13, %v541_v39  ;;  %v547_v52 = vld [vmem:[%s652_s21 + $0x12] sm:$0xf]  ;;  %v548_v53 = vld [vmem:[%s652_s21 + $0x1a] sm:$0xf]  ;;  %v549_v59 = vld [vmem:[%s652_s21 + $0x22] sm:$0xf] }
  0x17   : > { %v225_v55 = vadd.f32 %v221_v38, %v209_v41  ;;  %v226_v56 = vadd.f32 %v222_v43, %v210_v42  ;;  %v236_v57 = vmul.f32 %v582_v13, %v542_v40  ;;  %v237_v58 = vmul.f32 %v582_v13, %v543_v45  ;;  %v551_v60 = vld [vmem:[%s652_s21 + $0x10] sm:$0xf]  ;;  %v552_v1 = vld [vmem:[%s652_s21 + $0x18] sm:$0xf]  ;;  %v553_v2 = vld [vmem:[%s652_s21 + $0x20] sm:$0xf] }
  0x18   : > { %v227_v61 = vadd.f32 %v223_v44, %v211_v48  ;;  %v228_v62 = vadd.f32 %v224_v50, %v212_v49  ;;  %v238_v63 = vmul.f32 %v582_v13, %v544_v46  ;;  %v249_v0 = vmul.f32 %v583_v26, %v546_v47  ;;  %v585_v3 = vld [vmem:[%s808_s1 + $0x9] ss:$0 sm:$0xff]  ;;  %v556_v9 = vld [vmem:[%s652_s21 + $0x11] sm:$0xf]  ;;  %v557_v14 = vld [vmem:[%s652_s21 + $0x19] sm:$0xf] }
  0x19   : > { %v239_v4 = vadd.f32 %v235_v51, %v225_v55  ;;  %v240_v5 = vadd.f32 %v236_v57, %v226_v56  ;;  %v250_v6 = vmul.f32 %v583_v26, %v547_v52  ;;  %v251_v7 = vmul.f32 %v583_v26, %v548_v53  ;;  %v554_v8 = vld [vmem:[%s652_s21 + $0x28] sm:$0xf]  ;;  %v558_v15 = vld [vmem:[%s652_s21 + $0x21] sm:$0xf]  ;;  %v561_v22 = vld [vmem:[%s652_s21 + $0x12] sm:$0xf] }
  0x1a   : > { %v241_v10 = vadd.f32 %v237_v58, %v227_v61  ;;  %v242_v11 = vadd.f32 %v238_v63, %v228_v62  ;;  %v252_v12 = vmul.f32 %v583_v26, %v549_v59  ;;  %v265_v13 = vmul.f32 %v584_v54, %v551_v60  ;;  %v586_v16 = vld [vmem:[%s808_s1 + $0xa] ss:$0 sm:$0xff]  ;;  %v562_v26 = vld [vmem:[%s652_s21 + $0x1a] sm:$0xf]  ;;  %v563_v28 = vld [vmem:[%s652_s21 + $0x22] sm:$0xf] }
  0x1b   : > { %v253_v17 = vadd.f32 %v249_v0, %v239_v4  ;;  %v254_v18 = vadd.f32 %v250_v6, %v240_v5  ;;  %v266_v19 = vmul.f32 %v584_v54, %v552_v1  ;;  %v267_v20 = vmul.f32 %v584_v54, %v553_v2  ;;  %v559_v21 = vld [vmem:[%s652_s21 + $0x29] sm:$0xf]  ;;  %v587_v42 = vld [vmem:[%s809_s2] ss:$0 sm:$0xff] }
  0x1c   : > { %v255_v23 = vadd.f32 %v251_v7, %v241_v10  ;;  %v256_v24 = vadd.f32 %v252_v12, %v242_v11  ;;  %v268_v25 = vmul.f32 %v584_v54, %v554_v8  ;;  %v279_v27 = vmul.f32 %v585_v3, %v556_v9  ;;  %v564_v33 = vld [vmem:[%s652_s21 + $0x2a] sm:$0xf] }
  0x1d   : > { %v269_v29 = vadd.f32 %v265_v13, %v253_v17  ;;  %v270_v30 = vadd.f32 %v266_v19, %v254_v18  ;;  %v280_v31 = vmul.f32 %v585_v3, %v557_v14  ;;  %v281_v32 = vmul.f32 %v585_v3, %v558_v15 }
  0x1e   : > { %v271_v34 = vadd.f32 %v267_v20, %v255_v23  ;;  %v272_v35 = vadd.f32 %v268_v25, %v256_v24  ;;  %v282_v36 = vmul.f32 %v585_v3, %v559_v21  ;;  %v293_v37 = vmul.f32 %v586_v16, %v561_v22 }
  0x1f   : > { %v283_v38 = vadd.f32 %v279_v27, %v269_v29  ;;  %v284_v39 = vadd.f32 %v280_v31, %v270_v30  ;;  %v294_v40 = vmul.f32 %v586_v16, %v562_v26  ;;  %v295_v41 = vmul.f32 %v586_v16, %v563_v28 }
  0x20   : > { %v285_v43 = vadd.f32 %v281_v32, %v271_v34  ;;  %v286_v44 = vadd.f32 %v282_v36, %v272_v35  ;;  %v296_v45 = vmul.f32 %v586_v16, %v564_v33 }
  0x21   : > { %v297_v46 = vadd.f32 %v293_v37, %v283_v38  ;;  %v298_v47 = vadd.f32 %v294_v40, %v284_v39 }
  0x22   : > { %v299_v48 = vadd.f32 %v295_v41, %v285_v43  ;;  %v300_v49 = vadd.f32 %v296_v45, %v286_v44 }
  0x23   : > { %v714_v50 = vadd.f32 %v587_v42, %v297_v46  ;;  %v716_v51 = vadd.f32 %v587_v42, %v298_v47 }
  0x24   : > { %v718_v52 = vadd.f32 %v587_v42, %v299_v48  ;;  %v720_v53 = vadd.f32 %v587_v42, %v300_v49 }
  0x25   : > { %v723_v54 = vmul.f32 0.70710677, %v714_v50  ;;  %v726_v55 = vmul.f32 0.70710677, %v716_v51 }
  0x26   : > { %v729_v56 = vmul.f32 0.70710677, %v718_v52  ;;  %v732_v57 = vmul.f32 0.70710677, %v720_v53 }
  0x27   : > { %v735_v58 = vand.u32 2147483647, %v723_v54  ;;  %v738_v59 = vand.u32 2147483647, %v726_v55 }
  0x28   : > { %v741_v60 = vand.u32 2147483647, %v729_v56  ;;  %v744_v61 = vand.u32 2147483647, %v732_v57 }
  0x29   : > { %v321_v62 = vmul.f32 0.3275911, %v735_v58  ;;  %v322_v63 = vmul.f32 0.3275911, %v738_v59  ;;  %v425_v10 = vsub.f32 0.0, %v735_v58  ;;  %v426_v11 = vsub.f32 0.0, %v738_v59 }
  0x2a   : > { %v323_v0 = vmul.f32 0.3275911, %v741_v60  ;;  %v324_v1 = vmul.f32 0.3275911, %v744_v61  ;;  %v427_v40 = vsub.f32 0.0, %v741_v60 }
  0x2b   : > { %v325_v2 = vadd.f32 1.0, %v321_v62  ;;  %v326_v3 = vadd.f32 1.0, %v322_v63 }
  0x2c   : > { %v327_v4 = vadd.f32 1.0, %v323_v0  ;;  %v328_v5 = vadd.f32 1.0, %v324_v1 }
  0x2d   : > { %588 = vrcp.f32 %v325_v2  ;;  %v338_v6 = vand.u32 2147483647, %v325_v2  ;;  %v340_v7 = vand.u32 2147483648, %v325_v2  ;;  %v355_v8 = vand.u32 2147483648, %v326_v3 }
  0x2e   : > { %590 = vrcp.f32 %v326_v3  ;;  %vm334_vm0 = vweird.f32 %v325_v2  ;;  %vm349_vm1 = vweird.f32 %v326_v3  ;;  %v353_v14 = vand.u32 2147483647, %v326_v3 }
  0x2f   : > { %592 = vrcp.f32 %v327_v4  ;;  %vm752_vm2 = vcmp.eq.f32.partialorder %v338_v6, 8.507059e+37  ;;  %v341_v17 = vor.u32 1.1754944e-38, %v340_v7  ;;  %vm364_vm3 = vweird.f32 %v327_v4 }
  0x30   : > { %594 = vrcp.f32 %v328_v5  ;;  %v356_v20 = vor.u32 1.1754944e-38, %v355_v8  ;;  %v368_v24 = vand.u32 2147483647, %v327_v4  ;;  %v370_v25 = vand.u32 2147483648, %v327_v4 }
  0x31   : > { %vm379_vm8 = vweird.f32 %v328_v5  ;;  %v383_v31 = vand.u32 2147483647, %v328_v5  ;;  %v385_v32 = vand.u32 2147483648, %v328_v5  ;;  %vm354_vm11 = vcmp.eq.f32.partialorder %v353_v14, 8.507059e+37 }
  0x32   : > { %v371_v39 = vor.u32 1.1754944e-38, %v370_v25  ;;  %vm369_vm13 = vcmp.eq.f32.partialorder %v368_v24, 8.507059e+37  ;;  %v430_v7 = vmul.f32 %v426_v11, %v738_v59 }
  0x33   : > { %v589_v9 = vpop.eup %588  ;;  %vm384_vm15 = vcmp.eq.f32.partialorder %v383_v31, 8.507059e+37  ;;  %v386_v47 = vor.u32 1.1754944e-38, %v385_v32 }
  0x34   : > { %v591_v12 = vpop.eup %590  ;;  %v330_v13 = vmul.f32 %v589_v9, %v325_v2  ;;  %vm335_vm4 = vweird.f32 %v589_v9  ;;  %v428_v2 = vsub.f32 0.0, %v744_v61 }
  0x35   : > { %v593_v15 = vpop.eup %592  ;;  %v345_v18 = vmul.f32 %v591_v12, %v326_v3  ;;  %vm350_vm5 = vweird.f32 %v591_v12  ;;  %vm757_vm7 = vmor %vm334_vm0, %vm335_vm4  ;;  %v429_v3 = vmul.f32 %v425_v10, %v735_v58  ;;  %vm449_vm0 = vcmp.lt.f32.partialorder %v723_v54, 0.0 }
  0x36   : > { %v331_v19 = vsub.f32 1.0, %v330_v13  ;;  %v360_v21 = vmul.f32 %v593_v15, %v327_v4  ;;  %v595_v22 = vpop.eup %594  ;;  %vm365_vm6 = vweird.f32 %v593_v15  ;;  %vm762_vm9 = vmor %vm349_vm1, %vm350_vm5  ;;  %vm450_vm1 = vcmp.lt.f32.partialorder %v726_v55, 0.0 }
  0x37   : > { %v346_v23 = vsub.f32 1.0, %v345_v18  ;;  %v375_v28 = vmul.f32 %v595_v22, %v328_v5  ;;  %vm380_vm10 = vweird.f32 %v595_v22  ;;  %vm767_vm12 = vmor %vm364_vm3, %vm365_vm6  ;;  %v433_v18 = vmul.f32 1.442695, %v429_v3 }
  0x38   : > { %v332_v27 = vmul.f32 %v589_v9, %v331_v19  ;;  %v361_v26 = vsub.f32 1.0, %v360_v21  ;;  %vm779_vm14 = vmor %vm379_vm8, %vm380_vm10  ;;  %vm452_vm3 = vcmp.lt.f32.partialorder %v732_v57, 0.0 }
  0x39   : > { %v347_v30 = vmul.f32 %v591_v12, %v346_v23  ;;  %v376_v36 = vsub.f32 1.0, %v375_v28  ;;  %596 = vpow2.f32 %v433_v18 }
  0x3a   : > { %v333_v33 = vadd.f32 %v589_v9, %v332_v27  ;;  %v362_v35 = vmul.f32 %v593_v15, %v361_v26 }
  0x3b   : > { %v348_v37 = vadd.f32 %v591_v12, %v347_v30  ;;  %v377_v43 = vmul.f32 %v595_v22, %v376_v36 }
  0x3c   : > { %v337_v41 = vsel %vm757_vm7, %v589_v9, %v333_v33  ;;  %v363_v42 = vadd.f32 %v593_v15, %v362_v35 }
  0x3d   : > { %v342_v44 = vsel %vm752_vm2, %v341_v17, %v337_v41  ;;  %v352_v45 = vsel %vm762_vm9, %v591_v12, %v348_v37  ;;  %v378_v62 = vadd.f32 %v595_v22, %v377_v43  ;;  %v431_v12 = vmul.f32 %v427_v40, %v741_v60 }
  0x3e   : > { %v357_v48 = vsel %vm354_vm11, %v356_v20, %v352_v45  ;;  %v367_v49 = vsel %vm767_vm12, %v593_v15, %v363_v42  ;;  %v389_v63 = vmul.f32 1.0614054, %v342_v44  ;;  %v432_v17 = vmul.f32 %v428_v2, %v744_v61 }
  0x3f   : > { %v372_v0 = vsel %vm369_vm13, %v371_v39, %v367_v49  ;;  %v390_v1 = vmul.f32 1.0614054, %v357_v48  ;;  %v382_v4 = vsel %vm779_vm14, %v595_v22, %v378_v62  ;;  %v435_v20 = vmul.f32 1.442695, %v430_v7  ;;  %v597_v35 = vpop.eup %596 }
  0x40   : > { %v391_v5 = vmul.f32 1.0614054, %v372_v0  ;;  %v393_v6 = vadd.f32 -1.4531521, %v389_v63  ;;  %v387_v8 = vsel %vm384_vm15, %v386_v47, %v382_v4  ;;  %v437_v22 = vmul.f32 1.442695, %v431_v12 }
  0x41   : > { %v394_v9 = vadd.f32 -1.4531521, %v390_v1  ;;  %v392_v13 = vmul.f32 1.0614054, %v387_v8  ;;  %v439_v25 = vmul.f32 1.442695, %v432_v17  ;;  %598 = vpow2.f32 %v435_v20 }
  0x42   : > { %v395_v14 = vadd.f32 -1.4531521, %v391_v5  ;;  %v397_v15 = vmul.f32 %v393_v6, %v342_v44  ;;  %600 = vpow2.f32 %v437_v22  ;;  %vm451_vm2 = vcmp.lt.f32.partialorder %v729_v56, 0.0 }
  0x43   : > { %v398_v16 = vmul.f32 %v394_v9, %v357_v48  ;;  %v396_v19 = vadd.f32 -1.4531521, %v392_v13  ;;  %602 = vpow2.f32 %v439_v25  ;;  %v311_v9 = vmul.f32 0.5, %v718_v52 }
  0x44   : > { %v399_v58 = vmul.f32 %v395_v14, %v372_v0  ;;  %v401_v10 = vadd.f32 1.4214138, %v397_v15  ;;  %v312_v56 = vmul.f32 0.5, %v720_v53 }
  0x45   : > { %v402_v21 = vadd.f32 1.4214138, %v398_v16  ;;  %v400_v23 = vmul.f32 %v396_v19, %v387_v8 }
  0x46   : > { %v403_v24 = vadd.f32 1.4214138, %v399_v58  ;;  %v405_v59 = vmul.f32 %v401_v10, %v342_v44 }
  0x47   : > { %v406_v11 = vmul.f32 %v402_v21, %v357_v48  ;;  %v404_v60 = vadd.f32 1.4214138, %v400_v23  ;;  %v599_v37 = vpop.eup %598 }
  0x48   : > { %v407_v27 = vmul.f32 %v403_v24, %v372_v0  ;;  %v409_v26 = vadd.f32 -0.28449672, %v405_v59  ;;  %v601_v41 = vpop.eup %600 }
  0x49   : > { %v410_v28 = vadd.f32 -0.28449672, %v406_v11  ;;  %v408_v61 = vmul.f32 %v404_v60, %v387_v8  ;;  %v603_v47 = vpop.eup %602 }
  0x4a   : > { %v411_v29 = vadd.f32 -0.28449672, %v407_v27  ;;  %v413_v30 = vmul.f32 %v409_v26, %v342_v44 }
  0x4b   : > { %v414_v31 = vmul.f32 %v410_v28, %v357_v48  ;;  %v412_v32 = vadd.f32 -0.28449672, %v408_v61 }
  0x4c   : > { %v415_v33 = vmul.f32 %v411_v29, %v372_v0  ;;  %v417_v34 = vadd.f32 0.2548296, %v413_v30 }
  0x4d   : > { %v418_v36 = vadd.f32 0.2548296, %v414_v31  ;;  %v416_v38 = vmul.f32 %v412_v32, %v387_v8 }
  0x4e   : > { %v419_v39 = vadd.f32 0.2548296, %v415_v33  ;;  %v421_v40 = vmul.f32 %v417_v34, %v342_v44  ;;  %v309_v44 = vmul.f32 0.5, %v714_v50 }
  0x4f   : > { %v422_v42 = vmul.f32 %v418_v36, %v357_v48  ;;  %v420_v43 = vadd.f32 0.2548296, %v416_v38 }
  0x50   : > { %v423_v45 = vmul.f32 %v419_v39, %v372_v0  ;;  %v441_v46 = vmul.f32 %v597_v35, %v421_v40  ;;  %v310_v0 = vmul.f32 0.5, %v716_v51 }
  0x51   : > { %v442_v49 = vmul.f32 %v599_v37, %v422_v42  ;;  %v424_v62 = vmul.f32 %v420_v43, %v387_v8 }
  0x52   : > { %v443_v63 = vmul.f32 %v601_v41, %v423_v45  ;;  %v445_v1 = vsub.f32 1.0, %v441_v46 }
  0x53   : > { %v446_v2 = vsub.f32 1.0, %v442_v49  ;;  %v444_v3 = vmul.f32 %v603_v47, %v424_v62 }
  0x54   : > { %v447_v4 = vsub.f32 1.0, %v443_v63  ;;  %v453_v5 = vsub.f32 0.0, %v445_v1 }
  0x55   : > { %v454_v48 = vsub.f32 0.0, %v446_v2  ;;  %v448_v6 = vsub.f32 1.0, %v444_v3 }
  0x56   : > { %v455_v7 = vsub.f32 0.0, %v447_v4  ;;  %v457_v8 = vsel %vm449_vm0, %v453_v5, %v445_v1 }
  0x57   : > { %v458_v54 = vsel %vm450_vm1, %v454_v48, %v446_v2  ;;  %v461_v12 = vadd.f32 1.0, %v457_v8  ;;  %v456_v55 = vsub.f32 0.0, %v448_v6 }
  0x58   : > { %v459_v50 = vsel %vm451_vm2, %v455_v7, %v447_v4  ;;  %v462_v13 = vadd.f32 1.0, %v458_v54 }
  0x59   : > { %v463_v14 = vadd.f32 1.0, %v459_v50  ;;  %v465_v51 = vmul.f32 %v461_v12, %v309_v44  ;;  %v460_v15 = vsel %vm452_vm3, %v456_v55, %v448_v6 }
  0x5a   : > { %v466_v16 = vmul.f32 %v462_v13, %v310_v0  ;;  %v464_v17 = vadd.f32 1.0, %v460_v15 }
  0x5b   : > { %v467_v18 = vmul.f32 %v463_v14, %v311_v9  ;;  %469 = vst [vmem:[%s170_s13] sm:$0xf] %v465_v51 }
  0x5c   : > { %470 = vst [vmem:[%s170_s13 + $0x4] sm:$0xf] %v466_v16  ;;  %v468_v52 = vmul.f32 %v464_v17, %v312_v56 }
  0x5d   : > { %471 = vst [vmem:[%s170_s13 + $0x8] sm:$0xf] %v467_v18 }
  0x5e   : > { %472 = vst [vmem:[%s170_s13 + $0xc] sm:$0xf] %v468_v52 }
  0x5f PF: > { %s13_s12 = sadd.s32 1, %s610_s12  }
  0x60   : > { %p10_p4 = scmp.ge.s32.totalorder %s13_s12, 4  }
  0x62   :  { %12 = sbr.rel (!%p10_p4) target bundleno = 1 (0x1), region = 66 }

// kernel: conv_ffn_forward.10
= control target key start
LH: loop header
LB: loop body
LE: loop exit
PB: predicated region body
PF: predicated region fallthrough
CT: control target
= control target key end

     0   :  { %s475_s12 = smov 0   ;;  %s562_s0 = inlined_call_operand.vmem [shape: f32[2,4,4,128], index: 0, kind: input, shape index: {}]   ;;  %s563_s1 = inlined_call_operand.vmem [shape: f32[3,3,128], index: 1, kind: input, shape index: {}]   ;;  %s564_s2 = inlined_call_operand.vmem [shape: f32[1,128], index: 2, kind: input, shape index: {}]   ;;  %s565_s3 = inlined_call_operand.vmem [shape: f32[2,2,2,128], index: 3, kind: output, shape index: {}]  }
   0x1 LB: > { %s390_s13 = sadd.s32 4294967295, %s453_s12   ;;  %p394_p0 = scmp.ge.s32.totalorder %s453_s12, 1  ;;  %s453_s12 = sphi %s475_s12, %s13_s12  }
   0x2   : > { %p137_p1 = scmp.lt.s32.totalorder %s453_s12, 3 }
   0x4   : > { %p138_p2 = pnand %p394_p0, %p137_p1 }
   0x5   : > { %p161_p3 = scmp.lt.s32.totalorder (!%p138_p2), %s390_s13, 1 }
   0x6   : > { %141 = sbr.rel (%p138_p2) target bundleno = 92 (0x5c), region = 32 }
   0xb   : > { %s567_s13 = smov (!%p161_p3, %s390_s13), 1  ;;  %v429_v0 = vld [vmem:[%s563_s1] ss:$0 sm:$0xff]  ;;  %v430_v1 = vld [vmem:[%s563_s1 + $0x1] ss:$0 sm:$0xff] }
   0xc   : > { %v431_v2 = vld [vmem:[%s563_s1 + $0x2] ss:$0 sm:$0xff]  ;;  %s419_s20 = sshll.u32 %s567_s13, 4  ;;  %v432_v3 = vld [vmem:[%s563_s1 + $0x4] ss:$0 sm:$0xff]  ;;  %s420_s11 = sshll.u32 %s567_s13, 2 }
   0xd   : > { %s501_s25 = scalar_lea.vmem %s562_s0, %s419_s20  ;;  %v433_v4 = vld [vmem:[%s563_s1 + $0x5] ss:$0 sm:$0xff]  ;;  %v434_v23 = vld [vmem:[%s563_s1 + $0x6] ss:$0 sm:$0xff]  ;;  %v435_v30 = vld [vmem:[%s563_s1 + $0x8] ss:$0 sm:$0xff]  ;;  %s170_s16 = scalar_lea.vmem %s565_s3, %s420_s11 }
   0xe   : > { %v171_v5 = vld [vmem:[%s501_s25] sm:$0x3]  ;;  %v172_v6 = vld [vmem:[%s501_s25 + $0x4] sm:$0x3]  ;;  %v187_v12 = vld [vmem:[%s501_s25 + $0x2] sm:$0x3] }
   0xf   : > { %v179_v7 = vld [vmem:[%s501_s25 + $0x1] sm:$0x3]  ;;  %v175_v8 = vmul.f32 %v429_v0, %v171_v5  ;;  %v176_v9 = vmul.f32 %v429_v0, %v172_v6  ;;  %v180_v10 = vld [vmem:[%s501_s25 + $0x5] sm:$0x3]  ;;  %v191_v15 = vmul.f32 %v431_v2, %v187_v12  ;;  %v400_v18 = vld [vmem:[%s501_s25 + $0x8] sm:$0x3] }
  0x10   : > { %v183_v11 = vmul.f32 %v430_v1, %v179_v7  ;;  %v188_v13 = vld [vmem:[%s501_s25 + $0x6] sm:$0x3]  ;;  %v184_v14 = vmul.f32 %v430_v1, %v180_v10  ;;  %v399_v17 = vld [vmem:[%s501_s25 + $0x4] sm:$0x3]  ;;  %v403_v22 = vld [vmem:[%s501_s25 + $0x9] sm:$0x3]  ;;  %v202_v25 = vmul.f32 %v432_v3, %v400_v18 }
  0x11   : > { %v192_v16 = vmul.f32 %v431_v2, %v188_v13  ;;  %v402_v19 = vld [vmem:[%s501_s25 + $0x5] sm:$0x3]  ;;  %v201_v21 = vmul.f32 %v432_v3, %v399_v17  ;;  %v406_v29 = vld [vmem:[%s501_s25 + $0xa] sm:$0x3]  ;;  %v210_v32 = vmul.f32 %v433_v4, %v403_v22  ;;  %v408_v33 = vld [vmem:[%s501_s25 + $0x8] sm:$0x3] }
  0x12   : > { %v185_v20 = vadd.f32 %v183_v11, %v175_v8  ;;  %v186_v24 = vadd.f32 %v184_v14, %v176_v9  ;;  %v405_v26 = vld [vmem:[%s501_s25 + $0x6] sm:$0x3]  ;;  %v209_v28 = vmul.f32 %v433_v4, %v402_v19  ;;  %v409_v36 = vld [vmem:[%s501_s25 + $0xc] sm:$0x3]  ;;  %v436_v37 = vld [vmem:[%s563_s1 + $0x9] ss:$0 sm:$0xff]  ;;  %v218_v39 = vmul.f32 %v434_v23, %v406_v29 }
  0x13   : > { %v217_v35 = vmul.f32 %v434_v23, %v405_v26  ;;  %v411_v40 = vld [vmem:[%s501_s25 + $0x9] sm:$0x3]  ;;  %v227_v42 = vmul.f32 %v435_v30, %v408_v33  ;;  %v412_v43 = vld [vmem:[%s501_s25 + $0xd] sm:$0x3]  ;;  %v228_v46 = vmul.f32 %v435_v30, %v409_v36  ;;  %v438_v58 = vld [vmem:[%s564_s2] ss:$0 sm:$0xff] }
  0x14   : > { %v193_v27 = vadd.f32 %v191_v15, %v185_v20  ;;  %v194_v31 = vadd.f32 %v192_v16, %v186_v24  ;;  %v437_v44 = vld [vmem:[%s563_s1 + $0xa] ss:$0 sm:$0xff]  ;;  %v235_v49 = vmul.f32 %v436_v37, %v411_v40  ;;  %v415_v50 = vld [vmem:[%s501_s25 + $0xe] sm:$0x3]  ;;  %v236_v52 = vmul.f32 %v436_v37, %v412_v43 }
  0x15   : > { %v414_v47 = vld [vmem:[%s501_s25 + $0xa] sm:$0x3]  ;;  %v244_v56 = vmul.f32 %v437_v44, %v415_v50 }
  0x16   : > { %v203_v34 = vadd.f32 %v201_v21, %v193_v27  ;;  %v204_v38 = vadd.f32 %v202_v25, %v194_v31  ;;  %v243_v54 = vmul.f32 %v437_v44, %v414_v47 }
  0x18   : > { %v211_v41 = vadd.f32 %v209_v28, %v203_v34  ;;  %v212_v45 = vadd.f32 %v210_v32, %v204_v38 }
  0x1a   : > { %v219_v48 = vadd.f32 %v217_v35, %v211_v41  ;;  %v220_v51 = vadd.f32 %v218_v39, %v212_v45 }
  0x1c   : > { %v229_v53 = vadd.f32 %v227_v42, %v219_v48  ;;  %v230_v55 = vadd.f32 %v228_v46, %v220_v51 }
  0x1e   : > { %v237_v57 = vadd.f32 %v235_v49, %v229_v53  ;;  %v238_v59 = vadd.f32 %v236_v52, %v230_v55 }
  0x20   : > { %v245_v60 = vadd.f32 %v243_v54, %v237_v57  ;;  %v246_v61 = vadd.f32 %v244_v56, %v238_v59 }
  0x22   : > { %v539_v62 = vadd.f32 %v438_v58, %v245_v60  ;;  %v541_v63 = vadd.f32 %v438_v58, %v246_v61 }
  0x24   : > { %v544_v0 = vmul.f32 0.70710677, %v539_v62  ;;  %v547_v1 = vmul.f32 0.70710677, %v541_v63  ;;  %v253_v59 = vmul.f32 0.5, %v539_v62  ;;  %v254_v61 = vmul.f32 0.5, %v541_v63 }
  0x26   : > { %v257_v2 = vand.u32 2147483647, %v544_v0  ;;  %v258_v3 = vand.u32 2147483647, %v547_v1  ;;  %vm323_vm8 = vcmp.lt.f32.partialorder %v544_v0, 0.0  ;;  %vm324_vm9 = vcmp.lt.f32.partialorder %v547_v1, 0.0 }
  0x28   : > { %v259_v4 = vmul.f32 0.3275911, %v257_v2  ;;  %v260_v5 = vmul.f32 0.3275911, %v258_v3  ;;  %v311_v24 = vsub.f32 0.0, %v257_v2  ;;  %v312_v26 = vsub.f32 0.0, %v258_v3 }
  0x2a   : > { %v261_v6 = vadd.f32 1.0, %v259_v4  ;;  %v262_v7 = vadd.f32 1.0, %v260_v5  ;;  %v313_v32 = vmul.f32 %v311_v24, %v257_v2  ;;  %v314_v34 = vmul.f32 %v312_v26, %v258_v3 }
  0x2c   : > { %439 = vrcp.f32 %v261_v6  ;;  %vm268_vm0 = vweird.f32 %v261_v6  ;;  %v274_v11 = vand.u32 2147483648, %v261_v6  ;;  %v272_v14 = vand.u32 2147483647, %v261_v6 }
  0x2d   : > { %441 = vrcp.f32 %v262_v7  ;;  %v289_v15 = vand.u32 2147483648, %v262_v7  ;;  %vm283_vm2 = vweird.f32 %v262_v7  ;;  %v287_v17 = vand.u32 2147483647, %v262_v7 }
  0x2e   : > { %v275_v19 = vor.u32 1.1754944e-38, %v274_v11  ;;  %vm273_vm5 = vcmp.eq.f32.partialorder %v272_v14, 8.507059e+37  ;;  %v315_v38 = vmul.f32 1.442695, %v313_v32  ;;  %v317_v40 = vmul.f32 1.442695, %v314_v34 }
  0x2f   : > { %v290_v22 = vor.u32 1.1754944e-38, %v289_v15  ;;  %vm288_vm7 = vcmp.eq.f32.partialorder %v287_v17, 8.507059e+37 }
  0x30   : > { %443 = vpow2.f32 %v315_v38 }
  0x31   : > { %445 = vpow2.f32 %v317_v40 }
  0x32   : > { %v440_v8 = vpop.eup %439 }
  0x33   : > { %v442_v9 = vpop.eup %441  ;;  %v264_v10 = vmul.f32 %v440_v8, %v261_v6  ;;  %vm269_vm1 = vweird.f32 %v440_v8 }
  0x34   : > { %v279_v12 = vmul.f32 %v442_v9, %v262_v7  ;;  %vm284_vm3 = vweird.f32 %v442_v9  ;;  %vm270_vm4 = vmor %vm268_vm0, %vm269_vm1 }
  0x35   : > { %v265_v13 = vsub.f32 1.0, %v264_v10  ;;  %vm285_vm6 = vmor %vm283_vm2, %vm284_vm3 }
  0x36   : > { %v280_v16 = vsub.f32 1.0, %v279_v12  ;;  %v444_v49 = vpop.eup %443 }
  0x37   : > { %v266_v18 = vmul.f32 %v440_v8, %v265_v13  ;;  %v446_v51 = vpop.eup %445 }
  0x38   : > { %v281_v20 = vmul.f32 %v442_v9, %v280_v16 }
  0x39   : > { %v267_v21 = vadd.f32 %v440_v8, %v266_v18 }
  0x3a   : > { %v282_v23 = vadd.f32 %v442_v9, %v281_v20 }
  0x3b   : > { %v271_v25 = vsel %vm270_vm4, %v440_v8, %v267_v21 }
  0x3c   : > { %v276_v27 = vsel %vm273_vm5, %v275_v19, %v271_v25  ;;  %v286_v28 = vsel %vm285_vm6, %v442_v9, %v282_v23 }
  0x3d   : > { %v291_v29 = vsel %vm288_vm7, %v290_v22, %v286_v28  ;;  %v293_v30 = vmul.f32 1.0614054, %v276_v27 }
  0x3e   : > { %v294_v31 = vmul.f32 1.0614054, %v291_v29 }
  0x3f   : > { %v295_v33 = vadd.f32 -1.4531521, %v293_v30 }
  0x40   : > { %v296_v35 = vadd.f32 -1.4531521, %v294_v31 }
  0x41   : > { %v297_v36 = vmul.f32 %v295_v33, %v276_v27 }
  0x42   : > { %v298_v37 = vmul.f32 %v296_v35, %v291_v29 }
  0x43   : > { %v299_v39 = vadd.f32 1.4214138, %v297_v36 }
  0x44   : > { %v300_v41 = vadd.f32 1.4214138, %v298_v37 }
  0x45   : > { %v301_v42 = vmul.f32 %v299_v39, %v276_v27 }
  0x46   : > { %v302_v43 = vmul.f32 %v300_v41, %v291_v29 }
  0x47   : > { %v303_v44 = vadd.f32 -0.28449672, %v301_v42 }
  0x48   : > { %v304_v45 = vadd.f32 -0.28449672, %v302_v43 }
  0x49   : > { %v305_v46 = vmul.f32 %v303_v44, %v276_v27 }
  0x4a   : > { %v306_v47 = vmul.f32 %v304_v45, %v291_v29 }
  0x4b   : > { %v307_v48 = vadd.f32 0.2548296, %v305_v46 }
  0x4c   : > { %v308_v50 = vadd.f32 0.2548296, %v306_v47 }
  0x4d   : > { %v309_v52 = vmul.f32 %v307_v48, %v276_v27 }
  0x4e   : > { %v310_v53 = vmul.f32 %v308_v50, %v291_v29 }
  0x4f   : > { %v319_v54 = vmul.f32 %v444_v49, %v309_v52 }
  0x50   : > { %v320_v55 = vmul.f32 %v446_v51, %v310_v53 }
  0x51   : > { %v321_v56 = vsub.f32 1.0, %v319_v54 }
  0x52   : > { %v322_v57 = vsub.f32 1.0, %v320_v55 }
  0x53   : > { %v325_v58 = vsub.f32 0.0, %v321_v56 }
  0x54   : > { %v326_v60 = vsub.f32 0.0, %v322_v57 }
  0x55   : > { %v327_v2 = vsel %vm323_vm8, %v325_v58, %v321_v56 }
  0x56   : > { %v328_v3 = vsel %vm324_vm9, %v326_v60, %v322_v57  ;;  %v329_v4 = vadd.f32 1.0, %v327_v2 }
  0x57   : > { %v330_v5 = vadd.f32 1.0, %v328_v3 }
  0x58   : > { %v331_v6 = vmul.f32 %v329_v4, %v253_v59 }
  0x59   : > { %v332_v7 = vmul.f32 %v330_v5, %v254_v61 }
  0x5a   : > { %333 = vst [vmem:[%s170_s16] sm:$0x3] %v331_v6 }
  0x5b   : > { %334 = vst [vmem:[%s170_s16 + $0x2] sm:$0x3] %v332_v7 }
  0x5c PF: > { %s13_s12 = sadd.s32 1, %s453_s12  }
  0x5d   : > { %p10_p4 = scmp.ge.s32.totalorder %s13_s12, 4  }
  0x5f   :  { %12 = sbr.rel (!%p10_p4) target bundleno = 1 (0x1), region = 66 }

// kernel: conv_ffn_forward.6
= control target key start
LH: loop header
LB: loop body
LE: loop exit
PB: predicated region body
PF: predicated region fallthrough
CT: control target
= control target key end

     0   :  { %s523_s12 = smov 0   ;;  %s702_s0 = inlined_call_operand.vmem [shape: f32[768,128], index: 0, kind: input, shape index: {}]   ;;  %s703_s1 = inlined_call_operand.vmem [shape: f32[128,128], index: 1, kind: input, shape index: {}]   ;;  %s704_s2 = inlined_call_operand.vmem [shape: f32[1,128], index: 2, kind: input, shape index: {}]   ;;  %s705_s3 = inlined_call_operand.vmem [shape: f32[768,128], index: 3, kind: output, shape index: {}]  }
   0x1 LB: > { %s427_s13 = sadd.s32 4294967295, %s501_s12   ;;  %p431_p0 = scmp.ge.s32.totalorder %s501_s12, 1  ;;  %s501_s12 = sphi %s523_s12, %s13_s12  }
   0x2   : > { %p138_p1 = scmp.lt.s32.totalorder %s501_s12, 4 }
   0x4   : > { %p139_p2 = pnand %p431_p0, %p138_p1 }
   0x5   : > { %s432_s30 = sshll.u32 (!%p139_p2), %s427_s13, 5 }
   0x6   : > { %142 = sbr.rel (%p139_p2) target bundleno = 235 (0xeb), region = 32  ;;  %p163_p3 = scmp.lt.s32.totalorder (!%p139_p2), %s432_s30, 95 }
   0xb   : > { %v221_v0 = vld [vmem:[%s703_s1 + $0x78] sm:$0xff]  ;;  %v220_v1 = vld [vmem:[%s703_s1 + $0x70] sm:$0xff]  ;;  %v219_v2 = vld [vmem:[%s703_s1 + $0x68] sm:$0xff]  ;;  %s707_s30 = smov (!%p163_p3, %s432_s30), 95 }
   0xc   : > { %439 = vmatpush.msra.mxu2 %v221_v0  ;;  %440 = vmatpush.msra.mxu3 %v221_v0  ;;  %v218_v3 = vld [vmem:[%s703_s1 + $0x60] sm:$0xff]  ;;  %v217_v4 = vld [vmem:[%s703_s1 + $0x58] sm:$0xff]  ;;  %v216_v5 = vld [vmem:[%s703_s1 + $0x50] sm:$0xff]  ;;  %s433_s15 = sshll.u32 %s707_s30, 3 }
   0xd   : > { %226 = vmatpush.msra.mxu0 %v221_v0  ;;  %438 = vmatpush.msra.mxu1 %v221_v0  ;;  %v215_v6 = vld [vmem:[%s703_s1 + $0x48] sm:$0xff]  ;;  %v214_v7 = vld [vmem:[%s703_s1 + $0x40] sm:$0xff]  ;;  %v213_v8 = vld [vmem:[%s703_s1 + $0x38] sm:$0xff]  ;;  %s586_s22 = scalar_lea.vmem %s702_s0, %s433_s15  ;;  %s633_s29 = scalar_lea.vmem %s705_s3, %s433_s15 }
   0xe   : > { %442 = vmatpush.msra.mxu2 %v220_v1  ;;  %443 = vmatpush.msra.mxu3 %v220_v1  ;;  %v212_v9 = vld [vmem:[%s703_s1 + $0x30] sm:$0xff]  ;;  %v211_v10 = vld [vmem:[%s703_s1 + $0x28] sm:$0xff]  ;;  %v210_v11 = vld [vmem:[%s703_s1 + $0x20] sm:$0xff] }
   0xf   : > { %227 = vmatpush.msra.mxu0 %v220_v1  ;;  %441 = vmatpush.msra.mxu1 %v220_v1  ;;  %v209_v12 = vld [vmem:[%s703_s1 + $0x18] sm:$0xff]  ;;  %v208_v13 = vld [vmem:[%s703_s1 + $0x10] sm:$0xff]  ;;  %v207_v14 = vld [vmem:[%s703_s1 + $0x8] sm:$0xff] }
  0x10   : > { %445 = vmatpush.msra.mxu2 %v219_v2  ;;  %446 = vmatpush.msra.mxu3 %v219_v2  ;;  %v206_v15 = vld [vmem:[%s703_s1] sm:$0xff]  ;;  %v191_v20 = vld [vmem:[%s586_s22 + $0x88] sm:$0xff]  ;;  %v192_v24 = vld [vmem:[%s586_s22 + $0x90] sm:$0xff] }
  0x11   : > { %228 = vmatpush.msra.mxu0 %v219_v2  ;;  %444 = vmatpush.msra.mxu1 %v219_v2  ;;  %v190_v16 = vld [vmem:[%s586_s22 + $0x80] sm:$0xff]  ;;  %v199_v21 = vld [vmem:[%s586_s22 + $0xc8] sm:$0xff]  ;;  %v200_v25 = vld [vmem:[%s586_s22 + $0xd0] sm:$0xff] }
  0x12   : > { %448 = vmatpush.msra.mxu2 %v218_v3  ;;  %449 = vmatpush.msra.mxu3 %v218_v3  ;;  %v198_v17 = vld [vmem:[%s586_s22 + $0xc0] sm:$0xff]  ;;  %v175_v22 = vld [vmem:[%s586_s22 + $0x8] sm:$0xff]  ;;  %v176_v26 = vld [vmem:[%s586_s22 + $0x10] sm:$0xff] }
  0x13   : > { %229 = vmatpush.msra.mxu0 %v218_v3  ;;  %447 = vmatpush.msra.mxu1 %v218_v3  ;;  %v174_v18 = vld [vmem:[%s586_s22] sm:$0xff]  ;;  %v183_v23 = vld [vmem:[%s586_s22 + $0x48] sm:$0xff]  ;;  %v184_v27 = vld [vmem:[%s586_s22 + $0x50] sm:$0xff] }
  0x14   : > { %451 = vmatpush.msra.mxu2 %v217_v4  ;;  %452 = vmatpush.msra.mxu3 %v217_v4  ;;  %v182_v19 = vld [vmem:[%s586_s22 + $0x40] sm:$0xff]  ;;  %v193_v28 = vld [vmem:[%s586_s22 + $0x98] sm:$0xff]  ;;  %v195_v36 = vld [vmem:[%s586_s22 + $0xa8] sm:$0xff] }
  0x15   : > { %230 = vmatpush.msra.mxu0 %v217_v4  ;;  %450 = vmatpush.msra.mxu1 %v217_v4  ;;  %v201_v29 = vld [vmem:[%s586_s22 + $0xd8] sm:$0xff]  ;;  %v194_v32 = vld [vmem:[%s586_s22 + $0xa0] sm:$0xff]  ;;  %v203_v37 = vld [vmem:[%s586_s22 + $0xe8] sm:$0xff] }
  0x16   : > { %454 = vmatpush.msra.mxu2 %v216_v5  ;;  %455 = vmatpush.msra.mxu3 %v216_v5  ;;  %v177_v30 = vld [vmem:[%s586_s22 + $0x18] sm:$0xff]  ;;  %v202_v33 = vld [vmem:[%s586_s22 + $0xe0] sm:$0xff]  ;;  %v179_v38 = vld [vmem:[%s586_s22 + $0x28] sm:$0xff] }
  0x17   : > { %231 = vmatpush.msra.mxu0 %v216_v5  ;;  %453 = vmatpush.msra.mxu1 %v216_v5  ;;  %v185_v31 = vld [vmem:[%s586_s22 + $0x58] sm:$0xff]  ;;  %v178_v34 = vld [vmem:[%s586_s22 + $0x20] sm:$0xff]  ;;  %v187_v39 = vld [vmem:[%s586_s22 + $0x68] sm:$0xff] }
  0x18   : > { %457 = vmatpush.msra.mxu2 %v215_v6  ;;  %458 = vmatpush.msra.mxu3 %v215_v6  ;;  %v186_v35 = vld [vmem:[%s586_s22 + $0x60] sm:$0xff]  ;;  %v196_v40 = vld [vmem:[%s586_s22 + $0xb0] sm:$0xff]  ;;  %v197_v44 = vld [vmem:[%s586_s22 + $0xb8] sm:$0xff] }
  0x19   : > { %232 = vmatpush.msra.mxu0 %v215_v6  ;;  %456 = vmatpush.msra.mxu1 %v215_v6  ;;  %v204_v41 = vld [vmem:[%s586_s22 + $0xf0] sm:$0xff]  ;;  %v205_v45 = vld [vmem:[%s586_s22 + $0xf8] sm:$0xff]  ;;  %v626_v48 = vld [vmem:[%s704_s2] ss:$0 sm:$0xff] }
  0x1a   : > { %460 = vmatpush.msra.mxu2 %v214_v7  ;;  %461 = vmatpush.msra.mxu3 %v214_v7  ;;  %v180_v42 = vld [vmem:[%s586_s22 + $0x30] sm:$0xff]  ;;  %v181_v46 = vld [vmem:[%s586_s22 + $0x38] sm:$0xff] }
  0x1b   : > { %233 = vmatpush.msra.mxu0 %v214_v7  ;;  %459 = vmatpush.msra.mxu1 %v214_v7  ;;  %v188_v43 = vld [vmem:[%s586_s22 + $0x70] sm:$0xff]  ;;  %v189_v47 = vld [vmem:[%s586_s22 + $0x78] sm:$0xff] }
  0x1c   : > { %463 = vmatpush.msra.mxu2 %v213_v8  ;;  %464 = vmatpush.msra.mxu3 %v213_v8 }
  0x1d   : > { %234 = vmatpush.msra.mxu0 %v213_v8  ;;  %462 = vmatpush.msra.mxu1 %v213_v8 }
  0x1e   : > { %466 = vmatpush.msra.mxu2 %v212_v9  ;;  %467 = vmatpush.msra.mxu3 %v212_v9 }
  0x1f   : > { %235 = vmatpush.msra.mxu0 %v212_v9  ;;  %465 = vmatpush.msra.mxu1 %v212_v9 }
  0x20   : > { %469 = vmatpush.msra.mxu2 %v211_v10  ;;  %470 = vmatpush.msra.mxu3 %v211_v10 }
  0x21   : > { %236 = vmatpush.msra.mxu0 %v211_v10  ;;  %468 = vmatpush.msra.mxu1 %v211_v10 }
  0x22   : > { %472 = vmatpush.msra.mxu2 %v210_v11  ;;  %473 = vmatpush.msra.mxu3 %v210_v11 }
  0x23   : > { %237 = vmatpush.msra.mxu0 %v210_v11  ;;  %471 = vmatpush.msra.mxu1 %v210_v11 }
  0x24   : > { %475 = vmatpush.msra.mxu2 %v209_v12  ;;  %476 = vmatpush.msra.mxu3 %v209_v12 }
  0x25   : > { %238 = vmatpush.msra.mxu0 %v209_v12  ;;  %474 = vmatpush.msra.mxu1 %v209_v12 }
  0x26   : > { %478 = vmatpush.msra.mxu2 %v208_v13  ;;  %479 = vmatpush.msra.mxu3 %v208_v13 }
  0x27   : > { %239 = vmatpush.msra.mxu0 %v208_v13  ;;  %477 = vmatpush.msra.mxu1 %v208_v13 }
  0x28   : > { %481 = vmatpush.msra.mxu2 %v207_v14  ;;  %482 = vmatpush.msra.mxu3 %v207_v14 }
  0x29   : > { %240 = vmatpush.msra.mxu0 %v207_v14  ;;  %480 = vmatpush.msra.mxu1 %v207_v14 }
  0x2a   : > { %484 = vmatpush.msra.mxu2 %v206_v15  ;;  %485 = vmatpush.msra.mxu3 %v206_v15 }
  0x2b   : > { %290 = vmatmul.f32.vlgmr.msra.gmra.mxu2 %v190_v16  ;;  %314 = vmatmul.f32.vlgmr.msra.gmra.mxu3 %v198_v17 }
  0x2c   : > { %241 = vmatpush.msra.mxu0 %v206_v15  ;;  %483 = vmatpush.msra.mxu1 %v206_v15 }
  0x2d   : > { %242 = vmatmul.f32.vlgmr.msra.gmra.mxu0 %v174_v18  ;;  %266 = vmatmul.f32.vlgmr.msra.gmra.mxu1 %v182_v19 }
  0x33   : > { %293 = vmatmul.f32.gmra.mxu2 %v191_v20  ;;  %317 = vmatmul.f32.gmra.mxu3 %v199_v21 }
  0x35   : > { %245 = vmatmul.f32.gmra.mxu0 %v175_v22  ;;  %269 = vmatmul.f32.gmra.mxu1 %v183_v23 }
  0x3b   : > { %296 = vmatmul.f32.gmra.mxu2 %v192_v24  ;;  %320 = vmatmul.f32.gmra.mxu3 %v200_v25 }
  0x3d   : > { %248 = vmatmul.f32.gmra.mxu0 %v176_v26  ;;  %272 = vmatmul.f32.gmra.mxu1 %v184_v27 }
  0x43   : > { %299 = vmatmul.f32.gmra.mxu2 %v193_v28  ;;  %323 = vmatmul.f32.gmra.mxu3 %v201_v29 }
  0x45   : > { %251 = vmatmul.f32.gmra.mxu0 %v177_v30  ;;  %275 = vmatmul.f32.gmra.mxu1 %v185_v31 }
  0x4b   : > { %302 = vmatmul.f32.gmra.mxu2 %v194_v32  ;;  %326 = vmatmul.f32.gmra.mxu3 %v202_v33 }
  0x4d   : > { %254 = vmatmul.f32.gmra.mxu0 %v178_v34  ;;  %278 = vmatmul.f32.gmra.mxu1 %v186_v35 }
  0x53   : > { %305 = vmatmul.f32.gmra.mxu2 %v195_v36  ;;  %329 = vmatmul.f32.gmra.mxu3 %v203_v37 }
  0x55   : > { %257 = vmatmul.f32.gmra.mxu0 %v179_v38  ;;  %281 = vmatmul.f32.gmra.mxu1 %v187_v39 }
  0x5b   : > { %308 = vmatmul.f32.gmra.mxu2 %v196_v40  ;;  %332 = vmatmul.f32.gmra.mxu3 %v204_v41 }
  0x5d   : > { %260 = vmatmul.f32.gmra.mxu0 %v180_v42  ;;  %284 = vmatmul.f32.gmra.mxu1 %v188_v43 }
  0x63   : > { %311 = vmatmul.f32.gmra.mxu2 %v197_v44  ;;  %335 = vmatmul.f32.gmra.mxu3 %v205_v45 }
  0x65   : > { %263 = vmatmul.f32.gmra.mxu0 %v181_v46  ;;  %287 = vmatmul.f32.gmra.mxu1 %v189_v47 }
  0xaa   : > { %v243_v49 = vpop.f32.mrf.mxu0  ;;  %v267_v50 = vpop.f32.mrf.mxu1 }
  0xab   : > { %v244_v51 = vadd.f32 %v626_v48, %v243_v49  ;;  %v268_v52 = vadd.f32 %v626_v48, %v267_v50 }
  0xad   : > { %339 = vst [vmem:[%s633_s29] sm:$0xff] %v244_v51 }
  0xae   : > { %347 = vst [vmem:[%s633_s29 + $0x40] sm:$0xff] %v268_v52  ;;  %v291_v53 = vpop.f32.mrf.mxu2  ;;  %v315_v54 = vpop.f32.mrf.mxu3 }
  0xaf   : > { %v292_v55 = vadd.f32 %v626_v48, %v291_v53  ;;  %v316_v56 = vadd.f32 %v626_v48, %v315_v54 }
  0xb1   : > { %355 = vst [vmem:[%s633_s29 + $0x80] sm:$0xff] %v292_v55 }
  0xb2   : > { %363 = vst [vmem:[%s633_s29 + $0xc0] sm:$0xff] %v316_v56  ;;  %v246_v57 = vpop.f32.mrf.mxu0  ;;  %v270_v58 = vpop.f32.mrf.mxu1 }
  0xb3   : > { %v247_v59 = vadd.f32 %v626_v48, %v246_v57  ;;  %v271_v60 = vadd.f32 %v626_v48, %v270_v58 }
  0xb5   : > { %340 = vst [vmem:[%s633_s29 + $0x8] sm:$0xff] %v247_v59 }
  0xb6   : > { %348 = vst [vmem:[%s633_s29 + $0x48] sm:$0xff] %v271_v60  ;;  %v294_v61 = vpop.f32.mrf.mxu2  ;;  %v318_v62 = vpop.f32.mrf.mxu3 }
  0xb7   : > { %v295_v63 = vadd.f32 %v626_v48, %v294_v61  ;;  %v319_v0 = vadd.f32 %v626_v48, %v318_v62 }
  0xb9   : > { %356 = vst [vmem:[%s633_s29 + $0x88] sm:$0xff] %v295_v63 }
  0xba   : > { %364 = vst [vmem:[%s633_s29 + $0xc8] sm:$0xff] %v319_v0  ;;  %v249_v1 = vpop.f32.mrf.mxu0  ;;  %v273_v2 = vpop.f32.mrf.mxu1 }
  0xbb   : > { %v250_v3 = vadd.f32 %v626_v48, %v249_v1  ;;  %v274_v4 = vadd.f32 %v626_v48, %v273_v2 }
  0xbd   : > { %341 = vst [vmem:[%s633_s29 + $0x10] sm:$0xff] %v250_v3 }
  0xbe   : > { %349 = vst [vmem:[%s633_s29 + $0x50] sm:$0xff] %v274_v4  ;;  %v297_v5 = vpop.f32.mrf.mxu2  ;;  %v321_v6 = vpop.f32.mrf.mxu3 }
  0xbf   : > { %v298_v7 = vadd.f32 %v626_v48, %v297_v5  ;;  %v322_v8 = vadd.f32 %v626_v48, %v321_v6 }
  0xc1   : > { %357 = vst [vmem:[%s633_s29 + $0x90] sm:$0xff] %v298_v7 }
  0xc2   : > { %365 = vst [vmem:[%s633_s29 + $0xd0] sm:$0xff] %v322_v8  ;;  %v252_v9 = vpop.f32.mrf.mxu0  ;;  %v276_v10 = vpop.f32.mrf.mxu1 }
  0xc3   : > { %v253_v11 = vadd.f32 %v626_v48, %v252_v9  ;;  %v277_v12 = vadd.f32 %v626_v48, %v276_v10 }
  0xc5   : > { %342 = vst [vmem:[%s633_s29 + $0x18] sm:$0xff] %v253_v11 }
  0xc6   : > { %350 = vst [vmem:[%s633_s29 + $0x58] sm:$0xff] %v277_v12  ;;  %v300_v13 = vpop.f32.mrf.mxu2  ;;  %v324_v14 = vpop.f32.mrf.mxu3 }
  0xc7   : > { %v301_v15 = vadd.f32 %v626_v48, %v300_v13  ;;  %v325_v16 = vadd.f32 %v626_v48, %v324_v14 }
  0xc9   : > { %358 = vst [vmem:[%s633_s29 + $0x98] sm:$0xff] %v301_v15 }
  0xca   : > { %366 = vst [vmem:[%s633_s29 + $0xd8] sm:$0xff] %v325_v16  ;;  %v255_v17 = vpop.f32.mrf.mxu0  ;;  %v279_v18 = vpop.f32.mrf.mxu1 }
  0xcb   : > { %v256_v19 = vadd.f32 %v626_v48, %v255_v17  ;;  %v280_v20 = vadd.f32 %v626_v48, %v279_v18 }
  0xcd   : > { %343 = vst [vmem:[%s633_s29 + $0x20] sm:$0xff] %v256_v19 }
  0xce   : > { %351 = vst [vmem:[%s633_s29 + $0x60] sm:$0xff] %v280_v20  ;;  %v303_v21 = vpop.f32.mrf.mxu2  ;;  %v327_v22 = vpop.f32.mrf.mxu3 }
  0xcf   : > { %v304_v23 = vadd.f32 %v626_v48, %v303_v21  ;;  %v328_v24 = vadd.f32 %v626_v48, %v327_v22 }
  0xd1   : > { %359 = vst [vmem:[%s633_s29 + $0xa0] sm:$0xff] %v304_v23 }
  0xd2   : > { %367 = vst [vmem:[%s633_s29 + $0xe0] sm:$0xff] %v328_v24  ;;  %v258_v25 = vpop.f32.mrf.mxu0  ;;  %v282_v26 = vpop.f32.mrf.mxu1 }
  0xd3   : > { %v259_v27 = vadd.f32 %v626_v48, %v258_v25  ;;  %v283_v28 = vadd.f32 %v626_v48, %v282_v26 }
  0xd5   : > { %344 = vst [vmem:[%s633_s29 + $0x28] sm:$0xff] %v259_v27 }
  0xd6   : > { %352 = vst [vmem:[%s633_s29 + $0x68] sm:$0xff] %v283_v28  ;;  %v306_v29 = vpop.f32.mrf.mxu2  ;;  %v330_v30 = vpop.f32.mrf.mxu3 }
  0xd7   : > { %v307_v31 = vadd.f32 %v626_v48, %v306_v29  ;;  %v331_v32 = vadd.f32 %v626_v48, %v330_v30 }
  0xd9   : > { %360 = vst [vmem:[%s633_s29 + $0xa8] sm:$0xff] %v307_v31 }
  0xda   : > { %368 = vst [vmem:[%s633_s29 + $0xe8] sm:$0xff] %v331_v32  ;;  %v261_v33 = vpop.f32.mrf.mxu0  ;;  %v285_v34 = vpop.f32.mrf.mxu1 }
  0xdb   : > { %v262_v35 = vadd.f32 %v626_v48, %v261_v33  ;;  %v286_v36 = vadd.f32 %v626_v48, %v285_v34 }
  0xdd   : > { %345 = vst [vmem:[%s633_s29 + $0x30] sm:$0xff] %v262_v35 }
  0xde   : > { %353 = vst [vmem:[%s633_s29 + $0x70] sm:$0xff] %v286_v36  ;;  %v309_v37 = vpop.f32.mrf.mxu2  ;;  %v333_v38 = vpop.f32.mrf.mxu3 }
  0xdf   : > { %v310_v39 = vadd.f32 %v626_v48, %v309_v37  ;;  %v334_v40 = vadd.f32 %v626_v48, %v333_v38 }
  0xe1   : > { %361 = vst [vmem:[%s633_s29 + $0xb0] sm:$0xff] %v310_v39 }
  0xe2   : > { %369 = vst [vmem:[%s633_s29 + $0xf0] sm:$0xff] %v334_v40  ;;  %v264_v41 = vpop.f32.mrf.mxu0  ;;  %v288_v42 = vpop.f32.mrf.mxu1 }
  0xe3   : > { %v265_v43 = vadd.f32 %v626_v48, %v264_v41  ;;  %v289_v44 = vadd.f32 %v626_v48, %v288_v42 }
  0xe5   : > { %346 = vst [vmem:[%s633_s29 + $0x38] sm:$0xff] %v265_v43 }
  0xe6   : > { %354 = vst [vmem:[%s633_s29 + $0x78] sm:$0xff] %v289_v44  ;;  %v312_v45 = vpop.f32.mrf.mxu2  ;;  %v336_v46 = vpop.f32.mrf.mxu3 }
  0xe7   : > { %v313_v47 = vadd.f32 %v626_v48, %v312_v45  ;;  %v337_v49 = vadd.f32 %v626_v48, %v336_v46 }
  0xe9   : > { %362 = vst [vmem:[%s633_s29 + $0xb8] sm:$0xff] %v313_v47 }
  0xea   : > { %370 = vst [vmem:[%s633_s29 + $0xf8] sm:$0xff] %v337_v49 }
  0xeb PF: > { %s13_s12 = sadd.s32 1, %s501_s12  }
  0xec   : > { %p10_p4 = scmp.ge.s32.totalorder %s13_s12, 5  }
  0xee   :  { %12 = sbr.rel (!%p10_p4) target bundleno = 1 (0x1), region = 62 }

// kernel: conv_ffn_forward.8
= control target key start
LH: loop header
LB: loop body
LE: loop exit
PB: predicated region body
PF: predicated region fallthrough
CT: control target
= control target key end

     0   :  { %s948_s12 = smov 0   ;;  %s1544_s0 = inlined_call_operand.vmem [shape: f32[2,10,10,128], index: 0, kind: input, shape index: {}]   ;;  %s1545_s1 = inlined_call_operand.vmem [shape: f32[3,3,128], index: 1, kind: input, shape index: {}]   ;;  %s1546_s2 = inlined_call_operand.vmem [shape: f32[1,128], index: 2, kind: input, shape index: {}]   ;;  %s1547_s3 = inlined_call_operand.vmem [shape: f32[2,8,8,128], index: 3, kind: output, shape index: {}]  }
   0x1 LB: > { %s804_s13 = sadd.s32 4294967295, %s926_s12   ;;  %p808_p0 = scmp.ge.s32.totalorder %s926_s12, 1  ;;  %s926_s12 = sphi %s948_s12, %s13_s12  }
   0x2   : > { %p137_p1 = scmp.lt.s32.totalorder %s926_s12, 3 }
   0x4   : > { %p138_p2 = pnand %p808_p0, %p137_p1 }
   0x6   : > { %141 = sbr.rel (%p138_p2) target bundleno = 140 (0x8c), region = 32 }
   0xb   : > { %p161_p3 = scmp.lt.s32.totalorder %s804_s13, 1  ;;  %v878_v0 = vld [vmem:[%s1545_s1] ss:$0 sm:$0xff]  ;;  %v965_v1 = vld [vmem:[%s1545_s1 + $0x4] ss:$0 sm:$0xff] }
   0xc   : > { %v879_v2 = vld [vmem:[%s1545_s1 + $0x1] ss:$0 sm:$0xff]  ;;  %v880_v12 = vld [vmem:[%s1545_s1 + $0x2] ss:$0 sm:$0xff] }
   0xd   : > { %s1583_s13 = smov (!%p161_p3, %s804_s13), 1 }
   0xe   : > { %s869_s16 = smul.u32 160, %s1583_s13  ;;  %s868_s11 = sshll.u32 %s1583_s13, 6 }
   0xf   : > { %s170_s15 = scalar_lea.vmem %s1547_s3, %s868_s11 }
  0x10   : > { %s970_s21 = scalar_lea.vmem %s1544_s0, %s869_s16 }
  0x11   : > { %v171_v3 = vld [vmem:[%s970_s21] sm:$0xff]  ;;  %v172_v4 = vld [vmem:[%s970_s21 + $0x10] sm:$0xff] }
  0x12   : > { %v978_v5 = vld [vmem:[%s970_s21 + $0x20] sm:$0xff]  ;;  %v981_v6 = vld [vmem:[%s970_s21 + $0x30] sm:$0xff]  ;;  %v181_v9 = vmul.f32 %v878_v0, %v171_v3  ;;  %v182_v10 = vmul.f32 %v878_v0, %v172_v4  ;;  %v994_v13 = vmul.f32 %v965_v1, %v172_v4 }
  0x13   : > { %v984_v7 = vld [vmem:[%s970_s21 + $0x40] sm:$0xff]  ;;  %v987_v8 = vld [vmem:[%s970_s21 + $0x50] sm:$0xff]  ;;  %v183_v11 = vmul.f32 %v878_v0, %v978_v5  ;;  %v184_v16 = vmul.f32 %v878_v0, %v981_v6  ;;  %v262_v20 = vmul.f32 %v965_v1, %v978_v5  ;;  %v263_v27 = vmul.f32 %v965_v1, %v981_v6 }
  0x14   : > { %v997_v14 = vld [vmem:[%s970_s21 + $0x60] sm:$0xff]  ;;  %v1000_v15 = vld [vmem:[%s970_s21 + $0x70] sm:$0xff]  ;;  %v185_v17 = vmul.f32 %v878_v0, %v984_v7  ;;  %v186_v18 = vmul.f32 %v878_v0, %v987_v8  ;;  %v264_v34 = vmul.f32 %v965_v1, %v984_v7 }
  0x15   : > { %v197_v19 = vld [vmem:[%s970_s21 + $0x1] sm:$0xff]  ;;  %v187_v21 = vmul.f32 %v878_v0, %v997_v14  ;;  %v188_v22 = vmul.f32 %v878_v0, %v1000_v15  ;;  %v1011_v23 = vld [vmem:[%s970_s21 + $0x11] sm:$0xff] }
  0x16   : > { %v1014_v24 = vld [vmem:[%s970_s21 + $0x21] sm:$0xff]  ;;  %v1017_v25 = vld [vmem:[%s970_s21 + $0x31] sm:$0xff]  ;;  %v207_v26 = vmul.f32 %v879_v2, %v197_v19  ;;  %v208_v31 = vmul.f32 %v879_v2, %v1011_v23  ;;  %v265_v19 = vmul.f32 %v965_v1, %v987_v8 }
  0x17   : > { %v1022_v28 = vld [vmem:[%s970_s21 + $0x41] sm:$0xff]  ;;  %v1025_v29 = vld [vmem:[%s970_s21 + $0x51] sm:$0xff]  ;;  %v209_v32 = vmul.f32 %v879_v2, %v1014_v24  ;;  %v210_v33 = vmul.f32 %v879_v2, %v1017_v25 }
  0x18   : > { %v1028_v30 = vld [vmem:[%s970_s21 + $0x61] sm:$0xff]  ;;  %v1036_v35 = vld [vmem:[%s970_s21 + $0x71] sm:$0xff]  ;;  %v211_v36 = vmul.f32 %v879_v2, %v1022_v28  ;;  %v212_v37 = vmul.f32 %v879_v2, %v1025_v29  ;;  %v215_v39 = vadd.f32 %v207_v26, %v181_v9  ;;  %v216_v43 = vadd.f32 %v208_v31, %v182_v10 }
  0x19   : > { %v213_v38 = vmul.f32 %v879_v2, %v1028_v30  ;;  %v223_v40 = vld [vmem:[%s970_s21 + $0x2] sm:$0xff]  ;;  %v1043_v41 = vld [vmem:[%s970_s21 + $0x12] sm:$0xff]  ;;  %v214_v42 = vmul.f32 %v879_v2, %v1036_v35  ;;  %v217_v44 = vadd.f32 %v209_v32, %v183_v11  ;;  %v218_v45 = vadd.f32 %v210_v33, %v184_v16 }
  0x1a   : > { %v1047_v46 = vld [vmem:[%s970_s21 + $0x22] sm:$0xff]  ;;  %v1050_v47 = vld [vmem:[%s970_s21 + $0x32] sm:$0xff]  ;;  %v219_v49 = vadd.f32 %v211_v36, %v185_v17  ;;  %v220_v50 = vadd.f32 %v212_v37, %v186_v18  ;;  %v233_v55 = vmul.f32 %v880_v12, %v223_v40  ;;  %v234_v57 = vmul.f32 %v880_v12, %v1043_v41 }
  0x1b   : > { %v1053_v48 = vld [vmem:[%s970_s21 + $0x42] sm:$0xff]  ;;  %v221_v51 = vadd.f32 %v213_v38, %v187_v21  ;;  %v1056_v52 = vld [vmem:[%s970_s21 + $0x52] sm:$0xff]  ;;  %v222_v56 = vadd.f32 %v214_v42, %v188_v22  ;;  %v235_v58 = vmul.f32 %v880_v12, %v1047_v46  ;;  %v236_v59 = vmul.f32 %v880_v12, %v1050_v47 }
  0x1c   : > { %v1059_v53 = vld [vmem:[%s970_s21 + $0x62] sm:$0xff]  ;;  %v1062_v54 = vld [vmem:[%s970_s21 + $0x72] sm:$0xff]  ;;  %v237_v60 = vmul.f32 %v880_v12, %v1053_v48  ;;  %v238_v61 = vmul.f32 %v880_v12, %v1056_v52  ;;  %v241_v2 = vadd.f32 %v233_v55, %v215_v39  ;;  %v242_v3 = vadd.f32 %v234_v57, %v216_v43 }
  0x1d   : > { %v239_v62 = vmul.f32 %v880_v12, %v1059_v53  ;;  %v240_v63 = vmul.f32 %v880_v12, %v1062_v54  ;;  %v1072_v0 = vld [vmem:[%s970_s21 + $0x80] sm:$0xff]  ;;  %v243_v4 = vadd.f32 %v235_v58, %v217_v44  ;;  %v244_v9 = vadd.f32 %v236_v59, %v218_v45 }
  0x1e   : > { %v245_v10 = vadd.f32 %v237_v60, %v219_v49  ;;  %v246_v11 = vadd.f32 %v238_v61, %v220_v50  ;;  %v882_v18 = vld [vmem:[%s1545_s1 + $0x5] ss:$0 sm:$0xff]  ;;  %v266_v12 = vmul.f32 %v965_v1, %v997_v14  ;;  %v267_v21 = vmul.f32 %v965_v1, %v1000_v15 }
  0x1f   : > { %v247_v16 = vadd.f32 %v239_v62, %v221_v51  ;;  %v248_v17 = vadd.f32 %v240_v63, %v222_v56  ;;  %v268_v22 = vmul.f32 %v965_v1, %v1072_v0  ;;  %v269_v26 = vadd.f32 %v994_v13, %v241_v2  ;;  %v1087_v36 = vld [vmem:[%s970_s21 + $0x81] sm:$0xff] }
  0x20   : > { %v270_v31 = vadd.f32 %v262_v20, %v242_v3  ;;  %v271_v32 = vadd.f32 %v263_v27, %v243_v4  ;;  %v272_v33 = vadd.f32 %v264_v34, %v244_v9  ;;  %v273_v37 = vadd.f32 %v265_v19, %v245_v10  ;;  %v883_v13 = vld [vmem:[%s1545_s1 + $0x6] ss:$0 sm:$0xff]  ;;  %v884_v2 = vld [vmem:[%s1545_s1 + $0x8] ss:$0 sm:$0xff] }
  0x21   : > { %v274_v38 = vadd.f32 %v266_v12, %v246_v11  ;;  %v275_v39 = vadd.f32 %v267_v21, %v247_v16  ;;  %v276_v40 = vadd.f32 %v268_v22, %v248_v17  ;;  %v287_v42 = vmul.f32 %v882_v18, %v1011_v23  ;;  %v1101_v55 = vld [vmem:[%s970_s21 + $0x82] sm:$0xff] }
  0x22   : > { %v288_v43 = vmul.f32 %v882_v18, %v1014_v24  ;;  %v289_v44 = vmul.f32 %v882_v18, %v1017_v25  ;;  %v290_v1 = vmul.f32 %v882_v18, %v1022_v28  ;;  %v291_v20 = vmul.f32 %v882_v18, %v1025_v29 }
  0x23   : > { %v292_v27 = vmul.f32 %v882_v18, %v1028_v30  ;;  %v293_v34 = vmul.f32 %v882_v18, %v1036_v35  ;;  %v294_v45 = vmul.f32 %v882_v18, %v1087_v36  ;;  %v295_v49 = vadd.f32 %v287_v42, %v269_v26  ;;  %v846_v18 = vld [vmem:[%s970_s21 + $0x90] sm:$0xff] }
  0x24   : > { %v296_v23 = vadd.f32 %v288_v43, %v270_v31  ;;  %v297_v50 = vadd.f32 %v289_v44, %v271_v32  ;;  %v298_v51 = vadd.f32 %v290_v1, %v272_v33  ;;  %v299_v56 = vadd.f32 %v291_v20, %v273_v37  ;;  %v885_v37 = vld [vmem:[%s1545_s1 + $0x9] ss:$0 sm:$0xff] }
  0x25   : > { %v300_v57 = vadd.f32 %v292_v27, %v274_v38  ;;  %v301_v58 = vadd.f32 %v293_v34, %v275_v39  ;;  %v302_v59 = vadd.f32 %v294_v45, %v276_v40  ;;  %v313_v60 = vmul.f32 %v883_v13, %v1043_v41 }
  0x26   : > { %v314_v61 = vmul.f32 %v883_v13, %v1047_v46  ;;  %v315_v62 = vmul.f32 %v883_v13, %v1050_v47  ;;  %v316_v63 = vmul.f32 %v883_v13, %v1053_v48  ;;  %v317_v3 = vmul.f32 %v883_v13, %v1056_v52 }
  0x27   : > { %v318_v4 = vmul.f32 %v883_v13, %v1059_v53  ;;  %v319_v9 = vmul.f32 %v883_v13, %v1062_v54  ;;  %v320_v10 = vmul.f32 %v883_v13, %v1101_v55  ;;  %v321_v11 = vadd.f32 %v313_v60, %v295_v49 }
  0x28   : > { %v322_v41 = vadd.f32 %v314_v61, %v296_v23  ;;  %v323_v16 = vadd.f32 %v315_v62, %v297_v50  ;;  %v324_v17 = vadd.f32 %v316_v63, %v298_v51  ;;  %v325_v19 = vadd.f32 %v317_v3, %v299_v56 }
  0x29   : > { %v326_v12 = vadd.f32 %v318_v4, %v300_v57  ;;  %v327_v21 = vadd.f32 %v319_v9, %v301_v58  ;;  %v328_v22 = vadd.f32 %v320_v10, %v302_v59  ;;  %v341_v26 = vmul.f32 %v884_v2, %v978_v5 }
  0x2a   : > { %v342_v31 = vmul.f32 %v884_v2, %v981_v6  ;;  %v343_v32 = vmul.f32 %v884_v2, %v984_v7  ;;  %v344_v33 = vmul.f32 %v884_v2, %v987_v8  ;;  %v345_v38 = vmul.f32 %v884_v2, %v997_v14  ;;  %v855_v6 = vld [vmem:[%s970_s21 + $0x91] sm:$0xff] }
  0x2b   : > { %v346_v39 = vmul.f32 %v884_v2, %v1000_v15  ;;  %v347_v40 = vmul.f32 %v884_v2, %v1072_v0  ;;  %v348_v42 = vmul.f32 %v884_v2, %v846_v18  ;;  %v349_v43 = vadd.f32 %v341_v26, %v321_v11  ;;  %v886_v0 = vld [vmem:[%s1545_s1 + $0xa] ss:$0 sm:$0xff] }
  0x2c   : > { %v350_v44 = vadd.f32 %v342_v31, %v322_v41  ;;  %v351_v5 = vadd.f32 %v343_v32, %v323_v16  ;;  %v352_v1 = vadd.f32 %v344_v33, %v324_v17  ;;  %v353_v13 = vadd.f32 %v345_v38, %v325_v19 }
  0x2d   : > { %v354_v7 = vadd.f32 %v346_v39, %v326_v12  ;;  %v355_v8 = vadd.f32 %v347_v40, %v327_v21  ;;  %v356_v20 = vadd.f32 %v348_v42, %v328_v22  ;;  %v367_v27 = vmul.f32 %v885_v37, %v1014_v24 }
  0x2e   : > { %v368_v34 = vmul.f32 %v885_v37, %v1017_v25  ;;  %v369_v14 = vmul.f32 %v885_v37, %v1022_v28  ;;  %v370_v15 = vmul.f32 %v885_v37, %v1025_v29  ;;  %v371_v45 = vmul.f32 %v885_v37, %v1028_v30  ;;  %v864_v25 = vld [vmem:[%s970_s21 + $0x92] sm:$0xff] }
  0x2f   : > { %v372_v49 = vmul.f32 %v885_v37, %v1036_v35  ;;  %v373_v23 = vmul.f32 %v885_v37, %v1087_v36  ;;  %v374_v50 = vmul.f32 %v885_v37, %v855_v6  ;;  %v375_v51 = vadd.f32 %v367_v27, %v349_v43  ;;  %v887_v36 = vld [vmem:[%s1546_s2] ss:$0 sm:$0xff] }
  0x30   : > { %v376_v56 = vadd.f32 %v368_v34, %v350_v44  ;;  %v377_v24 = vadd.f32 %v369_v14, %v351_v5  ;;  %v378_v57 = vadd.f32 %v370_v15, %v352_v1  ;;  %v379_v58 = vadd.f32 %v371_v45, %v353_v13 }
  0x31   : > { %v380_v28 = vadd.f32 %v372_v49, %v354_v7  ;;  %v381_v59 = vadd.f32 %v373_v23, %v355_v8  ;;  %v382_v29 = vadd.f32 %v374_v50, %v356_v20  ;;  %v393_v60 = vmul.f32 %v886_v0, %v1047_v46 }
  0x32   : > { %v394_v61 = vmul.f32 %v886_v0, %v1050_v47  ;;  %v395_v30 = vmul.f32 %v886_v0, %v1053_v48  ;;  %v396_v35 = vmul.f32 %v886_v0, %v1056_v52  ;;  %v397_v62 = vmul.f32 %v886_v0, %v1059_v53 }
  0x33   : > { %v398_v63 = vmul.f32 %v886_v0, %v1062_v54  ;;  %v399_v2 = vmul.f32 %v886_v0, %v1101_v55  ;;  %v400_v3 = vmul.f32 %v886_v0, %v864_v25  ;;  %v401_v4 = vadd.f32 %v393_v60, %v375_v51 }
  0x34   : > { %v402_v9 = vadd.f32 %v394_v61, %v376_v56  ;;  %v403_v46 = vadd.f32 %v395_v30, %v377_v24  ;;  %v404_v10 = vadd.f32 %v396_v35, %v378_v57  ;;  %v405_v47 = vadd.f32 %v397_v62, %v379_v58 }
  0x35   : > { %v406_v11 = vadd.f32 %v398_v63, %v380_v28  ;;  %v407_v48 = vadd.f32 %v399_v2, %v381_v59  ;;  %v408_v41 = vadd.f32 %v400_v3, %v382_v29  ;;  %v1147_v52 = vadd.f32 %v887_v36, %v401_v4 }
  0x36   : > { %v1149_v16 = vadd.f32 %v887_v36, %v402_v9  ;;  %v1151_v17 = vadd.f32 %v887_v36, %v403_v46  ;;  %v1153_v53 = vadd.f32 %v887_v36, %v404_v10  ;;  %v1155_v54 = vadd.f32 %v887_v36, %v405_v47 }
  0x37   : > { %v1157_v55 = vadd.f32 %v887_v36, %v406_v11  ;;  %v1159_v18 = vadd.f32 %v887_v36, %v407_v48  ;;  %v1161_v19 = vadd.f32 %v887_v36, %v408_v41  ;;  %v1164_v12 = vmul.f32 0.70710677, %v1147_v52 }
  0x38   : > { %v1167_v21 = vmul.f32 0.70710677, %v1149_v16  ;;  %v1170_v22 = vmul.f32 0.70710677, %v1151_v17  ;;  %v1173_v26 = vmul.f32 0.70710677, %v1153_v53 }
  0x39   : > { %v1176_v31 = vmul.f32 0.70710677, %v1155_v54  ;;  %v1179_v32 = vmul.f32 0.70710677, %v1157_v55  ;;  %v1182_v33 = vmul.f32 0.70710677, %v1159_v18 }
  0x3a   : > { %v1185_v37 = vmul.f32 0.70710677, %v1161_v19  ;;  %v1188_v38 = vand.u32 2147483647, %v1164_v12  ;;  %v1191_v39 = vand.u32 2147483647, %v1167_v21 }
  0x3b   : > { %v1194_v40 = vand.u32 2147483647, %v1170_v22  ;;  %v1197_v42 = vand.u32 2147483647, %v1173_v26  ;;  %v1200_v43 = vand.u32 2147483647, %v1176_v31 }
  0x3c   : > { %1550 = vst [vmem:[#allocation2_spill] sm:$0xff] %v1185_v37  ;;  %v1203_v44 = vand.u32 2147483647, %v1179_v32  ;;  %v1206_v5 = vand.u32 2147483647, %v1182_v33 }
  0x3d   : > { %v1209_v1 = vand.u32 2147483647, %v1185_v37  ;;  %v445_v6 = vmul.f32 0.3275911, %v1188_v38  ;;  %v446_v13 = vmul.f32 0.3275911, %v1191_v39 }
  0x3e   : > { %v447_v7 = vmul.f32 0.3275911, %v1194_v40  ;;  %v448_v8 = vmul.f32 0.3275911, %v1197_v42  ;;  %v449_v20 = vmul.f32 0.3275911, %v1200_v43 }
  0x3f   : > { %v450_v27 = vmul.f32 0.3275911, %v1203_v44  ;;  %v451_v34 = vmul.f32 0.3275911, %v1206_v5  ;;  %v452_v14 = vmul.f32 0.3275911, %v1209_v1 }
  0x40   : > { %v453_v15 = vadd.f32 1.0, %v445_v6  ;;  %v1219_v0 = vadd.f32 1.0, %v446_v13  ;;  %v1221_v45 = vadd.f32 1.0, %v447_v7  ;;  %v1223_v49 = vadd.f32 1.0, %v448_v8 }
  0x41   : > { %v1225_v50 = vadd.f32 1.0, %v449_v20  ;;  %v1229_v56 = vadd.f32 1.0, %v450_v27  ;;  %v1231_v24 = vadd.f32 1.0, %v451_v34  ;;  %v1233_v57 = vadd.f32 1.0, %v452_v14 }
  0x42   : > { %888 = vrcp.f32 %v453_v15  ;;  %v472_v23 = vand.u32 2147483648, %v453_v15  ;;  %v487_v51 = vand.u32 2147483648, %v1219_v0  ;;  %vm466_vm0 = vweird.f32 %v453_v15 }
  0x43   : > { %890 = vrcp.f32 %v1219_v0  ;;  %v470_v25 = vand.u32 2147483647, %v453_v15  ;;  %v485_v58 = vand.u32 2147483647, %v1219_v0  ;;  %v502_v28 = vand.u32 2147483648, %v1221_v45 }
  0x44   : > { %892 = vrcp.f32 %v1221_v45  ;;  %v1238_v59 = vor.u32 1.1754944e-38, %v472_v23  ;;  %vm481_vm1 = vweird.f32 %v1219_v0  ;;  %v517_v29 = vand.u32 2147483648, %v1223_v49 }
  0x45   : > { %894 = vrcp.f32 %v1223_v49  ;;  %v1243_v60 = vor.u32 1.1754944e-38, %v487_v51  ;;  %vm496_vm2 = vweird.f32 %v1221_v45  ;;  %v500_v61 = vand.u32 2147483647, %v1221_v45 }
  0x46   : > { %896 = vrcp.f32 %v1225_v50  ;;  %vm511_vm3 = vweird.f32 %v1223_v49  ;;  %v515_v35 = vand.u32 2147483647, %v1223_v49  ;;  %v530_v36 = vand.u32 2147483647, %v1225_v50 }
  0x47   : > { %v532_v62 = vand.u32 2147483648, %v1225_v50  ;;  %vm1257_vm4 = vcmp.eq.f32.partialorder %v470_v25, 8.507059e+37  ;;  %vm1261_vm5 = vcmp.eq.f32.partialorder %v485_v58, 8.507059e+37  ;;  %v1265_v9 = vor.u32 1.1754944e-38, %v502_v28 }
  0x48   : > { %v1248_v30 = vpop.eup %888  ;;  %898 = vrcp.f32 %v1229_v56  ;;  %v1274_v47 = vor.u32 1.1754944e-38, %v517_v29  ;;  %vm1280_vm10 = vcmp.eq.f32.partialorder %v500_v61, 8.507059e+37  ;;  %vm1285_vm12 = vcmp.eq.f32.partialorder %v515_v35, 8.507059e+37 }
  0x49   : > { %v1254_v63 = vpop.eup %890  ;;  %v462_v2 = vmul.f32 %v1248_v30, %v453_v15  ;;  %vm467_vm7 = vweird.f32 %v1248_v30  ;;  %v533_v6 = vor.u32 1.1754944e-38, %v532_v62  ;;  %vm1289_vm13 = vcmp.eq.f32.partialorder %v530_v36, 8.507059e+37 }
  0x4a   : > { %v1269_v46 = vpop.eup %892  ;;  %v477_v10 = vmul.f32 %v1254_v63, %v1219_v0  ;;  %vm482_vm9 = vweird.f32 %v1254_v63  ;;  %v545_v27 = vand.u32 2147483647, %v1229_v56  ;;  %900 = vrcp.f32 %v1231_v24  ;;  %vm1301_vm14 = vmor %vm466_vm0, %vm467_vm7 }
  0x4b   : > { %v463_v11 = vsub.f32 1.0, %v462_v2  ;;  %v492_v48 = vmul.f32 %v1269_v46, %v1221_v45  ;;  %v895_v13 = vpop.eup %894  ;;  %vm497_vm11 = vweird.f32 %v1269_v46  ;;  %v547_v25 = vand.u32 2147483648, %v1229_v56  ;;  %vm1313_vm6 = vmor %vm481_vm1, %vm482_vm9 }
  0x4c   : > { %v478_v7 = vsub.f32 1.0, %v477_v10  ;;  %v897_v34 = vpop.eup %896  ;;  %v507_v51 = vmul.f32 %v895_v13, %v1223_v49  ;;  %vm512_vm15 = vweird.f32 %v895_v13  ;;  %vm556_vm8 = vweird.f32 %v1231_v24  ;;  %vm1323_vm7 = vmor %vm496_vm2, %vm497_vm11 }
  0x4d   : > { %v464_v14 = vmul.f32 %v1248_v30, %v463_v11  ;;  %v493_v23 = vsub.f32 1.0, %v492_v48  ;;  %v522_v29 = vmul.f32 %v897_v34, %v1225_v50  ;;  %vm527_vm0 = vweird.f32 %v897_v34  ;;  %vm1342_vm2 = vmor %vm511_vm3, %vm512_vm15 }
  0x4e   : > { %v479_v28 = vmul.f32 %v1254_v63, %v478_v7  ;;  %v899_v61 = vpop.eup %898  ;;  %v508_v62 = vsub.f32 1.0, %v507_v51  ;;  %vm1328_vm1 = vcmp.eq.f32.partialorder %v545_v27, 8.507059e+37  ;;  %v548_v51 = vor.u32 1.1754944e-38, %v547_v25 }
  0x4f   : > { %v465_v35 = vadd.f32 %v1248_v30, %v464_v14  ;;  %v494_v36 = vmul.f32 %v1269_v46, %v493_v23  ;;  %v523_v11 = vsub.f32 1.0, %v522_v29  ;;  %v537_v0 = vmul.f32 %v899_v61, %v1229_v56 }
  0x50   : > { %v480_v2 = vadd.f32 %v1254_v63, %v479_v28  ;;  %v509_v23 = vmul.f32 %v895_v13, %v508_v62  ;;  %v901_v45 = vpop.eup %900  ;;  %vm542_vm9 = vweird.f32 %v899_v61  ;;  %vm1571_vm11 = vweird.f32 %v1225_v50 }
  0x51   : > { %v469_v7 = vsel %vm1301_vm14, %v1248_v30, %v465_v35  ;;  %v495_v14 = vadd.f32 %v1269_v46, %v494_v36  ;;  %v524_v29 = vmul.f32 %v897_v34, %v523_v11  ;;  %v538_v37 = vsub.f32 1.0, %v537_v0  ;;  %vm1352_vm14 = vmor %vm1571_vm11, %vm527_vm0 }
  0x52   : > { %v484_v28 = vsel %vm1313_vm6, %v1254_v63, %v480_v2  ;;  %v510_v25 = vadd.f32 %v895_v13, %v509_v23  ;;  %v552_v49 = vmul.f32 %v901_v45, %v1231_v24  ;;  %v560_v58 = vand.u32 2147483647, %v1231_v24 }
  0x53   : > { %v499_v30 = vsel %vm1323_vm7, %v1269_v46, %v495_v14  ;;  %v1361_v35 = vsel %vm1257_vm4, %v1238_v59, %v469_v7  ;;  %v1366_v46 = vsel %vm1261_vm5, %v1243_v60, %v484_v28  ;;  %v525_v15 = vadd.f32 %v897_v34, %v524_v29 }
  0x54   : > { %v539_v50 = vmul.f32 %v899_v61, %v538_v37  ;;  %v514_v36 = vsel %vm1342_vm2, %v895_v13, %v510_v25  ;;  %vm1574_vm3 = vweird.f32 %v1229_v56  ;;  %v553_v2 = vsub.f32 1.0, %v552_v49 }
  0x55   : > { %vm1372_vm6 = vmor %vm1574_vm3, %vm542_vm9  ;;  %vm557_vm15 = vweird.f32 %v901_v45  ;;  %v562_v59 = vand.u32 2147483648, %v1231_v24  ;;  %v1380_v60 = vsel %vm1280_vm10, %v1265_v9, %v499_v30  ;;  %v529_v37 = vsel %vm1352_vm14, %v897_v34, %v525_v15 }
  0x56   : > { %v540_v3 = vadd.f32 %v899_v61, %v539_v50  ;;  %902 = vrcp.f32 %v1233_v57  ;;  %v1388_v56 = vsel %vm1285_vm12, %v1274_v47, %v514_v36  ;;  %v1392_v4 = vsel %vm1289_vm13, %v533_v6, %v529_v37  ;;  %vm1402_vm5 = vmor %vm556_vm8, %vm557_vm15 }
  0x57   : > { %v554_v13 = vmul.f32 %v901_v45, %v553_v2  ;;  %vm1394_vm4 = vcmp.eq.f32.partialorder %v560_v58, 8.507059e+37  ;;  %v563_v47 = vor.u32 1.1754944e-38, %v562_v59  ;;  %v575_v8 = vand.u32 2147483647, %v1233_v57 }
  0x58   : > { %v544_v9 = vsel %vm1372_vm6, %v899_v61, %v540_v3  ;;  %v581_v6 = vmul.f32 1.0614054, %v1361_v35  ;;  %v582_v11 = vmul.f32 1.0614054, %v1366_v46  ;;  %v583_v61 = vmul.f32 1.0614054, %v1380_v60 }
  0x59   : > { %v1410_v20 = vsel %vm1328_vm1, %v548_v51, %v544_v9  ;;  %v555_v10 = vadd.f32 %v901_v45, %v554_v13  ;;  %vm571_vm10 = vweird.f32 %v1233_v57  ;;  %v577_v24 = vand.u32 2147483648, %v1233_v57 }
  0x5a   : > { %v584_v0 = vmul.f32 1.0614054, %v1388_v56  ;;  %v585_v7 = vmul.f32 1.0614054, %v1392_v4  ;;  %v586_v48 = vmul.f32 1.0614054, %v1410_v20 }
  0x5b   : > { %v559_v14 = vsel %vm1402_vm5, %v901_v45, %v555_v10  ;;  %v589_v23 = vadd.f32 -1.4531521, %v581_v6  ;;  %v590_v51 = vadd.f32 -1.4531521, %v582_v11  ;;  %v591_v29 = vadd.f32 -1.4531521, %v583_v61 }
  0x5c   : > { %v903_v28 = vpop.eup %902  ;;  %v1423_v27 = vsel %vm1394_vm4, %v563_v47, %v559_v14  ;;  %v592_v30 = vadd.f32 -1.4531521, %v584_v0  ;;  %v593_v25 = vadd.f32 -1.4531521, %v585_v7  ;;  %v594_v58 = vadd.f32 -1.4531521, %v586_v48 }
  0x5d   : > { %v567_v63 = vmul.f32 %v903_v28, %v1233_v57  ;;  %vm572_vm8 = vweird.f32 %v903_v28  ;;  %v587_v49 = vmul.f32 1.0614054, %v1423_v27  ;;  %v597_v45 = vmul.f32 %v589_v23, %v1361_v35 }
  0x5e   : > { %v598_v15 = vmul.f32 %v590_v51, %v1366_v46  ;;  %v599_v50 = vmul.f32 %v591_v29, %v1380_v60  ;;  %v600_v36 = vmul.f32 %v592_v30, %v1388_v56  ;;  %v601_v59 = vmul.f32 %v593_v25, %v1392_v4  ;;  %vm573_vm12 = vmor %vm571_vm10, %vm572_vm8 }
  0x5f   : > { %v568_v62 = vsub.f32 1.0, %v567_v63  ;;  %v595_v2 = vadd.f32 -1.4531521, %v587_v49  ;;  %v602_v37 = vmul.f32 %v594_v58, %v1410_v20  ;;  %v605_v3 = vadd.f32 1.4214138, %v597_v45 }
  0x60   : > { %v606_v13 = vadd.f32 1.4214138, %v598_v15  ;;  %v607_v41 = vadd.f32 1.4214138, %v599_v50  ;;  %v608_v47 = vadd.f32 1.4214138, %v600_v36 }
  0x61   : > { %v569_v9 = vmul.f32 %v903_v28, %v568_v62  ;;  %v603_v34 = vmul.f32 %v595_v2, %v1423_v27  ;;  %v609_v6 = vadd.f32 1.4214138, %v601_v59  ;;  %vm576_vm13 = vcmp.eq.f32.partialorder %v575_v8, 8.507059e+37 }
  0x62   : > { %v578_v10 = vor.u32 1.1754944e-38, %v577_v24  ;;  %v610_v11 = vadd.f32 1.4214138, %v602_v37  ;;  %v613_v61 = vmul.f32 %v605_v3, %v1361_v35  ;;  %v614_v14 = vmul.f32 %v606_v13, %v1366_v46 }
  0x63   : > { %v570_v0 = vadd.f32 %v903_v28, %v569_v9  ;;  %v611_v7 = vadd.f32 1.4214138, %v603_v34  ;;  %v615_v48 = vmul.f32 %v607_v41, %v1380_v60  ;;  %v616_v23 = vmul.f32 %v608_v47, %v1388_v56 }
  0x64   : > { %v617_v51 = vmul.f32 %v609_v6, %v1392_v4  ;;  %v618_v30 = vmul.f32 %v610_v11, %v1410_v20  ;;  %v621_v8 = vadd.f32 -0.28449672, %v613_v61  ;;  %v622_v63 = vadd.f32 -0.28449672, %v614_v14 }
  0x65   : > { %v574_v29 = vsel %vm573_vm12, %v903_v28, %v570_v0  ;;  %v619_v25 = vmul.f32 %v611_v7, %v1423_v27  ;;  %v623_v49 = vadd.f32 -0.28449672, %v615_v48  ;;  %v624_v58 = vadd.f32 -0.28449672, %v616_v23 }
  0x66   : > { %v1443_v57 = vsel %vm576_vm13, %v578_v10, %v574_v29  ;;  %v625_v45 = vadd.f32 -0.28449672, %v617_v51  ;;  %v1448_v15 = vmul.f32 0.5, %v1147_v52  ;;  %v626_v36 = vadd.f32 -0.28449672, %v618_v30 }
  0x67   : > { %v588_v24 = vmul.f32 1.0614054, %v1443_v57  ;;  %v1451_v28 = vmul.f32 0.5, %v1149_v16  ;;  %v1454_v62 = vmul.f32 0.5, %v1151_v17  ;;  %v1457_v2 = vmul.f32 0.5, %v1153_v53 }
  0x68   : > { %v629_v59 = vmul.f32 %v621_v8, %v1361_v35  ;;  %v627_v3 = vadd.f32 -0.28449672, %v619_v25  ;;  %v630_v13 = vmul.f32 %v622_v63, %v1366_v46  ;;  %v631_v52 = vmul.f32 %v623_v49, %v1380_v60 }
  0x69   : > { %v596_v50 = vadd.f32 -1.4531521, %v588_v24  ;;  %v632_v41 = vmul.f32 %v624_v58, %v1388_v56  ;;  %v633_v16 = vmul.f32 %v625_v45, %v1392_v4  ;;  %v653_v9 = vsub.f32 0.0, %v1188_v38 }
  0x6a   : > { %v654_v17 = vsub.f32 0.0, %v1191_v39  ;;  %v634_v53 = vmul.f32 %v626_v36, %v1410_v20  ;;  %v655_v47 = vsub.f32 0.0, %v1194_v40  ;;  %v656_v6 = vsub.f32 0.0, %v1197_v42 }
  0x6b   : > { %v604_v37 = vmul.f32 %v596_v50, %v1443_v57  ;;  %v657_v10 = vsub.f32 0.0, %v1200_v43  ;;  %v658_v11 = vsub.f32 0.0, %v1203_v44  ;;  %v659_v61 = vsub.f32 0.0, %v1206_v5 }
  0x6c   : > { %v660_v0 = vsub.f32 0.0, %v1209_v1  ;;  %v661_v14 = vmul.f32 %v653_v9, %v1188_v38  ;;  %v662_v48 = vmul.f32 %v654_v17, %v1191_v39  ;;  %v663_v23 = vmul.f32 %v655_v47, %v1194_v40 }
  0x6d   : > { %v612_v34 = vadd.f32 1.4214138, %v604_v37  ;;  %v637_v51 = vadd.f32 0.2548296, %v629_v59  ;;  %v664_v29 = vmul.f32 %v656_v6, %v1197_v42  ;;  %v665_v30 = vmul.f32 %v657_v10, %v1200_v43 }
  0x6e   : > { %v666_v8 = vmul.f32 %v658_v11, %v1203_v44  ;;  %v667_v25 = vmul.f32 %v659_v61, %v1206_v5  ;;  %v669_v63 = vmul.f32 1.442695, %v661_v14  ;;  %v671_v49 = vmul.f32 1.442695, %v662_v48 }
  0x6f   : > { %v620_v7 = vmul.f32 %v612_v34, %v1443_v57  ;;  %v635_v58 = vmul.f32 %v627_v3, %v1423_v27  ;;  %v668_v38 = vmul.f32 %v660_v0, %v1209_v1  ;;  %v673_v45 = vmul.f32 1.442695, %v663_v23 }
  0x70   : > { %v675_v39 = vmul.f32 1.442695, %v664_v29  ;;  %v638_v50 = vadd.f32 0.2548296, %v630_v13  ;;  %v639_v40 = vadd.f32 0.2548296, %v631_v52  ;;  %904 = vpow2.f32 %v669_v63 }
  0x71   : > { %v628_v24 = vadd.f32 -0.28449672, %v620_v7  ;;  %v677_v36 = vmul.f32 1.442695, %v665_v30  ;;  %v640_v42 = vadd.f32 0.2548296, %v632_v41  ;;  %906 = vpow2.f32 %v671_v49 }
  0x72   : > { %v641_v59 = vadd.f32 0.2548296, %v633_v16  ;;  %v679_v43 = vmul.f32 1.442695, %v666_v8  ;;  %v642_v37 = vadd.f32 0.2548296, %v634_v53  ;;  %908 = vpow2.f32 %v673_v45 }
  0x73   : > { %v636_v44 = vmul.f32 %v628_v24, %v1443_v57  ;;  %v681_v5 = vmul.f32 1.442695, %v667_v25  ;;  %v643_v9 = vadd.f32 0.2548296, %v635_v58  ;;  %v645_v3 = vmul.f32 %v637_v51, %v1361_v35  ;;  %v1581_v30 = vld [vmem:[#allocation2_spill] sm:$0xff] }
  0x74   : > { %910 = vpow2.f32 %v675_v39  ;;  %v683_v1 = vmul.f32 1.442695, %v668_v38  ;;  %v1487_v17 = vmul.f32 0.5, %v1155_v54  ;;  %v1490_v13 = vmul.f32 0.5, %v1157_v55 }
  0x75   : > { %v646_v52 = vmul.f32 %v638_v50, %v1366_v46  ;;  %912 = vpow2.f32 %v677_v36  ;;  %v1494_v41 = vmul.f32 0.5, %v1159_v18  ;;  %v1497_v16 = vmul.f32 0.5, %v1161_v19 }
  0x76   : > { %v647_v34 = vmul.f32 %v639_v40, %v1380_v60  ;;  %914 = vpow2.f32 %v679_v43  ;;  %v905_v35 = vpop.eup %904  ;;  %v644_v53 = vadd.f32 0.2548296, %v636_v44  ;;  %v648_v54 = vmul.f32 %v640_v42, %v1388_v56 }
  0x77   : > { %v649_v47 = vmul.f32 %v641_v59, %v1392_v4  ;;  %916 = vpow2.f32 %v681_v5  ;;  %v907_v55 = vpop.eup %906  ;;  %v650_v46 = vmul.f32 %v642_v37, %v1410_v20  ;;  %v651_v6 = vmul.f32 %v643_v9, %v1423_v27 }
  0x78   : > { %918 = vpow2.f32 %v683_v1  ;;  %v685_v18 = vmul.f32 %v905_v35, %v645_v3  ;;  %v909_v10 = vpop.eup %908  ;;  %v686_v19 = vmul.f32 %v907_v55, %v646_v52  ;;  %vm701_vm0 = vcmp.lt.f32.partialorder %v1164_v12, 0.0 }
  0x79   : > { %vm702_vm7 = vcmp.lt.f32.partialorder %v1167_v21, 0.0  ;;  %vm703_vm1 = vcmp.lt.f32.partialorder %v1170_v22, 0.0  ;;  %v687_v56 = vmul.f32 %v909_v10, %v647_v34  ;;  %vm704_vm2 = vcmp.lt.f32.partialorder %v1173_v26, 0.0 }
  0x7a   : > { %v911_v60 = vpop.eup %910  ;;  %v693_v11 = vsub.f32 1.0, %v685_v18  ;;  %vm705_vm9 = vcmp.lt.f32.partialorder %v1176_v31, 0.0  ;;  %v652_v20 = vmul.f32 %v644_v53, %v1443_v57  ;;  %v694_v61 = vsub.f32 1.0, %v686_v19 }
  0x7b   : > { %v913_v4 = vpop.eup %912  ;;  %v688_v27 = vmul.f32 %v911_v60, %v648_v54  ;;  %vm706_vm11 = vcmp.lt.f32.partialorder %v1179_v32, 0.0  ;;  %v695_v14 = vsub.f32 1.0, %v687_v56  ;;  %vm707_vm14 = vcmp.lt.f32.partialorder %v1182_v33, 0.0 }
  0x7c   : > { %v915_v0 = vpop.eup %914  ;;  %v689_v7 = vmul.f32 %v913_v4, %v649_v47  ;;  %v709_v48 = vsub.f32 0.0, %v693_v11  ;;  %vm708_vm3 = vcmp.lt.f32.partialorder %v1581_v30, 0.0  ;;  %v710_v8 = vsub.f32 0.0, %v694_v61 }
  0x7d   : > { %v917_v23 = vpop.eup %916  ;;  %v690_v51 = vmul.f32 %v915_v0, %v650_v46  ;;  %v696_v29 = vsub.f32 1.0, %v688_v27  ;;  %v711_v63 = vsub.f32 0.0, %v695_v14 }
  0x7e   : > { %v919_v24 = vpop.eup %918  ;;  %v691_v25 = vmul.f32 %v917_v23, %v651_v6  ;;  %v697_v57 = vsub.f32 1.0, %v689_v7  ;;  %v717_v49 = vsel %vm701_vm0, %v709_v48, %v693_v11  ;;  %v718_v39 = vsel %vm702_vm7, %v710_v8, %v694_v61 }
  0x7f   : > { %v692_v58 = vmul.f32 %v919_v24, %v652_v20  ;;  %v698_v38 = vsub.f32 1.0, %v690_v51  ;;  %v712_v45 = vsub.f32 0.0, %v696_v29  ;;  %v719_v36 = vsel %vm703_vm1, %v711_v63, %v695_v14 }
  0x80   : > { %v699_v50 = vsub.f32 1.0, %v691_v25  ;;  %v713_v40 = vsub.f32 0.0, %v697_v57  ;;  %v725_v42 = vadd.f32 1.0, %v717_v49  ;;  %v726_v12 = vadd.f32 1.0, %v718_v39 }
  0x81   : > { %v700_v59 = vsub.f32 1.0, %v692_v58  ;;  %v714_v43 = vsub.f32 0.0, %v698_v38  ;;  %v720_v44 = vsel %vm704_vm2, %v712_v45, %v696_v29  ;;  %v727_v5 = vadd.f32 1.0, %v719_v36 }
  0x82   : > { %v715_v37 = vsub.f32 0.0, %v699_v50  ;;  %v721_v21 = vsel %vm705_vm9, %v713_v40, %v697_v57  ;;  %v728_v9 = vadd.f32 1.0, %v720_v44  ;;  %v733_v52 = vmul.f32 %v725_v42, %v1448_v15 }
  0x83   : > { %v716_v3 = vsub.f32 0.0, %v700_v59  ;;  %v722_v22 = vsel %vm706_vm11, %v714_v43, %v698_v38  ;;  %v729_v1 = vadd.f32 1.0, %v721_v21  ;;  %v734_v35 = vmul.f32 %v726_v12, %v1451_v28 }
  0x84   : > { %v723_v26 = vsel %vm707_vm14, %v715_v37, %v699_v50  ;;  %v730_v34 = vadd.f32 1.0, %v722_v22  ;;  %v735_v53 = vmul.f32 %v727_v5, %v1454_v62  ;;  %v736_v47 = vmul.f32 %v728_v9, %v1457_v2  ;;  %741 = vst [vmem:[%s170_s15] sm:$0xff] %v733_v52 }
  0x85   : > { %v724_v31 = vsel %vm708_vm3, %v716_v3, %v700_v59  ;;  %v731_v54 = vadd.f32 1.0, %v723_v26  ;;  %v737_v32 = vmul.f32 %v729_v1, %v1487_v17  ;;  %742 = vst [vmem:[%s170_s15 + $0x8] sm:$0xff] %v734_v35 }
  0x86   : > { %v732_v55 = vadd.f32 1.0, %v724_v31  ;;  %v738_v15 = vmul.f32 %v730_v34, %v1490_v13  ;;  %743 = vst [vmem:[%s170_s15 + $0x10] sm:$0xff] %v735_v53 }
  0x87   : > { %v739_v33 = vmul.f32 %v731_v54, %v1494_v41  ;;  %744 = vst [vmem:[%s170_s15 + $0x18] sm:$0xff] %v736_v47 }
  0x88   : > { %v740_v28 = vmul.f32 %v732_v55, %v1497_v16  ;;  %745 = vst [vmem:[%s170_s15 + $0x20] sm:$0xff] %v737_v32 }
  0x89   : > { %746 = vst [vmem:[%s170_s15 + $0x28] sm:$0xff] %v738_v15 }
  0x8a   : > { %747 = vst [vmem:[%s170_s15 + $0x30] sm:$0xff] %v739_v33 }
  0x8b   : > { %748 = vst [vmem:[%s170_s15 + $0x38] sm:$0xff] %v740_v28 }
  0x8c PF: > { %s13_s12 = sadd.s32 1, %s926_s12  }
  0x8d   : > { %p10_p4 = scmp.ge.s32.totalorder %s13_s12, 4  }
  0x8f   :  { %12 = sbr.rel (!%p10_p4) target bundleno = 1 (0x1), region = 66 }

// kernel: conv_ffn_forward.7
= control target key start
LH: loop header
LB: loop body
LE: loop exit
PB: predicated region body
PF: predicated region fallthrough
CT: control target
= control target key end

     0   :  { %s2844_s12 = smov 0   ;;  %s6522_s0 = inlined_call_operand.vmem [shape: f32[2,18,18,128], index: 0, kind: input, shape index: {}]   ;;  %s6523_s1 = inlined_call_operand.vmem [shape: f32[3,3,128], index: 1, kind: input, shape index: {}]   ;;  %s6524_s2 = inlined_call_operand.vmem [shape: f32[1,128], index: 2, kind: input, shape index: {}]   ;;  %s6525_s3 = inlined_call_operand.vmem [shape: f32[2,16,16,128], index: 3, kind: output, shape index: {}]  }
   0x1 LB: > { %s2460_s13 = sadd.s32 4294967295, %s2822_s12   ;;  %p2464_p0 = scmp.ge.s32.totalorder %s2822_s12, 1  ;;  %s2822_s12 = sphi %s2844_s12, %s13_s12  }
   0x2   : > { %p137_p1 = scmp.lt.s32.totalorder %s2822_s12, 3 }
   0x4   : > { %p138_p2 = pnand %p2464_p0, %p137_p1 }
   0x6   : > { %141 = sbr.rel (%p138_p2) target bundleno = 598 (0x256), region = 32 }
   0xb   : > { %p161_p3 = scmp.lt.s32.totalorder %s2460_s13, 1  ;;  %v2865_v2 = vld [vmem:[%s6523_s1] ss:$0 sm:$0xff]  ;;  %v2930_v23 = vld [vmem:[%s6523_s1 + $0x1] ss:$0 sm:$0xff] }
   0xd   : > { %s7657_s13 = smov (!%p161_p3, %s2460_s13), 1 }
   0xe   : > { %s2669_s14 = smul.u32 432, %s7657_s13  ;;  %s2668_s11 = sshll.u32 %s7657_s13, 8 }
   0xf   : > { %s6306_s15 = scalar_lea.vmem %s6525_s3, %s2668_s11 }
  0x10   : > { %s2858_s17 = scalar_lea.vmem %s6522_s0, %s2669_s14 }
  0x11   : > { %v171_v0 = vld [vmem:[%s2858_s17] sm:$0xff]  ;;  %v172_v1 = vld [vmem:[%s2858_s17 + $0x8] sm:$0xff]  ;;  %v2868_v3 = vld [vmem:[%s2858_s17 + $0x18] sm:$0xff] }
  0x12   : > { %6814 = vst [vmem:[#allocation2_spill] sm:$0xff] %v2868_v3  ;;  %v2871_v4 = vld [vmem:[%s2858_s17 + $0x20] sm:$0xff]  ;;  %v2874_v5 = vld [vmem:[%s2858_s17 + $0x30] sm:$0xff]  ;;  %v2877_v6 = vld [vmem:[%s2858_s17 + $0x38] sm:$0xff]  ;;  %v2922_v21 = vmul.f32 %v2865_v2, %v171_v0  ;;  %v2925_v22 = vmul.f32 %v2865_v2, %v172_v1  ;;  %v2943_v27 = vmul.f32 %v2865_v2, %v2868_v3 }
  0x13   : > { %6815 = vst [vmem:[#allocation3_spill] sm:$0xff] %v2871_v4  ;;  %v2880_v7 = vld [vmem:[%s2858_s17 + $0x48] sm:$0xff]  ;;  %v2883_v8 = vld [vmem:[%s2858_s17 + $0x50] sm:$0xff]  ;;  %v2886_v9 = vld [vmem:[%s2858_s17 + $0x60] sm:$0xff]  ;;  %v2947_v28 = vmul.f32 %v2865_v2, %v2871_v4  ;;  %v2951_v29 = vmul.f32 %v2865_v2, %v2874_v5  ;;  %v2955_v30 = vmul.f32 %v2865_v2, %v2877_v6 }
  0x14   : > { %6816 = vst [vmem:[#allocation4_spill] sm:$0xff] %v2874_v5  ;;  %v2889_v10 = vld [vmem:[%s2858_s17 + $0x68] sm:$0xff]  ;;  %v2892_v11 = vld [vmem:[%s2858_s17 + $0x78] sm:$0xff]  ;;  %v2895_v12 = vld [vmem:[%s2858_s17 + $0x80] sm:$0xff]  ;;  %v2968_v34 = vmul.f32 %v2865_v2, %v2880_v7  ;;  %v2972_v35 = vmul.f32 %v2865_v2, %v2883_v8  ;;  %v2976_v36 = vmul.f32 %v2865_v2, %v2886_v9 }
  0x15   : > { %6817 = vst [vmem:[#allocation5_spill] sm:$0xff] %v2877_v6  ;;  %v2898_v13 = vld [vmem:[%s2858_s17 + $0x90] sm:$0xff]  ;;  %v2901_v14 = vld [vmem:[%s2858_s17 + $0x98] sm:$0xff]  ;;  %v2904_v15 = vld [vmem:[%s2858_s17 + $0xa8] sm:$0xff]  ;;  %v2980_v37 = vmul.f32 %v2865_v2, %v2889_v10  ;;  %v2990_v40 = vmul.f32 %v2865_v2, %v2892_v11  ;;  %v2994_v41 = vmul.f32 %v2865_v2, %v2895_v12 }
  0x16   : > { %6818 = vst [vmem:[#allocation6_spill] sm:$0xff] %v2880_v7  ;;  %v2907_v16 = vld [vmem:[%s2858_s17 + $0xb0] sm:$0xff]  ;;  %v2910_v17 = vld [vmem:[%s2858_s17 + $0xc0] sm:$0xff]  ;;  %v2913_v18 = vld [vmem:[%s2858_s17 + $0xc8] sm:$0xff]  ;;  %v2998_v42 = vmul.f32 %v2865_v2, %v2898_v13  ;;  %v3002_v43 = vmul.f32 %v2865_v2, %v2901_v14  ;;  %v3013_v47 = vmul.f32 %v2865_v2, %v2904_v15 }
  0x17   : > { %6819 = vst [vmem:[#allocation7_spill] sm:$0xff] %v2883_v8  ;;  %v2916_v19 = vld [vmem:[%s2858_s17 + $0xd8] sm:$0xff]  ;;  %v2919_v20 = vld [vmem:[%s2858_s17 + $0xe0] sm:$0xff]  ;;  %v2933_v24 = vld [vmem:[%s2858_s17 + $0xf0] sm:$0xff]  ;;  %v3017_v48 = vmul.f32 %v2865_v2, %v2907_v16  ;;  %v3021_v49 = vmul.f32 %v2865_v2, %v2910_v17  ;;  %v3025_v50 = vmul.f32 %v2865_v2, %v2913_v18 }
  0x18   : > { %6820 = vst [vmem:[#allocation8_spill] sm:$0xff] %v2886_v9  ;;  %v2936_v25 = vld [vmem:[%s2858_s17 + $0xf8] sm:$0xff]  ;;  %v2939_v26 = vld [vmem:[%s2858_s17 + $0x108] sm:$0xff]  ;;  %v2958_v31 = vld [vmem:[%s2858_s17 + $0x110] sm:$0xff]  ;;  %v3036_v54 = vmul.f32 %v2865_v2, %v2916_v19  ;;  %v3040_v55 = vmul.f32 %v2865_v2, %v2919_v20  ;;  %v3044_v56 = vmul.f32 %v2865_v2, %v2933_v24 }
  0x19   : > { %6821 = vst [vmem:[#allocation9_spill] sm:$0xff] %v2889_v10  ;;  %v2961_v32 = vld [vmem:[%s2858_s17 + $0x120] sm:$0xff]  ;;  %v2964_v33 = vld [vmem:[%s2858_s17 + $0x128] sm:$0xff]  ;;  %v2983_v38 = vld [vmem:[%s2858_s17 + $0x138] sm:$0xff]  ;;  %v3048_v57 = vmul.f32 %v2865_v2, %v2936_v25  ;;  %v3055_v59 = vmul.f32 %v2865_v2, %v2939_v26  ;;  %v3059_v60 = vmul.f32 %v2865_v2, %v2958_v31 }
  0x1a   : > { %6822 = vst [vmem:[#allocation10_spill] sm:$0xff] %v2892_v11  ;;  %v2986_v39 = vld [vmem:[%s2858_s17 + $0x140] sm:$0xff]  ;;  %v3006_v45 = vld [vmem:[%s2858_s17 + $0x150] sm:$0xff]  ;;  %v3009_v46 = vld [vmem:[%s2858_s17 + $0x158] sm:$0xff]  ;;  %v3063_v61 = vmul.f32 %v2865_v2, %v2961_v32 }
  0x1b   : > { %6823 = vst [vmem:[#allocation11_spill] sm:$0xff] %v2895_v12  ;;  %v269_v44 = vld [vmem:[%s2858_s17 + $0x1] sm:$0xff]  ;;  %v270_v51 = vld [vmem:[%s2858_s17 + $0x9] sm:$0xff]  ;;  %v3051_v58 = vld [vmem:[%s2858_s17 + $0x19] sm:$0xff] }
  0x1c   : > { %6824 = vst [vmem:[#allocation12_spill] sm:$0xff] %v2898_v13  ;;  %v3029_v52 = vld [vmem:[%s2858_s17 + $0x168] sm:$0xff]  ;;  %v3032_v53 = vld [vmem:[%s2858_s17 + $0x170] sm:$0xff]  ;;  %v3072_v0 = vld [vmem:[%s2858_s17 + $0x39] sm:$0xff]  ;;  %v303_v1 = vmul.f32 %v2930_v23, %v269_v44 }
  0x1d   : > { %6825 = vst [vmem:[#allocation13_spill] sm:$0xff] %v2901_v14  ;;  %v3066_v62 = vld [vmem:[%s2858_s17 + $0x21] sm:$0xff]  ;;  %v3069_v63 = vld [vmem:[%s2858_s17 + $0x31] sm:$0xff]  ;;  %v3146_v13 = vld [vmem:[%s2858_s17 + $0xc9] sm:$0xff] }
  0x1e   : > { %6826 = vst [vmem:[#allocation14_spill] sm:$0xff] %v2904_v15  ;;  %v3094_v44 = vld [vmem:[%s2858_s17 + $0x61] sm:$0xff]  ;;  %v306_v15 = vmul.f32 %v2930_v23, %v3066_v62  ;;  %v307_v14 = vmul.f32 %v2930_v23, %v3069_v63  ;;  %v3158_v11 = vld [vmem:[%s2858_s17 + $0xd9] sm:$0xff]  ;;  %v3164_v9 = vld [vmem:[%s2858_s17 + $0xf1] sm:$0xff] }
  0x1f   : > { %6827 = vst [vmem:[#allocation15_spill] sm:$0xff] %v2907_v16  ;;  %v3131_v16 = vld [vmem:[%s2858_s17 + $0xa9] sm:$0xff]  ;;  %v3161_v10 = vld [vmem:[%s2858_s17 + $0xe1] sm:$0xff]  ;;  %v3182_v7 = vld [vmem:[%s2858_s17 + $0x111] sm:$0xff] }
  0x20   : > { %6828 = vst [vmem:[#allocation16_spill] sm:$0xff] %v2910_v17  ;;  %v3116_v17 = vld [vmem:[%s2858_s17 + $0x81] sm:$0xff]  ;;  %v3179_v8 = vld [vmem:[%s2858_s17 + $0x109] sm:$0xff]  ;;  %v3200_v5 = vld [vmem:[%s2858_s17 + $0x139] sm:$0xff]  ;;  %v3209_v4 = vadd.f32 %v306_v15, %v2947_v28 }
  0x21   : > { %6829 = vst [vmem:[#allocation17_spill] sm:$0xff] %v2913_v18  ;;  %v3113_v18 = vld [vmem:[%s2858_s17 + $0x79] sm:$0xff]  ;;  %v3197_v6 = vld [vmem:[%s2858_s17 + $0x129] sm:$0xff]  ;;  %v3233_v28 = vld [vmem:[%s2858_s17 + $0x171] sm:$0xff] }
  0x22   : > { %6830 = vst [vmem:[#allocation18_spill] sm:$0xff] %v2916_v19  ;;  %v3110_v19 = vld [vmem:[%s2858_s17 + $0x69] sm:$0xff]  ;;  %v3218_v3 = vld [vmem:[%s2858_s17 + $0x159] sm:$0xff] }
  0x23   : > { %6831 = vst [vmem:[#allocation19_spill] sm:$0xff] %v2919_v20  ;;  %v3099_v20 = vmul.f32 %v2865_v2, %v3006_v45  ;;  %v3230_v15 = vld [vmem:[%s2858_s17 + $0x169] sm:$0xff] }
  0x24   : > { %6832 = vst [vmem:[#allocation20_spill] sm:$0xff] %v2933_v24  ;;  %v3091_v24 = vld [vmem:[%s2858_s17 + $0x51] sm:$0xff] }
  0x25   : > { %6833 = vst [vmem:[#allocation21_spill] sm:$0xff] %v2936_v25  ;;  %v3088_v25 = vld [vmem:[%s2858_s17 + $0x49] sm:$0xff] }
  0x26   : > { %6834 = vst [vmem:[#allocation22_spill] sm:$0xff] %v2939_v26  ;;  %v3085_v26 = vmul.f32 %v2865_v2, %v2986_v39  ;;  %v309_v12 = vmul.f32 %v2930_v23, %v3088_v25 }
  0x27   : > { %6835 = vst [vmem:[#allocation23_spill] sm:$0xff] %v2958_v31  ;;  %v3077_v31 = vmul.f32 %v2865_v2, %v2964_v33 }
  0x28   : > { %6836 = vst [vmem:[#allocation24_spill] sm:$0xff] %v2961_v32  ;;  %v3081_v32 = vmul.f32 %v2865_v2, %v2983_v38 }
  0x29   : > { %6837 = vst [vmem:[#allocation25_spill] sm:$0xff] %v2964_v33  ;;  %v304_v33 = vmul.f32 %v2930_v23, %v270_v51  ;;  %v305_v51 = vmul.f32 %v2930_v23, %v3051_v58 }
  0x2a   : > { %6838 = vst [vmem:[#allocation26_spill] sm:$0xff] %v2983_v38  ;;  %v3103_v38 = vmul.f32 %v2865_v2, %v3009_v46 }
  0x2b   : > { %6839 = vst [vmem:[#allocation27_spill] sm:$0xff] %v2986_v39  ;;  %v3107_v39 = vmul.f32 %v2865_v2, %v3029_v52 }
  0x2c   : > { %6840 = vst [vmem:[#allocation28_spill] sm:$0xff] %v3006_v45  ;;  %v3122_v45 = vmul.f32 %v2865_v2, %v3032_v53  ;;  %v3140_v2 = vld [vmem:[%s2858_s17 + $0xb1] sm:$0xff] }
  0x2d   : > { %6841 = vst [vmem:[#allocation29_spill] sm:$0xff] %v3009_v46  ;;  %v3125_v46 = vld [vmem:[%s2858_s17 + $0x91] sm:$0xff] }
  0x2e   : > { %6842 = vst [vmem:[#allocation30_spill] sm:$0xff] %v3029_v52  ;;  %v3128_v52 = vld [vmem:[%s2858_s17 + $0x99] sm:$0xff] }
  0x2f   : > { %6843 = vst [vmem:[#allocation31_spill] sm:$0xff] %v3032_v53  ;;  %v3143_v53 = vld [vmem:[%s2858_s17 + $0xc1] sm:$0xff] }
  0x30   : > { %6844 = vst [vmem:[#allocation32_spill] sm:$0xff] %v3051_v58  ;;  %v308_v58 = vmul.f32 %v2930_v23, %v3072_v0 }
  0x31   : > { %6845 = vst [vmem:[#allocation33_spill] sm:$0xff] %v3066_v62  ;;  %v310_v62 = vmul.f32 %v2930_v23, %v3091_v24 }
  0x32   : > { %6846 = vst [vmem:[#allocation34_spill] sm:$0xff] %v3069_v63  ;;  %v311_v63 = vmul.f32 %v2930_v23, %v3094_v44 }
  0x33   : > { %6847 = vst [vmem:[#allocation35_spill] sm:$0xff] %v3072_v0  ;;  %v3155_v0 = vadd.f32 %v303_v1, %v2922_v21  ;;  %v3173_v21 = vadd.f32 %v304_v33, %v2925_v22  ;;  %v3176_v1 = vld [vmem:[%s2858_s17 + $0xf9] sm:$0xff]  ;;  %v3191_v22 = vadd.f32 %v305_v51, %v2943_v27  ;;  %v3194_v33 = vld [vmem:[%s2858_s17 + $0x121] sm:$0xff]  ;;  %v3215_v51 = vld [vmem:[%s2858_s17 + $0x151] sm:$0xff] }
  0x34   : > { %6848 = vst [vmem:[#allocation36_spill] sm:$0xff] %v3088_v25  ;;  %v312_v25 = vmul.f32 %v2930_v23, %v3110_v19  ;;  %v3212_v27 = vld [vmem:[%s2858_s17 + $0x141] sm:$0xff] }
  0x35   : > { %6849 = vst [vmem:[#allocation37_spill] sm:$0xff] %v3091_v24  ;;  %v313_v24 = vmul.f32 %v2930_v23, %v3113_v18 }
  0x36   : > { %6850 = vst [vmem:[#allocation38_spill] sm:$0xff] %v3094_v44  ;;  %v314_v44 = vmul.f32 %v2930_v23, %v3116_v17 }
  0x37   : > { %6851 = vst [vmem:[#allocation39_spill] sm:$0xff] %v3110_v19  ;;  %v315_v19 = vmul.f32 %v2930_v23, %v3125_v46 }
  0x38   : > { %6852 = vst [vmem:[#allocation40_spill] sm:$0xff] %v3113_v18  ;;  %v316_v18 = vmul.f32 %v2930_v23, %v3128_v52 }
  0x39   : > { %6853 = vst [vmem:[#allocation41_spill] sm:$0xff] %v3116_v17  ;;  %v317_v17 = vmul.f32 %v2930_v23, %v3131_v16 }
  0x3a   : > { %6854 = vst [vmem:[#allocation42_spill] sm:$0xff] %v3125_v46  ;;  %v318_v46 = vmul.f32 %v2930_v23, %v3140_v2 }
  0x3b   : > { %6855 = vst [vmem:[#allocation43_spill] sm:$0xff] %v3128_v52  ;;  %v319_v52 = vmul.f32 %v2930_v23, %v3143_v53 }
  0x3c   : > { %6856 = vst [vmem:[#allocation44_spill] sm:$0xff] %v3131_v16  ;;  %v320_v16 = vmul.f32 %v2930_v23, %v3146_v13 }
  0x3d   : > { %6857 = vst [vmem:[#allocation45_spill] sm:$0xff] %v3140_v2  ;;  %v322_v2 = vmul.f32 %v2930_v23, %v3161_v10 }
  0x3e   : > { %6858 = vst [vmem:[#allocation46_spill] sm:$0xff] %v3143_v53  ;;  %v323_v53 = vmul.f32 %v2930_v23, %v3164_v9 }
  0x3f   : > { %6859 = vst [vmem:[#allocation47_spill] sm:$0xff] %v3146_v13  ;;  %v3227_v13 = vadd.f32 %v307_v14, %v2951_v29  ;;  %v327_v14 = vmul.f32 %v2930_v23, %v3194_v33  ;;  %v328_v29 = vmul.f32 %v2930_v23, %v3197_v6 }
  0x40   : > { %6860 = vst [vmem:[#allocation48_spill] sm:$0xff] %v3158_v11 }
  0x41   : > { %6861 = vst [vmem:[#allocation49_spill] sm:$0xff] %v3161_v10  ;;  %v3242_v10 = vadd.f32 %v308_v58, %v2955_v30  ;;  %v331_v30 = vmul.f32 %v2930_v23, %v3215_v51  ;;  %v332_v58 = vmul.f32 %v2930_v23, %v3218_v3 }
  0x42   : > { %6862 = vst [vmem:[#allocation50_spill] sm:$0xff] %v3164_v9  ;;  %v3251_v9 = vadd.f32 %v309_v12, %v2968_v34  ;;  %v334_v12 = vmul.f32 %v2930_v23, %v3233_v28  ;;  %v3267_v34 = vadd.f32 %v311_v63, %v2976_v36  ;;  %v368_v36 = vld [vmem:[%s2858_s17 + $0xa] sm:$0xff]  ;;  %v3373_v63 = vld [vmem:[%s2858_s17 + $0x9a] sm:$0xff] }
  0x43   : > { %6863 = vst [vmem:[#allocation51_spill] sm:$0xff] %v3173_v21  ;;  %v325_v21 = vmul.f32 %v2930_v23, %v3179_v8 }
  0x44   : > { %6864 = vst [vmem:[#allocation52_spill] sm:$0xff] %v3176_v1 }
  0x45   : > { %6865 = vst [vmem:[#allocation53_spill] sm:$0xff] %v3179_v8  ;;  %v3453_v8 = vld [vmem:[%s2858_s17 + $0x15a] sm:$0xff] }
  0x46   : > { %6866 = vst [vmem:[#allocation54_spill] sm:$0xff] %v3182_v7 }
  0x47   : > { %6867 = vst [vmem:[#allocation55_spill] sm:$0xff] %v3191_v22  ;;  %v321_v22 = vmul.f32 %v2930_v23, %v3158_v11  ;;  %v326_v11 = vmul.f32 %v2930_v23, %v3182_v7  ;;  %v330_v7 = vmul.f32 %v2930_v23, %v3212_v27 }
  0x48   : > { %6868 = vst [vmem:[#allocation56_spill] sm:$0xff] %v3194_v33  ;;  %v3260_v33 = vadd.f32 %v310_v62, %v2972_v35  ;;  %v3276_v35 = vadd.f32 %v314_v44, %v2994_v41  ;;  %v3279_v62 = vadd.f32 %v315_v19, %v2998_v42  ;;  %v3298_v19 = vadd.f32 %v319_v52, %v3021_v49  ;;  %v3307_v41 = vld [vmem:[%s2858_s17 + $0x22] sm:$0xff]  ;;  %v3310_v42 = vld [vmem:[%s2858_s17 + $0x32] sm:$0xff]  ;;  %v3376_v44 = vld [vmem:[%s2858_s17 + $0xaa] sm:$0xff] }
  0x49   : > { %6869 = vst [vmem:[#allocation57_spill] sm:$0xff] %v3197_v6  ;;  %v333_v6 = vmul.f32 %v2930_v23, %v3230_v15  ;;  %v3331_v49 = vld [vmem:[%s2858_s17 + $0x52] sm:$0xff]  ;;  %v3337_v52 = vadd.f32 %v325_v21, %v3055_v59 }
  0x4a   : > { %6870 = vst [vmem:[#allocation58_spill] sm:$0xff] %v3200_v5 }
  0x4b   : > { %6871 = vst [vmem:[#allocation59_spill] sm:$0xff] %v3209_v4  ;;  %v324_v4 = vmul.f32 %v2930_v23, %v3176_v1  ;;  %v329_v1 = vmul.f32 %v2930_v23, %v3200_v5  ;;  %v367_v23 = vld [vmem:[%s2858_s17 + $0x2] sm:$0xff]  ;;  %v3450_v5 = vld [vmem:[%s2858_s17 + $0x152] sm:$0xff] }
  0x4c   : > { %6872 = vst [vmem:[#allocation60_spill] sm:$0xff] %v3212_v27 }
  0x4d   : > { %6873 = vst [vmem:[#allocation61_spill] sm:$0xff] %v3215_v51  ;;  %v3270_v51 = vadd.f32 %v312_v25, %v2980_v37  ;;  %v3289_v25 = vld [vmem:[%s6523_s1 + $0x2] ss:$0 sm:$0xff]  ;;  %v3295_v37 = vadd.f32 %v318_v46, %v3017_v48  ;;  %v3319_v46 = vadd.f32 %v322_v2, %v3040_v55  ;;  %v3328_v48 = vld [vmem:[%s2858_s17 + $0x4a] sm:$0xff]  ;;  %v3358_v59 = vadd.f32 %v329_v1, %v3081_v32  ;;  %v3396_v1 = vld [vmem:[%s2858_s17 + $0xda] sm:$0xff] }
  0x4e   : > { %6874 = vst [vmem:[#allocation62_spill] sm:$0xff] %v3218_v3  ;;  %v3273_v3 = vadd.f32 %v313_v24, %v2990_v40  ;;  %v3292_v24 = vadd.f32 %v317_v17, %v3013_v47  ;;  %v3304_v40 = vld [vmem:[%s2858_s17 + $0x1a] sm:$0xff]  ;;  %v3325_v47 = vadd.f32 %v324_v4, %v3048_v57  ;;  %v3346_v4 = vadd.f32 %v328_v29, %v3077_v31  ;;  %v3349_v55 = vld [vmem:[%s2858_s17 + $0x6a] sm:$0xff]  ;;  %v3355_v57 = vld [vmem:[%s2858_s17 + $0x82] sm:$0xff] }
  0x4f   : > { %6875 = vst [vmem:[#allocation63_spill] sm:$0xff] %v3230_v15  ;;  %v3282_v15 = vadd.f32 %v316_v18, %v3002_v43  ;;  %v3301_v18 = vadd.f32 %v320_v16, %v3025_v50  ;;  %v3313_v17 = vld [vmem:[%s2858_s17 + $0x3a] sm:$0xff]  ;;  %v3316_v43 = vadd.f32 %v321_v22, %v3036_v54  ;;  %v3322_v16 = vadd.f32 %v323_v53, %v3044_v56  ;;  %v3334_v50 = vld [vmem:[%s2858_s17 + $0x62] sm:$0xff] }
  0x50   : > { %6876 = vst [vmem:[#allocation64_spill] sm:$0xff] %v3233_v28  ;;  %v3340_v54 = vadd.f32 %v326_v11, %v3059_v60  ;;  %v3343_v53 = vadd.f32 %v327_v14, %v3063_v61  ;;  %v3352_v56 = vld [vmem:[%s2858_s17 + $0x7a] sm:$0xff]  ;;  %v3361_v11 = vadd.f32 %v330_v7, %v3085_v26  ;;  %v3364_v60 = vadd.f32 %v331_v30, %v3099_v20  ;;  %v3370_v61 = vld [vmem:[%s2858_s17 + $0x92] sm:$0xff]  ;;  %v3388_v26 = vld [vmem:[%s2858_s17 + $0xc2] sm:$0xff] }
  0x51   : > { %6877 = vst [vmem:[#allocation65_spill] sm:$0xff] %v3304_v40  ;;  %v3367_v31 = vadd.f32 %v332_v58, %v3103_v38  ;;  %v3379_v32 = vadd.f32 %v333_v6, %v3107_v39  ;;  %v3382_v7 = vadd.f32 %v334_v12, %v3122_v45  ;;  %v3385_v20 = vld [vmem:[%s2858_s17 + $0xb2] sm:$0xff]  ;;  %v3391_v38 = vld [vmem:[%s2858_s17 + $0xca] sm:$0xff]  ;;  %v401_v2 = vmul.f32 %v3289_v25, %v367_v23  ;;  %v3399_v6 = vld [vmem:[%s2858_s17 + $0xe2] sm:$0xff] }
  0x52   : > { %6878 = vst [vmem:[#allocation66_spill] sm:$0xff] %v3307_v41  ;;  %v402_v21 = vmul.f32 %v3289_v25, %v368_v36  ;;  %v3402_v39 = vld [vmem:[%s2858_s17 + $0xf2] sm:$0xff]  ;;  %v403_v45 = vmul.f32 %v3289_v25, %v3304_v40  ;;  %v404_v22 = vmul.f32 %v3289_v25, %v3307_v41  ;;  %v405_v14 = vmul.f32 %v3289_v25, %v3310_v42  ;;  %v3413_v30 = vld [vmem:[%s2858_s17 + $0xfa] sm:$0xff]  ;;  %v3416_v58 = vld [vmem:[%s2858_s17 + $0x10a] sm:$0xff] }
  0x53   : > { %6879 = vst [vmem:[#allocation67_spill] sm:$0xff] %v3310_v42  ;;  %v406_v29 = vmul.f32 %v3289_v25, %v3313_v17  ;;  %v3419_v12 = vld [vmem:[%s2858_s17 + $0x112] sm:$0xff]  ;;  %v407_v23 = vmul.f32 %v3289_v25, %v3328_v48  ;;  %v408_v36 = vmul.f32 %v3289_v25, %v3331_v49  ;;  %v409_v42 = vmul.f32 %v3289_v25, %v3334_v50  ;;  %v3430_v41 = vld [vmem:[%s2858_s17 + $0x122] sm:$0xff]  ;;  %v3433_v40 = vld [vmem:[%s2858_s17 + $0x12a] sm:$0xff] }
  0x54   : > { %6880 = vst [vmem:[#allocation68_spill] sm:$0xff] %v3313_v17  ;;  %v410_v17 = vmul.f32 %v3289_v25, %v3349_v55  ;;  %v3436_v28 = vld [vmem:[%s2858_s17 + $0x13a] sm:$0xff]  ;;  %v414_v27 = vmul.f32 %v3289_v25, %v3373_v63 }
  0x55   : > { %6881 = vst [vmem:[#allocation69_spill] sm:$0xff] %v3328_v48  ;;  %v411_v48 = vmul.f32 %v3289_v25, %v3352_v56 }
  0x56   : > { %6882 = vst [vmem:[#allocation70_spill] sm:$0xff] %v3331_v49  ;;  %v412_v49 = vmul.f32 %v3289_v25, %v3355_v57 }
  0x57   : > { %6883 = vst [vmem:[#allocation71_spill] sm:$0xff] %v3334_v50  ;;  %v413_v50 = vmul.f32 %v3289_v25, %v3370_v61 }
  0x58   : > { %6884 = vst [vmem:[#allocation72_spill] sm:$0xff] %v3343_v53  ;;  %v6917_v53 = vld [vmem:[#allocation59_spill] sm:$0xff] }
  0x59   : > { %6885 = vst [vmem:[#allocation73_spill] sm:$0xff] %v3346_v4  ;;  %v6916_v4 = vld [vmem:[#allocation55_spill] sm:$0xff] }
  0x5a   : > { %6886 = vst [vmem:[#allocation74_spill] sm:$0xff] %v3349_v55  ;;  %v3447_v55 = vld [vmem:[%s2858_s17 + $0x142] sm:$0xff] }
  0x5b   : > { %6887 = vst [vmem:[#allocation75_spill] sm:$0xff] %v3352_v56  ;;  %v416_v56 = vmul.f32 %v3289_v25, %v3385_v20 }
  0x5c   : > { %6888 = vst [vmem:[#allocation76_spill] sm:$0xff] %v3355_v57  ;;  %v417_v57 = vmul.f32 %v3289_v25, %v3388_v26 }
  0x5d   : > { %6889 = vst [vmem:[#allocation77_spill] sm:$0xff] %v3358_v59  ;;  %v6915_v59 = vld [vmem:[#allocation51_spill] sm:$0xff] }
  0x5e   : > { %6890 = vst [vmem:[#allocation78_spill] sm:$0xff] %v3361_v11  ;;  %v425_v11 = vmul.f32 %v3289_v25, %v3430_v41 }
  0x5f   : > { %6891 = vst [vmem:[#allocation79_spill] sm:$0xff] %v3364_v60  ;;  %v420_v60 = vmul.f32 %v3289_v25, %v3399_v6 }
  0x60   : > { %6892 = vst [vmem:[#allocation80_spill] sm:$0xff] %v3367_v31  ;;  %v419_v31 = vmul.f32 %v3289_v25, %v3396_v1 }
  0x61   : > { %6893 = vst [vmem:[#allocation81_spill] sm:$0xff] %v3370_v61  ;;  %v418_v61 = vmul.f32 %v3289_v25, %v3391_v38 }
  0x62   : > { %6894 = vst [vmem:[#allocation82_spill] sm:$0xff] %v3373_v63  ;;  %v3467_v63 = vld [vmem:[%s2858_s17 + $0x172] sm:$0xff] }
  0x63   : > { %6895 = vst [vmem:[#allocation83_spill] sm:$0xff] %v3376_v44 }
  0x64   : > { %6896 = vst [vmem:[#allocation84_spill] sm:$0xff] %v3379_v32  ;;  %v3464_v32 = vld [vmem:[%s2858_s17 + $0x16a] sm:$0xff] }
  0x65   : > { %6897 = vst [vmem:[#allocation85_spill] sm:$0xff] %v3382_v7  ;;  %v415_v7 = vmul.f32 %v3289_v25, %v3376_v44  ;;  %v421_v44 = vmul.f32 %v3289_v25, %v3402_v39 }
  0x66   : > { %6898 = vst [vmem:[#allocation86_spill] sm:$0xff] %v3385_v20  ;;  %v422_v20 = vmul.f32 %v3289_v25, %v3413_v30 }
  0x67   : > { %6899 = vst [vmem:[#allocation87_spill] sm:$0xff] %v3388_v26  ;;  %v423_v26 = vmul.f32 %v3289_v25, %v3416_v58 }
  0x68   : > { %6900 = vst [vmem:[#allocation88_spill] sm:$0xff] %v3391_v38  ;;  %v424_v38 = vmul.f32 %v3289_v25, %v3419_v12 }
  0x69   : > { %6901 = vst [vmem:[#allocation89_spill] sm:$0xff] %v3396_v1  ;;  %v426_v1 = vmul.f32 %v3289_v25, %v3433_v40 }
  0x6a   : > { %6902 = vst [vmem:[#allocation90_spill] sm:$0xff] %v3399_v6  ;;  %v427_v6 = vmul.f32 %v3289_v25, %v3436_v28 }
  0x6b   : > { %6903 = vst [vmem:[#allocation91_spill] sm:$0xff] %v3402_v39  ;;  %v428_v39 = vmul.f32 %v3289_v25, %v3447_v55 }
  0x6c   : > { %6904 = vst [vmem:[#allocation92_spill] sm:$0xff] %v3413_v30  ;;  %v429_v30 = vmul.f32 %v3289_v25, %v3450_v5 }
  0x6d   : > { %6905 = vst [vmem:[#allocation93_spill] sm:$0xff] %v3416_v58  ;;  %v430_v58 = vmul.f32 %v3289_v25, %v3453_v8 }
  0x6e   : > { %6906 = vst [vmem:[#allocation94_spill] sm:$0xff] %v3419_v12  ;;  %v431_v12 = vmul.f32 %v3289_v25, %v3464_v32 }
  0x6f   : > { %6907 = vst [vmem:[#allocation95_spill] sm:$0xff] %v3430_v41  ;;  %v432_v41 = vmul.f32 %v3289_v25, %v3467_v63  ;;  %v3516_v25 = vadd.f32 %v407_v23, %v3251_v9  ;;  %v3537_v9 = vadd.f32 %v414_v27, %v3282_v15  ;;  %v3558_v27 = vadd.f32 %v420_v60, %v3319_v46  ;;  %v6925_v46 = vld [vmem:[#allocation77_spill] sm:$0xff]  ;;  %v6947_v23 = vld [vmem:[#allocation12_spill] sm:$0xff] }
  0x70   : > { %6908 = vst [vmem:[#allocation96_spill] sm:$0xff] %v3433_v40  ;;  %v3498_v40 = vadd.f32 %v401_v2, %v3155_v0  ;;  %v3519_v0 = vadd.f32 %v408_v36, %v3260_v33  ;;  %v3540_v33 = vadd.f32 %v415_v7, %v3292_v24  ;;  %v3561_v15 = vadd.f32 %v421_v44, %v3322_v16  ;;  %v6927_v16 = vld [vmem:[#allocation78_spill] sm:$0xff]  ;;  %v6938_v44 = vld [vmem:[#allocation3_spill] sm:$0xff] }
  0x71   : > { %6909 = vst [vmem:[#allocation97_spill] sm:$0xff] %v3436_v28  ;;  %v3501_v28 = vadd.f32 %v402_v21, %v6915_v59  ;;  %v3522_v59 = vadd.f32 %v409_v42, %v3267_v34  ;;  %v3543_v34 = vadd.f32 %v416_v56, %v3295_v37  ;;  %v3564_v24 = vadd.f32 %v422_v20, %v3325_v47  ;;  %v6929_v47 = vld [vmem:[#allocation79_spill] sm:$0xff]  ;;  %v6939_v20 = vld [vmem:[#allocation4_spill] sm:$0xff]  ;;  %v6941_v21 = vld [vmem:[#allocation6_spill] sm:$0xff] }
  0x72   : > { %6910 = vst [vmem:[#allocation98_spill] sm:$0xff] %v3447_v55  ;;  %v3504_v55 = vadd.f32 %v403_v45, %v6916_v4  ;;  %v3525_v4 = vadd.f32 %v410_v17, %v3270_v51  ;;  %v3546_v51 = vadd.f32 %v417_v57, %v3298_v19  ;;  %v3567_v37 = vadd.f32 %v423_v26, %v3337_v52  ;;  %v6923_v17 = vld [vmem:[#allocation73_spill] sm:$0xff]  ;;  %v6931_v52 = vld [vmem:[#allocation80_spill] sm:$0xff] }
  0x73   : > { %6911 = vst [vmem:[#allocation99_spill] sm:$0xff] %v3450_v5  ;;  %v3507_v5 = vadd.f32 %v404_v22, %v6917_v53  ;;  %v3528_v53 = vadd.f32 %v411_v48, %v3273_v3  ;;  %v3549_v3 = vadd.f32 %v418_v61, %v3301_v18  ;;  %v3570_v19 = vadd.f32 %v424_v38, %v3340_v54  ;;  %v6921_v18 = vld [vmem:[#allocation72_spill] sm:$0xff]  ;;  %v6940_v38 = vld [vmem:[#allocation5_spill] sm:$0xff] }
  0x74   : > { %6912 = vst [vmem:[#allocation100_spill] sm:$0xff] %v3453_v8  ;;  %v3510_v8 = vadd.f32 %v405_v14, %v3227_v13  ;;  %v3531_v13 = vadd.f32 %v412_v49, %v3276_v35  ;;  %v2681_v35 = vld [vmem:[%s6523_s1 + $0x4] ss:$0 sm:$0xff]  ;;  %v3573_v42 = vadd.f32 %v425_v11, %v6921_v18  ;;  %v3579_v48 = vadd.f32 %v427_v6, %v6925_v46  ;;  %v6933_v54 = vld [vmem:[#allocation84_spill] sm:$0xff]  ;;  %v6935_v11 = vld [vmem:[#allocation85_spill] sm:$0xff] }
  0x75   : > { %6913 = vst [vmem:[#allocation101_spill] sm:$0xff] %v3464_v32  ;;  %v3513_v32 = vadd.f32 %v406_v29, %v3242_v10  ;;  %v3534_v10 = vadd.f32 %v413_v50, %v3279_v62  ;;  %v3555_v62 = vadd.f32 %v419_v31, %v3316_v43  ;;  %v3576_v43 = vadd.f32 %v426_v1, %v6923_v17  ;;  %v6937_v31 = vld [vmem:[#allocation2_spill] sm:$0xff]  ;;  %v6942_v6 = vld [vmem:[#allocation7_spill] sm:$0xff]  ;;  %v6943_v45 = vld [vmem:[#allocation8_spill] sm:$0xff] }
  0x76   : > { %6914 = vst [vmem:[#allocation102_spill] sm:$0xff] %v3467_v63  ;;  %v3582_v49 = vadd.f32 %v428_v39, %v6927_v16  ;;  %v3585_v50 = vadd.f32 %v429_v30, %v6929_v47  ;;  %v3588_v56 = vadd.f32 %v430_v58, %v6931_v52  ;;  %v3591_v57 = vadd.f32 %v431_v12, %v6933_v54  ;;  %v6944_v14 = vld [vmem:[#allocation9_spill] sm:$0xff]  ;;  %v6946_v58 = vld [vmem:[#allocation11_spill] sm:$0xff]  ;;  %v6949_v46 = vld [vmem:[#allocation14_spill] sm:$0xff] }
  0x77   : > { %6918 = vst [vmem:[#allocation51_spill] sm:$0xff] %v3564_v24  ;;  %v3594_v60 = vadd.f32 %v432_v41, %v6935_v11  ;;  %v501_v61 = vmul.f32 %v2681_v35, %v6937_v31  ;;  %v502_v7 = vmul.f32 %v2681_v35, %v6938_v44  ;;  %v503_v26 = vmul.f32 %v2681_v35, %v6939_v20  ;;  %v6945_v41 = vld [vmem:[#allocation10_spill] sm:$0xff]  ;;  %v6948_v18 = vld [vmem:[#allocation13_spill] sm:$0xff]  ;;  %v6950_v47 = vld [vmem:[#allocation15_spill] sm:$0xff] }
  0x78   : > { %6919 = vst [vmem:[#allocation55_spill] sm:$0xff] %v3567_v37  ;;  %v504_v2 = vmul.f32 %v2681_v35, %v6940_v38  ;;  %v505_v1 = vmul.f32 %v2681_v35, %v6941_v21  ;;  %v506_v39 = vmul.f32 %v2681_v35, %v6942_v6  ;;  %v507_v22 = vmul.f32 %v2681_v35, %v6943_v45  ;;  %v6951_v54 = vld [vmem:[#allocation16_spill] sm:$0xff]  ;;  %v6952_v31 = vld [vmem:[#allocation17_spill] sm:$0xff]  ;;  %v6953_v20 = vld [vmem:[#allocation18_spill] sm:$0xff] }
  0x79   : > { %6920 = vst [vmem:[#allocation59_spill] sm:$0xff] %v3570_v19  ;;  %v508_v29 = vmul.f32 %v2681_v35, %v6944_v14  ;;  %v509_v30 = vmul.f32 %v2681_v35, %v6945_v41  ;;  %v510_v12 = vmul.f32 %v2681_v35, %v6946_v58  ;;  %v511_v36 = vmul.f32 %v2681_v35, %v6947_v23  ;;  %v6954_v21 = vld [vmem:[#allocation19_spill] sm:$0xff]  ;;  %v3615_v45 = vld [vmem:[%s2858_s17 + $0x180] sm:$0xff]  ;;  %v6957_v41 = vld [vmem:[#allocation20_spill] sm:$0xff] }
  0x7a   : > { %6922 = vst [vmem:[#allocation72_spill] sm:$0xff] %v3573_v42  ;;  %v512_v17 = vmul.f32 %v2681_v35, %v6948_v18  ;;  %v513_v16 = vmul.f32 %v2681_v35, %v6949_v46  ;;  %v514_v52 = vmul.f32 %v2681_v35, %v6950_v47  ;;  %v515_v11 = vmul.f32 %v2681_v35, %v6951_v54  ;;  %v3618_v14 = vld [vmem:[%s2858_s17 + $0x188] sm:$0xff]  ;;  %v6958_v23 = vld [vmem:[#allocation21_spill] sm:$0xff]  ;;  %v6959_v63 = vld [vmem:[#allocation22_spill] sm:$0xff] }
  0x7b   : > { %6924 = vst [vmem:[#allocation73_spill] sm:$0xff] %v3576_v43  ;;  %v516_v44 = vmul.f32 %v2681_v35, %v6952_v31  ;;  %v517_v38 = vmul.f32 %v2681_v35, %v6953_v20  ;;  %v518_v6 = vmul.f32 %v2681_v35, %v6954_v21  ;;  %v519_v58 = vmul.f32 %v2681_v35, %v6957_v41  ;;  %v6966_v42 = vld [vmem:[#allocation29_spill] sm:$0xff]  ;;  %v6967_v37 = vld [vmem:[#allocation30_spill] sm:$0xff]  ;;  %v6968_v24 = vld [vmem:[#allocation31_spill] sm:$0xff] }
  0x7c   : > { %6926 = vst [vmem:[#allocation77_spill] sm:$0xff] %v3579_v48  ;;  %v520_v18 = vmul.f32 %v2681_v35, %v6958_v23  ;;  %v521_v46 = vmul.f32 %v2681_v35, %v6959_v63  ;;  %v6965_v48 = vld [vmem:[#allocation28_spill] sm:$0xff]  ;;  %v528_v19 = vmul.f32 %v2681_v35, %v6966_v42  ;;  %v529_v41 = vmul.f32 %v2681_v35, %v6967_v37 }
  0x7d   : > { %6928 = vst [vmem:[#allocation78_spill] sm:$0xff] %v3582_v49  ;;  %v6964_v49 = vld [vmem:[#allocation27_spill] sm:$0xff]  ;;  %v527_v43 = vmul.f32 %v2681_v35, %v6965_v48  ;;  %v530_v23 = vmul.f32 %v2681_v35, %v6968_v24  ;;  %v531_v63 = vmul.f32 %v2681_v35, %v3615_v45  ;;  %v3644_v48 = vadd.f32 %v504_v2, %v3507_v5 }
  0x7e   : > { %6930 = vst [vmem:[#allocation79_spill] sm:$0xff] %v3585_v50  ;;  %v6963_v50 = vld [vmem:[#allocation26_spill] sm:$0xff]  ;;  %v526_v21 = vmul.f32 %v2681_v35, %v6964_v49  ;;  %v3641_v49 = vadd.f32 %v503_v26, %v3504_v55  ;;  %v3647_v37 = vadd.f32 %v505_v1, %v3510_v8  ;;  %v3650_v24 = vadd.f32 %v506_v39, %v3513_v32 }
  0x7f   : > { %6932 = vst [vmem:[#allocation80_spill] sm:$0xff] %v3588_v56  ;;  %v6962_v56 = vld [vmem:[#allocation25_spill] sm:$0xff]  ;;  %v525_v20 = vmul.f32 %v2681_v35, %v6963_v50  ;;  %v3662_v55 = vadd.f32 %v510_v12, %v3525_v4  ;;  %v3665_v5 = vadd.f32 %v511_v36, %v3528_v53  ;;  %v3668_v8 = vadd.f32 %v512_v17, %v3531_v13  ;;  %v2682_v13 = vld [vmem:[%s6523_s1 + $0x5] ss:$0 sm:$0xff] }
  0x80   : > { %6934 = vst [vmem:[#allocation84_spill] sm:$0xff] %v3591_v57  ;;  %v6961_v57 = vld [vmem:[#allocation24_spill] sm:$0xff]  ;;  %v524_v31 = vmul.f32 %v2681_v35, %v6962_v56  ;;  %v3638_v56 = vadd.f32 %v502_v7, %v3501_v28  ;;  %v3659_v28 = vadd.f32 %v509_v30, %v3522_v59  ;;  %v3671_v32 = vadd.f32 %v513_v16, %v3534_v10 }
  0x81   : > { %6936 = vst [vmem:[#allocation85_spill] sm:$0xff] %v3594_v60  ;;  %v6960_v60 = vld [vmem:[#allocation23_spill] sm:$0xff]  ;;  %v523_v54 = vmul.f32 %v2681_v35, %v6961_v57  ;;  %v3635_v57 = vadd.f32 %v501_v61, %v3498_v40  ;;  %v3656_v40 = vadd.f32 %v508_v29, %v3519_v0  ;;  %v3677_v0 = vadd.f32 %v515_v11, %v3540_v33  ;;  %v6975_v7 = vld [vmem:[#allocation72_spill] sm:$0xff] }
  0x82   : > { %6955 = vst [vmem:[#allocation2_spill] sm:$0xff] %v3615_v45  ;;  %v522_v47 = vmul.f32 %v2681_v35, %v6960_v60  ;;  %v532_v60 = vmul.f32 %v2681_v35, %v3618_v14  ;;  %v3653_v35 = vadd.f32 %v507_v22, %v3516_v25  ;;  %v3674_v25 = vadd.f32 %v514_v52, %v3537_v9  ;;  %v6991_v11 = vld [vmem:[#allocation32_spill] sm:$0xff]  ;;  %v7013_v45 = vld [vmem:[#allocation53_spill] sm:$0xff] }
  0x83   : > { %6956 = vst [vmem:[#allocation3_spill] sm:$0xff] %v3618_v14  ;;  %v3680_v59 = vadd.f32 %v516_v44, %v3543_v34  ;;  %v3683_v4 = vadd.f32 %v517_v38, %v3546_v51  ;;  %v3686_v53 = vadd.f32 %v518_v6, %v3549_v3  ;;  %v3692_v10 = vadd.f32 %v519_v58, %v3555_v62  ;;  %v6969_v34 = vld [vmem:[#allocation51_spill] sm:$0xff]  ;;  %v6977_v62 = vld [vmem:[#allocation73_spill] sm:$0xff]  ;;  %v6993_v6 = vld [vmem:[#allocation34_spill] sm:$0xff] }
  0x84   : > { %v3695_v9 = vadd.f32 %v520_v18, %v3558_v27  ;;  %v3698_v33 = vadd.f32 %v521_v46, %v3561_v15  ;;  %v3701_v42 = vadd.f32 %v522_v47, %v6969_v34  ;;  %v6971_v51 = vld [vmem:[#allocation55_spill] sm:$0xff]  ;;  %v3710_v26 = vadd.f32 %v525_v20, %v6975_v7  ;;  %v6979_v27 = vld [vmem:[#allocation77_spill] sm:$0xff]  ;;  %v6981_v15 = vld [vmem:[#allocation78_spill] sm:$0xff] }
  0x85   : > { %v3704_v50 = vadd.f32 %v523_v54, %v6971_v51  ;;  %v6973_v3 = vld [vmem:[#allocation59_spill] sm:$0xff]  ;;  %v3713_v2 = vadd.f32 %v526_v21, %v6977_v62  ;;  %v3716_v1 = vadd.f32 %v527_v43, %v6979_v27  ;;  %v3719_v39 = vadd.f32 %v528_v19, %v6981_v15  ;;  %v6992_v38 = vld [vmem:[#allocation33_spill] sm:$0xff]  ;;  %v6995_v46 = vld [vmem:[#allocation36_spill] sm:$0xff] }
  0x86   : > { %6970 = vst [vmem:[#allocation4_spill] sm:$0xff] %v3701_v42  ;;  %v3707_v61 = vadd.f32 %v524_v31, %v6973_v3  ;;  %v6983_v22 = vld [vmem:[#allocation79_spill] sm:$0xff]  ;;  %v6985_v30 = vld [vmem:[#allocation80_spill] sm:$0xff]  ;;  %v599_v44 = vmul.f32 %v2682_v13, %v6991_v11  ;;  %v600_v43 = vmul.f32 %v2682_v13, %v6992_v38  ;;  %v601_v58 = vmul.f32 %v2682_v13, %v6993_v6  ;;  %v6996_v54 = vld [vmem:[#allocation37_spill] sm:$0xff] }
  0x87   : > { %6972 = vst [vmem:[#allocation5_spill] sm:$0xff] %v3704_v50  ;;  %v3722_v29 = vadd.f32 %v529_v41, %v6983_v22  ;;  %v3725_v12 = vadd.f32 %v530_v23, %v6985_v30  ;;  %v6987_v36 = vld [vmem:[#allocation84_spill] sm:$0xff]  ;;  %v6994_v19 = vld [vmem:[#allocation35_spill] sm:$0xff]  ;;  %v603_v47 = vmul.f32 %v2682_v13, %v6995_v46  ;;  %v604_v31 = vmul.f32 %v2682_v13, %v6996_v54  ;;  %v6997_v20 = vld [vmem:[#allocation38_spill] sm:$0xff] }
  0x88   : > { %6974 = vst [vmem:[#allocation6_spill] sm:$0xff] %v3707_v61  ;;  %v3728_v17 = vadd.f32 %v531_v63, %v6987_v36  ;;  %v6989_v16 = vld [vmem:[#allocation85_spill] sm:$0xff]  ;;  %v602_v18 = vmul.f32 %v2682_v13, %v6994_v19  ;;  %v605_v21 = vmul.f32 %v2682_v13, %v6997_v20  ;;  %v6998_v41 = vld [vmem:[#allocation39_spill] sm:$0xff]  ;;  %v6999_v63 = vld [vmem:[#allocation40_spill] sm:$0xff] }
  0x89   : > { %6976 = vst [vmem:[#allocation7_spill] sm:$0xff] %v3710_v26  ;;  %v3731_v52 = vadd.f32 %v532_v60, %v6989_v16  ;;  %v606_v23 = vmul.f32 %v2682_v13, %v6998_v41  ;;  %v607_v60 = vmul.f32 %v2682_v13, %v6999_v63  ;;  %v7000_v34 = vld [vmem:[#allocation41_spill] sm:$0xff]  ;;  %v7001_v3 = vld [vmem:[#allocation42_spill] sm:$0xff]  ;;  %v7002_v62 = vld [vmem:[#allocation43_spill] sm:$0xff] }
  0x8a   : > { %6978 = vst [vmem:[#allocation8_spill] sm:$0xff] %v3713_v2  ;;  %v608_v51 = vmul.f32 %v2682_v13, %v7000_v34  ;;  %v609_v7 = vmul.f32 %v2682_v13, %v7001_v3  ;;  %v610_v27 = vmul.f32 %v2682_v13, %v7002_v62  ;;  %v7003_v15 = vld [vmem:[#allocation44_spill] sm:$0xff]  ;;  %v7004_v30 = vld [vmem:[#allocation45_spill] sm:$0xff]  ;;  %v7005_v16 = vld [vmem:[#allocation46_spill] sm:$0xff] }
  0x8b   : > { %6980 = vst [vmem:[#allocation9_spill] sm:$0xff] %v3716_v1  ;;  %v611_v22 = vmul.f32 %v2682_v13, %v7003_v15  ;;  %v612_v36 = vmul.f32 %v2682_v13, %v7004_v30  ;;  %v613_v11 = vmul.f32 %v2682_v13, %v7005_v16  ;;  %v7006_v38 = vld [vmem:[#allocation47_spill] sm:$0xff]  ;;  %v7007_v19 = vld [vmem:[#allocation48_spill] sm:$0xff]  ;;  %v7008_v54 = vld [vmem:[#allocation49_spill] sm:$0xff]  ;;  %v619_v15 = vmul.f32 %v2682_v13, %v7013_v45 }
  0x8c   : > { %6982 = vst [vmem:[#allocation10_spill] sm:$0xff] %v3719_v39  ;;  %v614_v6 = vmul.f32 %v2682_v13, %v7006_v38  ;;  %v615_v46 = vmul.f32 %v2682_v13, %v7007_v19  ;;  %v616_v20 = vmul.f32 %v2682_v13, %v7008_v54  ;;  %v3752_v41 = vld [vmem:[%s2858_s17 + $0x181] sm:$0xff]  ;;  %v3755_v63 = vld [vmem:[%s2858_s17 + $0x189] sm:$0xff]  ;;  %v7019_v1 = vld [vmem:[#allocation61_spill] sm:$0xff] }
  0x8d   : > { %6984 = vst [vmem:[#allocation11_spill] sm:$0xff] %v3722_v29  ;;  %v7011_v34 = vld [vmem:[#allocation50_spill] sm:$0xff]  ;;  %v7012_v14 = vld [vmem:[#allocation52_spill] sm:$0xff]  ;;  %v625_v2 = vmul.f32 %v2682_v13, %v7019_v1  ;;  %v7021_v50 = vld [vmem:[#allocation63_spill] sm:$0xff]  ;;  %v629_v45 = vmul.f32 %v2682_v13, %v3752_v41  ;;  %v3781_v1 = vadd.f32 %v602_v18, %v3644_v48  ;;  %v3802_v48 = vadd.f32 %v609_v7, %v3665_v5 }
  0x8e   : > { %6986 = vst [vmem:[#allocation12_spill] sm:$0xff] %v3725_v12  ;;  %v617_v3 = vmul.f32 %v2682_v13, %v7011_v34  ;;  %v618_v62 = vmul.f32 %v2682_v13, %v7012_v14  ;;  %v7016_v12 = vld [vmem:[#allocation57_spill] sm:$0xff]  ;;  %v7017_v29 = vld [vmem:[#allocation58_spill] sm:$0xff]  ;;  %v7018_v39 = vld [vmem:[#allocation60_spill] sm:$0xff]  ;;  %v627_v34 = vmul.f32 %v2682_v13, %v7021_v50  ;;  %v3784_v50 = vadd.f32 %v603_v47, %v3647_v37 }
  0x8f   : > { %6988 = vst [vmem:[#allocation13_spill] sm:$0xff] %v3728_v17  ;;  %v7015_v17 = vld [vmem:[#allocation56_spill] sm:$0xff]  ;;  %v622_v38 = vmul.f32 %v2682_v13, %v7016_v12  ;;  %v623_v19 = vmul.f32 %v2682_v13, %v7017_v29  ;;  %v624_v54 = vmul.f32 %v2682_v13, %v7018_v39  ;;  %v7020_v26 = vld [vmem:[#allocation62_spill] sm:$0xff]  ;;  %v3775_v12 = vadd.f32 %v600_v43, %v3638_v56 }
  0x90   : > { %6990 = vst [vmem:[#allocation14_spill] sm:$0xff] %v3731_v52  ;;  %v7014_v52 = vld [vmem:[#allocation54_spill] sm:$0xff]  ;;  %v621_v16 = vmul.f32 %v2682_v13, %v7015_v17  ;;  %v626_v61 = vmul.f32 %v2682_v13, %v7020_v26  ;;  %v7022_v42 = vld [vmem:[#allocation64_spill] sm:$0xff]  ;;  %v3772_v17 = vadd.f32 %v599_v44, %v3635_v57  ;;  %v3778_v39 = vadd.f32 %v601_v58, %v3641_v49  ;;  %v7029_v43 = vld [vmem:[#allocation7_spill] sm:$0xff] }
  0x91   : > { %7009 = vst [vmem:[#allocation15_spill] sm:$0xff] %v3752_v41  ;;  %v620_v30 = vmul.f32 %v2682_v13, %v7014_v52  ;;  %v628_v14 = vmul.f32 %v2682_v13, %v7022_v42  ;;  %v630_v52 = vmul.f32 %v2682_v13, %v3755_v63  ;;  %v3787_v42 = vadd.f32 %v604_v31, %v3650_v24  ;;  %v7067_v41 = vld [vmem:[#allocation93_spill] sm:$0xff] }
  0x92   : > { %7010 = vst [vmem:[#allocation16_spill] sm:$0xff] %v3755_v63  ;;  %v3790_v13 = vadd.f32 %v605_v21, %v3653_v35  ;;  %v3793_v57 = vadd.f32 %v606_v23, %v3656_v40  ;;  %v3796_v56 = vadd.f32 %v607_v60, %v3659_v28  ;;  %v3799_v49 = vadd.f32 %v608_v51, %v3662_v55  ;;  %v7066_v63 = vld [vmem:[#allocation92_spill] sm:$0xff] }
  0x93   : > { %v3805_v37 = vadd.f32 %v610_v27, %v3668_v8  ;;  %v3808_v24 = vadd.f32 %v611_v22, %v3671_v32  ;;  %v3811_v35 = vadd.f32 %v612_v36, %v3674_v25  ;;  %v3814_v40 = vadd.f32 %v613_v11, %v3677_v0  ;;  %v2683_v8 = vld [vmem:[%s6523_s1 + $0x6] ss:$0 sm:$0xff]  ;;  %v7045_v11 = vld [vmem:[#allocation65_spill] sm:$0xff] }
  0x94   : > { %v3817_v28 = vadd.f32 %v614_v6, %v3680_v59  ;;  %v3820_v55 = vadd.f32 %v615_v46, %v3683_v4  ;;  %v3823_v5 = vadd.f32 %v616_v20, %v3686_v53  ;;  %v3829_v32 = vadd.f32 %v617_v3, %v3692_v10  ;;  %v7023_v59 = vld [vmem:[#allocation4_spill] sm:$0xff]  ;;  %v7025_v4 = vld [vmem:[#allocation5_spill] sm:$0xff]  ;;  %v7027_v53 = vld [vmem:[#allocation6_spill] sm:$0xff] }
  0x95   : > { %v3832_v25 = vadd.f32 %v618_v62, %v3695_v9  ;;  %v3835_v0 = vadd.f32 %v619_v15, %v3698_v33  ;;  %v3838_v26 = vadd.f32 %v620_v30, %v7023_v59  ;;  %v3841_v29 = vadd.f32 %v621_v16, %v7025_v4  ;;  %v7031_v10 = vld [vmem:[#allocation8_spill] sm:$0xff]  ;;  %v7033_v9 = vld [vmem:[#allocation9_spill] sm:$0xff]  ;;  %v7035_v33 = vld [vmem:[#allocation10_spill] sm:$0xff] }
  0x96   : > { %v3844_v44 = vadd.f32 %v622_v38, %v7027_v53  ;;  %v3847_v58 = vadd.f32 %v623_v19, %v7029_v43  ;;  %v3850_v18 = vadd.f32 %v624_v54, %v7031_v10  ;;  %v3853_v47 = vadd.f32 %v625_v2, %v7033_v9  ;;  %v7037_v21 = vld [vmem:[#allocation11_spill] sm:$0xff]  ;;  %v7039_v60 = vld [vmem:[#allocation12_spill] sm:$0xff]  ;;  %v7041_v7 = vld [vmem:[#allocation13_spill] sm:$0xff] }
  0x97   : > { %7024 = vst [vmem:[#allocation17_spill] sm:$0xff] %v3838_v26  ;;  %v3856_v31 = vadd.f32 %v626_v61, %v7035_v33  ;;  %v3859_v23 = vadd.f32 %v627_v34, %v7037_v21  ;;  %v3862_v51 = vadd.f32 %v628_v14, %v7039_v60  ;;  %v3865_v27 = vadd.f32 %v629_v45, %v7041_v7  ;;  %v7043_v22 = vld [vmem:[#allocation14_spill] sm:$0xff]  ;;  %v7047_v20 = vld [vmem:[#allocation67_spill] sm:$0xff]  ;;  %v7048_v61 = vld [vmem:[#allocation68_spill] sm:$0xff] }
  0x98   : > { %7026 = vst [vmem:[#allocation18_spill] sm:$0xff] %v3841_v29  ;;  %v3868_v36 = vadd.f32 %v630_v52, %v7043_v22  ;;  %v697_v6 = vmul.f32 %v2683_v8, %v7045_v11  ;;  %v7046_v46 = vld [vmem:[#allocation66_spill] sm:$0xff]  ;;  %v699_v3 = vmul.f32 %v2683_v8, %v7047_v20  ;;  %v700_v62 = vmul.f32 %v2683_v8, %v7048_v61  ;;  %v7049_v15 = vld [vmem:[#allocation69_spill] sm:$0xff]  ;;  %v7051_v19 = vld [vmem:[#allocation71_spill] sm:$0xff] }
  0x99   : > { %7028 = vst [vmem:[#allocation19_spill] sm:$0xff] %v3844_v44  ;;  %v698_v2 = vmul.f32 %v2683_v8, %v7046_v46  ;;  %v701_v30 = vmul.f32 %v2683_v8, %v7049_v15  ;;  %v7050_v16 = vld [vmem:[#allocation70_spill] sm:$0xff]  ;;  %v703_v54 = vmul.f32 %v2683_v8, %v7051_v19  ;;  %v7053_v45 = vld [vmem:[#allocation75_spill] sm:$0xff]  ;;  %v7054_v59 = vld [vmem:[#allocation76_spill] sm:$0xff] }
  0x9a   : > { %7030 = vst [vmem:[#allocation20_spill] sm:$0xff] %v3847_v58  ;;  %v702_v38 = vmul.f32 %v2683_v8, %v7050_v16  ;;  %v7052_v34 = vld [vmem:[#allocation74_spill] sm:$0xff]  ;;  %v705_v52 = vmul.f32 %v2683_v8, %v7053_v45  ;;  %v706_v4 = vmul.f32 %v2683_v8, %v7054_v59  ;;  %v7055_v53 = vld [vmem:[#allocation81_spill] sm:$0xff]  ;;  %v7057_v33 = vld [vmem:[#allocation83_spill] sm:$0xff] }
  0x9b   : > { %7032 = vst [vmem:[#allocation21_spill] sm:$0xff] %v3850_v18  ;;  %v704_v14 = vmul.f32 %v2683_v8, %v7052_v34  ;;  %v707_v43 = vmul.f32 %v2683_v8, %v7055_v53  ;;  %v7056_v10 = vld [vmem:[#allocation82_spill] sm:$0xff]  ;;  %v709_v21 = vmul.f32 %v2683_v8, %v7057_v33  ;;  %v7059_v22 = vld [vmem:[#allocation87_spill] sm:$0xff]  ;;  %v7060_v46 = vld [vmem:[#allocation88_spill] sm:$0xff]  ;;  %v717_v33 = vmul.f32 %v2683_v8, %v7067_v41 }
  0x9c   : > { %7034 = vst [vmem:[#allocation22_spill] sm:$0xff] %v3853_v47  ;;  %v708_v9 = vmul.f32 %v2683_v8, %v7056_v10  ;;  %v7058_v60 = vld [vmem:[#allocation86_spill] sm:$0xff]  ;;  %v711_v11 = vmul.f32 %v2683_v8, %v7059_v22  ;;  %v712_v20 = vmul.f32 %v2683_v8, %v7060_v46  ;;  %v7061_v61 = vld [vmem:[#allocation89_spill] sm:$0xff]  ;;  %v3892_v45 = vld [vmem:[%s2858_s17 + $0x18a] sm:$0xff]  ;;  %v716_v10 = vmul.f32 %v2683_v8, %v7066_v63 }
  0x9d   : > { %7036 = vst [vmem:[#allocation23_spill] sm:$0xff] %v3856_v31  ;;  %v710_v7 = vmul.f32 %v2683_v8, %v7058_v60  ;;  %v713_v15 = vmul.f32 %v2683_v8, %v7061_v61  ;;  %v7062_v16 = vld [vmem:[#allocation90_spill] sm:$0xff]  ;;  %v7065_v59 = vld [vmem:[#allocation91_spill] sm:$0xff]  ;;  %v7074_v58 = vld [vmem:[#allocation100_spill] sm:$0xff] }
  0x9e   : > { %7038 = vst [vmem:[#allocation24_spill] sm:$0xff] %v3859_v23  ;;  %v714_v19 = vmul.f32 %v2683_v8, %v7062_v16  ;;  %v3889_v34 = vld [vmem:[%s2858_s17 + $0x182] sm:$0xff]  ;;  %v715_v53 = vmul.f32 %v2683_v8, %v7065_v59  ;;  %v7071_v23 = vld [vmem:[#allocation97_spill] sm:$0xff]  ;;  %v724_v44 = vmul.f32 %v2683_v8, %v7074_v58  ;;  %v3918_v58 = vadd.f32 %v700_v62, %v3781_v1 }
  0x9f   : > { %7040 = vst [vmem:[#allocation25_spill] sm:$0xff] %v3862_v51  ;;  %v7070_v51 = vld [vmem:[#allocation96_spill] sm:$0xff]  ;;  %v721_v61 = vmul.f32 %v2683_v8, %v7071_v23  ;;  %v7072_v31 = vld [vmem:[#allocation98_spill] sm:$0xff]  ;;  %v7073_v47 = vld [vmem:[#allocation99_spill] sm:$0xff]  ;;  %v727_v41 = vmul.f32 %v2683_v8, %v3889_v34  ;;  %v3912_v23 = vadd.f32 %v698_v2, %v3775_v12  ;;  %v3933_v12 = vadd.f32 %v705_v52, %v3796_v56 }
  0xa0   : > { %7042 = vst [vmem:[#allocation26_spill] sm:$0xff] %v3865_v27  ;;  %v7069_v27 = vld [vmem:[#allocation95_spill] sm:$0xff]  ;;  %v720_v46 = vmul.f32 %v2683_v8, %v7070_v51  ;;  %v722_v16 = vmul.f32 %v2683_v8, %v7072_v31  ;;  %v723_v18 = vmul.f32 %v2683_v8, %v7073_v47  ;;  %v7075_v29 = vld [vmem:[#allocation101_spill] sm:$0xff]  ;;  %v7076_v26 = vld [vmem:[#allocation102_spill] sm:$0xff]  ;;  %v3909_v51 = vadd.f32 %v697_v6, %v3772_v17 }
  0xa1   : > { %7044 = vst [vmem:[#allocation27_spill] sm:$0xff] %v3868_v36  ;;  %v7068_v36 = vld [vmem:[#allocation94_spill] sm:$0xff]  ;;  %v719_v22 = vmul.f32 %v2683_v8, %v7069_v27  ;;  %v725_v59 = vmul.f32 %v2683_v8, %v7075_v29  ;;  %v726_v63 = vmul.f32 %v2683_v8, %v7076_v26  ;;  %v3915_v47 = vadd.f32 %v699_v3, %v3778_v39  ;;  %v2568_v56 = vld [vmem:[%s2858_s17 + $0x38] sm:$0xff]  ;;  %v2569_v31 = vld [vmem:[%s2858_s17 + $0x48] sm:$0xff] }
  0xa2   : > { %7063 = vst [vmem:[#allocation28_spill] sm:$0xff] %v3889_v34  ;;  %v718_v60 = vmul.f32 %v2683_v8, %v7068_v36  ;;  %v728_v36 = vmul.f32 %v2683_v8, %v3892_v45  ;;  %v3921_v26 = vadd.f32 %v701_v30, %v3784_v50  ;;  %v3924_v29 = vadd.f32 %v702_v38, %v3787_v42  ;;  %v2570_v27 = vld [vmem:[%s2858_s17 + $0x50] sm:$0xff]  ;;  %v2571_v6 = vld [vmem:[%s2858_s17 + $0x60] sm:$0xff]  ;;  %v2573_v62 = vld [vmem:[%s2858_s17 + $0x78] sm:$0xff] }
  0xa3   : > { %7064 = vst [vmem:[#allocation29_spill] sm:$0xff] %v3892_v45  ;;  %v3927_v8 = vadd.f32 %v703_v54, %v3790_v13  ;;  %v3930_v17 = vadd.f32 %v704_v14, %v3793_v57  ;;  %v3936_v39 = vadd.f32 %v706_v4, %v3799_v49  ;;  %v3939_v1 = vadd.f32 %v707_v43, %v3802_v48  ;;  %v2567_v57 = vld [vmem:[%s2858_s17 + $0x30] sm:$0xff]  ;;  %v3955_v49 = vld [vmem:[%s6523_s1 + $0x8] ss:$0 sm:$0xff]  ;;  %v2574_v30 = vld [vmem:[%s2858_s17 + $0x80] sm:$0xff] }
  0xa4   : > { %v3942_v50 = vadd.f32 %v708_v9, %v3805_v37  ;;  %v3945_v42 = vadd.f32 %v709_v21, %v3808_v24  ;;  %v3948_v13 = vadd.f32 %v710_v7, %v3811_v35  ;;  %v3958_v48 = vadd.f32 %v711_v11, %v3814_v40  ;;  %v7078_v38 = vld [vmem:[#allocation18_spill] sm:$0xff]  ;;  %v7084_v52 = vld [vmem:[#allocation21_spill] sm:$0xff]  ;;  %v2575_v43 = vld [vmem:[%s2858_s17 + $0x90] sm:$0xff] }
  0xa5   : > { %v3961_v37 = vadd.f32 %v712_v20, %v3817_v28  ;;  %v3964_v24 = vadd.f32 %v713_v15, %v3820_v55  ;;  %v3967_v35 = vadd.f32 %v714_v19, %v3823_v5  ;;  %v3973_v2 = vadd.f32 %v715_v53, %v3829_v32  ;;  %v7077_v55 = vld [vmem:[#allocation17_spill] sm:$0xff]  ;;  %v2572_v5 = vld [vmem:[%s2858_s17 + $0x68] sm:$0xff]  ;;  %v7086_v7 = vld [vmem:[#allocation22_spill] sm:$0xff] }
  0xa6   : > { %v3976_v40 = vadd.f32 %v716_v10, %v3832_v25  ;;  %v3979_v28 = vadd.f32 %v717_v33, %v3835_v0  ;;  %v3982_v3 = vadd.f32 %v718_v60, %v7077_v55  ;;  %v3988_v54 = vadd.f32 %v719_v22, %v7078_v38  ;;  %v7080_v32 = vld [vmem:[#allocation19_spill] sm:$0xff]  ;;  %v7082_v25 = vld [vmem:[#allocation20_spill] sm:$0xff]  ;;  %v2576_v9 = vld [vmem:[%s2858_s17 + $0x98] sm:$0xff] }
  0xa7   : > { %v3991_v14 = vadd.f32 %v720_v46, %v7080_v32  ;;  %v3994_v0 = vadd.f32 %v721_v61, %v7082_v25  ;;  %v3997_v4 = vadd.f32 %v722_v16, %v7084_v52  ;;  %v2577_v21 = vld [vmem:[%s2858_s17 + $0xa8] sm:$0xff]  ;;  %v4003_v11 = vadd.f32 %v723_v18, %v7086_v7  ;;  %v7090_v19 = vld [vmem:[#allocation24_spill] sm:$0xff]  ;;  %v7092_v10 = vld [vmem:[#allocation25_spill] sm:$0xff] }
  0xa8   : > { %7079 = vst [vmem:[#allocation30_spill] sm:$0xff] %v3988_v54  ;;  %v7088_v20 = vld [vmem:[#allocation23_spill] sm:$0xff]  ;;  %v4009_v53 = vadd.f32 %v725_v59, %v7090_v19  ;;  %v4012_v33 = vadd.f32 %v726_v63, %v7092_v10  ;;  %v2578_v60 = vld [vmem:[%s2858_s17 + $0xb0] sm:$0xff]  ;;  %v2579_v22 = vld [vmem:[%s2858_s17 + $0xc0] sm:$0xff]  ;;  %v797_v59 = vmul.f32 %v3955_v49, %v2567_v57  ;;  %v798_v63 = vmul.f32 %v3955_v49, %v2568_v56 }
  0xa9   : > { %7081 = vst [vmem:[#allocation31_spill] sm:$0xff] %v3991_v14  ;;  %v4006_v15 = vadd.f32 %v724_v44, %v7088_v20  ;;  %v2580_v46 = vld [vmem:[%s2858_s17 + $0xc8] sm:$0xff]  ;;  %v7094_v61 = vld [vmem:[#allocation26_spill] sm:$0xff]  ;;  %v2581_v44 = vld [vmem:[%s2858_s17 + $0xd8] sm:$0xff]  ;;  %v800_v20 = vmul.f32 %v3955_v49, %v2570_v27  ;;  %v802_v19 = vmul.f32 %v3955_v49, %v2572_v5  ;;  %v803_v56 = vmul.f32 %v3955_v49, %v2573_v62 }
  0xaa   : > { %7083 = vst [vmem:[#allocation51_spill] sm:$0xff] %v3994_v0  ;;  %v4018_v16 = vadd.f32 %v727_v41, %v7094_v61  ;;  %v7096_v18 = vld [vmem:[#allocation27_spill] sm:$0xff]  ;;  %v2582_v38 = vld [vmem:[%s2858_s17 + $0xe0] sm:$0xff]  ;;  %v2583_v32 = vld [vmem:[%s2858_s17 + $0xf0] sm:$0xff]  ;;  %v799_v41 = vmul.f32 %v3955_v49, %v2569_v31  ;;  %v805_v45 = vmul.f32 %v3955_v49, %v2575_v43  ;;  %v806_v31 = vmul.f32 %v3955_v49, %v2576_v9 }
  0xab   : > { %7085 = vst [vmem:[#allocation55_spill] sm:$0xff] %v3997_v4  ;;  %v4021_v55 = vadd.f32 %v728_v36, %v7096_v18  ;;  %v2584_v25 = vld [vmem:[%s2858_s17 + $0xf8] sm:$0xff]  ;;  %v2585_v52 = vld [vmem:[%s2858_s17 + $0x108] sm:$0xff]  ;;  %v2586_v7 = vld [vmem:[%s2858_s17 + $0x110] sm:$0xff]  ;;  %v801_v36 = vmul.f32 %v3955_v49, %v2571_v6  ;;  %v804_v18 = vmul.f32 %v3955_v49, %v2574_v30  ;;  %v808_v5 = vmul.f32 %v3955_v49, %v2578_v60 }
  0xac   : > { %7087 = vst [vmem:[#allocation59_spill] sm:$0xff] %v4003_v11  ;;  %v2587_v10 = vld [vmem:[%s2858_s17 + $0x120] sm:$0xff]  ;;  %v2588_v57 = vld [vmem:[%s2858_s17 + $0x128] sm:$0xff]  ;;  %v2589_v61 = vld [vmem:[%s2858_s17 + $0x138] sm:$0xff]  ;;  %v811_v30 = vmul.f32 %v3955_v49, %v2581_v44  ;;  %v812_v43 = vmul.f32 %v3955_v49, %v2582_v38  ;;  %v814_v9 = vmul.f32 %v3955_v49, %v2584_v25  ;;  %v816_v60 = vmul.f32 %v3955_v49, %v2586_v7 }
  0xad   : > { %7089 = vst [vmem:[#allocation72_spill] sm:$0xff] %v4006_v15  ;;  %v2590_v27 = vld [vmem:[%s2858_s17 + $0x140] sm:$0xff]  ;;  %v2591_v34 = vld [vmem:[%s2858_s17 + $0x150] sm:$0xff]  ;;  %v2592_v6 = vld [vmem:[%s2858_s17 + $0x158] sm:$0xff]  ;;  %v813_v15 = vmul.f32 %v3955_v49, %v2583_v32  ;;  %v819_v0 = vmul.f32 %v3955_v49, %v2589_v61 }
  0xae   : > { %7091 = vst [vmem:[#allocation73_spill] sm:$0xff] %v4009_v53  ;;  %v2593_v62 = vld [vmem:[%s2858_s17 + $0x168] sm:$0xff]  ;;  %v2594_v53 = vld [vmem:[%s2858_s17 + $0x170] sm:$0xff]  ;;  %v2597_v11 = vld [vmem:[%s2858_s17 + $0x198] sm:$0xff]  ;;  %v820_v44 = vmul.f32 %v3955_v49, %v2590_v27  ;;  %v821_v38 = vmul.f32 %v3955_v49, %v2591_v34  ;;  %v822_v32 = vmul.f32 %v3955_v49, %v2592_v6  ;;  %v4074_v34 = vadd.f32 %v797_v59, %v3909_v51 }
  0xaf   : > { %7093 = vst [vmem:[#allocation77_spill] sm:$0xff] %v4012_v33  ;;  %v810_v33 = vmul.f32 %v3955_v49, %v2580_v46  ;;  %v2598_v4 = vld [vmem:[%s2858_s17 + $0x1a0] sm:$0xff]  ;;  %v818_v46 = vmul.f32 %v3955_v49, %v2588_v57  ;;  %v823_v25 = vmul.f32 %v3955_v49, %v2593_v62  ;;  %v824_v14 = vmul.f32 %v3955_v49, %v2594_v53  ;;  %v7099_v7 = vld [vmem:[#allocation3_spill] sm:$0xff] }
  0xb0   : > { %7095 = vst [vmem:[#allocation78_spill] sm:$0xff] %v4018_v16  ;;  %v809_v16 = vmul.f32 %v3955_v49, %v2579_v22  ;;  %v817_v22 = vmul.f32 %v3955_v49, %v2587_v10  ;;  %v7098_v54 = vld [vmem:[#allocation2_spill] sm:$0xff]  ;;  %v826_v10 = vmul.f32 %v3955_v49, %v7099_v7  ;;  %v827_v57 = vmul.f32 %v3955_v49, %v2597_v11  ;;  %v2616_v7 = vld [vmem:[%s2858_s17 + $0xf1] sm:$0xff] }
  0xb1   : > { %7097 = vst [vmem:[#allocation79_spill] sm:$0xff] %v4021_v55  ;;  %v807_v55 = vmul.f32 %v3955_v49, %v2577_v21  ;;  %v815_v21 = vmul.f32 %v3955_v49, %v2585_v52  ;;  %v825_v52 = vmul.f32 %v3955_v49, %v7098_v54  ;;  %v828_v61 = vmul.f32 %v3955_v49, %v2598_v4  ;;  %v2603_v4 = vld [vmem:[%s2858_s17 + $0x51] sm:$0xff]  ;;  %v7100_v59 = vld [vmem:[#allocation30_spill] sm:$0xff] }
  0xb2   : > { %v4077_v27 = vadd.f32 %v798_v63, %v3912_v23  ;;  %v4080_v53 = vadd.f32 %v799_v41, %v3915_v47  ;;  %v4083_v54 = vadd.f32 %v800_v20, %v3918_v58  ;;  %v4086_v6 = vadd.f32 %v801_v36, %v3921_v26  ;;  %v7106_v20 = vld [vmem:[#allocation55_spill] sm:$0xff]  ;;  %v2608_v36 = vld [vmem:[%s2858_s17 + $0x91] sm:$0xff] }
  0xb3   : > { %v4089_v11 = vadd.f32 %v802_v19, %v3924_v29  ;;  %v4092_v49 = vadd.f32 %v803_v56, %v3927_v8  ;;  %v4095_v51 = vadd.f32 %v804_v18, %v3930_v17  ;;  %v4098_v23 = vadd.f32 %v805_v45, %v3933_v12  ;;  %v2600_v17 = vld [vmem:[%s2858_s17 + $0x31] sm:$0xff]  ;;  %v2601_v45 = vld [vmem:[%s2858_s17 + $0x39] sm:$0xff]  ;;  %v4120_v12 = vld [vmem:[%s6523_s1 + $0x9] ss:$0 sm:$0xff] }
  0xb4   : > { %v4101_v47 = vadd.f32 %v806_v31, %v3936_v39  ;;  %v4104_v58 = vadd.f32 %v807_v55, %v3939_v1  ;;  %v4107_v26 = vadd.f32 %v808_v5, %v3942_v50  ;;  %v4110_v29 = vadd.f32 %v809_v16, %v3945_v42  ;;  %v2607_v55 = vld [vmem:[%s2858_s17 + $0x81] sm:$0xff]  ;;  %v2609_v19 = vld [vmem:[%s2858_s17 + $0x99] sm:$0xff]  ;;  %v2610_v56 = vld [vmem:[%s2858_s17 + $0xa9] sm:$0xff] }
  0xb5   : > { %v4113_v8 = vadd.f32 %v810_v33, %v3948_v13  ;;  %v4123_v39 = vadd.f32 %v811_v30, %v3958_v48  ;;  %v4126_v1 = vadd.f32 %v812_v43, %v3961_v37  ;;  %v4129_v50 = vadd.f32 %v813_v15, %v3964_v24  ;;  %v2602_v13 = vld [vmem:[%s2858_s17 + $0x49] sm:$0xff]  ;;  %v2604_v33 = vld [vmem:[%s2858_s17 + $0x61] sm:$0xff]  ;;  %v2606_v15 = vld [vmem:[%s2858_s17 + $0x79] sm:$0xff] }
  0xb6   : > { %v4132_v42 = vadd.f32 %v814_v9, %v3967_v35  ;;  %v4138_v16 = vadd.f32 %v815_v21, %v3973_v2  ;;  %v4141_v48 = vadd.f32 %v816_v60, %v3976_v40  ;;  %v4144_v37 = vadd.f32 %v817_v22, %v3979_v28  ;;  %v2605_v35 = vld [vmem:[%s2858_s17 + $0x69] sm:$0xff]  ;;  %v7112_v62 = vld [vmem:[#allocation73_spill] sm:$0xff]  ;;  %v2612_v60 = vld [vmem:[%s2858_s17 + $0xc1] sm:$0xff] }
  0xb7   : > { %v4147_v24 = vadd.f32 %v818_v46, %v3982_v3  ;;  %v4153_v63 = vadd.f32 %v819_v0, %v7100_v59  ;;  %v7102_v2 = vld [vmem:[#allocation31_spill] sm:$0xff]  ;;  %v4162_v3 = vadd.f32 %v822_v32, %v7106_v20  ;;  %v7110_v31 = vld [vmem:[#allocation72_spill] sm:$0xff]  ;;  %v4174_v30 = vadd.f32 %v825_v52, %v7112_v62  ;;  %v7114_v43 = vld [vmem:[#allocation77_spill] sm:$0xff] }
  0xb8   : > { %v4156_v41 = vadd.f32 %v820_v44, %v7102_v2  ;;  %v7104_v40 = vld [vmem:[#allocation51_spill] sm:$0xff]  ;;  %v4171_v5 = vadd.f32 %v824_v14, %v7110_v31  ;;  %v4177_v9 = vadd.f32 %v826_v10, %v7114_v43  ;;  %v2611_v21 = vld [vmem:[%s2858_s17 + $0xb1] sm:$0xff]  ;;  %v7116_v46 = vld [vmem:[#allocation78_spill] sm:$0xff]  ;;  %v895_v52 = vmul.f32 %v4120_v12, %v2600_v17 }
  0xb9   : > { %7101 = vst [vmem:[#allocation80_spill] sm:$0xff] %v4153_v63  ;;  %v4159_v28 = vadd.f32 %v821_v38, %v7104_v40  ;;  %v7108_v18 = vld [vmem:[#allocation59_spill] sm:$0xff]  ;;  %v4183_v44 = vadd.f32 %v827_v57, %v7116_v46  ;;  %v2614_v14 = vld [vmem:[%s2858_s17 + $0xd9] sm:$0xff]  ;;  %v896_v10 = vmul.f32 %v4120_v12, %v2601_v45  ;;  %v2619_v40 = vld [vmem:[%s2858_s17 + $0x111] sm:$0xff]  ;;  %v897_v57 = vmul.f32 %v4120_v12, %v2602_v13 }
  0xba   : > { %7103 = vst [vmem:[#allocation84_spill] sm:$0xff] %v4156_v41  ;;  %v4168_v0 = vadd.f32 %v823_v25, %v7108_v18  ;;  %v2613_v22 = vld [vmem:[%s2858_s17 + $0xc9] sm:$0xff]  ;;  %v2615_v25 = vld [vmem:[%s2858_s17 + $0xe1] sm:$0xff]  ;;  %v2617_v59 = vld [vmem:[%s2858_s17 + $0xf9] sm:$0xff]  ;;  %v898_v20 = vmul.f32 %v4120_v12, %v2603_v4  ;;  %v900_v18 = vmul.f32 %v4120_v12, %v2605_v35  ;;  %v901_v45 = vmul.f32 %v4120_v12, %v2606_v15 }
  0xbb   : > { %7105 = vst [vmem:[#allocation85_spill] sm:$0xff] %v4159_v28  ;;  %v7118_v38 = vld [vmem:[#allocation79_spill] sm:$0xff]  ;;  %v2622_v62 = vld [vmem:[%s2858_s17 + $0x139] sm:$0xff]  ;;  %v902_v43 = vmul.f32 %v4120_v12, %v2607_v55  ;;  %v903_v46 = vmul.f32 %v4120_v12, %v2608_v36  ;;  %v904_v13 = vmul.f32 %v4120_v12, %v2609_v19  ;;  %v906_v35 = vmul.f32 %v4120_v12, %v2611_v21 }
  0xbc   : > { %7107 = vst [vmem:[#allocation32_spill] sm:$0xff] %v4162_v3  ;;  %v4186_v32 = vadd.f32 %v828_v61, %v7118_v38  ;;  %v2618_v2 = vld [vmem:[%s2858_s17 + $0x109] sm:$0xff]  ;;  %v899_v61 = vmul.f32 %v4120_v12, %v2604_v33  ;;  %v2620_v31 = vld [vmem:[%s2858_s17 + $0x121] sm:$0xff]  ;;  %v2624_v38 = vld [vmem:[%s2858_s17 + $0x151] sm:$0xff]  ;;  %v909_v55 = vmul.f32 %v4120_v12, %v2614_v14  ;;  %v910_v36 = vmul.f32 %v4120_v12, %v2615_v25 }
  0xbd   : > { %7109 = vst [vmem:[#allocation33_spill] sm:$0xff] %v4168_v0  ;;  %v2621_v17 = vld [vmem:[%s2858_s17 + $0x129] sm:$0xff]  ;;  %v2623_v4 = vld [vmem:[%s2858_s17 + $0x141] sm:$0xff]  ;;  %v2625_v33 = vld [vmem:[%s2858_s17 + $0x159] sm:$0xff]  ;;  %v912_v19 = vmul.f32 %v4120_v12, %v2617_v59  ;;  %v914_v21 = vmul.f32 %v4120_v12, %v2619_v40  ;;  %v917_v28 = vmul.f32 %v4120_v12, %v2622_v62  ;;  %v919_v25 = vmul.f32 %v4120_v12, %v2624_v38 }
  0xbe   : > { %7111 = vst [vmem:[#allocation34_spill] sm:$0xff] %v4171_v5  ;;  %v2626_v15 = vld [vmem:[%s2858_s17 + $0x169] sm:$0xff]  ;;  %v911_v5 = vmul.f32 %v4120_v12, %v2616_v7  ;;  %v2630_v0 = vld [vmem:[%s2858_s17 + $0x199] sm:$0xff]  ;;  %v2631_v3 = vld [vmem:[%s2858_s17 + $0x1a1] sm:$0xff]  ;;  %v918_v14 = vmul.f32 %v4120_v12, %v2623_v4  ;;  %v920_v7 = vmul.f32 %v4120_v12, %v2625_v33  ;;  %v4239_v4 = vadd.f32 %v895_v52, %v4074_v34 }
  0xbf   : > { %7113 = vst [vmem:[#allocation35_spill] sm:$0xff] %v4174_v30  ;;  %v2627_v30 = vld [vmem:[%s2858_s17 + $0x171] sm:$0xff]  ;;  %v921_v59 = vmul.f32 %v4120_v12, %v2626_v15  ;;  %v7120_v63 = vld [vmem:[#allocation15_spill] sm:$0xff]  ;;  %v926_v62 = vmul.f32 %v4120_v12, %v2631_v3  ;;  %v4242_v38 = vadd.f32 %v896_v10, %v4077_v27  ;;  %v4251_v33 = vadd.f32 %v899_v61, %v4086_v6 }
  0xc0   : > { %7115 = vst [vmem:[#allocation36_spill] sm:$0xff] %v4177_v9  ;;  %v908_v9 = vmul.f32 %v4120_v12, %v2613_v22  ;;  %v916_v22 = vmul.f32 %v4120_v12, %v2621_v17  ;;  %v922_v41 = vmul.f32 %v4120_v12, %v2627_v30  ;;  %v7121_v40 = vld [vmem:[#allocation16_spill] sm:$0xff]  ;;  %v925_v17 = vmul.f32 %v4120_v12, %v2630_v0  ;;  %v2640_v52 = vld [vmem:[%s2858_s17 + $0x82] sm:$0xff] }
  0xc1   : > { %7117 = vst [vmem:[#allocation37_spill] sm:$0xff] %v4183_v44  ;;  %v907_v44 = vmul.f32 %v4120_v12, %v2612_v60  ;;  %v915_v60 = vmul.f32 %v4120_v12, %v2620_v31  ;;  %v924_v31 = vmul.f32 %v4120_v12, %v7121_v40  ;;  %v4245_v30 = vadd.f32 %v897_v57, %v4080_v53  ;;  %v2635_v3 = vld [vmem:[%s2858_s17 + $0x4a] sm:$0xff]  ;;  %v2649_v40 = vld [vmem:[%s2858_s17 + $0xf2] sm:$0xff] }
  0xc2   : > { %7119 = vst [vmem:[#allocation38_spill] sm:$0xff] %v4186_v32  ;;  %v905_v32 = vmul.f32 %v4120_v12, %v2610_v56  ;;  %v913_v56 = vmul.f32 %v4120_v12, %v2618_v2  ;;  %v923_v2 = vmul.f32 %v4120_v12, %v7120_v63  ;;  %v4248_v63 = vadd.f32 %v898_v20, %v4083_v54  ;;  %v7123_v10 = vld [vmem:[#allocation80_spill] sm:$0xff] }
  0xc3   : > { %v4254_v0 = vadd.f32 %v900_v18, %v4089_v11  ;;  %v4257_v12 = vadd.f32 %v901_v45, %v4092_v49  ;;  %v4260_v34 = vadd.f32 %v902_v43, %v4095_v51  ;;  %v4263_v27 = vadd.f32 %v903_v46, %v4098_v23  ;;  %v2633_v51 = vld [vmem:[%s2858_s17 + $0x32] sm:$0xff]  ;;  %v2634_v23 = vld [vmem:[%s2858_s17 + $0x3a] sm:$0xff]  ;;  %v2643_v43 = vld [vmem:[%s2858_s17 + $0xaa] sm:$0xff] }
  0xc4   : > { %v4266_v53 = vadd.f32 %v904_v13, %v4101_v47  ;;  %v4269_v54 = vadd.f32 %v905_v32, %v4104_v58  ;;  %v4272_v6 = vadd.f32 %v906_v35, %v4107_v26  ;;  %v4275_v11 = vadd.f32 %v907_v44, %v4110_v29  ;;  %v4285_v47 = vld [vmem:[%s6523_s1 + $0xa] ss:$0 sm:$0xff]  ;;  %v2637_v44 = vld [vmem:[%s2858_s17 + $0x62] sm:$0xff]  ;;  %v7129_v61 = vld [vmem:[#allocation32_spill] sm:$0xff] }
  0xc5   : > { %v4278_v49 = vadd.f32 %v908_v9, %v4113_v8  ;;  %v4288_v58 = vadd.f32 %v909_v55, %v4123_v39  ;;  %v4291_v26 = vadd.f32 %v910_v36, %v4126_v1  ;;  %v4294_v29 = vadd.f32 %v911_v5, %v4129_v50  ;;  %v2636_v9 = vld [vmem:[%s2858_s17 + $0x52] sm:$0xff]  ;;  %v2639_v5 = vld [vmem:[%s2858_s17 + $0x7a] sm:$0xff] }
  0xc6   : > { %v4297_v8 = vadd.f32 %v912_v19, %v4132_v42  ;;  %v4303_v32 = vadd.f32 %v913_v56, %v4138_v16  ;;  %v4306_v39 = vadd.f32 %v914_v21, %v4141_v48  ;;  %v4309_v1 = vadd.f32 %v915_v60, %v4144_v37  ;;  %v2638_v42 = vld [vmem:[%s2858_s17 + $0x6a] sm:$0xff]  ;;  %v7127_v48 = vld [vmem:[#allocation85_spill] sm:$0xff]  ;;  %v7133_v13 = vld [vmem:[#allocation34_spill] sm:$0xff] }
  0xc7   : > { %v4312_v50 = vadd.f32 %v916_v22, %v4147_v24  ;;  %v4318_v57 = vadd.f32 %v917_v28, %v7123_v10  ;;  %v7125_v16 = vld [vmem:[#allocation84_spill] sm:$0xff]  ;;  %v4324_v37 = vadd.f32 %v919_v25, %v7127_v48  ;;  %v4327_v24 = vadd.f32 %v920_v7, %v7129_v61  ;;  %v2642_v45 = vld [vmem:[%s2858_s17 + $0x9a] sm:$0xff]  ;;  %v7135_v15 = vld [vmem:[#allocation35_spill] sm:$0xff] }
  0xc8   : > { %v4321_v20 = vadd.f32 %v918_v14, %v7125_v16  ;;  %v2641_v18 = vld [vmem:[%s2858_s17 + $0x92] sm:$0xff]  ;;  %v4336_v35 = vadd.f32 %v922_v41, %v7133_v13  ;;  %v4339_v55 = vadd.f32 %v923_v2, %v7135_v15  ;;  %v2645_v21 = vld [vmem:[%s2858_s17 + $0xc2] sm:$0xff]  ;;  %v2646_v60 = vld [vmem:[%s2858_s17 + $0xca] sm:$0xff]  ;;  %v993_v2 = vmul.f32 %v4285_v47, %v2633_v51 }
  0xc9   : > { %7122 = vst [vmem:[#allocation39_spill] sm:$0xff] %v4312_v50  ;;  %v7131_v46 = vld [vmem:[#allocation33_spill] sm:$0xff]  ;;  %v7137_v36 = vld [vmem:[#allocation36_spill] sm:$0xff]  ;;  %v7141_v25 = vld [vmem:[#allocation38_spill] sm:$0xff]  ;;  %v996_v61 = vmul.f32 %v4285_v47, %v2636_v9 }
  0xca   : > { %7124 = vst [vmem:[#allocation40_spill] sm:$0xff] %v4318_v57  ;;  %v4333_v28 = vadd.f32 %v921_v59, %v7131_v46  ;;  %v4342_v19 = vadd.f32 %v924_v31, %v7137_v36  ;;  %v2644_v56 = vld [vmem:[%s2858_s17 + $0xb2] sm:$0xff]  ;;  %v4351_v7 = vadd.f32 %v926_v62, %v7141_v25  ;;  %v2647_v41 = vld [vmem:[%s2858_s17 + $0xda] sm:$0xff]  ;;  %v2648_v59 = vld [vmem:[%s2858_s17 + $0xe2] sm:$0xff]  ;;  %v994_v31 = vmul.f32 %v4285_v47, %v2634_v23 }
  0xcb   : > { %7126 = vst [vmem:[#allocation41_spill] sm:$0xff] %v4321_v20  ;;  %v7139_v22 = vld [vmem:[#allocation37_spill] sm:$0xff]  ;;  %v2651_v16 = vld [vmem:[%s2858_s17 + $0x10a] sm:$0xff]  ;;  %v997_v62 = vmul.f32 %v4285_v47, %v2637_v44  ;;  %v998_v46 = vmul.f32 %v4285_v47, %v2638_v42  ;;  %v2653_v13 = vld [vmem:[%s2858_s17 + $0x122] sm:$0xff]  ;;  %v999_v23 = vmul.f32 %v4285_v47, %v2639_v5  ;;  %v1000_v36 = vmul.f32 %v4285_v47, %v2640_v52 }
  0xcc   : > { %7128 = vst [vmem:[#allocation42_spill] sm:$0xff] %v4324_v37  ;;  %v4348_v14 = vadd.f32 %v925_v17, %v7139_v22  ;;  %v2650_v10 = vld [vmem:[%s2858_s17 + $0xfa] sm:$0xff]  ;;  %v2652_v48 = vld [vmem:[%s2858_s17 + $0x112] sm:$0xff]  ;;  %v995_v17 = vmul.f32 %v4285_v47, %v2635_v3  ;;  %v2654_v51 = vld [vmem:[%s2858_s17 + $0x12a] sm:$0xff]  ;;  %v1001_v22 = vmul.f32 %v4285_v47, %v2641_v18  ;;  %v1002_v3 = vmul.f32 %v4285_v47, %v2642_v45 }
  0xcd   : > { %7130 = vst [vmem:[#allocation43_spill] sm:$0xff] %v4327_v24  ;;  %v2655_v15 = vld [vmem:[%s2858_s17 + $0x13a] sm:$0xff]  ;;  %v2656_v9 = vld [vmem:[%s2858_s17 + $0x142] sm:$0xff]  ;;  %v2657_v25 = vld [vmem:[%s2858_s17 + $0x152] sm:$0xff]  ;;  %v1004_v42 = vmul.f32 %v4285_v47, %v2644_v56  ;;  %v1007_v52 = vmul.f32 %v4285_v47, %v2647_v41  ;;  %v1008_v18 = vmul.f32 %v4285_v47, %v2648_v59  ;;  %v1010_v45 = vmul.f32 %v4285_v47, %v2650_v10 }
  0xce   : > { %7132 = vst [vmem:[#allocation44_spill] sm:$0xff] %v4333_v28  ;;  %v2658_v44 = vld [vmem:[%s2858_s17 + $0x15a] sm:$0xff]  ;;  %v2659_v5 = vld [vmem:[%s2858_s17 + $0x16a] sm:$0xff]  ;;  %v2664_v24 = vld [vmem:[%s2858_s17 + $0x1a2] sm:$0xff]  ;;  %v1012_v56 = vmul.f32 %v4285_v47, %v2652_v48  ;;  %v1015_v37 = vmul.f32 %v4285_v47, %v2655_v15  ;;  %v1016_v41 = vmul.f32 %v4285_v47, %v2656_v9  ;;  %v1017_v59 = vmul.f32 %v4285_v47, %v2657_v25 }
  0xcf   : > { %7134 = vst [vmem:[#allocation45_spill] sm:$0xff] %v4336_v35  ;;  %v1009_v35 = vmul.f32 %v4285_v47, %v2649_v40  ;;  %v2663_v28 = vld [vmem:[%s2858_s17 + $0x19a] sm:$0xff]  ;;  %v1018_v40 = vmul.f32 %v4285_v47, %v2658_v44  ;;  %v1019_v10 = vmul.f32 %v4285_v47, %v2659_v5  ;;  %v7143_v57 = vld [vmem:[#allocation28_spill] sm:$0xff]  ;;  %v1024_v15 = vmul.f32 %v4285_v47, %v2664_v24 }
  0xd0   : > { %7136 = vst [vmem:[#allocation46_spill] sm:$0xff] %v4339_v55  ;;  %v2660_v55 = vld [vmem:[%s2858_s17 + $0x172] sm:$0xff]  ;;  %v1025_v9 = vadd.f32 %v993_v2, %v4239_v4  ;;  %v1026_v25 = vadd.f32 %v994_v31, %v4242_v38  ;;  %v1027_v44 = vadd.f32 %v995_v17, %v4245_v30  ;;  %v1028_v5 = vadd.f32 %v996_v61, %v4248_v63 }
  0xd1   : > { %7138 = vst [vmem:[#allocation47_spill] sm:$0xff] %v4342_v19  ;;  %v1006_v19 = vmul.f32 %v4285_v47, %v2646_v60  ;;  %v1014_v60 = vmul.f32 %v4285_v47, %v2654_v51  ;;  %v1020_v20 = vmul.f32 %v4285_v47, %v2660_v55  ;;  %v7144_v48 = vld [vmem:[#allocation29_spill] sm:$0xff]  ;;  %v1023_v51 = vmul.f32 %v4285_v47, %v2663_v28 }
  0xd2   : > { %7140 = vst [vmem:[#allocation48_spill] sm:$0xff] %v4348_v14  ;;  %v1005_v14 = vmul.f32 %v4285_v47, %v2645_v21  ;;  %v1013_v21 = vmul.f32 %v4285_v47, %v2653_v13  ;;  %v1022_v13 = vmul.f32 %v4285_v47, %v7144_v48  ;;  %v1029_v55 = vadd.f32 %v997_v62, %v4251_v33 }
  0xd3   : > { %7142 = vst [vmem:[#allocation49_spill] sm:$0xff] %v4351_v7  ;;  %v1003_v7 = vmul.f32 %v4285_v47, %v2643_v43  ;;  %v1011_v43 = vmul.f32 %v4285_v47, %v2651_v16  ;;  %v1021_v16 = vmul.f32 %v4285_v47, %v7143_v57  ;;  %v1030_v50 = vadd.f32 %v998_v46, %v4254_v0 }
  0xd4   : > { %v1031_v57 = vadd.f32 %v999_v23, %v4257_v12  ;;  %v1032_v48 = vadd.f32 %v1000_v36, %v4260_v34  ;;  %v1033_v28 = vadd.f32 %v1001_v22, %v4263_v27  ;;  %v1034_v47 = vadd.f32 %v1002_v3, %v4266_v53  ;;  %v4424_v27 = vld [vmem:[%s6524_s2] ss:$0 sm:$0xff] }
  0xd5   : > { %v1035_v4 = vadd.f32 %v1003_v7, %v4269_v54  ;;  %v1036_v38 = vadd.f32 %v1004_v42, %v4272_v6  ;;  %v1037_v30 = vadd.f32 %v1005_v14, %v4275_v11  ;;  %v1038_v63 = vadd.f32 %v1006_v19, %v4278_v49  ;;  %v7145_v11 = vld [vmem:[#allocation39_spill] sm:$0xff]  ;;  %v7150_v7 = vld [vmem:[#allocation44_spill] sm:$0xff] }
  0xd6   : > { %v1039_v33 = vadd.f32 %v1007_v52, %v4288_v58  ;;  %v1040_v0 = vadd.f32 %v1008_v18, %v4291_v26  ;;  %v1041_v12 = vadd.f32 %v1009_v35, %v4294_v29  ;;  %v1042_v34 = vadd.f32 %v1010_v45, %v4297_v8  ;;  %v7146_v58 = vld [vmem:[#allocation40_spill] sm:$0xff]  ;;  %v7147_v26 = vld [vmem:[#allocation41_spill] sm:$0xff]  ;;  %v7148_v29 = vld [vmem:[#allocation42_spill] sm:$0xff] }
  0xd7   : > { %v1043_v53 = vadd.f32 %v1011_v43, %v4303_v32  ;;  %v1044_v54 = vadd.f32 %v1012_v56, %v4306_v39  ;;  %v1045_v6 = vadd.f32 %v1013_v21, %v4309_v1  ;;  %v1046_v49 = vadd.f32 %v1014_v60, %v7145_v11  ;;  %v7149_v8 = vld [vmem:[#allocation43_spill] sm:$0xff]  ;;  %v7151_v31 = vld [vmem:[#allocation45_spill] sm:$0xff]  ;;  %v7152_v61 = vld [vmem:[#allocation46_spill] sm:$0xff] }
  0xd8   : > { %v1047_v24 = vadd.f32 %v1015_v37, %v7146_v58  ;;  %v1048_v19 = vadd.f32 %v1016_v41, %v7147_v26  ;;  %v1049_v35 = vadd.f32 %v1017_v59, %v7148_v29  ;;  %v1050_v14 = vadd.f32 %v1018_v40, %v7149_v8  ;;  %v7153_v62 = vld [vmem:[#allocation47_spill] sm:$0xff] }
  0xd9   : > { %v1051_v2 = vadd.f32 %v1019_v10, %v7150_v7  ;;  %v1052_v17 = vadd.f32 %v1020_v20, %v7151_v31  ;;  %v1053_v32 = vadd.f32 %v1021_v16, %v7152_v61  ;;  %v4438_v39 = vadd.f32 %v1022_v13, %v7153_v62  ;;  %v7154_v1 = vld [vmem:[#allocation48_spill] sm:$0xff] }
  0xda   : > { %v4441_v46 = vadd.f32 %v1023_v51, %v7154_v1  ;;  %v7155_v23 = vld [vmem:[#allocation49_spill] sm:$0xff]  ;;  %v1061_v36 = vadd.f32 %v4424_v27, %v1025_v9  ;;  %v1062_v22 = vadd.f32 %v4424_v27, %v1026_v25  ;;  %v1063_v3 = vadd.f32 %v4424_v27, %v1027_v44 }
  0xdb   : > { %v4444_v37 = vadd.f32 %v1024_v15, %v7155_v23  ;;  %v1064_v42 = vadd.f32 %v4424_v27, %v1028_v5  ;;  %v1065_v20 = vadd.f32 %v4424_v27, %v1029_v55  ;;  %v1066_v52 = vadd.f32 %v4424_v27, %v1030_v50 }
  0xdc   : > { %v1067_v18 = vadd.f32 %v4424_v27, %v1031_v57  ;;  %v1068_v45 = vadd.f32 %v4424_v27, %v1032_v48  ;;  %v1069_v43 = vadd.f32 %v4424_v27, %v1033_v28  ;;  %v1070_v56 = vadd.f32 %v4424_v27, %v1034_v47 }
  0xdd   : > { %v1071_v21 = vadd.f32 %v4424_v27, %v1035_v4  ;;  %v1072_v60 = vadd.f32 %v4424_v27, %v1036_v38  ;;  %v1073_v41 = vadd.f32 %v4424_v27, %v1037_v30  ;;  %v1074_v59 = vadd.f32 %v4424_v27, %v1038_v63 }
  0xde   : > { %v1075_v40 = vadd.f32 %v4424_v27, %v1039_v33  ;;  %v1076_v50 = vadd.f32 %v4424_v27, %v1040_v0  ;;  %v1077_v10 = vadd.f32 %v4424_v27, %v1041_v12  ;;  %v1078_v16 = vadd.f32 %v4424_v27, %v1042_v34 }
  0xdf   : > { %v1079_v13 = vadd.f32 %v4424_v27, %v1043_v53  ;;  %v1080_v51 = vadd.f32 %v4424_v27, %v1044_v54  ;;  %v4467_v15 = vadd.f32 %v4424_v27, %v1045_v6  ;;  %v4470_v9 = vadd.f32 %v4424_v27, %v1046_v49 }
  0xe0   : > { %v4473_v25 = vadd.f32 %v4424_v27, %v1047_v24  ;;  %v4476_v44 = vadd.f32 %v4424_v27, %v1048_v19  ;;  %v4479_v5 = vadd.f32 %v4424_v27, %v1049_v35  ;;  %v4481_v55 = vmul.f32 0.5, %v1061_v36 }
  0xe1   : > { %v4483_v57 = vmul.f32 0.5, %v1062_v22  ;;  %v4485_v48 = vmul.f32 0.5, %v1063_v3  ;;  %v4487_v28 = vmul.f32 0.5, %v1064_v42  ;;  %v4489_v47 = vmul.f32 0.5, %v1065_v20 }
  0xe2   : > { %7156 = vst [vmem:[#allocation50_spill] sm:$0xff] %v4481_v55  ;;  %v4491_v4 = vmul.f32 0.5, %v1066_v52  ;;  %v4493_v38 = vmul.f32 0.5, %v1067_v18  ;;  %v4495_v30 = vmul.f32 0.5, %v1068_v45  ;;  %v4497_v63 = vmul.f32 0.5, %v1069_v43 }
  0xe3   : > { %7157 = vst [vmem:[#allocation52_spill] sm:$0xff] %v4483_v57  ;;  %v4499_v33 = vmul.f32 0.5, %v1070_v56  ;;  %v4501_v0 = vmul.f32 0.5, %v1071_v21  ;;  %v4503_v12 = vmul.f32 0.5, %v1072_v60  ;;  %v4505_v34 = vmul.f32 0.5, %v1073_v41 }
  0xe4   : > { %7158 = vst [vmem:[#allocation53_spill] sm:$0xff] %v4485_v48  ;;  %v4507_v53 = vmul.f32 0.5, %v1074_v59  ;;  %v4509_v54 = vmul.f32 0.5, %v1075_v40  ;;  %v4511_v6 = vmul.f32 0.5, %v1076_v50  ;;  %v4513_v11 = vmul.f32 0.5, %v1077_v10 }
  0xe5   : > { %7159 = vst [vmem:[#allocation54_spill] sm:$0xff] %v4487_v28  ;;  %v4515_v49 = vmul.f32 0.5, %v1078_v16  ;;  %v4517_v58 = vmul.f32 0.5, %v1079_v13  ;;  %v4519_v24 = vmul.f32 0.5, %v1080_v51  ;;  %v4521_v26 = vmul.f32 0.70710677, %v1061_v36 }
  0xe6   : > { %7160 = vst [vmem:[#allocation56_spill] sm:$0xff] %v4489_v47  ;;  %v4524_v19 = vadd.f32 %v4424_v27, %v1050_v14  ;;  %v4526_v29 = vmul.f32 0.70710677, %v1062_v22  ;;  %v4528_v35 = vmul.f32 0.70710677, %v1063_v3  ;;  %v4533_v7 = vadd.f32 %v4424_v27, %v1051_v2 }
  0xe7   : > { %7161 = vst [vmem:[#allocation57_spill] sm:$0xff] %v4491_v4  ;;  %v4530_v8 = vmul.f32 0.70710677, %v1064_v42  ;;  %v4535_v31 = vmul.f32 0.70710677, %v1065_v20  ;;  %v4542_v1 = vadd.f32 %v4424_v27, %v1052_v17  ;;  %v4551_v22 = vadd.f32 %v4424_v27, %v1053_v32 }
  0xe8   : > { %7162 = vst [vmem:[#allocation58_spill] sm:$0xff] %v4493_v38  ;;  %v4537_v61 = vmul.f32 0.70710677, %v1066_v52  ;;  %v4539_v62 = vmul.f32 0.70710677, %v1067_v18  ;;  %v4561_v20 = vadd.f32 %v4424_v27, %v4438_v39  ;;  %v4571_v32 = vadd.f32 %v4424_v27, %v4441_v46 }
  0xe9   : > { %7163 = vst [vmem:[#allocation60_spill] sm:$0xff] %v4495_v30  ;;  %v4544_v14 = vmul.f32 0.70710677, %v1068_v45  ;;  %v4546_v23 = vmul.f32 0.70710677, %v1069_v43  ;;  %v4581_v39 = vadd.f32 %v4424_v27, %v4444_v37 }
  0xea   : > { %7164 = vst [vmem:[#allocation61_spill] sm:$0xff] %v4497_v63  ;;  %v4548_v36 = vmul.f32 0.70710677, %v1070_v56  ;;  %v4553_v2 = vmul.f32 0.70710677, %v1071_v21 }
  0xeb   : > { %7165 = vst [vmem:[#allocation62_spill] sm:$0xff] %v4499_v33  ;;  %v4555_v3 = vmul.f32 0.70710677, %v1072_v60  ;;  %v4557_v42 = vmul.f32 0.70710677, %v1073_v41 }
  0xec   : > { %7166 = vst [vmem:[#allocation63_spill] sm:$0xff] %v4501_v0  ;;  %v4563_v17 = vmul.f32 0.70710677, %v1074_v59  ;;  %v4565_v52 = vmul.f32 0.70710677, %v1075_v40 }
  0xed   : > { %7167 = vst [vmem:[#allocation64_spill] sm:$0xff] %v4503_v12  ;;  %v4567_v18 = vmul.f32 0.70710677, %v1076_v50  ;;  %v4573_v45 = vmul.f32 0.70710677, %v1077_v10 }
  0xee   : > { %7168 = vst [vmem:[#allocation4_spill] sm:$0xff] %v4505_v34  ;;  %v4575_v43 = vmul.f32 0.70710677, %v1078_v16  ;;  %v4577_v56 = vmul.f32 0.70710677, %v1079_v13 }
  0xef   : > { %7169 = vst [vmem:[#allocation5_spill] sm:$0xff] %v4507_v53  ;;  %v4583_v21 = vmul.f32 0.70710677, %v1080_v51  ;;  %v4586_v60 = vmul.f32 0.70710677, %v4467_v15 }
  0xf0   : > { %7170 = vst [vmem:[#allocation6_spill] sm:$0xff] %v4509_v54  ;;  %v4589_v41 = vmul.f32 0.70710677, %v4470_v9  ;;  %v4592_v46 = vmul.f32 0.70710677, %v4473_v25 }
  0xf1   : > { %7171 = vst [vmem:[#allocation7_spill] sm:$0xff] %v4511_v6  ;;  %v4595_v59 = vmul.f32 0.70710677, %v4476_v44  ;;  %v4598_v40 = vmul.f32 0.70710677, %v4479_v5 }
  0xf2   : > { %7172 = vst [vmem:[#allocation8_spill] sm:$0xff] %v4513_v11  ;;  %v4601_v27 = vmul.f32 0.70710677, %v4524_v19  ;;  %v4604_v37 = vmul.f32 0.70710677, %v4533_v7 }
  0xf3   : > { %7173 = vst [vmem:[#allocation9_spill] sm:$0xff] %v4515_v49  ;;  %v4607_v50 = vmul.f32 0.70710677, %v4542_v1  ;;  %v4610_v10 = vmul.f32 0.70710677, %v4551_v22 }
  0xf4   : > { %7174 = vst [vmem:[#allocation10_spill] sm:$0xff] %v4517_v58  ;;  %v4613_v16 = vmul.f32 0.70710677, %v4561_v20  ;;  %v4616_v13 = vmul.f32 0.70710677, %v4571_v32 }
  0xf5   : > { %7175 = vst [vmem:[#allocation11_spill] sm:$0xff] %v4519_v24  ;;  %v4619_v51 = vmul.f32 0.70710677, %v4581_v39  ;;  %v4622_v24 = vand.u32 2147483647, %v4521_v26 }
  0xf6   : > { %7176 = vst [vmem:[#allocation12_spill] sm:$0xff] %v4521_v26  ;;  %v4643_v58 = vand.u32 2147483647, %v4544_v14  ;;  %v4646_v49 = vand.u32 2147483647, %v4546_v23 }
  0xf7   : > { %7177 = vst [vmem:[#allocation13_spill] sm:$0xff] %v4526_v29  ;;  %v4649_v11 = vand.u32 2147483647, %v4548_v36  ;;  %v4652_v6 = vand.u32 2147483647, %v4553_v2 }
  0xf8   : > { %7178 = vst [vmem:[#allocation14_spill] sm:$0xff] %v4528_v35  ;;  %v4655_v54 = vand.u32 2147483647, %v4555_v3  ;;  %v4658_v53 = vand.u32 2147483647, %v4557_v42 }
  0xf9   : > { %7179 = vst [vmem:[#allocation65_spill] sm:$0xff] %v4530_v8  ;;  %v4661_v34 = vand.u32 2147483647, %v4563_v17  ;;  %v4664_v12 = vand.u32 2147483647, %v4565_v52 }
  0xfa   : > { %7180 = vst [vmem:[#allocation66_spill] sm:$0xff] %v4533_v7  ;;  %v4625_v7 = vand.u32 2147483647, %v4526_v29  ;;  %v4667_v0 = vand.u32 2147483647, %v4567_v18  ;;  %v4764_v29 = vmul.f32 0.5, %v4476_v44 }
  0xfb   : > { %7181 = vst [vmem:[#allocation67_spill] sm:$0xff] %v4535_v31  ;;  %v4670_v33 = vand.u32 2147483647, %v4573_v45  ;;  %v4673_v63 = vand.u32 2147483647, %v4575_v43 }
  0xfc   : > { %7182 = vst [vmem:[#allocation68_spill] sm:$0xff] %v4537_v61  ;;  %v4676_v30 = vand.u32 2147483647, %v4577_v56  ;;  %v4679_v38 = vand.u32 2147483647, %v4583_v21 }
  0xfd   : > { %7183 = vst [vmem:[#allocation69_spill] sm:$0xff] %v4539_v62  ;;  %v4682_v4 = vand.u32 2147483647, %v4586_v60  ;;  %v4685_v47 = vand.u32 2147483647, %v4589_v41 }
  0xfe   : > { %7184 = vst [vmem:[#allocation70_spill] sm:$0xff] %v4542_v1  ;;  %v4628_v1 = vand.u32 2147483647, %v4528_v35  ;;  %v4688_v28 = vand.u32 2147483647, %v4592_v46 }
  0xff   : > { %7185 = vst [vmem:[#allocation71_spill] sm:$0xff] %v4544_v14  ;;  %v4691_v48 = vand.u32 2147483647, %v4595_v59  ;;  %v4694_v57 = vand.u32 2147483647, %v4598_v40 }
 0x100   : > { %7186 = vst [vmem:[#allocation74_spill] sm:$0xff] %v4546_v23  ;;  %v4697_v55 = vand.u32 2147483647, %v4601_v27  ;;  %v4741_v23 = vmul.f32 0.5, %v4473_v25  ;;  %v1210_v25 = vmul.f32 0.3275911, %v4685_v47 }
 0x101   : > { %7187 = vst [vmem:[#allocation75_spill] sm:$0xff] %v4548_v36 }
 0x102   : > { %7188 = vst [vmem:[#allocation76_spill] sm:$0xff] %v4551_v22  ;;  %v4631_v22 = vand.u32 2147483647, %v4530_v8  ;;  %v1214_v8 = vmul.f32 0.3275911, %v4697_v55 }
 0x103   : > { %7189 = vst [vmem:[#allocation81_spill] sm:$0xff] %v4553_v2  ;;  %v1201_v2 = vmul.f32 0.3275911, %v4658_v53 }
 0x104   : > { %7190 = vst [vmem:[#allocation82_spill] sm:$0xff] %v4555_v3  ;;  %v1200_v3 = vmul.f32 0.3275911, %v4655_v54 }
 0x105   : > { %7191 = vst [vmem:[#allocation83_spill] sm:$0xff] %v4557_v42  ;;  %v4734_v42 = vmul.f32 0.5, %v4470_v9  ;;  %v1205_v9 = vmul.f32 0.3275911, %v4670_v33 }
 0x106   : > { %7192 = vst [vmem:[#allocation86_spill] sm:$0xff] %v4561_v20  ;;  %v4634_v20 = vand.u32 2147483647, %v4535_v31  ;;  %v1213_v31 = vmul.f32 0.3275911, %v4694_v57 }
 0x107   : > { %7193 = vst [vmem:[#allocation87_spill] sm:$0xff] %v4563_v17 }
 0x108   : > { %7194 = vst [vmem:[#allocation88_spill] sm:$0xff] %v4565_v52  ;;  %v1199_v52 = vmul.f32 0.3275911, %v4652_v6 }
 0x109   : > { %7195 = vst [vmem:[#allocation89_spill] sm:$0xff] %v4567_v18  ;;  %v4727_v18 = vmul.f32 0.5, %v4467_v15  ;;  %v1202_v15 = vmul.f32 0.3275911, %v4661_v34 }
 0x10a   : > { %7196 = vst [vmem:[#allocation90_spill] sm:$0xff] %v4571_v32  ;;  %v4637_v32 = vand.u32 2147483647, %v4537_v61  ;;  %v1209_v61 = vmul.f32 0.3275911, %v4682_v4 }
 0x10b   : > { %7197 = vst [vmem:[#allocation91_spill] sm:$0xff] %v4573_v45  ;;  %v1197_v45 = vmul.f32 0.3275911, %v4646_v49 }
 0x10c   : > { %7198 = vst [vmem:[#allocation92_spill] sm:$0xff] %v4575_v43  ;;  %v1194_v43 = vmul.f32 0.3275911, %v4637_v32 }
 0x10d   : > { %7199 = vst [vmem:[#allocation93_spill] sm:$0xff] %v4577_v56  ;;  %v1191_v56 = vmul.f32 0.3275911, %v4628_v1 }
 0x10e   : > { %7200 = vst [vmem:[#allocation94_spill] sm:$0xff] %v4581_v39  ;;  %v4640_v39 = vand.u32 2147483647, %v4539_v62  ;;  %v1207_v62 = vmul.f32 0.3275911, %v4676_v30 }
 0x10f   : > { %7201 = vst [vmem:[#allocation95_spill] sm:$0xff] %v4583_v21  ;;  %v4700_v21 = vand.u32 2147483647, %v4604_v37  ;;  %v4745_v14 = vadd.f32 1.0, %v1191_v56  ;;  %v1212_v56 = vmul.f32 0.3275911, %v4691_v48 }
 0x110   : > { %7202 = vst [vmem:[#allocation96_spill] sm:$0xff] %v4586_v60  ;;  %v4703_v60 = vand.u32 2147483647, %v4607_v50 }
 0x111   : > { %7203 = vst [vmem:[#allocation97_spill] sm:$0xff] %v4589_v41  ;;  %v4706_v41 = vand.u32 2147483647, %v4610_v10  ;;  %v1215_v26 = vmul.f32 0.3275911, %v4700_v21  ;;  %vm1288_vm2 = vweird.f32 %v4745_v14 }
 0x112   : > { %7204 = vst [vmem:[#allocation98_spill] sm:$0xff] %v4592_v46  ;;  %v4709_v46 = vand.u32 2147483647, %v4613_v16 }
 0x113   : > { %7205 = vst [vmem:[#allocation99_spill] sm:$0xff] %v4595_v59  ;;  %v4712_v59 = vand.u32 2147483647, %v4616_v13 }
 0x114   : > { %7206 = vst [vmem:[#allocation100_spill] sm:$0xff] %v4598_v40  ;;  %v1189_v40 = vmul.f32 0.3275911, %v4622_v24 }
 0x115   : > { %7207 = vst [vmem:[#allocation101_spill] sm:$0xff] %v4601_v27  ;;  %v4716_v27 = vand.u32 2147483647, %v4619_v51  ;;  %v1219_v44 = vmul.f32 0.3275911, %v4712_v59 }
 0x116   : > { %7208 = vst [vmem:[#allocation102_spill] sm:$0xff] %v4604_v37  ;;  %v1190_v37 = vmul.f32 0.3275911, %v4625_v7  ;;  %v4731_v17 = vadd.f32 1.0, %v1189_v40  ;;  %v1204_v40 = vmul.f32 0.3275911, %v4667_v0 }
 0x117   : > { %7209 = vst [vmem:[#allocation17_spill] sm:$0xff] %v4607_v50  ;;  %v1192_v50 = vmul.f32 0.3275911, %v4631_v22 }
 0x118   : > { %7210 = vst [vmem:[#allocation18_spill] sm:$0xff] %v4610_v10  ;;  %v1193_v10 = vmul.f32 0.3275911, %v4634_v20  ;;  %v4738_v36 = vadd.f32 1.0, %v1190_v37  ;;  %v1208_v37 = vmul.f32 0.3275911, %v4679_v38  ;;  %2688 = vrcp.f32 %v4731_v17 }
 0x119   : > { %7211 = vst [vmem:[#allocation19_spill] sm:$0xff] %v4613_v16  ;;  %v1195_v16 = vmul.f32 0.3275911, %v4640_v39  ;;  %v4760_v35 = vadd.f32 1.0, %v1192_v50  ;;  %v4775_v50 = vadd.f32 1.0, %v1194_v43  ;;  %vm1258_vm0 = vweird.f32 %v4731_v17 }
 0x11a   : > { %7212 = vst [vmem:[#allocation20_spill] sm:$0xff] %v4616_v13  ;;  %v1196_v13 = vmul.f32 0.3275911, %v4643_v58  ;;  %2690 = vrcp.f32 %v4738_v36  ;;  %vm1273_vm1 = vweird.f32 %v4738_v36 }
 0x11b   : > { %7213 = vst [vmem:[#allocation21_spill] sm:$0xff] %v4619_v51  ;;  %v1198_v51 = vmul.f32 0.3275911, %v4649_v11  ;;  %2692 = vrcp.f32 %v4745_v14  ;;  %vm1303_vm3 = vweird.f32 %v4760_v35  ;;  %vm1333_vm12 = vweird.f32 %v4775_v50 }
 0x11c   : > { %7214 = vst [vmem:[#allocation22_spill] sm:$0xff] %v4622_v24  ;;  %2694 = vrcp.f32 %v4760_v35 }
 0x11d   : > { %7215 = vst [vmem:[#allocation23_spill] sm:$0xff] %v4625_v7 }
 0x11e   : > { %7216 = vst [vmem:[#allocation24_spill] sm:$0xff] %v4628_v1 }
 0x11f   : > { %7217 = vst [vmem:[#allocation25_spill] sm:$0xff] %v4631_v22 }
 0x120   : > { %7218 = vst [vmem:[#allocation26_spill] sm:$0xff] %v4634_v20 }
 0x121   : > { %7219 = vst [vmem:[#allocation27_spill] sm:$0xff] %v4637_v32 }
 0x122   : > { %7220 = vst [vmem:[#allocation2_spill] sm:$0xff] %v4640_v39 }
 0x123   : > { %7221 = vst [vmem:[#allocation3_spill] sm:$0xff] %v4643_v58 }
 0x124   : > { %7222 = vst [vmem:[#allocation30_spill] sm:$0xff] %v4646_v49 }
 0x125   : > { %7223 = vst [vmem:[#allocation31_spill] sm:$0xff] %v4649_v11  ;;  %v1309_v11 = vand.u32 2147483648, %v4760_v35 }
 0x126   : > { %7224 = vst [vmem:[#allocation51_spill] sm:$0xff] %v4652_v6 }
 0x127   : > { %7225 = vst [vmem:[#allocation55_spill] sm:$0xff] %v4655_v54 }
 0x128   : > { %7226 = vst [vmem:[#allocation59_spill] sm:$0xff] %v4658_v53 }
 0x129   : > { %7227 = vst [vmem:[#allocation72_spill] sm:$0xff] %v4661_v34  ;;  %v1292_v34 = vand.u32 2147483647, %v4745_v14 }
 0x12a   : > { %7228 = vst [vmem:[#allocation73_spill] sm:$0xff] %v4664_v12 }
 0x12b   : > { %7229 = vst [vmem:[#allocation77_spill] sm:$0xff] %v4667_v0  ;;  %vm4892_vm7 = vcmp.eq.f32.partialorder %v1292_v34, 8.507059e+37 }
 0x12c   : > { %7230 = vst [vmem:[#allocation78_spill] sm:$0xff] %v4670_v33  ;;  %v1264_v33 = vand.u32 2147483648, %v4731_v17 }
 0x12d   : > { %7231 = vst [vmem:[#allocation79_spill] sm:$0xff] %v4673_v63 }
 0x12e   : > { %7232 = vst [vmem:[#allocation15_spill] sm:$0xff] %v4676_v30  ;;  %v4869_v6 = vor.u32 1.1754944e-38, %v1264_v33 }
 0x12f   : > { %7233 = vst [vmem:[#allocation16_spill] sm:$0xff] %v4679_v38 }
 0x130   : > { %7234 = vst [vmem:[#allocation80_spill] sm:$0xff] %v4682_v4  ;;  %v4778_v4 = vmul.f32 0.5, %v4524_v19  ;;  %v4795_v19 = vadd.f32 1.0, %v1199_v52 }
 0x131   : > { %7235 = vst [vmem:[#allocation84_spill] sm:$0xff] %v4685_v47  ;;  %v1216_v47 = vmul.f32 0.3275911, %v4703_v60 }
 0x132   : > { %7236 = vst [vmem:[#allocation85_spill] sm:$0xff] %v4688_v28 }
 0x133   : > { %7237 = vst [vmem:[#allocation32_spill] sm:$0xff] %v4691_v48  ;;  %v4771_v48 = vmul.f32 0.5, %v4479_v5  ;;  %v4788_v5 = vadd.f32 1.0, %v1197_v45 }
 0x134   : > { %7238 = vst [vmem:[#allocation33_spill] sm:$0xff] %v4694_v57  ;;  %v1217_v57 = vmul.f32 0.3275911, %v4706_v41 }
 0x135   : > { %7239 = vst [vmem:[#allocation34_spill] sm:$0xff] %v4697_v55  ;;  %v1218_v55 = vmul.f32 0.3275911, %v4709_v46 }
 0x136   : > { %7240 = vst [vmem:[#allocation35_spill] sm:$0xff] %v4700_v21  ;;  %v4782_v21 = vadd.f32 1.0, %v1195_v16  ;;  %v4846_v38 = vadd.f32 1.0, %v1217_v57 }
 0x137   : > { %7241 = vst [vmem:[#allocation36_spill] sm:$0xff] %v4703_v60  ;;  %v4786_v60 = vadd.f32 1.0, %v1196_v13  ;;  %v4804_v13 = vadd.f32 1.0, %v1202_v15  ;;  %v4848_v30 = vadd.f32 1.0, %v1218_v55  ;;  %v1294_v55 = vand.u32 2147483648, %v4745_v14 }
 0x138   : > { %7242 = vst [vmem:[#allocation37_spill] sm:$0xff] %v4706_v41  ;;  %v4821_v41 = vadd.f32 1.0, %v1210_v25  ;;  %v4842_v25 = vadd.f32 1.0, %v1216_v47  ;;  %v1279_v47 = vand.u32 2147483648, %v4738_v36 }
 0x139   : > { %7243 = vst [vmem:[#allocation38_spill] sm:$0xff] %v4709_v46  ;;  %v4819_v46 = vadd.f32 1.0, %v1209_v61  ;;  %v4836_v61 = vadd.f32 1.0, %v1213_v31  ;;  %v1295_v39 = vor.u32 1.1754944e-38, %v1294_v55 }
 0x13a   : > { %7244 = vst [vmem:[#allocation28_spill] sm:$0xff] %v4712_v59  ;;  %v4799_v59 = vadd.f32 1.0, %v1201_v2  ;;  %v4817_v2 = vadd.f32 1.0, %v1208_v37  ;;  %v4838_v37 = vadd.f32 1.0, %v1214_v8 }
 0x13b   : > { %7245 = vst [vmem:[#allocation29_spill] sm:$0xff] %v4716_v27 }
 0x13c   : > { %7246 = vst [vmem:[#allocation39_spill] sm:$0xff] %v4727_v18  ;;  %v1203_v18 = vmul.f32 0.3275911, %v4664_v12 }
 0x13d   : > { %7247 = vst [vmem:[#allocation40_spill] sm:$0xff] %v4734_v42  ;;  %v1206_v42 = vmul.f32 0.3275911, %v4673_v63  ;;  %v4850_v63 = vadd.f32 1.0, %v1219_v44  ;;  %v1277_v44 = vand.u32 2147483647, %v4738_v36 }
 0x13e   : > { %7248 = vst [vmem:[#allocation41_spill] sm:$0xff] %v4741_v23  ;;  %v1211_v23 = vmul.f32 0.3275911, %v4688_v28  ;;  %v4768_v28 = vadd.f32 1.0, %v1193_v10  ;;  %v4784_v10 = vpop.eup %2688  ;;  %v4806_v45 = vadd.f32 1.0, %v1203_v18  ;;  %v4825_v18 = vadd.f32 1.0, %v1212_v56 }
 0x13f   : > { %7249 = vst [vmem:[#allocation42_spill] sm:$0xff] %v4764_v29  ;;  %v1220_v29 = vmul.f32 0.3275911, %v4716_v27  ;;  %v4793_v43 = vpop.eup %2690  ;;  %v4811_v27 = vadd.f32 1.0, %v1205_v9  ;;  %v4813_v52 = vadd.f32 1.0, %v1206_v42  ;;  %vm1259_vm4 = vweird.f32 %v4784_v10 }
 0x140   : > { %7250 = vst [vmem:[#allocation43_spill] sm:$0xff] %v4771_v48  ;;  %v4790_v48 = vadd.f32 1.0, %v1198_v51  ;;  %2696 = vrcp.f32 %v4768_v28  ;;  %v4802_v16 = vpop.eup %2692  ;;  %v4808_v51 = vadd.f32 1.0, %v1204_v40  ;;  %v4823_v15 = vadd.f32 1.0, %v1211_v23  ;;  %vm4911_vm11 = vmor %vm1258_vm0, %vm1259_vm4 }
 0x141   : > { %7251 = vst [vmem:[#allocation44_spill] sm:$0xff] %v4778_v4  ;;  %v4797_v4 = vadd.f32 1.0, %v1200_v3  ;;  %2698 = vrcp.f32 %v4775_v50  ;;  %v4815_v3 = vadd.f32 1.0, %v1207_v62  ;;  %v1254_v40 = vmul.f32 %v4784_v10, %v4731_v17  ;;  %v4834_v42 = vpop.eup %2694 }
 0x142   : > { %v1269_v9 = vmul.f32 %v4793_v43, %v4738_v36  ;;  %v1284_v62 = vmul.f32 %v4802_v16, %v4745_v14  ;;  %2700 = vrcp.f32 %v4782_v21  ;;  %v4840_v23 = vadd.f32 1.0, %v1215_v26 }
 0x143   : > { %v4855_v31 = vadd.f32 1.0, %v1220_v29  ;;  %v1262_v26 = vand.u32 2147483647, %v4731_v17  ;;  %v1255_v8 = vsub.f32 1.0, %v1254_v40  ;;  %v1299_v53 = vmul.f32 %v4834_v42, %v4760_v35 }
 0x144   : > { %v1270_v12 = vsub.f32 1.0, %v1269_v9  ;;  %v1285_v57 = vsub.f32 1.0, %v1284_v62  ;;  %v4875_v9 = vor.u32 1.1754944e-38, %v1279_v47  ;;  %v1307_v62 = vand.u32 2147483647, %v4760_v35 }
 0x145   : > { %v1256_v49 = vmul.f32 %v4784_v10, %v1255_v8  ;;  %vm4884_vm5 = vcmp.eq.f32.partialorder %v1262_v26, 8.507059e+37  ;;  %vm4888_vm6 = vcmp.eq.f32.partialorder %v1277_v44, 8.507059e+37  ;;  %v1300_v8 = vsub.f32 1.0, %v1299_v53 }
 0x146   : > { %v4844_v56 = vpop.eup %2696  ;;  %v1271_v33 = vmul.f32 %v4793_v43, %v1270_v12  ;;  %v1286_v58 = vmul.f32 %v4802_v16, %v1285_v57  ;;  %vm1274_vm8 = vweird.f32 %v4793_v43  ;;  %vm1318_vm9 = vweird.f32 %v4768_v28 }
 0x147   : > { %v4853_v0 = vpop.eup %2698  ;;  %v1314_v29 = vmul.f32 %v4844_v56, %v4768_v28  ;;  %2702 = vrcp.f32 %v4786_v60  ;;  %vm1289_vm10 = vweird.f32 %v4802_v16  ;;  %v4902_v57 = vor.u32 1.1754944e-38, %v1309_v11  ;;  %vm4920_vm13 = vmor %vm1273_vm1, %vm1274_vm8 }
 0x148   : > { %v4867_v54 = vpop.eup %2700  ;;  %v1329_v40 = vmul.f32 %v4853_v0, %v4775_v50  ;;  %v1322_v34 = vand.u32 2147483647, %v4768_v28  ;;  %v1324_v55 = vand.u32 2147483648, %v4768_v28  ;;  %v1257_v53 = vadd.f32 %v4784_v10, %v1256_v49  ;;  %vm4935_vm15 = vmor %vm1288_vm2, %vm1289_vm10 }
 0x149   : > { %v1315_v22 = vsub.f32 1.0, %v1314_v29  ;;  %v1344_v12 = vmul.f32 %v4867_v54, %v4782_v21  ;;  %v1272_v29 = vadd.f32 %v4793_v43, %v1271_v33  ;;  %v1301_v49 = vmul.f32 %v4834_v42, %v1300_v8 }
 0x14a   : > { %v1330_v26 = vsub.f32 1.0, %v1329_v40  ;;  %v1287_v40 = vadd.f32 %v4802_v16, %v1286_v58  ;;  %vm4925_vm14 = vcmp.eq.f32.partialorder %v1307_v62, 8.507059e+37  ;;  %2704 = vrcp.f32 %v4788_v5 }
 0x14b   : > { %v1316_v1 = vmul.f32 %v4844_v56, %v1315_v22  ;;  %v1345_v7 = vsub.f32 1.0, %v1344_v12  ;;  %vm1304_vm0 = vweird.f32 %v4834_v42  ;;  %v1337_v62 = vand.u32 2147483647, %v4775_v50 }
 0x14c   : > { %v1331_v36 = vmul.f32 %v4853_v0, %v1330_v26  ;;  %2706 = vrcp.f32 %v4790_v48  ;;  %vm1319_vm1 = vweird.f32 %v4844_v56  ;;  %vm4944_vm4 = vcmp.eq.f32.partialorder %v1322_v34, 8.507059e+37  ;;  %vm4967_vm8 = vmor %vm1303_vm3, %vm1304_vm0 }
 0x14d   : > { %v1325_v33 = vor.u32 1.1754944e-38, %v1324_v55  ;;  %v1339_v14 = vand.u32 2147483648, %v4775_v50  ;;  %v4949_v8 = vpop.eup %2702  ;;  %v1261_v12 = vsel %vm4911_vm11, %v4784_v10, %v1257_v53  ;;  %v1276_v26 = vsel %vm4920_vm13, %v4793_v43, %v1272_v29  ;;  %vm4975_vm10 = vmor %vm1318_vm9, %vm1319_vm1 }
 0x14e   : > { %vm1334_vm2 = vweird.f32 %v4853_v0  ;;  %2708 = vrcp.f32 %v4795_v19  ;;  %v1291_v34 = vsel %vm4935_vm15, %v4802_v16, %v1287_v40  ;;  %v1302_v55 = vadd.f32 %v4834_v42, %v1301_v49 }
 0x14f   : > { %v1317_v43 = vadd.f32 %v4844_v56, %v1316_v1  ;;  %v1346_v53 = vmul.f32 %v4867_v54, %v1345_v7  ;;  %v1332_v16 = vadd.f32 %v4853_v0, %v1331_v36  ;;  %vm4980_vm11 = vcmp.eq.f32.partialorder %v1337_v62, 8.507059e+37  ;;  %vm4990_vm13 = vmor %vm1333_vm12, %vm1334_vm2 }
 0x150   : > { %vm1348_vm3 = vweird.f32 %v4782_v21  ;;  %v1352_v35 = vand.u32 2147483647, %v4782_v21  ;;  %v4986_v40 = vpop.eup %2704  ;;  %v1340_v7 = vor.u32 1.1754944e-38, %v1339_v14  ;;  %vm1349_vm9 = vweird.f32 %v4867_v54 }
 0x151   : > { %v1359_v1 = vmul.f32 %v4949_v8, %v4786_v60  ;;  %2710 = vrcp.f32 %v4797_v4  ;;  %v5003_v49 = vsel %vm4884_vm5, %v4869_v6, %v1261_v12  ;;  %v5008_v50 = vsel %vm4888_vm6, %v4875_v9, %v1276_v26  ;;  %vm5030_vm5 = vmor %vm1348_vm3, %vm1349_vm9 }
 0x152   : > { %v4998_v11 = vpop.eup %2706  ;;  %v5012_v58 = vsel %vm4892_vm7, %v1295_v39, %v1291_v34  ;;  %v1354_v36 = vand.u32 2147483648, %v4782_v21  ;;  %v1306_v62 = vsel %vm4967_vm8, %v4834_v42, %v1302_v55  ;;  %v1321_v6 = vsel %vm4975_vm10, %v4844_v56, %v1317_v43 }
 0x153   : > { %v1347_v32 = vadd.f32 %v4867_v54, %v1346_v53  ;;  %2712 = vrcp.f32 %v4799_v59  ;;  %v1336_v20 = vsel %vm4990_vm13, %v4853_v0, %v1332_v16  ;;  %vm5034_vm6 = vcmp.eq.f32.partialorder %v1352_v35, 8.507059e+37 }
 0x154   : > { %v5023_v9 = vpop.eup %2708  ;;  %v1367_v56 = vand.u32 2147483647, %v4786_v60  ;;  %v1369_v47 = vand.u32 2147483648, %v4786_v60  ;;  %v1360_v14 = vsub.f32 1.0, %v1359_v1  ;;  %v1374_v12 = vmul.f32 %v4986_v40, %v4788_v5 }
 0x155   : > { %v1389_v0 = vmul.f32 %v4998_v11, %v4790_v48  ;;  %2714 = vrcp.f32 %v4804_v13  ;;  %v5048_v21 = vsel %vm4925_vm14, %v4902_v57, %v1306_v62  ;;  %v5052_v26 = vsel %vm4944_vm4, %v1325_v33, %v1321_v6 }
 0x156   : > { %7280 = vst [vmem:[#allocation45_spill] sm:$0xff] %v5048_v21  ;;  %v1355_v34 = vor.u32 1.1754944e-38, %v1354_v36  ;;  %v1384_v55 = vand.u32 2147483648, %v4788_v5  ;;  %v1351_v43 = vsel %vm5030_vm5, %v4867_v54, %v1347_v32  ;;  %vm1363_vm7 = vweird.f32 %v4786_v60 }
 0x157   : > { %7281 = vst [vmem:[#allocation46_spill] sm:$0xff] %v5052_v26  ;;  %v5055_v10 = vpop.eup %2710  ;;  %v1399_v53 = vand.u32 2147483648, %v4790_v48  ;;  %v1404_v57 = vmul.f32 %v5023_v9, %v4795_v19  ;;  %v5066_v17 = vsel %vm4980_vm11, %v1340_v7, %v1336_v20  ;;  %v1370_v22 = vor.u32 1.1754944e-38, %v1369_v47 }
 0x158   : > { %7282 = vst [vmem:[#allocation47_spill] sm:$0xff] %v5066_v17  ;;  %vm1378_vm12 = vweird.f32 %v4788_v5  ;;  %v1382_v33 = vand.u32 2147483647, %v4788_v5  ;;  %v1361_v54 = vmul.f32 %v4949_v8, %v1360_v14  ;;  %vm5073_vm14 = vcmp.eq.f32.partialorder %v1367_v56, 8.507059e+37 }
 0x159   : > { %v5070_v44 = vpop.eup %2712  ;;  %v1375_v35 = vsub.f32 1.0, %v1374_v12  ;;  %v1390_v28 = vsub.f32 1.0, %v1389_v0  ;;  %vm1393_vm15 = vweird.f32 %v4790_v48  ;;  %v5080_v29 = vsel %vm5034_vm6, %v1355_v34, %v1351_v43 }
 0x15a   : > { %v5082_v7 = vor.u32 1.1754944e-38, %v1384_v55  ;;  %v1397_v1 = vand.u32 2147483647, %v4790_v48  ;;  %v1419_v36 = vmul.f32 %v5055_v10, %v4797_v4  ;;  %vm1364_vm0 = vweird.f32 %v4949_v8 }
 0x15b   : > { %v5087_v62 = vpop.eup %2714  ;;  %v5090_v6 = vor.u32 1.1754944e-38, %v1399_v53  ;;  %v1405_v32 = vsub.f32 1.0, %v1404_v57  ;;  %vm1408_vm1 = vweird.f32 %v4795_v19  ;;  %vm1379_vm4 = vweird.f32 %v4986_v40  ;;  %vm5104_vm8 = vmor %vm1363_vm7, %vm1364_vm0 }
 0x15c   : > { %v1412_v20 = vand.u32 2147483647, %v4795_v19  ;;  %v1414_v39 = vand.u32 2147483648, %v4795_v19  ;;  %v1434_v42 = vmul.f32 %v5070_v44, %v4799_v59  ;;  %v1362_v56 = vadd.f32 %v4949_v8, %v1361_v54  ;;  %vm5137_vm9 = vmor %vm1378_vm12, %vm1379_vm4 }
 0x15d   : > { %v1376_v47 = vmul.f32 %v4986_v40, %v1375_v35  ;;  %v1391_v14 = vmul.f32 %v4998_v11, %v1390_v28  ;;  %vm1423_vm2 = vweird.f32 %v4797_v4  ;;  %vm5108_vm10 = vcmp.eq.f32.partialorder %v1382_v33, 8.507059e+37 }
 0x15e   : > { %vm5112_vm11 = vcmp.eq.f32.partialorder %v1397_v1, 8.507059e+37  ;;  %v1420_v55 = vsub.f32 1.0, %v1419_v36  ;;  %v1427_v43 = vand.u32 2147483647, %v4797_v4  ;;  %v1449_v53 = vmul.f32 %v5087_v62, %v4804_v13 }
 0x15f   : > { %2716 = vrcp.f32 %v4806_v45  ;;  %vm1394_vm3 = vweird.f32 %v4998_v11  ;;  %v1406_v60 = vmul.f32 %v5023_v9, %v1405_v32  ;;  %v1429_v57 = vand.u32 2147483648, %v4797_v4 }
 0x160   : > { %2718 = vrcp.f32 %v4808_v51  ;;  %vm5124_vm13 = vcmp.eq.f32.partialorder %v1412_v20, 8.507059e+37  ;;  %v1415_v54 = vor.u32 1.1754944e-38, %v1414_v39  ;;  %v1435_v35 = vsub.f32 1.0, %v1434_v42  ;;  %vm5145_vm6 = vmor %vm1393_vm15, %vm1394_vm3 }
 0x161   : > { %v1442_v28 = vand.u32 2147483647, %v4799_v59  ;;  %v1366_v1 = vsel %vm5104_vm8, %v4949_v8, %v1362_v56  ;;  %v1377_v36 = vadd.f32 %v4986_v40, %v1376_v47  ;;  %v1392_v20 = vadd.f32 %v4998_v11, %v1391_v14 }
 0x162   : > { %vm1409_vm5 = vweird.f32 %v5023_v9  ;;  %v1421_v8 = vmul.f32 %v5055_v10, %v1420_v55  ;;  %vm5150_vm7 = vcmp.eq.f32.partialorder %v1427_v43, 8.507059e+37  ;;  %v1450_v5 = vsub.f32 1.0, %v1449_v53 }
 0x163   : > { %2720 = vrcp.f32 %v4811_v27  ;;  %v1407_v56 = vadd.f32 %v5023_v9, %v1406_v60  ;;  %v1430_v47 = vor.u32 1.1754944e-38, %v1429_v57  ;;  %vm1438_vm12 = vweird.f32 %v4799_v59  ;;  %vm5166_vm15 = vmor %vm1408_vm1, %vm1409_vm5 }
 0x164   : > { %v1444_v48 = vand.u32 2147483648, %v4799_v59  ;;  %v5162_v12 = vsel %vm5073_vm14, %v1370_v22, %v1366_v1  ;;  %vm1424_vm0 = vweird.f32 %v5055_v10  ;;  %v1436_v43 = vmul.f32 %v5070_v44, %v1435_v35 }
 0x165   : > { %v5158_v14 = vpop.eup %2716  ;;  %7299 = vst [vmem:[#allocation48_spill] sm:$0xff] %v5162_v12  ;;  %vm5172_vm4 = vcmp.eq.f32.partialorder %v1442_v28, 8.507059e+37  ;;  %v1381_v22 = vsel %vm5137_vm9, %v4986_v40, %v1377_v36  ;;  %v1396_v19 = vsel %vm5145_vm6, %v4998_v11, %v1392_v20  ;;  %v1457_v16 = vand.u32 2147483647, %v4804_v13  ;;  %vm5195_vm1 = vmor %vm1423_vm2, %vm1424_vm0 }
 0x166   : > { %v5176_v60 = vpop.eup %2718  ;;  %2722 = vrcp.f32 %v4813_v52  ;;  %v1422_v57 = vadd.f32 %v5055_v10, %v1421_v8  ;;  %vm1439_vm14 = vweird.f32 %v5070_v44  ;;  %v1451_v35 = vmul.f32 %v5087_v62, %v1450_v5 }
 0x167   : > { %v1459_v28 = vand.u32 2147483648, %v4804_v13  ;;  %v1411_v40 = vsel %vm5166_vm15, %v5023_v9, %v1407_v56  ;;  %v1445_v1 = vor.u32 1.1754944e-38, %v1444_v48  ;;  %v1464_v36 = vmul.f32 %v5158_v14, %v4806_v45  ;;  %vm5223_vm2 = vmor %vm1438_vm12, %vm1439_vm14 }
 0x168   : > { %2724 = vrcp.f32 %v4815_v3  ;;  %v1437_v20 = vadd.f32 %v5070_v44, %v1436_v43  ;;  %vm1453_vm8 = vweird.f32 %v4804_v13  ;;  %vm1454_vm3 = vweird.f32 %v5087_v62 }
 0x169   : > { %v5202_v32 = vpop.eup %2720  ;;  %v1479_v4 = vmul.f32 %v5176_v60, %v4808_v51  ;;  %v5212_v9 = vsel %vm5108_vm10, %v5082_v7, %v1381_v22  ;;  %v5217_v39 = vsel %vm5112_vm11, %v5090_v6, %v1396_v19  ;;  %vm5227_vm9 = vcmp.eq.f32.partialorder %v1457_v16, 8.507059e+37  ;;  %vm5242_vm10 = vmor %vm1453_vm8, %vm1454_vm3 }
 0x16a   : > { %7306 = vst [vmem:[#allocation49_spill] sm:$0xff] %v5212_v9  ;;  %v1474_v7 = vand.u32 2147483648, %v4806_v45  ;;  %v5234_v0 = vsel %vm5124_vm13, %v1415_v54, %v1411_v40  ;;  %v1426_v6 = vsel %vm5195_vm1, %v5055_v10, %v1422_v57  ;;  %v1452_v59 = vadd.f32 %v5087_v62, %v1451_v35 }
 0x16b   : > { %7307 = vst [vmem:[#allocation103_spill] sm:$0xff] %v5217_v39  ;;  %v1460_v34 = vor.u32 1.1754944e-38, %v1459_v28  ;;  %v1465_v48 = vsub.f32 1.0, %v1464_v36  ;;  %v1472_v55 = vand.u32 2147483647, %v4806_v45  ;;  %v1494_v33 = vmul.f32 %v5202_v32, %v4811_v27 }
 0x16c   : > { %7312 = vst [vmem:[#allocation104_spill] sm:$0xff] %v5234_v0  ;;  %v5240_v5 = vpop.eup %2722  ;;  %2726 = vrcp.f32 %v4817_v2  ;;  %v1441_v10 = vsel %vm5223_vm2, %v5070_v44, %v1437_v20  ;;  %vm1468_vm11 = vweird.f32 %v4806_v45  ;;  %v1480_v54 = vsub.f32 1.0, %v1479_v4 }
 0x16d   : > { %v1487_v43 = vand.u32 2147483647, %v4808_v51  ;;  %v5259_v19 = vsel %vm5150_vm7, %v1430_v47, %v1426_v6  ;;  %v1475_v16 = vor.u32 1.1754944e-38, %v1474_v7  ;;  %vm1483_vm13 = vweird.f32 %v4808_v51 }
 0x16e   : > { %v5255_v22 = vpop.eup %2724  ;;  %7315 = vst [vmem:[#allocation105_spill] sm:$0xff] %v5259_v19  ;;  %v1489_v57 = vand.u32 2147483648, %v4808_v51  ;;  %v1456_v44 = vsel %vm5242_vm10, %v5087_v62, %v1452_v59  ;;  %vm1498_vm5 = vweird.f32 %v4811_v27  ;;  %v1502_v35 = vand.u32 2147483647, %v4811_v27 }
 0x16f   : > { %v1509_v28 = vmul.f32 %v5240_v5, %v4813_v52  ;;  %v5272_v42 = vsel %vm5172_vm4, %v1445_v1, %v1441_v10  ;;  %v1466_v47 = vmul.f32 %v5158_v14, %v1465_v48  ;;  %vm5275_vm6 = vcmp.eq.f32.partialorder %v1472_v55, 8.507059e+37 }
 0x170   : > { %7316 = vst [vmem:[#allocation106_spill] sm:$0xff] %v5272_v42  ;;  %v1495_v11 = vsub.f32 1.0, %v1494_v33  ;;  %v1504_v62 = vand.u32 2147483648, %v4811_v27  ;;  %v1481_v36 = vmul.f32 %v5176_v60, %v1480_v54  ;;  %vm5281_vm7 = vcmp.eq.f32.partialorder %v1487_v43, 8.507059e+37 }
 0x171   : > { %v1524_v53 = vmul.f32 %v5255_v22, %v4815_v3  ;;  %2728 = vrcp.f32 %v4819_v46  ;;  %v5292_v4 = vsel %vm5227_vm9, %v1460_v34, %v1456_v44  ;;  %vm1469_vm12 = vweird.f32 %v5158_v14 }
 0x172   : > { %v5288_v1 = vpop.eup %2726  ;;  %7321 = vst [vmem:[#allocation107_spill] sm:$0xff] %v5292_v4  ;;  %vm1484_vm15 = vweird.f32 %v5176_v60  ;;  %v1490_v13 = vor.u32 1.1754944e-38, %v1489_v57  ;;  %v1510_v7 = vsub.f32 1.0, %v1509_v28  ;;  %v1517_v6 = vand.u32 2147483647, %v4813_v52  ;;  %vm5308_vm4 = vmor %vm1468_vm11, %vm1469_vm12 }
 0x173   : > { %v1519_v59 = vand.u32 2147483648, %v4813_v52  ;;  %2730 = vrcp.f32 %v4821_v41  ;;  %v1467_v56 = vadd.f32 %v5158_v14, %v1466_v47  ;;  %v1496_v48 = vmul.f32 %v5202_v32, %v1495_v11  ;;  %vm5320_vm1 = vmor %vm1483_vm13, %vm1484_vm15 }
 0x174   : > { %vm5301_vm0 = vcmp.eq.f32.partialorder %v1502_v35, 8.507059e+37  ;;  %v1505_v34 = vor.u32 1.1754944e-38, %v1504_v62  ;;  %2732 = vrcp.f32 %v4823_v15  ;;  %v1482_v33 = vadd.f32 %v5176_v60, %v1481_v36 }
 0x175   : > { %vm1513_vm14 = vweird.f32 %v4813_v52  ;;  %v1525_v10 = vsub.f32 1.0, %v1524_v53  ;;  %v1539_v54 = vmul.f32 %v5288_v1, %v4817_v2  ;;  %vm1499_vm8 = vweird.f32 %v5202_v32 }
 0x176   : > { %vm1528_vm3 = vweird.f32 %v4815_v3  ;;  %v1532_v45 = vand.u32 2147483647, %v4815_v3  ;;  %v1534_v57 = vand.u32 2147483648, %v4815_v3  ;;  %v1511_v35 = vmul.f32 %v5240_v5, %v1510_v7  ;;  %vm5351_vm10 = vmor %vm1498_vm5, %vm1499_vm8 }
 0x177   : > { %v5328_v44 = vpop.eup %2728  ;;  %vm5331_vm2 = vcmp.eq.f32.partialorder %v1517_v6, 8.507059e+37  ;;  %v1520_v51 = vor.u32 1.1754944e-38, %v1519_v59  ;;  %v1549_v47 = vand.u32 2147483648, %v4817_v2  ;;  %v1471_v11 = vsel %vm5308_vm4, %v5158_v14, %v1467_v56 }
 0x178   : > { %v1497_v62 = vadd.f32 %v5202_v32, %v1496_v48  ;;  %vm1514_vm9 = vweird.f32 %v5240_v5  ;;  %v1547_v36 = vand.u32 2147483647, %v4817_v2  ;;  %v1486_v7 = vsel %vm5320_vm1, %v5176_v60, %v1482_v33 }
 0x179   : > { %v5342_v53 = vpop.eup %2730  ;;  %v1526_v14 = vmul.f32 %v5255_v22, %v1525_v10  ;;  %v1540_v59 = vsub.f32 1.0, %v1539_v54  ;;  %2734 = vrcp.f32 %v4825_v18  ;;  %vm5359_vm11 = vcmp.eq.f32.partialorder %v1532_v45, 8.507059e+37  ;;  %vm5383_vm12 = vmor %vm1513_vm14, %vm1514_vm9 }
 0x17a   : > { %v5357_v56 = vpop.eup %2732  ;;  %v1535_v60 = vor.u32 1.1754944e-38, %v1534_v57  ;;  %vm1543_vm13 = vweird.f32 %v4817_v2  ;;  %v1554_v27 = vmul.f32 %v5328_v44, %v4819_v46  ;;  %v5368_v55 = vsel %vm5275_vm6, %v1475_v16, %v1471_v11 }
 0x17b   : > { %7334 = vst [vmem:[#allocation108_spill] sm:$0xff] %v5368_v55  ;;  %v1512_v33 = vadd.f32 %v5240_v5, %v1511_v35  ;;  %vm1529_vm5 = vweird.f32 %v5255_v22  ;;  %v1550_v10 = vor.u32 1.1754944e-38, %v1549_v47  ;;  %v5374_v54 = vsel %vm5281_vm7, %v1490_v13, %v1486_v7 }
 0x17c   : > { %7335 = vst [vmem:[#allocation109_spill] sm:$0xff] %v5374_v54  ;;  %v1501_v43 = vsel %vm5351_vm10, %v5202_v32, %v1497_v62  ;;  %v1564_v40 = vand.u32 2147483648, %v4819_v46  ;;  %v1569_v45 = vmul.f32 %v5342_v53, %v4821_v41  ;;  %v1527_v20 = vadd.f32 %v5255_v22, %v1526_v14  ;;  %vm5401_vm7 = vmor %vm1528_vm3, %vm1529_vm5 }
 0x17d   : > { %v1541_v13 = vmul.f32 %v5288_v1, %v1540_v59  ;;  %vm5392_vm6 = vcmp.eq.f32.partialorder %v1547_v36, 8.507059e+37  ;;  %v1584_v52 = vmul.f32 %v5357_v56, %v4823_v15  ;;  %2736 = vrcp.f32 %v4836_v61 }
 0x17e   : > { %v1555_v35 = vsub.f32 1.0, %v1554_v27  ;;  %vm1558_vm15 = vweird.f32 %v4819_v46  ;;  %v1562_v47 = vand.u32 2147483647, %v4819_v46  ;;  %2738 = vrcp.f32 %v4838_v37 }
 0x17f   : > { %v5408_v11 = vpop.eup %2734  ;;  %v5412_v62 = vsel %vm5301_vm0, %v1505_v34, %v1501_v43  ;;  %v1516_v3 = vsel %vm5383_vm12, %v5240_v5, %v1512_v33  ;;  %vm1544_vm4 = vweird.f32 %v5288_v1  ;;  %v1579_v36 = vand.u32 2147483648, %v4821_v41 }
 0x180   : > { %7342 = vst [vmem:[#allocation110_spill] sm:$0xff] %v5412_v62  ;;  %v5419_v7 = vor.u32 1.1754944e-38, %v1564_v40  ;;  %v1570_v6 = vsub.f32 1.0, %v1569_v45  ;;  %vm1573_vm14 = vweird.f32 %v4821_v41  ;;  %v1577_v14 = vand.u32 2147483647, %v4821_v41  ;;  %vm5434_vm0 = vmor %vm1543_vm13, %vm1544_vm4 }
 0x181   : > { %v1531_v8 = vsel %vm5401_vm7, %v5255_v22, %v1527_v20  ;;  %v1542_v34 = vadd.f32 %v5288_v1, %v1541_v13  ;;  %v1585_v59 = vsub.f32 1.0, %v1584_v52  ;;  %2740 = vrcp.f32 %v4840_v23 }
 0x182   : > { %v5430_v5 = vsel %vm5331_vm2, %v1520_v51, %v1516_v3  ;;  %v1556_v33 = vmul.f32 %v5328_v44, %v1555_v35  ;;  %vm5439_vm1 = vcmp.eq.f32.partialorder %v1562_v47, 8.507059e+37  ;;  %vm1588_vm8 = vweird.f32 %v4823_v15 }
 0x183   : > { %7343 = vst [vmem:[#allocation111_spill] sm:$0xff] %v5430_v5  ;;  %v1599_v22 = vmul.f32 %v5408_v11, %v4825_v18  ;;  %v5446_v28 = vpop.eup %2736  ;;  %vm1559_vm3 = vweird.f32 %v5328_v44  ;;  %v1580_v2 = vor.u32 1.1754944e-38, %v1579_v36  ;;  %v1592_v51 = vand.u32 2147483647, %v4823_v15 }
 0x184   : > { %2742 = vrcp.f32 %v4842_v25  ;;  %v5451_v16 = vpop.eup %2738  ;;  %v5455_v40 = vsel %vm5359_vm11, %v1535_v60, %v1531_v8  ;;  %v1571_v45 = vmul.f32 %v5342_v53, %v1570_v6  ;;  %vm5458_vm2 = vcmp.eq.f32.partialorder %v1577_v14, 8.507059e+37  ;;  %vm5480_vm11 = vmor %vm1558_vm15, %vm1559_vm3 }
 0x185   : > { %7348 = vst [vmem:[#allocation112_spill] sm:$0xff] %v5455_v40  ;;  %v1594_v13 = vand.u32 2147483648, %v4823_v15  ;;  %vm1603_vm9 = vweird.f32 %v4825_v18  ;;  %v1546_v52 = vsel %vm5434_vm0, %v5288_v1, %v1542_v34  ;;  %v1586_v32 = vmul.f32 %v5357_v56, %v1585_v59 }
 0x186   : > { %v1607_v48 = vand.u32 2147483647, %v4825_v18  ;;  %v1609_v60 = vand.u32 2147483648, %v4825_v18  ;;  %v1557_v35 = vadd.f32 %v5328_v44, %v1556_v33  ;;  %vm1574_vm10 = vweird.f32 %v5342_v53 }
 0x187   : > { %v1600_v47 = vsub.f32 1.0, %v1599_v22  ;;  %v1614_v3 = vmul.f32 %v5446_v28, %v4836_v61  ;;  %v5474_v36 = vpop.eup %2740  ;;  %vm1589_vm13 = vweird.f32 %v5357_v56  ;;  %vm5485_vm5 = vcmp.eq.f32.partialorder %v1592_v51, 8.507059e+37  ;;  %vm5502_vm7 = vmor %vm1573_vm14, %vm1574_vm10 }
 0x188   : > { %v1629_v14 = vmul.f32 %v5451_v16, %v4838_v37  ;;  %2744 = vrcp.f32 %v4846_v38  ;;  %v5494_v8 = vsel %vm5392_vm6, %v1550_v10, %v1546_v52  ;;  %v1572_v46 = vadd.f32 %v5342_v53, %v1571_v45  ;;  %vm5516_vm6 = vmor %vm1588_vm8, %vm1589_vm13 }
 0x189   : > { %7355 = vst [vmem:[#allocation113_spill] sm:$0xff] %v5494_v8  ;;  %v1595_v34 = vor.u32 1.1754944e-38, %v1594_v13  ;;  %vm1618_vm12 = vweird.f32 %v4836_v61  ;;  %v1587_v33 = vadd.f32 %v5357_v56, %v1586_v32  ;;  %v1610_v22 = vor.u32 1.1754944e-38, %v1609_v60 }
 0x18a   : > { %v5498_v59 = vpop.eup %2742  ;;  %v1622_v57 = vand.u32 2147483647, %v4836_v61  ;;  %v1624_v10 = vand.u32 2147483648, %v4836_v61  ;;  %v1561_v51 = vsel %vm5480_vm11, %v5328_v44, %v1557_v35  ;;  %v1601_v45 = vmul.f32 %v5408_v11, %v1600_v47 }
 0x18b   : > { %vm5521_vm15 = vcmp.eq.f32.partialorder %v1607_v48, 8.507059e+37  ;;  %v1615_v52 = vsub.f32 1.0, %v1614_v3  ;;  %v1644_v32 = vmul.f32 %v5474_v36, %v4840_v23  ;;  %vm1604_vm4 = vweird.f32 %v5408_v11 }
 0x18c   : > { %v1630_v44 = vsub.f32 1.0, %v1629_v14  ;;  %v1637_v60 = vand.u32 2147483647, %v4838_v37  ;;  %2746 = vrcp.f32 %v4848_v30  ;;  %v1576_v15 = vsel %vm5502_vm7, %v5342_v53, %v1572_v46 }
 0x18d   : > { %v1639_v48 = vand.u32 2147483648, %v4838_v37  ;;  %v1659_v35 = vmul.f32 %v5498_v59, %v4842_v25  ;;  %2748 = vrcp.f32 %v4850_v63  ;;  %v5542_v3 = vsel %vm5439_vm1, %v5419_v7, %v1561_v51  ;;  %vm5564_vm1 = vmor %vm1603_vm9, %vm1604_vm4 }
 0x18e   : > { %v5537_v47 = vpop.eup %2744  ;;  %7362 = vst [vmem:[#allocation114_spill] sm:$0xff] %v5542_v3  ;;  %v1591_v1 = vsel %vm5516_vm6, %v5357_v56, %v1587_v33  ;;  %vm1633_vm14 = vweird.f32 %v4838_v37  ;;  %2750 = vrcp.f32 %v4855_v31  ;;  %v1602_v53 = vadd.f32 %v5408_v11, %v1601_v45 }
 0x18f   : > { %v1616_v14 = vmul.f32 %v5446_v28, %v1615_v52  ;;  %vm5551_vm0 = vcmp.eq.f32.partialorder %v1622_v57, 8.507059e+37  ;;  %v1645_v27 = vsub.f32 1.0, %v1644_v32  ;;  %v1652_v7 = vand.u32 2147483647, %v4840_v23 }
 0x190   : > { %v5558_v43 = vsel %vm5458_vm2, %v1580_v2, %v1576_v15  ;;  %v1625_v33 = vor.u32 1.1754944e-38, %v1624_v10  ;;  %v1631_v57 = vmul.f32 %v5451_v16, %v1630_v44  ;;  %v1654_v51 = vand.u32 2147483648, %v4840_v23 }
 0x191   : > { %7365 = vst [vmem:[#allocation115_spill] sm:$0xff] %v5558_v43  ;;  %vm1619_vm8 = vweird.f32 %v5446_v28  ;;  %vm5571_vm3 = vcmp.eq.f32.partialorder %v1637_v60, 8.507059e+37  ;;  %v1640_v2 = vor.u32 1.1754944e-38, %v1639_v48  ;;  %v1660_v20 = vsub.f32 1.0, %v1659_v35 }
 0x192   : > { %v1674_v18 = vmul.f32 %v5537_v47, %v4846_v38  ;;  %v5577_v45 = vpop.eup %2746  ;;  %v5581_v10 = vsel %vm5485_vm5, %v1595_v34, %v1591_v1  ;;  %vm1634_vm2 = vweird.f32 %v5451_v16  ;;  %vm1648_vm9 = vweird.f32 %v4840_v23  ;;  %vm5603_vm11 = vmor %vm1618_vm12, %vm1619_vm8 }
 0x193   : > { %7370 = vst [vmem:[#allocation116_spill] sm:$0xff] %v5581_v10  ;;  %v1667_v52 = vand.u32 2147483647, %v4842_v25  ;;  %v5586_v32 = vpop.eup %2748  ;;  %v1606_v44 = vsel %vm5564_vm1, %v5408_v11, %v1602_v53  ;;  %v1617_v60 = vadd.f32 %v5446_v28, %v1616_v14  ;;  %v1646_v15 = vmul.f32 %v5474_v36, %v1645_v27  ;;  %vm5612_vm5 = vmor %vm1633_vm14, %vm1634_vm2 }
 0x194   : > { %vm5593_vm10 = vcmp.eq.f32.partialorder %v1652_v7, 8.507059e+37  ;;  %v5597_v34 = vpop.eup %2750  ;;  %v1632_v11 = vadd.f32 %v5451_v16, %v1631_v57  ;;  %v1655_v35 = vor.u32 1.1754944e-38, %v1654_v51  ;;  %vm1663_vm13 = vweird.f32 %v4842_v25 }
 0x195   : > { %v1669_v1 = vand.u32 2147483648, %v4842_v25  ;;  %vm1649_vm7 = vweird.f32 %v5474_v36  ;;  %v1661_v61 = vmul.f32 %v5498_v59, %v1660_v20  ;;  %v1675_v14 = vsub.f32 1.0, %v1674_v18 }
 0x196   : > { %v1689_v27 = vmul.f32 %v5577_v45, %v4848_v30  ;;  %v5622_v7 = vsel %vm5521_vm15, %v1610_v22, %v1606_v44  ;;  %vm5624_vm12 = vcmp.eq.f32.partialorder %v1667_v52, 8.507059e+37  ;;  %v1682_v37 = vand.u32 2147483647, %v4846_v38  ;;  %vm5643_vm15 = vmor %vm1648_vm9, %vm1649_vm7 }
 0x197   : > { %7377 = vst [vmem:[#allocation117_spill] sm:$0xff] %v5622_v7  ;;  %v1704_v57 = vmul.f32 %v5586_v32, %v4850_v63  ;;  %v1621_v51 = vsel %vm5603_vm11, %v5446_v28, %v1617_v60  ;;  %v1647_v20 = vadd.f32 %v5474_v36, %v1646_v15  ;;  %vm1664_vm6 = vweird.f32 %v5498_v59 }
 0x198   : > { %v1719_v22 = vmul.f32 %v5597_v34, %v4855_v31  ;;  %v1636_v13 = vsel %vm5612_vm5, %v5451_v16, %v1632_v11  ;;  %v1670_v52 = vor.u32 1.1754944e-38, %v1669_v1  ;;  %vm1678_vm4 = vweird.f32 %v4846_v38  ;;  %vm5658_vm14 = vmor %vm1663_vm13, %vm1664_vm6 }
 0x199   : > { %v1684_v28 = vand.u32 2147483648, %v4846_v38  ;;  %v1662_v44 = vadd.f32 %v5498_v59, %v1661_v61  ;;  %v1676_v60 = vmul.f32 %v5537_v47, %v1675_v14  ;;  %v1690_v15 = vsub.f32 1.0, %v1689_v27 }
 0x19a   : > { %v1697_v48 = vand.u32 2147483647, %v4848_v30  ;;  %v5654_v16 = vsel %vm5551_vm0, %v1625_v33, %v1621_v51  ;;  %vm5662_vm1 = vcmp.eq.f32.partialorder %v1682_v37, 8.507059e+37  ;;  %v1699_v1 = vand.u32 2147483648, %v4848_v30 }
 0x19b   : > { %7382 = vst [vmem:[#allocation118_spill] sm:$0xff] %v5654_v16  ;;  %v1705_v53 = vsub.f32 1.0, %v1704_v57  ;;  %v1651_v61 = vsel %vm5643_vm15, %v5474_v36, %v1647_v20  ;;  %vm1679_vm0 = vweird.f32 %v5537_v47  ;;  %v1712_v46 = vand.u32 2147483647, %v4850_v63 }
 0x19c   : > { %v1720_v25 = vsub.f32 1.0, %v1719_v22  ;;  %v5674_v33 = vsel %vm5571_vm3, %v1640_v2, %v1636_v13  ;;  %v1685_v14 = vor.u32 1.1754944e-38, %v1684_v28  ;;  %vm1693_vm8 = vweird.f32 %v4848_v30  ;;  %vm5694_vm3 = vmor %vm1678_vm4, %vm1679_vm0 }
 0x19d   : > { %7387 = vst [vmem:[#allocation119_spill] sm:$0xff] %v5674_v33  ;;  %vm1708_vm2 = vweird.f32 %v4850_v63  ;;  %v1666_v27 = vsel %vm5658_vm14, %v5498_v59, %v1662_v44  ;;  %v1677_v36 = vadd.f32 %v5537_v47, %v1676_v60  ;;  %v1691_v37 = vmul.f32 %v5577_v45, %v1690_v15 }
 0x19e   : > { %vm5683_vm9 = vcmp.eq.f32.partialorder %v1697_v48, 8.507059e+37  ;;  %v1714_v41 = vand.u32 2147483648, %v4850_v63  ;;  %v5690_v2 = vsel %vm5593_vm10, %v1655_v35, %v1651_v61  ;;  %v1706_v59 = vmul.f32 %v5586_v32, %v1705_v53 }
 0x19f   : > { %7390 = vst [vmem:[#allocation120_spill] sm:$0xff] %v5690_v2  ;;  %v1727_v20 = vand.u32 2147483647, %v4855_v31  ;;  %v1729_v22 = vand.u32 2147483648, %v4855_v31  ;;  %vm1694_vm11 = vweird.f32 %v5577_v45  ;;  %v1700_v13 = vor.u32 1.1754944e-38, %v1699_v1 }
 0x1a0   : > { %vm5702_vm13 = vcmp.eq.f32.partialorder %v1712_v46, 8.507059e+37  ;;  %v1721_v6 = vmul.f32 %v5597_v34, %v1720_v25  ;;  %v5709_v38 = vsel %vm5624_vm12, %v1670_v52, %v1666_v27  ;;  %vm1709_vm10 = vweird.f32 %v5586_v32  ;;  %vm5721_vm6 = vmor %vm1693_vm8, %vm1694_vm11 }
 0x1a1   : > { %7395 = vst [vmem:[#allocation121_spill] sm:$0xff] %v5709_v38  ;;  %vm1723_vm5 = vweird.f32 %v4855_v31  ;;  %v1733_v35 = vmul.f32 1.0614054, %v5003_v49  ;;  %v1681_v28 = vsel %vm5694_vm3, %v5537_v47, %v1677_v36  ;;  %v1692_v44 = vadd.f32 %v5577_v45, %v1691_v37  ;;  %vm5733_vm15 = vmor %vm1708_vm2, %vm1709_vm10 }
 0x1a2   : > { %v1715_v60 = vor.u32 1.1754944e-38, %v1714_v41  ;;  %vm1724_vm7 = vweird.f32 %v5597_v34  ;;  %v1707_v52 = vadd.f32 %v5586_v32, %v1706_v59  ;;  %vm5726_vm12 = vcmp.eq.f32.partialorder %v1727_v20, 8.507059e+37 }
 0x1a3   : > { %v1730_v48 = vor.u32 1.1754944e-38, %v1729_v22  ;;  %v1734_v47 = vmul.f32 1.0614054, %v5008_v50  ;;  %v1722_v30 = vadd.f32 %v5597_v34, %v1721_v6  ;;  %v1735_v1 = vmul.f32 1.0614054, %v5012_v58  ;;  %vm5747_vm4 = vmor %vm1723_vm5, %vm1724_vm7 }
 0x1a4   : > { %v1736_v53 = vmul.f32 1.0614054, %v5048_v21  ;;  %v1737_v61 = vmul.f32 1.0614054, %v5052_v26  ;;  %v5743_v46 = vsel %vm5662_vm1, %v1685_v14, %v1681_v28  ;;  %v1738_v25 = vmul.f32 1.0614054, %v5066_v17 }
 0x1a5   : > { %7402 = vst [vmem:[#allocation122_spill] sm:$0xff] %v5743_v46  ;;  %v1739_v27 = vmul.f32 1.0614054, %v5080_v29  ;;  %v1740_v36 = vmul.f32 1.0614054, %v5162_v12  ;;  %v1696_v37 = vsel %vm5721_vm6, %v5577_v45, %v1692_v44  ;;  %v1711_v41 = vsel %vm5733_vm15, %v5586_v32, %v1707_v52 }
 0x1a6   : > { %v1741_v11 = vmul.f32 1.0614054, %v5212_v9  ;;  %v1742_v14 = vmul.f32 1.0614054, %v5217_v39  ;;  %v1743_v31 = vmul.f32 1.0614054, %v5234_v0  ;;  %v1726_v45 = vsel %vm5747_vm4, %v5597_v34, %v1722_v30 }
 0x1a7   : > { %v1744_v51 = vmul.f32 1.0614054, %v5259_v19  ;;  %v1745_v59 = vmul.f32 1.0614054, %v5272_v42  ;;  %v1746_v20 = vmul.f32 1.0614054, %v5292_v4  ;;  %v5774_v44 = vsel %vm5683_vm9, %v1700_v13, %v1696_v37 }
 0x1a8   : > { %v1747_v22 = vmul.f32 1.0614054, %v5368_v55  ;;  %v1748_v6 = vmul.f32 1.0614054, %v5374_v54  ;;  %v1749_v28 = vmul.f32 1.0614054, %v5412_v62  ;;  %v5781_v23 = vsel %vm5702_vm13, %v1715_v60, %v1711_v41 }
 0x1a9   : > { %7405 = vst [vmem:[#allocation123_spill] sm:$0xff] %v5774_v44  ;;  %v1750_v32 = vmul.f32 1.0614054, %v5430_v5  ;;  %v1751_v56 = vmul.f32 1.0614054, %v5455_v40  ;;  %v5788_v57 = vsel %vm5726_vm12, %v1730_v48, %v1726_v45 }
 0x1aa   : > { %v1752_v52 = vmul.f32 1.0614054, %v5494_v8  ;;  %7406 = vst [vmem:[#allocation124_spill] sm:$0xff] %v5781_v23  ;;  %v1753_v34 = vmul.f32 1.0614054, %v5542_v3 }
 0x1ab   : > { %v1754_v30 = vmul.f32 1.0614054, %v5558_v43  ;;  %v1755_v63 = vmul.f32 1.0614054, %v5581_v10  ;;  %7407 = vst [vmem:[#allocation125_spill] sm:$0xff] %v5788_v57 }
 0x1ac   : > { %v1756_v13 = vmul.f32 1.0614054, %v5622_v7  ;;  %v1757_v37 = vmul.f32 1.0614054, %v5654_v16  ;;  %v1758_v24 = vmul.f32 1.0614054, %v5674_v33 }
 0x1ad   : > { %v1759_v18 = vmul.f32 1.0614054, %v5690_v2  ;;  %v1760_v60 = vmul.f32 1.0614054, %v5709_v38  ;;  %v1765_v41 = vadd.f32 -1.4531521, %v1733_v35 }
 0x1ae   : > { %v1761_v3 = vmul.f32 1.0614054, %v5743_v46  ;;  %v1762_v43 = vmul.f32 1.0614054, %v5774_v44  ;;  %v1766_v10 = vadd.f32 -1.4531521, %v1734_v47 }
 0x1af   : > { %v1763_v15 = vmul.f32 1.0614054, %v5781_v23  ;;  %v1764_v48 = vmul.f32 1.0614054, %v5788_v57  ;;  %v1767_v45 = vadd.f32 -1.4531521, %v1735_v1  ;;  %v1797_v2 = vmul.f32 %v1765_v41, %v5003_v49 }
 0x1b0   : > { %v1768_v7 = vadd.f32 -1.4531521, %v1736_v53  ;;  %v1769_v8 = vadd.f32 -1.4531521, %v1737_v61  ;;  %v1770_v16 = vadd.f32 -1.4531521, %v1738_v25  ;;  %v1798_v46 = vmul.f32 %v1766_v10, %v5008_v50 }
 0x1b1   : > { %v1771_v40 = vadd.f32 -1.4531521, %v1739_v27  ;;  %v1772_v33 = vadd.f32 -1.4531521, %v1740_v36  ;;  %v1773_v5 = vadd.f32 -1.4531521, %v1741_v11  ;;  %v1799_v23 = vmul.f32 %v1767_v45, %v5012_v58 }
 0x1b2   : > { %v1774_v38 = vadd.f32 -1.4531521, %v1742_v14  ;;  %v1775_v35 = vadd.f32 -1.4531521, %v1743_v31  ;;  %v1776_v62 = vadd.f32 -1.4531521, %v1744_v51  ;;  %v1800_v61 = vmul.f32 %v1768_v7, %v5048_v21 }
 0x1b3   : > { %v1777_v44 = vadd.f32 -1.4531521, %v1745_v59  ;;  %v1778_v47 = vadd.f32 -1.4531521, %v1746_v20  ;;  %v1779_v54 = vadd.f32 -1.4531521, %v1747_v22  ;;  %v1801_v11 = vmul.f32 %v1769_v8, %v5052_v26 }
 0x1b4   : > { %v1780_v57 = vadd.f32 -1.4531521, %v1748_v6  ;;  %v1781_v1 = vadd.f32 -1.4531521, %v1749_v28  ;;  %v1782_v53 = vadd.f32 -1.4531521, %v1750_v32  ;;  %v1802_v10 = vmul.f32 %v1770_v16, %v5066_v17 }
 0x1b5   : > { %v1783_v25 = vadd.f32 -1.4531521, %v1751_v56  ;;  %v1784_v27 = vadd.f32 -1.4531521, %v1752_v52  ;;  %v1785_v36 = vadd.f32 -1.4531521, %v1753_v34  ;;  %v1803_v41 = vmul.f32 %v1771_v40, %v5080_v29 }
 0x1b6   : > { %v1786_v14 = vadd.f32 -1.4531521, %v1754_v30  ;;  %v1787_v31 = vadd.f32 -1.4531521, %v1755_v63  ;;  %v1788_v51 = vadd.f32 -1.4531521, %v1756_v13  ;;  %v1804_v7 = vmul.f32 %v1772_v33, %v5162_v12 }
 0x1b7   : > { %v1789_v59 = vadd.f32 -1.4531521, %v1757_v37  ;;  %v1790_v20 = vadd.f32 -1.4531521, %v1758_v24  ;;  %v1791_v22 = vadd.f32 -1.4531521, %v1759_v18  ;;  %v1805_v34 = vmul.f32 %v1773_v5, %v5212_v9 }
 0x1b8   : > { %v1792_v6 = vadd.f32 -1.4531521, %v1760_v60  ;;  %v1793_v28 = vadd.f32 -1.4531521, %v1761_v3  ;;  %v1794_v32 = vadd.f32 -1.4531521, %v1762_v43  ;;  %v1806_v8 = vmul.f32 %v1774_v38, %v5217_v39 }
 0x1b9   : > { %v1795_v56 = vadd.f32 -1.4531521, %v1763_v15  ;;  %v1796_v52 = vadd.f32 -1.4531521, %v1764_v48  ;;  %v1807_v30 = vmul.f32 %v1775_v35, %v5234_v0  ;;  %v1808_v16 = vmul.f32 %v1776_v62, %v5259_v19  ;;  %v7408_v3 = vld [vmem:[#allocation109_spill] sm:$0xff]  ;;  %v7409_v13 = vld [vmem:[#allocation110_spill] sm:$0xff] }
 0x1ba   : > { %v1809_v24 = vmul.f32 %v1777_v44, %v5272_v42  ;;  %v1810_v63 = vmul.f32 %v1778_v47, %v5292_v4  ;;  %v1811_v40 = vmul.f32 %v1779_v54, %v5368_v55  ;;  %v1812_v43 = vmul.f32 %v1780_v57, %v7408_v3  ;;  %v7410_v37 = vld [vmem:[#allocation111_spill] sm:$0xff]  ;;  %v7411_v60 = vld [vmem:[#allocation112_spill] sm:$0xff]  ;;  %v7412_v15 = vld [vmem:[#allocation113_spill] sm:$0xff] }
 0x1bb   : > { %v1813_v33 = vmul.f32 %v1781_v1, %v7409_v13  ;;  %v1814_v18 = vmul.f32 %v1782_v53, %v7410_v37  ;;  %v1815_v5 = vmul.f32 %v1783_v25, %v7411_v60  ;;  %v1816_v38 = vmul.f32 %v1784_v27, %v7412_v15  ;;  %v7413_v48 = vld [vmem:[#allocation114_spill] sm:$0xff]  ;;  %v7414_v35 = vld [vmem:[#allocation115_spill] sm:$0xff]  ;;  %v7415_v19 = vld [vmem:[#allocation116_spill] sm:$0xff] }
 0x1bc   : > { %v1817_v45 = vmul.f32 %v1785_v36, %v7413_v48  ;;  %v1818_v62 = vmul.f32 %v1786_v14, %v7414_v35  ;;  %v1819_v44 = vmul.f32 %v1787_v31, %v7415_v19  ;;  %v7416_v42 = vld [vmem:[#allocation117_spill] sm:$0xff]  ;;  %v7417_v4 = vld [vmem:[#allocation118_spill] sm:$0xff]  ;;  %v1829_v55 = vadd.f32 1.4214138, %v1797_v2  ;;  %v7418_v57 = vld [vmem:[#allocation119_spill] sm:$0xff] }
 0x1bd   : > { %v1820_v47 = vmul.f32 %v1788_v51, %v7416_v42  ;;  %v1821_v54 = vmul.f32 %v1789_v59, %v7417_v4  ;;  %v1822_v3 = vmul.f32 %v1790_v20, %v7418_v57  ;;  %v7419_v1 = vld [vmem:[#allocation120_spill] sm:$0xff]  ;;  %v7420_v53 = vld [vmem:[#allocation121_spill] sm:$0xff]  ;;  %v1830_v25 = vadd.f32 1.4214138, %v1798_v46  ;;  %v7421_v60 = vld [vmem:[#allocation122_spill] sm:$0xff] }
 0x1be   : > { %v1823_v13 = vmul.f32 %v1791_v22, %v7419_v1  ;;  %v1824_v37 = vmul.f32 %v1792_v6, %v7420_v53  ;;  %v1825_v27 = vmul.f32 %v1793_v28, %v7421_v60  ;;  %v7422_v15 = vld [vmem:[#allocation123_spill] sm:$0xff]  ;;  %v7423_v48 = vld [vmem:[#allocation124_spill] sm:$0xff]  ;;  %v1831_v35 = vadd.f32 1.4214138, %v1799_v23  ;;  %v7424_v31 = vld [vmem:[#allocation125_spill] sm:$0xff] }
 0x1bf   : > { %v1826_v36 = vmul.f32 %v1794_v32, %v7422_v15  ;;  %v1827_v14 = vmul.f32 %v1795_v56, %v7423_v48  ;;  %v1828_v19 = vmul.f32 %v1796_v52, %v7424_v31  ;;  %v1832_v51 = vadd.f32 1.4214138, %v1800_v61 }
 0x1c0   : > { %v1833_v42 = vadd.f32 1.4214138, %v1801_v11  ;;  %v1834_v59 = vadd.f32 1.4214138, %v1802_v10  ;;  %v1835_v2 = vadd.f32 1.4214138, %v1803_v41  ;;  %v1861_v22 = vmul.f32 %v1829_v55, %v5003_v49 }
 0x1c1   : > { %v1836_v4 = vadd.f32 1.4214138, %v1804_v7  ;;  %v1837_v20 = vadd.f32 1.4214138, %v1805_v34  ;;  %v1838_v1 = vadd.f32 1.4214138, %v1806_v8  ;;  %v1862_v28 = vmul.f32 %v1830_v25, %v5008_v50 }
 0x1c2   : > { %v1839_v6 = vadd.f32 1.4214138, %v1807_v30  ;;  %v1840_v46 = vadd.f32 1.4214138, %v1808_v16  ;;  %v1841_v60 = vadd.f32 1.4214138, %v1809_v24  ;;  %v1863_v23 = vmul.f32 %v1831_v35, %v5012_v58 }
 0x1c3   : > { %v1842_v32 = vadd.f32 1.4214138, %v1810_v63  ;;  %v1843_v15 = vadd.f32 1.4214138, %v1811_v40  ;;  %v1844_v56 = vadd.f32 1.4214138, %v1812_v43  ;;  %v1864_v11 = vmul.f32 %v1832_v51, %v5048_v21 }
 0x1c4   : > { %v1845_v52 = vadd.f32 1.4214138, %v1813_v33  ;;  %v1846_v61 = vadd.f32 1.4214138, %v1814_v18  ;;  %v1847_v10 = vadd.f32 1.4214138, %v1815_v5  ;;  %v1865_v55 = vmul.f32 %v1833_v42, %v5052_v26 }
 0x1c5   : > { %v1848_v41 = vadd.f32 1.4214138, %v1816_v38  ;;  %v1849_v7 = vadd.f32 1.4214138, %v1817_v45  ;;  %v1850_v34 = vadd.f32 1.4214138, %v1818_v62  ;;  %v1866_v16 = vmul.f32 %v1834_v59, %v5066_v17 }
 0x1c6   : > { %v1851_v8 = vadd.f32 1.4214138, %v1819_v44  ;;  %v1852_v30 = vadd.f32 1.4214138, %v1820_v47  ;;  %v1853_v24 = vadd.f32 1.4214138, %v1821_v54  ;;  %v1867_v35 = vmul.f32 %v1835_v2, %v5080_v29 }
 0x1c7   : > { %v1854_v63 = vadd.f32 1.4214138, %v1822_v3  ;;  %v1855_v40 = vadd.f32 1.4214138, %v1823_v13  ;;  %v1856_v43 = vadd.f32 1.4214138, %v1824_v37  ;;  %v1868_v25 = vmul.f32 %v1836_v4, %v5162_v12 }
 0x1c8   : > { %v1857_v33 = vadd.f32 1.4214138, %v1825_v27  ;;  %v1858_v18 = vadd.f32 1.4214138, %v1826_v36  ;;  %v1859_v5 = vadd.f32 1.4214138, %v1827_v14  ;;  %v1869_v45 = vmul.f32 %v1837_v20, %v5212_v9 }
 0x1c9   : > { %v1860_v38 = vadd.f32 1.4214138, %v1828_v19  ;;  %v1870_v42 = vmul.f32 %v1838_v1, %v5217_v39  ;;  %v1871_v62 = vmul.f32 %v1839_v6, %v5234_v0  ;;  %v7425_v44 = vld [vmem:[#allocation105_spill] sm:$0xff]  ;;  %v7426_v54 = vld [vmem:[#allocation106_spill] sm:$0xff]  ;;  %v7427_v13 = vld [vmem:[#allocation107_spill] sm:$0xff] }
 0x1ca   : > { %v1872_v47 = vmul.f32 %v1840_v46, %v7425_v44  ;;  %v1873_v3 = vmul.f32 %v1841_v60, %v7426_v54  ;;  %v1874_v51 = vmul.f32 %v1842_v32, %v7427_v13  ;;  %v7428_v59 = vld [vmem:[#allocation108_spill] sm:$0xff]  ;;  %v7429_v27 = vld [vmem:[#allocation109_spill] sm:$0xff]  ;;  %v7430_v2 = vld [vmem:[#allocation110_spill] sm:$0xff] }
 0x1cb   : > { %v1875_v37 = vmul.f32 %v1843_v15, %v7428_v59  ;;  %v1876_v36 = vmul.f32 %v1844_v56, %v7429_v27  ;;  %v1877_v4 = vmul.f32 %v1845_v52, %v7430_v2  ;;  %v7431_v14 = vld [vmem:[#allocation111_spill] sm:$0xff]  ;;  %v7432_v12 = vld [vmem:[#allocation112_spill] sm:$0xff]  ;;  %v7433_v9 = vld [vmem:[#allocation113_spill] sm:$0xff]  ;;  %v1893_v59 = vadd.f32 -0.28449672, %v1861_v22 }
 0x1cc   : > { %v1878_v19 = vmul.f32 %v1846_v61, %v7431_v14  ;;  %v1879_v20 = vmul.f32 %v1847_v10, %v7432_v12  ;;  %v1880_v1 = vmul.f32 %v1848_v41, %v7433_v9  ;;  %v7434_v39 = vld [vmem:[#allocation114_spill] sm:$0xff]  ;;  %v7435_v0 = vld [vmem:[#allocation115_spill] sm:$0xff]  ;;  %v7436_v44 = vld [vmem:[#allocation116_spill] sm:$0xff]  ;;  %v1886_v56 = vmul.f32 %v1854_v63, %v7418_v57 }
 0x1cd   : > { %v1881_v6 = vmul.f32 %v1849_v7, %v7434_v39  ;;  %v1882_v46 = vmul.f32 %v1850_v34, %v7435_v0  ;;  %v1883_v60 = vmul.f32 %v1851_v8, %v7436_v44  ;;  %v7437_v54 = vld [vmem:[#allocation117_spill] sm:$0xff]  ;;  %v7438_v13 = vld [vmem:[#allocation118_spill] sm:$0xff]  ;;  %v7439_v52 = vld [vmem:[#allocation120_spill] sm:$0xff]  ;;  %v1888_v61 = vmul.f32 %v1856_v43, %v7420_v53 }
 0x1ce   : > { %v1884_v32 = vmul.f32 %v1852_v30, %v7437_v54  ;;  %v1885_v15 = vmul.f32 %v1853_v24, %v7438_v13  ;;  %v1887_v2 = vmul.f32 %v1855_v40, %v7439_v52  ;;  %v1894_v10 = vadd.f32 -0.28449672, %v1862_v28  ;;  %v7440_v12 = vld [vmem:[#allocation122_spill] sm:$0xff]  ;;  %v7441_v9 = vld [vmem:[#allocation123_spill] sm:$0xff] }
 0x1cf   : > { %v1889_v41 = vmul.f32 %v1857_v33, %v7440_v12  ;;  %v1890_v7 = vmul.f32 %v1858_v18, %v7441_v9  ;;  %v1891_v34 = vmul.f32 %v1859_v5, %v7423_v48  ;;  %v1895_v0 = vadd.f32 -0.28449672, %v1863_v23 }
 0x1d0   : > { %v1892_v8 = vmul.f32 %v1860_v38, %v7424_v31  ;;  %v1896_v30 = vadd.f32 -0.28449672, %v1864_v11  ;;  %v1897_v54 = vadd.f32 -0.28449672, %v1865_v55  ;;  %v1898_v24 = vadd.f32 -0.28449672, %v1866_v16 }
 0x1d1   : > { %v1899_v22 = vadd.f32 -0.28449672, %v1867_v35  ;;  %v1900_v13 = vadd.f32 -0.28449672, %v1868_v25  ;;  %v1901_v63 = vadd.f32 -0.28449672, %v1869_v45  ;;  %v1925_v40 = vmul.f32 %v1893_v59, %v5003_v49 }
 0x1d2   : > { %v1902_v52 = vadd.f32 -0.28449672, %v1870_v42  ;;  %v1903_v43 = vadd.f32 -0.28449672, %v1871_v62  ;;  %v1904_v28 = vadd.f32 -0.28449672, %v1872_v47  ;;  %v1926_v33 = vmul.f32 %v1894_v10, %v5008_v50 }
 0x1d3   : > { %v1905_v12 = vadd.f32 -0.28449672, %v1873_v3  ;;  %v1906_v18 = vadd.f32 -0.28449672, %v1874_v51  ;;  %v1907_v9 = vadd.f32 -0.28449672, %v1875_v37  ;;  %v1927_v23 = vmul.f32 %v1895_v0, %v5012_v58 }
 0x1d4   : > { %v1908_v5 = vadd.f32 -0.28449672, %v1876_v36  ;;  %v1909_v38 = vadd.f32 -0.28449672, %v1877_v4  ;;  %v1910_v11 = vadd.f32 -0.28449672, %v1878_v19  ;;  %v1928_v55 = vmul.f32 %v1896_v30, %v5048_v21 }
 0x1d5   : > { %v1911_v16 = vadd.f32 -0.28449672, %v1879_v20  ;;  %v1912_v35 = vadd.f32 -0.28449672, %v1880_v1  ;;  %v1913_v25 = vadd.f32 -0.28449672, %v1881_v6  ;;  %v1929_v45 = vmul.f32 %v1897_v54, %v5052_v26 }
 0x1d6   : > { %v1914_v42 = vadd.f32 -0.28449672, %v1882_v46  ;;  %v1915_v62 = vadd.f32 -0.28449672, %v1883_v60  ;;  %v1916_v47 = vadd.f32 -0.28449672, %v1884_v32  ;;  %v1930_v59 = vmul.f32 %v1898_v24, %v5066_v17 }
 0x1d7   : > { %v1917_v3 = vadd.f32 -0.28449672, %v1885_v15  ;;  %v1918_v51 = vadd.f32 -0.28449672, %v1886_v56  ;;  %v1919_v37 = vadd.f32 -0.28449672, %v1887_v2  ;;  %v1931_v0 = vmul.f32 %v1899_v22, %v5080_v29 }
 0x1d8   : > { %v1920_v36 = vadd.f32 -0.28449672, %v1888_v61  ;;  %v1921_v4 = vadd.f32 -0.28449672, %v1889_v41  ;;  %v1922_v19 = vadd.f32 -0.28449672, %v1890_v7  ;;  %v1940_v41 = vmul.f32 %v1908_v5, %v7429_v27 }
 0x1d9   : > { %v7442_v10 = vld [vmem:[#allocation48_spill] sm:$0xff]  ;;  %v1923_v20 = vadd.f32 -0.28449672, %v1891_v34  ;;  %v1924_v1 = vadd.f32 -0.28449672, %v1892_v8  ;;  %v7443_v6 = vld [vmem:[#allocation49_spill] sm:$0xff]  ;;  %v1942_v34 = vmul.f32 %v1910_v11, %v7431_v14  ;;  %v1950_v5 = vmul.f32 %v1918_v51, %v7418_v57 }
 0x1da   : > { %v1932_v30 = vmul.f32 %v1900_v13, %v7442_v10  ;;  %v1933_v21 = vmul.f32 %v1901_v63, %v7443_v6  ;;  %v7444_v54 = vld [vmem:[#allocation103_spill] sm:$0xff]  ;;  %v7445_v60 = vld [vmem:[#allocation104_spill] sm:$0xff]  ;;  %v7446_v26 = vld [vmem:[#allocation105_spill] sm:$0xff]  ;;  %v1952_v11 = vmul.f32 %v1920_v36, %v7420_v53 }
 0x1db   : > { %v1934_v46 = vmul.f32 %v1902_v52, %v7444_v54  ;;  %v1935_v32 = vmul.f32 %v1903_v43, %v7445_v60  ;;  %v1936_v24 = vmul.f32 %v1904_v28, %v7446_v26  ;;  %v7447_v15 = vld [vmem:[#allocation106_spill] sm:$0xff]  ;;  %v7448_v2 = vld [vmem:[#allocation107_spill] sm:$0xff]  ;;  %v7449_v22 = vld [vmem:[#allocation108_spill] sm:$0xff]  ;;  %v1945_v43 = vmul.f32 %v1913_v25, %v7434_v39 }
 0x1dc   : > { %v1937_v56 = vmul.f32 %v1905_v12, %v7447_v15  ;;  %v1938_v17 = vmul.f32 %v1906_v18, %v7448_v2  ;;  %v1939_v61 = vmul.f32 %v1907_v9, %v7449_v22  ;;  %v7450_v7 = vld [vmem:[#allocation110_spill] sm:$0xff]  ;;  %v7451_v8 = vld [vmem:[#allocation112_spill] sm:$0xff]  ;;  %v7452_v6 = vld [vmem:[#allocation113_spill] sm:$0xff]  ;;  %v1947_v12 = vmul.f32 %v1915_v62, %v7436_v44 }
 0x1dd   : > { %v1941_v13 = vmul.f32 %v1909_v38, %v7450_v7  ;;  %v1943_v63 = vmul.f32 %v1911_v16, %v7451_v8  ;;  %v1944_v52 = vmul.f32 %v1912_v35, %v7452_v6  ;;  %v7453_v60 = vld [vmem:[#allocation115_spill] sm:$0xff]  ;;  %v7454_v15 = vld [vmem:[#allocation117_spill] sm:$0xff]  ;;  %v7455_v2 = vld [vmem:[#allocation118_spill] sm:$0xff]  ;;  %v1957_v22 = vadd.f32 0.2548296, %v1925_v40 }
 0x1de   : > { %v1946_v28 = vmul.f32 %v1914_v42, %v7453_v60  ;;  %v1948_v18 = vmul.f32 %v1916_v47, %v7454_v15  ;;  %v1949_v9 = vmul.f32 %v1917_v3, %v7455_v2  ;;  %v7456_v38 = vld [vmem:[#allocation120_spill] sm:$0xff]  ;;  %v1958_v16 = vadd.f32 0.2548296, %v1926_v33  ;;  %v7457_v8 = vld [vmem:[#allocation122_spill] sm:$0xff]  ;;  %v7458_v6 = vld [vmem:[#allocation123_spill] sm:$0xff] }
 0x1df   : > { %v1951_v7 = vmul.f32 %v1919_v37, %v7456_v38  ;;  %v1953_v35 = vmul.f32 %v1921_v4, %v7457_v8  ;;  %v1954_v25 = vmul.f32 %v1922_v19, %v7458_v6  ;;  %v1955_v42 = vmul.f32 %v1923_v20, %v7423_v48 }
 0x1e0   : > { %v1959_v60 = vadd.f32 0.2548296, %v1927_v23  ;;  %v1956_v62 = vmul.f32 %v1924_v1, %v7424_v31  ;;  %v1960_v47 = vadd.f32 0.2548296, %v1928_v55  ;;  %v1961_v15 = vadd.f32 0.2548296, %v1929_v45 }
 0x1e1   : > { %v1962_v3 = vadd.f32 0.2548296, %v1930_v59  ;;  %v1963_v40 = vadd.f32 0.2548296, %v1931_v0  ;;  %v1964_v2 = vadd.f32 0.2548296, %v1932_v30  ;;  %v5896_v37 = vmul.f32 %v1957_v22, %v5003_v49 }
 0x1e2   : > { %v1965_v51 = vadd.f32 0.2548296, %v1933_v21  ;;  %v1966_v36 = vadd.f32 0.2548296, %v1934_v46  ;;  %v1967_v33 = vadd.f32 0.2548296, %v1935_v32  ;;  %v5899_v4 = vmul.f32 %v1958_v16, %v5008_v50 }
 0x1e3   : > { %v1968_v53 = vadd.f32 0.2548296, %v1936_v24  ;;  %v1969_v19 = vadd.f32 0.2548296, %v1937_v56  ;;  %v1970_v20 = vadd.f32 0.2548296, %v1938_v17  ;;  %v5902_v1 = vmul.f32 %v1959_v60, %v5012_v58 }
 0x1e4   : > { %v1971_v23 = vadd.f32 0.2548296, %v1939_v61  ;;  %v1972_v55 = vadd.f32 0.2548296, %v1940_v41  ;;  %v1973_v45 = vadd.f32 0.2548296, %v1941_v13  ;;  %v5914_v13 = vmul.f32 %v1963_v40, %v5080_v29 }
 0x1e5   : > { %v1974_v59 = vadd.f32 0.2548296, %v1942_v34  ;;  %v7459_v0 = vld [vmem:[#allocation45_spill] sm:$0xff]  ;;  %v1975_v49 = vadd.f32 0.2548296, %v1943_v63  ;;  %v7460_v32 = vld [vmem:[#allocation46_spill] sm:$0xff]  ;;  %v5933_v29 = vmul.f32 %v1968_v53, %v7446_v26 }
 0x1e6   : > { %v5905_v21 = vmul.f32 %v1960_v47, %v7459_v0  ;;  %v1976_v30 = vadd.f32 0.2548296, %v1944_v52  ;;  %v1977_v46 = vadd.f32 0.2548296, %v1945_v43  ;;  %v5908_v24 = vmul.f32 %v1961_v15, %v7460_v32  ;;  %v7461_v17 = vld [vmem:[#allocation47_spill] sm:$0xff]  ;;  %v7472_v40 = vld [vmem:[#allocation110_spill] sm:$0xff] }
 0x1e7   : > { %v1978_v50 = vadd.f32 0.2548296, %v1946_v28  ;;  %v1979_v22 = vadd.f32 0.2548296, %v1947_v12  ;;  %v1980_v56 = vadd.f32 0.2548296, %v1948_v18  ;;  %v5911_v61 = vmul.f32 %v1962_v3, %v7461_v17 }
 0x1e8   : > { %v1981_v58 = vadd.f32 0.2548296, %v1949_v9  ;;  %v1982_v60 = vadd.f32 0.2548296, %v1950_v5  ;;  %v1983_v41 = vadd.f32 0.2548296, %v1951_v7  ;;  %v5917_v52 = vmul.f32 %v1964_v2, %v7442_v10 }
 0x1e9   : > { %v1984_v34 = vadd.f32 0.2548296, %v1952_v11  ;;  %v1985_v16 = vadd.f32 0.2548296, %v1953_v35  ;;  %v1986_v63 = vadd.f32 0.2548296, %v1954_v25  ;;  %v5927_v18 = vmul.f32 %v1966_v36, %v7444_v54 }
 0x1ea   : > { %v5919_v15 = vadd.f32 0.2548296, %v1955_v42  ;;  %v5921_v43 = vadd.f32 0.2548296, %v1956_v62  ;;  %v7462_v28 = vld [vmem:[#allocation49_spill] sm:$0xff]  ;;  %v7463_v7 = vld [vmem:[#allocation104_spill] sm:$0xff]  ;;  %v5946_v54 = vmul.f32 %v1972_v55, %v7429_v27  ;;  %v5953_v26 = vmul.f32 %v1974_v59, %v7431_v14 }
 0x1eb   : > { %v5924_v12 = vmul.f32 %v1965_v51, %v7462_v28  ;;  %v5930_v9 = vmul.f32 %v1967_v33, %v7463_v7  ;;  %v7464_v5 = vld [vmem:[#allocation106_spill] sm:$0xff]  ;;  %v7466_v35 = vld [vmem:[#allocation107_spill] sm:$0xff]  ;;  %v7468_v42 = vld [vmem:[#allocation108_spill] sm:$0xff]  ;;  %v5950_v51 = vmul.f32 %v1973_v45, %v7472_v40  ;;  %v5970_v17 = vmul.f32 %v1979_v22, %v7436_v44 }
 0x1ec   : > { %v5936_v11 = vmul.f32 %v1969_v19, %v7464_v5  ;;  %v7465_v10 = vld [vmem:[#allocation22_spill] sm:$0xff]  ;;  %v5940_v25 = vmul.f32 %v1970_v20, %v7466_v35  ;;  %v5943_v62 = vmul.f32 %v1971_v23, %v7468_v42  ;;  %7470 = vst [vmem:[#allocation125_spill] sm:$0xff] %v5946_v54  ;;  %v7471_v47 = vld [vmem:[#allocation23_spill] sm:$0xff]  ;;  %v7475_v53 = vld [vmem:[#allocation112_spill] sm:$0xff]  ;;  %v5963_v23 = vmul.f32 %v1977_v46, %v7434_v39 }
 0x1ed   : > { %v2021_v2 = vsub.f32 0.0, %v7465_v10  ;;  %v2022_v3 = vsub.f32 0.0, %v7471_v47  ;;  %7473 = vst [vmem:[#allocation109_spill] sm:$0xff] %v5950_v51  ;;  %v5956_v36 = vmul.f32 %v1975_v49, %v7475_v53  ;;  %v7477_v33 = vld [vmem:[#allocation24_spill] sm:$0xff]  ;;  %v7478_v20 = vld [vmem:[#allocation113_spill] sm:$0xff]  ;;  %v7481_v27 = vld [vmem:[#allocation115_spill] sm:$0xff]  ;;  %v5981_v39 = vmul.f32 %v1982_v60, %v7418_v57 }
 0x1ee   : > { %7467 = vst [vmem:[#allocation119_spill] sm:$0xff] %v5940_v25  ;;  %v2023_v19 = vsub.f32 0.0, %v7477_v33  ;;  %v5960_v0 = vmul.f32 %v1976_v30, %v7478_v20  ;;  %v5966_v55 = vmul.f32 %v1978_v50, %v7481_v27  ;;  %v7483_v32 = vld [vmem:[#allocation25_spill] sm:$0xff]  ;;  %v7487_v49 = vld [vmem:[#allocation26_spill] sm:$0xff]  ;;  %v7491_v46 = vld [vmem:[#allocation27_spill] sm:$0xff]  ;;  %v5986_v44 = vmul.f32 %v1983_v41, %v7456_v38 }
 0x1ef   : > { %7469 = vst [vmem:[#allocation124_spill] sm:$0xff] %v5943_v62  ;;  %v2024_v45 = vsub.f32 0.0, %v7483_v32  ;;  %v7485_v14 = vld [vmem:[#allocation117_spill] sm:$0xff]  ;;  %v2025_v28 = vsub.f32 0.0, %v7487_v49  ;;  %v2053_v7 = vmul.f32 %v2021_v2, %v7465_v10  ;;  %v7488_v30 = vld [vmem:[#allocation118_spill] sm:$0xff]  ;;  %v2026_v50 = vsub.f32 0.0, %v7491_v46 }
 0x1f0   : > { %7474 = vst [vmem:[#allocation111_spill] sm:$0xff] %v5953_v26  ;;  %v5973_v59 = vmul.f32 %v1980_v56, %v7485_v14  ;;  %v5978_v5 = vmul.f32 %v1981_v58, %v7488_v30  ;;  %v2054_v35 = vmul.f32 %v2022_v3, %v7471_v47  ;;  %v7493_v22 = vld [vmem:[#allocation121_spill] sm:$0xff]  ;;  %v7495_v42 = vld [vmem:[#allocation2_spill] sm:$0xff]  ;;  %v2055_v10 = vmul.f32 %v2023_v19, %v7477_v33  ;;  %v7498_v60 = vld [vmem:[#allocation3_spill] sm:$0xff] }
 0x1f1   : > { %7476 = vst [vmem:[#allocation114_spill] sm:$0xff] %v5956_v36  ;;  %v5989_v56 = vmul.f32 %v1984_v34, %v7493_v22  ;;  %v2027_v40 = vsub.f32 0.0, %v7495_v42  ;;  %v5994_v58 = vmul.f32 %v1985_v16, %v7457_v8  ;;  %v5997_v57 = vmul.f32 %v1986_v63, %v7458_v6  ;;  %v7499_v3 = vld [vmem:[#allocation30_spill] sm:$0xff]  ;;  %v7500_v41 = vld [vmem:[#allocation31_spill] sm:$0xff]  ;;  %v7504_v30 = vld [vmem:[#allocation72_spill] sm:$0xff] }
 0x1f2   : > { %7479 = vst [vmem:[#allocation116_spill] sm:$0xff] %v5960_v0  ;;  %v2028_v2 = vsub.f32 0.0, %v7498_v60  ;;  %v2056_v47 = vmul.f32 %v2024_v45, %v7483_v32  ;;  %v2029_v38 = vsub.f32 0.0, %v7499_v3  ;;  %v2030_v53 = vsub.f32 0.0, %v7500_v41  ;;  %v7501_v27 = vld [vmem:[#allocation51_spill] sm:$0xff] }
 0x1f3   : > { %7480 = vst [vmem:[#allocation48_spill] sm:$0xff] %v5963_v23  ;;  %v2057_v34 = vmul.f32 %v2025_v28, %v7487_v49  ;;  %v2085_v20 = vmul.f32 1.442695, %v2053_v7  ;;  %v2031_v14 = vsub.f32 0.0, %v7501_v27  ;;  %v7502_v33 = vld [vmem:[#allocation55_spill] sm:$0xff]  ;;  %v2058_v8 = vmul.f32 %v2026_v50, %v7491_v46  ;;  %v7507_v7 = vld [vmem:[#allocation78_spill] sm:$0xff] }
 0x1f4   : > { %7482 = vst [vmem:[#allocation103_spill] sm:$0xff] %v5966_v55  ;;  %v2032_v19 = vsub.f32 0.0, %v7502_v33  ;;  %v2087_v16 = vmul.f32 1.442695, %v2054_v35  ;;  %v7503_v6 = vld [vmem:[#allocation59_spill] sm:$0xff]  ;;  %v2034_v22 = vsub.f32 0.0, %v7504_v30  ;;  %v2059_v32 = vmul.f32 %v2027_v40, %v7495_v42 }
 0x1f5   : > { %7484 = vst [vmem:[#allocation105_spill] sm:$0xff] %v5970_v17  ;;  %v2033_v63 = vsub.f32 0.0, %v7503_v6  ;;  %v2089_v45 = vmul.f32 1.442695, %v2055_v10  ;;  %v2060_v49 = vmul.f32 %v2028_v2, %v7498_v60  ;;  %v2091_v28 = vmul.f32 1.442695, %v2056_v47 }
 0x1f6   : > { %7486 = vst [vmem:[#allocation120_spill] sm:$0xff] %v5973_v59  ;;  %2752 = vpow2.f32 %v2085_v20  ;;  %v2093_v46 = vmul.f32 1.442695, %v2057_v34  ;;  %v7508_v50 = vld [vmem:[#allocation79_spill] sm:$0xff]  ;;  %v2062_v59 = vmul.f32 %v2030_v53, %v7500_v41  ;;  %v2095_v42 = vmul.f32 1.442695, %v2058_v8 }
 0x1f7   : > { %7489 = vst [vmem:[#allocation122_spill] sm:$0xff] %v5978_v5  ;;  %v2061_v5 = vmul.f32 %v2029_v38, %v7499_v3  ;;  %v2038_v35 = vsub.f32 0.0, %v7508_v50  ;;  %2754 = vpow2.f32 %v2087_v16  ;;  %v7509_v40 = vld [vmem:[#allocation15_spill] sm:$0xff]  ;;  %v2063_v17 = vmul.f32 %v2031_v14, %v7501_v27  ;;  %v7510_v60 = vld [vmem:[#allocation16_spill] sm:$0xff] }
 0x1f8   : > { %7490 = vst [vmem:[#allocation123_spill] sm:$0xff] %v5981_v39  ;;  %v2037_v39 = vsub.f32 0.0, %v7507_v7  ;;  %v2039_v10 = vsub.f32 0.0, %v7509_v40  ;;  %2756 = vpow2.f32 %v2089_v45  ;;  %v2097_v55 = vmul.f32 1.442695, %v2059_v32  ;;  %v7511_v38 = vld [vmem:[#allocation80_spill] sm:$0xff] }
 0x1f9   : > { %7492 = vst [vmem:[#allocation45_spill] sm:$0xff] %v5986_v44  ;;  %v2040_v2 = vsub.f32 0.0, %v7510_v60  ;;  %v2064_v47 = vmul.f32 %v2032_v19, %v7502_v33  ;;  %2758 = vpow2.f32 %v2091_v28  ;;  %v2099_v3 = vmul.f32 1.442695, %v2060_v49  ;;  %v7512_v53 = vld [vmem:[#allocation84_spill] sm:$0xff]  ;;  %v7513_v32 = vld [vmem:[#allocation85_spill] sm:$0xff] }
 0x1fa   : > { %7494 = vst [vmem:[#allocation46_spill] sm:$0xff] %v5989_v56  ;;  %v7506_v56 = vld [vmem:[#allocation77_spill] sm:$0xff]  ;;  %v2041_v34 = vsub.f32 0.0, %v7511_v38  ;;  %v2065_v20 = vmul.f32 %v2033_v63, %v7503_v6  ;;  %2760 = vpow2.f32 %v2093_v46  ;;  %v2101_v41 = vmul.f32 1.442695, %v2061_v5  ;;  %v7514_v28 = vld [vmem:[#allocation32_spill] sm:$0xff] }
 0x1fb   : > { %7496 = vst [vmem:[#allocation47_spill] sm:$0xff] %v5994_v58  ;;  %v2036_v44 = vsub.f32 0.0, %v7506_v56  ;;  %v2042_v8 = vsub.f32 0.0, %v7512_v53  ;;  %v2066_v16 = vmul.f32 %v2034_v22, %v7504_v30  ;;  %2762 = vpow2.f32 %v2095_v42  ;;  %v7515_v30 = vld [vmem:[#allocation33_spill] sm:$0xff] }
 0x1fc   : > { %7497 = vst [vmem:[#allocation49_spill] sm:$0xff] %v5997_v57  ;;  %v7505_v57 = vld [vmem:[#allocation73_spill] sm:$0xff]  ;;  %v2103_v27 = vmul.f32 1.442695, %v2062_v59  ;;  %v6025_v14 = vpop.eup %2752  ;;  %v2043_v45 = vsub.f32 0.0, %v7513_v32  ;;  %2764 = vpow2.f32 %v2097_v55  ;;  %v2044_v6 = vsub.f32 0.0, %v7514_v28 }
 0x1fd   : > { %v2035_v58 = vsub.f32 0.0, %v7505_v57  ;;  %v2105_v19 = vmul.f32 1.442695, %v2063_v17  ;;  %v6029_v49 = vpop.eup %2754  ;;  %v2068_v5 = vmul.f32 %v2036_v44, %v7506_v56  ;;  %2766 = vpow2.f32 %v2099_v3  ;;  %v7516_v55 = vld [vmem:[#allocation34_spill] sm:$0xff]  ;;  %v7517_v44 = vld [vmem:[#allocation35_spill] sm:$0xff] }
 0x1fe   : > { %v2107_v63 = vmul.f32 1.442695, %v2064_v47  ;;  %v6033_v46 = vpop.eup %2756  ;;  %v2045_v59 = vsub.f32 0.0, %v7515_v30  ;;  %v2069_v22 = vmul.f32 %v2037_v39, %v7507_v7  ;;  %2768 = vpow2.f32 %v2101_v41  ;;  %v7518_v39 = vld [vmem:[#allocation36_spill] sm:$0xff] }
 0x1ff   : > { %v2067_v33 = vmul.f32 %v2035_v58, %v7505_v57  ;;  %v2109_v42 = vmul.f32 1.442695, %v2065_v20  ;;  %v6037_v23 = vpop.eup %2758  ;;  %v2046_v17 = vsub.f32 0.0, %v7516_v55  ;;  %v2070_v58 = vmul.f32 %v2038_v35, %v7508_v50  ;;  %v7519_v50 = vld [vmem:[#allocation37_spill] sm:$0xff] }
 0x200   : > { %2770 = vpow2.f32 %v2103_v27  ;;  %v2111_v57 = vmul.f32 1.442695, %v2066_v16  ;;  %v6041_v0 = vpop.eup %2760  ;;  %v2047_v56 = vsub.f32 0.0, %v7517_v44  ;;  %v2071_v47 = vmul.f32 %v2039_v10, %v7509_v40  ;;  %v7520_v40 = vld [vmem:[#allocation38_spill] sm:$0xff] }
 0x201   : > { %2772 = vpow2.f32 %v2105_v19  ;;  %v2113_v3 = vmul.f32 1.442695, %v2067_v33  ;;  %v6045_v36 = vpop.eup %2762  ;;  %v2048_v7 = vsub.f32 0.0, %v7518_v39  ;;  %v2072_v20 = vmul.f32 %v2040_v2, %v7510_v60  ;;  %v7521_v60 = vld [vmem:[#allocation28_spill] sm:$0xff] }
 0x202   : > { %2774 = vpow2.f32 %v2107_v63  ;;  %v2115_v41 = vmul.f32 1.442695, %v2068_v5  ;;  %v6049_v26 = vpop.eup %2764  ;;  %v2049_v35 = vsub.f32 0.0, %v7519_v50  ;;  %v2073_v16 = vmul.f32 %v2041_v34, %v7511_v38  ;;  %v7522_v38 = vld [vmem:[#allocation29_spill] sm:$0xff] }
 0x203   : > { %2776 = vpow2.f32 %v2109_v42  ;;  %v2117_v27 = vmul.f32 1.442695, %v2069_v22  ;;  %v6053_v51 = vpop.eup %2766  ;;  %v2050_v10 = vsub.f32 0.0, %v7520_v40  ;;  %v2074_v33 = vmul.f32 %v2042_v8, %v7512_v53 }
 0x204   : > { %2778 = vpow2.f32 %v2111_v57  ;;  %v2119_v19 = vmul.f32 1.442695, %v2070_v58  ;;  %v6057_v54 = vpop.eup %2768  ;;  %v2051_v2 = vsub.f32 0.0, %v7521_v60  ;;  %v2075_v5 = vmul.f32 %v2043_v45, %v7513_v32 }
 0x205   : > { %2780 = vpow2.f32 %v2113_v3  ;;  %v2121_v63 = vmul.f32 1.442695, %v2071_v47  ;;  %v2052_v34 = vsub.f32 0.0, %v7522_v38  ;;  %v2076_v22 = vmul.f32 %v2044_v6, %v7514_v28 }
 0x206   : > { %v6061_v62 = vpop.eup %2770  ;;  %2782 = vpow2.f32 %v2115_v41  ;;  %v2123_v42 = vmul.f32 1.442695, %v2072_v20  ;;  %v2077_v53 = vmul.f32 %v2045_v59, %v7515_v30  ;;  %v2078_v8 = vmul.f32 %v2046_v17, %v7516_v55 }
 0x207   : > { %v6065_v25 = vpop.eup %2772  ;;  %2784 = vpow2.f32 %v2117_v27  ;;  %v2125_v58 = vmul.f32 1.442695, %v2073_v16  ;;  %v2079_v32 = vmul.f32 %v2047_v56, %v7517_v44  ;;  %v2080_v45 = vmul.f32 %v2048_v7, %v7518_v39 }
 0x208   : > { %v6069_v57 = vpop.eup %2774  ;;  %2786 = vpow2.f32 %v2119_v19  ;;  %v2127_v47 = vmul.f32 1.442695, %v2074_v33  ;;  %v6075_v28 = vmul.f32 %v5919_v15, %v7423_v48  ;;  %v6079_v6 = vmul.f32 %v5921_v43, %v7424_v31 }
 0x209   : > { %v2777_v3 = vpop.eup %2776  ;;  %2788 = vpow2.f32 %v2121_v63  ;;  %v2129_v30 = vmul.f32 1.442695, %v2075_v5  ;;  %v2081_v55 = vmul.f32 %v2049_v35, %v7519_v50  ;;  %v2082_v17 = vmul.f32 %v2050_v10, %v7520_v40 }
 0x20a   : > { %v2779_v59 = vpop.eup %2778  ;;  %2790 = vpow2.f32 %v2123_v42  ;;  %v2131_v44 = vmul.f32 1.442695, %v2076_v22  ;;  %v2083_v39 = vmul.f32 %v2051_v2, %v7521_v60  ;;  %v2084_v7 = vmul.f32 %v2052_v34, %v7522_v38  ;;  %v7524_v42 = vld [vmem:[#allocation124_spill] sm:$0xff] }
 0x20b   : > { %v2781_v56 = vpop.eup %2780  ;;  %2792 = vpow2.f32 %v2125_v58  ;;  %v2133_v48 = vmul.f32 1.442695, %v2077_v53  ;;  %v2135_v31 = vmul.f32 1.442695, %v2078_v8  ;;  %v2137_v43 = vmul.f32 1.442695, %v2079_v32 }
 0x20c   : > { %v2783_v15 = vpop.eup %2782  ;;  %2794 = vpow2.f32 %v2127_v47  ;;  %v2139_v20 = vmul.f32 1.442695, %v2080_v45  ;;  %v6087_v50 = vmul.f32 %v6025_v14, %v5896_v37  ;;  %v6091_v35 = vmul.f32 %v6029_v49, %v5899_v4  ;;  %v7528_v45 = vld [vmem:[#allocation12_spill] sm:$0xff]  ;;  %v7529_v47 = vld [vmem:[#allocation114_spill] sm:$0xff] }
 0x20d   : > { %v2785_v41 = vpop.eup %2784  ;;  %2796 = vpow2.f32 %v2129_v30  ;;  %v6095_v16 = vmul.f32 %v6033_v46, %v5902_v1  ;;  %v6099_v40 = vmul.f32 %v6037_v23, %v5905_v21  ;;  %v6103_v10 = vmul.f32 %v6041_v0, %v5908_v24  ;;  %v7530_v30 = vld [vmem:[#allocation116_spill] sm:$0xff] }
 0x20e   : > { %v2787_v27 = vpop.eup %2786  ;;  %2798 = vpow2.f32 %v2131_v44  ;;  %v6107_v37 = vmul.f32 %v6045_v36, %v5911_v61  ;;  %v2141_v14 = vmul.f32 1.442695, %v2081_v55  ;;  %v2143_v49 = vmul.f32 1.442695, %v2082_v17  ;;  %v7531_v55 = vld [vmem:[#allocation48_spill] sm:$0xff] }
 0x20f   : > { %v2789_v4 = vpop.eup %2788  ;;  %2800 = vpow2.f32 %v2133_v48  ;;  %v6111_v1 = vmul.f32 %v6049_v26, %v5914_v13  ;;  %v2145_v21 = vmul.f32 1.442695, %v2083_v39  ;;  %v2147_v23 = vmul.f32 1.442695, %v2084_v7  ;;  %v7533_v39 = vld [vmem:[#allocation14_spill] sm:$0xff]  ;;  %v7534_v7 = vld [vmem:[#allocation65_spill] sm:$0xff] }
 0x210   : > { %v2791_v46 = vpop.eup %2790  ;;  %2802 = vpow2.f32 %v2135_v31  ;;  %v6115_v24 = vmul.f32 %v6053_v51, %v5917_v52  ;;  %v2181_v61 = vsub.f32 1.0, %v6087_v50  ;;  %v2182_v36 = vsub.f32 1.0, %v6091_v35  ;;  %v7554_v44 = vld [vmem:[#allocation88_spill] sm:$0xff] }
 0x211   : > { %v2793_v0 = vpop.eup %2792  ;;  %2804 = vpow2.f32 %v2137_v43  ;;  %v6810_v33 = vsub.f32 1.0, %v6095_v16  ;;  %v6811_v13 = vsub.f32 1.0, %v6099_v40  ;;  %v2185_v26 = vsub.f32 1.0, %v6103_v10  ;;  %v7551_v43 = vld [vmem:[#allocation82_spill] sm:$0xff] }
 0x212   : > { %v2795_v19 = vpop.eup %2794  ;;  %2806 = vpow2.f32 %v2139_v20  ;;  %v2186_v60 = vsub.f32 1.0, %v6107_v37  ;;  %v6125_v52 = vmul.f32 %v6057_v54, %v5924_v12  ;;  %v6129_v51 = vmul.f32 %v6061_v62, %v5927_v18  ;;  %v7523_v18 = vld [vmem:[#allocation119_spill] sm:$0xff] }
 0x213   : > { %v2797_v2 = vpop.eup %2796  ;;  %2808 = vpow2.f32 %v2141_v14  ;;  %v6812_v5 = vsub.f32 1.0, %v6111_v1  ;;  %v6134_v38 = vmul.f32 %v6065_v25, %v5930_v9  ;;  %v6138_v34 = vmul.f32 %v6069_v57, %v5933_v29  ;;  %v7525_v9 = vld [vmem:[#allocation125_spill] sm:$0xff]  ;;  %v7527_v57 = vld [vmem:[#allocation111_spill] sm:$0xff] }
 0x214   : > { %v2799_v63 = vpop.eup %2798  ;;  %2810 = vpow2.f32 %v2143_v49  ;;  %v6813_v22 = vsub.f32 1.0, %v6115_v24  ;;  %v6142_v54 = vmul.f32 %v2777_v3, %v5936_v11  ;;  %v6145_v62 = vmul.f32 %v2779_v59, %v7523_v18  ;;  %v7526_v29 = vld [vmem:[#allocation109_spill] sm:$0xff]  ;;  %v7539_v18 = vld [vmem:[#allocation120_spill] sm:$0xff] }
 0x215   : > { %v2801_v12 = vpop.eup %2800  ;;  %2812 = vpow2.f32 %v2145_v21  ;;  %v6148_v53 = vmul.f32 %v2781_v56, %v7524_v42  ;;  %v6151_v25 = vmul.f32 %v2783_v15, %v7525_v9  ;;  %v6154_v58 = vmul.f32 %v2785_v41, %v7526_v29  ;;  %v7532_v56 = vld [vmem:[#allocation13_spill] sm:$0xff]  ;;  %v7535_v15 = vld [vmem:[#allocation103_spill] sm:$0xff] }
 0x216   : > { %v2803_v8 = vpop.eup %2802  ;;  %2814 = vpow2.f32 %v2147_v23  ;;  %v6157_v32 = vmul.f32 %v2787_v27, %v7527_v57  ;;  %vm2213_vm14 = vcmp.lt.f32.partialorder %v7528_v45, 0.0  ;;  %v6161_v3 = vmul.f32 %v2789_v4, %v7529_v47  ;;  %v7536_v27 = vld [vmem:[#allocation67_spill] sm:$0xff]  ;;  %v7537_v14 = vld [vmem:[#allocation105_spill] sm:$0xff] }
 0x217   : > { %v2805_v11 = vpop.eup %2804  ;;  %v6164_v59 = vmul.f32 %v2791_v46, %v7530_v30  ;;  %v6167_v17 = vmul.f32 %v2793_v0, %v7531_v55  ;;  %vm2214_vm1 = vcmp.lt.f32.partialorder %v7532_v56, 0.0  ;;  %vm2215_vm0 = vcmp.lt.f32.partialorder %v7533_v39, 0.0  ;;  %v7538_v0 = vld [vmem:[#allocation68_spill] sm:$0xff]  ;;  %v7541_v30 = vld [vmem:[#allocation122_spill] sm:$0xff]  ;;  %v7543_v9 = vld [vmem:[#allocation123_spill] sm:$0xff] }
 0x218   : > { %vm2216_vm8 = vcmp.lt.f32.partialorder %v7534_v7, 0.0  ;;  %v2807_v48 = vpop.eup %2806  ;;  %v6174_v31 = vmul.f32 %v2795_v19, %v7535_v15  ;;  %vm2217_vm2 = vcmp.lt.f32.partialorder %v7536_v27, 0.0  ;;  %v6181_v49 = vmul.f32 %v2797_v2, %v7537_v14  ;;  %v7540_v2 = vld [vmem:[#allocation69_spill] sm:$0xff]  ;;  %v7545_v46 = vld [vmem:[#allocation46_spill] sm:$0xff]  ;;  %v7547_v15 = vld [vmem:[#allocation47_spill] sm:$0xff] }
 0x219   : > { %v2809_v4 = vpop.eup %2808  ;;  %vm2218_vm9 = vcmp.lt.f32.partialorder %v7538_v0, 0.0  ;;  %v6188_v42 = vmul.f32 %v2799_v63, %v7539_v18  ;;  %vm2219_vm3 = vcmp.lt.f32.partialorder %v7540_v2, 0.0  ;;  %v6195_v55 = vmul.f32 %v2801_v12, %v7541_v30  ;;  %v7542_v63 = vld [vmem:[#allocation71_spill] sm:$0xff]  ;;  %v7544_v29 = vld [vmem:[#allocation45_spill] sm:$0xff]  ;;  %v7546_v30 = vld [vmem:[#allocation74_spill] sm:$0xff] }
 0x21a   : > { %v2811_v19 = vpop.eup %2810  ;;  %vm2220_vm11 = vcmp.lt.f32.partialorder %v7542_v63, 0.0  ;;  %v6202_v21 = vmul.f32 %v2803_v8, %v7543_v9  ;;  %v6205_v57 = vmul.f32 %v2805_v11, %v7544_v29  ;;  %v6208_v41 = vmul.f32 %v2807_v48, %v7545_v46  ;;  %v7548_v23 = vld [vmem:[#allocation49_spill] sm:$0xff]  ;;  %v7549_v8 = vld [vmem:[#allocation75_spill] sm:$0xff] }
 0x21b   : > { %v2813_v47 = vpop.eup %2812  ;;  %vm2221_vm13 = vcmp.lt.f32.partialorder %v7546_v30, 0.0  ;;  %v6213_v14 = vmul.f32 %v2809_v4, %v7547_v15  ;;  %v6216_v20 = vmul.f32 %v2811_v19, %v7548_v23  ;;  %vm2222_vm10 = vcmp.lt.f32.partialorder %v7549_v8, 0.0  ;;  %v7550_v9 = vld [vmem:[#allocation81_spill] sm:$0xff]  ;;  %v7580_v8 = vld [vmem:[#allocation98_spill] sm:$0xff] }
 0x21c   : > { %v2815_v18 = vpop.eup %2814  ;;  %vm2223_vm5 = vcmp.lt.f32.partialorder %v7550_v9, 0.0  ;;  %v2245_v11 = vsub.f32 0.0, %v2181_v61  ;;  %v2246_v46 = vsub.f32 0.0, %v2182_v36  ;;  %v2247_v4 = vsub.f32 0.0, %v6810_v33 }
 0x21d   : > { %v2248_v23 = vsub.f32 0.0, %v6811_v13  ;;  %v6231_v19 = vmul.f32 %v2813_v47, %v6075_v28  ;;  %v6234_v29 = vmul.f32 %v2815_v18, %v6079_v6  ;;  %vm2224_vm7 = vcmp.lt.f32.partialorder %v7551_v43, 0.0  ;;  %v7552_v13 = vld [vmem:[#allocation83_spill] sm:$0xff] }
 0x21e   : > { %v2249_v48 = vsub.f32 0.0, %v2185_v26  ;;  %vm2225_vm6 = vcmp.lt.f32.partialorder %v7552_v13, 0.0  ;;  %v2250_v28 = vsub.f32 0.0, %v2186_v60  ;;  %v7553_v18 = vld [vmem:[#allocation87_spill] sm:$0xff]  ;;  %v2251_v15 = vsub.f32 0.0, %v6812_v5 }
 0x21f   : > { %vm2226_vm12 = vcmp.lt.f32.partialorder %v7553_v18, 0.0  ;;  %v2277_v33 = vsel %vm2213_vm14, %v2245_v11, %v2181_v61  ;;  %vm2227_vm15 = vcmp.lt.f32.partialorder %v7554_v44, 0.0  ;;  %v2252_v12 = vsub.f32 0.0, %v6813_v22  ;;  %v7557_v22 = vld [vmem:[#allocation89_spill] sm:$0xff] }
 0x220   : > { %v2278_v47 = vsel %vm2214_vm1, %v2246_v46, %v2182_v36  ;;  %v7555_v6 = vsub.f32 1.0, %v6095_v16  ;;  %v7556_v50 = vsub.f32 1.0, %v6099_v40  ;;  %vm2228_vm4 = vcmp.lt.f32.partialorder %v7557_v22, 0.0  ;;  %v7559_v36 = vld [vmem:[#allocation91_spill] sm:$0xff] }
 0x221   : > { %v7558_v35 = vsub.f32 1.0, %v6125_v52  ;;  %v2281_v16 = vsel %vm2217_vm2, %v2249_v48, %v2185_v26  ;;  %vm2229_vm14 = vcmp.lt.f32.partialorder %v7559_v36, 0.0  ;;  %v7560_v40 = vsub.f32 1.0, %v6129_v51 }
 0x222   : > { %v2279_v5 = vsel %vm2215_vm0, %v2247_v4, %v7555_v6  ;;  %v2280_v61 = vsel %vm2216_vm8, %v2248_v23, %v7556_v50  ;;  %v7561_v7 = vsub.f32 1.0, %v6134_v38  ;;  %v2282_v4 = vsel %vm2218_vm9, %v2250_v28, %v2186_v60  ;;  %v7562_v6 = vld [vmem:[#allocation92_spill] sm:$0xff] }
 0x223   : > { %v2253_v56 = vsub.f32 0.0, %v7558_v35  ;;  %v2254_v39 = vsub.f32 0.0, %v7560_v40  ;;  %v2309_v23 = vadd.f32 1.0, %v2277_v33  ;;  %vm2230_vm1 = vcmp.lt.f32.partialorder %v7562_v6, 0.0  ;;  %v7564_v35 = vld [vmem:[#allocation93_spill] sm:$0xff] }
 0x224   : > { %v2255_v46 = vsub.f32 0.0, %v7561_v7  ;;  %v7563_v10 = vsub.f32 1.0, %v6111_v1  ;;  %v2310_v27 = vadd.f32 1.0, %v2278_v47  ;;  %v2311_v48 = vadd.f32 1.0, %v2279_v5  ;;  %v7568_v5 = vld [vmem:[#allocation95_spill] sm:$0xff] }
 0x225   : > { %v2312_v50 = vadd.f32 1.0, %v2280_v61  ;;  %vm2231_vm0 = vcmp.lt.f32.partialorder %v7564_v35, 0.0  ;;  %v7565_v40 = vsub.f32 1.0, %v6138_v34  ;;  %v7566_v37 = vsub.f32 1.0, %v6142_v54 }
 0x226   : > { %v2283_v26 = vsel %vm2219_vm3, %v2251_v15, %v7563_v10  ;;  %v7567_v33 = vsub.f32 1.0, %v6115_v24  ;;  %v2313_v1 = vadd.f32 1.0, %v2281_v16  ;;  %vm2232_vm8 = vcmp.lt.f32.partialorder %v7568_v5, 0.0 }
 0x227   : > { %v2256_v7 = vsub.f32 0.0, %v7565_v40  ;;  %v2257_v0 = vsub.f32 0.0, %v7566_v37  ;;  %v7569_v2 = vsub.f32 1.0, %v6145_v62  ;;  %v7570_v28 = vsub.f32 1.0, %v6148_v53 }
 0x228   : > { %v2284_v60 = vsel %vm2220_vm11, %v2252_v12, %v7567_v33  ;;  %v7571_v61 = vsub.f32 1.0, %v6125_v52  ;;  %v2314_v63 = vadd.f32 1.0, %v2282_v4  ;;  %v7572_v12 = vld [vmem:[#allocation96_spill] sm:$0xff]  ;;  %v7573_v16 = vsub.f32 1.0, %v6129_v51  ;;  %v7579_v51 = vld [vmem:[#allocation54_spill] sm:$0xff] }
 0x229   : > { %v2258_v15 = vsub.f32 0.0, %v7569_v2  ;;  %v2259_v47 = vsub.f32 0.0, %v7570_v28  ;;  %vm2233_vm2 = vcmp.lt.f32.partialorder %v7572_v12, 0.0  ;;  %v7574_v40 = vsub.f32 1.0, %v6134_v38  ;;  %v7575_v2 = vld [vmem:[#allocation50_spill] sm:$0xff]  ;;  %v7576_v28 = vld [vmem:[#allocation97_spill] sm:$0xff] }
 0x22a   : > { %v2285_v24 = vsel %vm2221_vm13, %v2253_v56, %v7571_v61  ;;  %v2286_v10 = vsel %vm2222_vm10, %v2254_v39, %v7573_v16  ;;  %v2315_v33 = vadd.f32 1.0, %v2283_v26  ;;  %v2341_v52 = vmul.f32 %v2309_v23, %v7575_v2  ;;  %v7577_v56 = vld [vmem:[#allocation52_spill] sm:$0xff]  ;;  %v7578_v61 = vld [vmem:[#allocation53_spill] sm:$0xff] }
 0x22b   : > { %v2287_v37 = vsel %vm2223_vm5, %v2255_v46, %v7574_v40  ;;  %vm2234_vm9 = vcmp.lt.f32.partialorder %v7576_v28, 0.0  ;;  %v2316_v30 = vadd.f32 1.0, %v2284_v60  ;;  %v2342_v4 = vmul.f32 %v2310_v27, %v7577_v56  ;;  %v7583_v26 = vld [vmem:[#allocation56_spill] sm:$0xff]  ;;  %v7584_v27 = vld [vmem:[#allocation99_spill] sm:$0xff]  ;;  %v7587_v2 = vld [vmem:[#allocation57_spill] sm:$0xff] }
 0x22c   : > { %v2343_v11 = vmul.f32 %v2311_v48, %v7578_v61  ;;  %v2344_v45 = vmul.f32 %v2312_v50, %v7579_v51  ;;  %vm2235_vm3 = vcmp.lt.f32.partialorder %v7580_v8, 0.0  ;;  %v7581_v38 = vsub.f32 1.0, %v6151_v25  ;;  %2373 = vst [vmem:[%s6306_s15] sm:$0xff] %v2341_v52  ;;  %v7591_v61 = vld [vmem:[#allocation58_spill] sm:$0xff] }
 0x22d   : > { %v7582_v9 = vsub.f32 1.0, %v6138_v34  ;;  %v2317_v23 = vadd.f32 1.0, %v2285_v24  ;;  %v2345_v60 = vmul.f32 %v2313_v1, %v7583_v26  ;;  %vm2236_vm11 = vcmp.lt.f32.partialorder %v7584_v27, 0.0  ;;  %2374 = vst [vmem:[%s6306_s15 + $0x8] sm:$0xff] %v2342_v4  ;;  %v7599_v26 = vld [vmem:[#allocation61_spill] sm:$0xff] }
 0x22e   : > { %v2260_v39 = vsub.f32 0.0, %v7581_v38  ;;  %v7585_v48 = vsub.f32 1.0, %v6154_v58  ;;  %v7586_v16 = vsub.f32 1.0, %v6142_v54  ;;  %v2318_v34 = vadd.f32 1.0, %v2286_v10  ;;  %2375 = vst [vmem:[%s6306_s15 + $0x10] sm:$0xff] %v2343_v11  ;;  %v7595_v38 = vld [vmem:[#allocation60_spill] sm:$0xff] }
 0x22f   : > { %v2288_v46 = vsel %vm2224_vm7, %v2256_v7, %v7582_v9  ;;  %v2346_v43 = vmul.f32 %v2314_v63, %v7587_v2  ;;  %v7588_v7 = vld [vmem:[#allocation100_spill] sm:$0xff]  ;;  %v7589_v1 = vsub.f32 1.0, %v6157_v32  ;;  %v7590_v52 = vsub.f32 1.0, %v6145_v62  ;;  %2376 = vst [vmem:[%s6306_s15 + $0x18] sm:$0xff] %v2344_v45 }
 0x230   : > { %v2261_v50 = vsub.f32 0.0, %v7585_v48  ;;  %v2289_v40 = vsel %vm2225_vm6, %v2257_v0, %v7586_v16  ;;  %vm2237_vm13 = vcmp.lt.f32.partialorder %v7588_v7, 0.0  ;;  %v2319_v54 = vadd.f32 1.0, %v2287_v37  ;;  %v7592_v0 = vld [vmem:[#allocation101_spill] sm:$0xff]  ;;  %2377 = vst [vmem:[%s6306_s15 + $0x20] sm:$0xff] %v2345_v60  ;;  %v7603_v16 = vld [vmem:[#allocation62_spill] sm:$0xff] }
 0x231   : > { %v2262_v24 = vsub.f32 0.0, %v7589_v1  ;;  %v2290_v56 = vsel %vm2226_vm12, %v2258_v15, %v7590_v52  ;;  %v2347_v13 = vmul.f32 %v2315_v33, %v7591_v61  ;;  %vm2238_vm10 = vcmp.lt.f32.partialorder %v7592_v0, 0.0  ;;  %v7596_v15 = vld [vmem:[#allocation102_spill] sm:$0xff]  ;;  %2378 = vst [vmem:[%s6306_s15 + $0x28] sm:$0xff] %v2346_v43  ;;  %v7611_v61 = vld [vmem:[#allocation64_spill] sm:$0xff] }
 0x232   : > { %v7593_v63 = vsub.f32 1.0, %v6161_v3  ;;  %v7594_v4 = vsub.f32 1.0, %v6148_v53  ;;  %v2320_v62 = vadd.f32 1.0, %v2288_v46  ;;  %v2348_v18 = vmul.f32 %v2316_v30, %v7595_v38  ;;  %v7615_v3 = vld [vmem:[#allocation4_spill] sm:$0xff] }
 0x233   : > { %vm2239_vm5 = vcmp.lt.f32.partialorder %v7596_v15, 0.0  ;;  %v7597_v37 = vsub.f32 1.0, %v6164_v59  ;;  %v7598_v33 = vsub.f32 1.0, %v6151_v25  ;;  %v2321_v53 = vadd.f32 1.0, %v2289_v40  ;;  %2379 = vst [vmem:[%s6306_s15 + $0x30] sm:$0xff] %v2347_v13 }
 0x234   : > { %v2263_v10 = vsub.f32 0.0, %v7593_v63  ;;  %v2291_v51 = vsel %vm2227_vm15, %v2259_v47, %v7594_v4  ;;  %v2349_v44 = vmul.f32 %v2317_v23, %v7599_v26  ;;  %v7600_v47 = vld [vmem:[#allocation17_spill] sm:$0xff]  ;;  %v7601_v30 = vsub.f32 1.0, %v6167_v17  ;;  %2380 = vst [vmem:[%s6306_s15 + $0x38] sm:$0xff] %v2348_v18 }
 0x235   : > { %v2264_v11 = vsub.f32 0.0, %v7597_v37  ;;  %v2292_v9 = vsel %vm2228_vm4, %v2260_v39, %v7598_v33  ;;  %vm2240_vm7 = vcmp.lt.f32.partialorder %v7600_v47, 0.0  ;;  %v7602_v46 = vmov %v7585_v48  ;;  %v7604_v39 = vld [vmem:[#allocation18_spill] sm:$0xff]  ;;  %v7618_v33 = vld [vmem:[#allocation5_spill] sm:$0xff] }
 0x236   : > { %v2265_v45 = vsub.f32 0.0, %v7601_v30  ;;  %v2293_v48 = vsel %vm2229_vm14, %v2261_v50, %v7602_v46  ;;  %v2322_v25 = vadd.f32 1.0, %v2290_v56  ;;  %v2350_v22 = vmul.f32 %v2318_v34, %v7603_v16  ;;  %v7608_v50 = vld [vmem:[#allocation19_spill] sm:$0xff]  ;;  %2381 = vst [vmem:[%s6306_s15 + $0x40] sm:$0xff] %v2349_v44  ;;  %v7621_v44 = vld [vmem:[#allocation6_spill] sm:$0xff] }
 0x237   : > { %vm2241_vm6 = vcmp.lt.f32.partialorder %v7604_v39, 0.0  ;;  %v7605_v23 = vsub.f32 1.0, %v6174_v31  ;;  %v7606_v40 = vmov %v7589_v1  ;;  %v2323_v58 = vadd.f32 1.0, %v2291_v51  ;;  %v7607_v1 = vld [vmem:[#allocation63_spill] sm:$0xff] }
 0x238   : > { %v2294_v2 = vsel %vm2230_vm1, %v2262_v24, %v7606_v40  ;;  %v2351_v36 = vmul.f32 %v2319_v54, %v7607_v1  ;;  %vm2242_vm12 = vcmp.lt.f32.partialorder %v7608_v50, 0.0  ;;  %v7609_v34 = vsub.f32 1.0, %v6181_v49  ;;  %v7612_v24 = vld [vmem:[#allocation20_spill] sm:$0xff]  ;;  %2382 = vst [vmem:[%s6306_s15 + $0x48] sm:$0xff] %v2350_v22 }
 0x239   : > { %v2266_v60 = vsub.f32 0.0, %v7605_v23  ;;  %v7610_v52 = vmov %v7593_v63  ;;  %v2324_v32 = vadd.f32 1.0, %v2292_v9  ;;  %v2352_v6 = vmul.f32 %v2320_v62, %v7611_v61  ;;  %v7627_v40 = vld [vmem:[#allocation8_spill] sm:$0xff]  ;;  %v7633_v61 = vld [vmem:[#allocation10_spill] sm:$0xff] }
 0x23a   : > { %v2267_v43 = vsub.f32 0.0, %v7609_v34  ;;  %v2295_v56 = vsel %vm2231_vm0, %v2263_v10, %v7610_v52  ;;  %vm2243_vm15 = vcmp.lt.f32.partialorder %v7612_v24, 0.0  ;;  %v7613_v54 = vsub.f32 1.0, %v6188_v42  ;;  %2383 = vst [vmem:[%s6306_s15 + $0x50] sm:$0xff] %v2351_v36  ;;  %v7652_v24 = vld [vmem:[#allocation86_spill] sm:$0xff] }
 0x23b   : > { %v7614_v63 = vmov %v7597_v37  ;;  %v2325_v51 = vadd.f32 1.0, %v2293_v48  ;;  %v2353_v38 = vmul.f32 %v2321_v53, %v7615_v3  ;;  %v7616_v35 = vsub.f32 1.0, %v6195_v55  ;;  %2384 = vst [vmem:[%s6306_s15 + $0x58] sm:$0xff] %v2352_v6 }
 0x23c   : > { %v2268_v13 = vsub.f32 0.0, %v7613_v54  ;;  %v2296_v4 = vsel %vm2232_vm8, %v2264_v11, %v7614_v63  ;;  %v7617_v62 = vmov %v7601_v30  ;;  %v2326_v37 = vadd.f32 1.0, %v2294_v2 }
 0x23d   : > { %v2269_v10 = vsub.f32 0.0, %v7616_v35  ;;  %v2297_v18 = vsel %vm2233_vm2, %v2265_v45, %v7617_v62  ;;  %v2354_v9 = vmul.f32 %v2322_v25, %v7618_v33  ;;  %v7619_v59 = vsub.f32 1.0, %v6202_v21  ;;  %v7624_v25 = vld [vmem:[#allocation7_spill] sm:$0xff]  ;;  %2385 = vst [vmem:[%s6306_s15 + $0x60] sm:$0xff] %v2353_v38  ;;  %v7642_v33 = vld [vmem:[#allocation40_spill] sm:$0xff] }
 0x23e   : > { %v7620_v11 = vmov %v7605_v23  ;;  %v2327_v26 = vadd.f32 1.0, %v2295_v56  ;;  %v2355_v30 = vmul.f32 %v2323_v58, %v7621_v44  ;;  %v7622_v17 = vsub.f32 1.0, %v6205_v57  ;;  %v7640_v57 = vld [vmem:[#allocation21_spill] sm:$0xff] }
 0x23f   : > { %v2270_v5 = vsub.f32 0.0, %v7619_v59  ;;  %v2298_v53 = vsel %vm2234_vm9, %v2266_v60, %v7620_v11  ;;  %v7623_v45 = vmov %v7609_v34  ;;  %v2328_v48 = vadd.f32 1.0, %v2296_v4  ;;  %v7630_v34 = vld [vmem:[#allocation9_spill] sm:$0xff]  ;;  %2386 = vst [vmem:[%s6306_s15 + $0x68] sm:$0xff] %v2354_v9  ;;  %v7636_v4 = vld [vmem:[#allocation11_spill] sm:$0xff] }
 0x240   : > { %v2271_v12 = vsub.f32 0.0, %v7622_v17  ;;  %v2299_v46 = vsel %vm2235_vm3, %v2267_v43, %v7623_v45  ;;  %v2356_v16 = vmul.f32 %v2324_v32, %v7624_v25  ;;  %v7625_v31 = vsub.f32 1.0, %v6208_v41  ;;  %2387 = vst [vmem:[%s6306_s15 + $0x70] sm:$0xff] %v2355_v30  ;;  %v7643_v41 = vld [vmem:[#allocation66_spill] sm:$0xff] }
 0x241   : > { %v7626_v22 = vmov %v7613_v54  ;;  %v2329_v60 = vadd.f32 1.0, %v2297_v18  ;;  %v2357_v2 = vmul.f32 %v2325_v51, %v7627_v40  ;;  %v7628_v49 = vsub.f32 1.0, %v6213_v14  ;;  %v7646_v14 = vld [vmem:[#allocation70_spill] sm:$0xff] }
 0x242   : > { %v2272_v28 = vsub.f32 0.0, %v7625_v31  ;;  %v2300_v23 = vsel %vm2236_vm11, %v2268_v13, %v7626_v22  ;;  %v7629_v58 = vmov %v7616_v35  ;;  %v2330_v36 = vadd.f32 1.0, %v2298_v53  ;;  %2388 = vst [vmem:[%s6306_s15 + $0x78] sm:$0xff] %v2356_v16  ;;  %v7645_v53 = vld [vmem:[#allocation41_spill] sm:$0xff]  ;;  %v7651_v16 = vld [vmem:[#allocation43_spill] sm:$0xff]  ;;  %v7653_v22 = vld [vmem:[#allocation44_spill] sm:$0xff] }
 0x243   : > { %v2273_v8 = vsub.f32 0.0, %v7628_v49  ;;  %v2301_v1 = vsel %vm2237_vm13, %v2269_v10, %v7629_v58  ;;  %v2358_v43 = vmul.f32 %v2326_v37, %v7630_v34  ;;  %v7631_v42 = vsub.f32 1.0, %v6216_v20  ;;  %v7639_v10 = vld [vmem:[#allocation39_spill] sm:$0xff]  ;;  %2389 = vst [vmem:[%s6306_s15 + $0x80] sm:$0xff] %v2357_v2  ;;  %v7649_v20 = vld [vmem:[#allocation76_spill] sm:$0xff] }
 0x244   : > { %v7632_v52 = vmov %v7619_v59  ;;  %v2331_v32 = vadd.f32 1.0, %v2299_v46  ;;  %v2359_v6 = vmul.f32 %v2327_v26, %v7633_v61  ;;  %v7634_v55 = vsub.f32 1.0, %v6231_v19 }
 0x245   : > { %v2274_v27 = vsub.f32 0.0, %v7631_v42  ;;  %v2302_v56 = vsel %vm2238_vm10, %v2270_v5, %v7632_v52  ;;  %v7635_v54 = vmov %v7622_v17  ;;  %v2332_v63 = vadd.f32 1.0, %v2300_v23  ;;  %2390 = vst [vmem:[%s6306_s15 + $0x88] sm:$0xff] %v2358_v43 }
 0x246   : > { %v2275_v7 = vsub.f32 0.0, %v7634_v55  ;;  %v2303_v13 = vsel %vm2239_vm5, %v2271_v12, %v7635_v54  ;;  %v2360_v51 = vmul.f32 %v2328_v48, %v7636_v4  ;;  %v7637_v21 = vsub.f32 1.0, %v6234_v29  ;;  %2391 = vst [vmem:[%s6306_s15 + $0x90] sm:$0xff] %v2359_v6  ;;  %v7648_v12 = vld [vmem:[#allocation42_spill] sm:$0xff] }
 0x247   : > { %v7638_v3 = vmov %v7625_v31  ;;  %v2333_v35 = vadd.f32 1.0, %v2301_v1  ;;  %v2361_v62 = vmul.f32 %v2329_v60, %v7639_v10  ;;  %vm2244_vm4 = vcmp.lt.f32.partialorder %v7640_v57, 0.0  ;;  %v7654_v60 = vld [vmem:[#allocation90_spill] sm:$0xff] }
 0x248   : > { %v2276_v0 = vsub.f32 0.0, %v7637_v21  ;;  %v2304_v38 = vsel %vm2240_vm7, %v2272_v28, %v7638_v3  ;;  %v7641_v15 = vmov %v7628_v49  ;;  %v2334_v37 = vadd.f32 1.0, %v2302_v56  ;;  %2392 = vst [vmem:[%s6306_s15 + $0x98] sm:$0xff] %v2360_v51  ;;  %v7655_v49 = vld [vmem:[#allocation94_spill] sm:$0xff] }
 0x249   : > { %v2305_v18 = vsel %vm2241_vm6, %v2273_v8, %v7641_v15  ;;  %v2362_v9 = vmul.f32 %v2330_v36, %v7642_v33  ;;  %v1119_v47 = vmul.f32 0.5, %v7643_v41  ;;  %v7644_v59 = vmov %v7631_v42  ;;  %2393 = vst [vmem:[%s6306_s15 + $0xa0] sm:$0xff] %v2361_v62 }
 0x24a   : > { %v2306_v5 = vsel %vm2242_vm12, %v2274_v27, %v7644_v59  ;;  %v2335_v11 = vadd.f32 1.0, %v2303_v13  ;;  %v2363_v26 = vmul.f32 %v2331_v32, %v7645_v53  ;;  %v1120_v39 = vmul.f32 0.5, %v7646_v14 }
 0x24b   : > { %v7647_v44 = vmov %v7634_v55  ;;  %v2336_v17 = vadd.f32 1.0, %v2304_v38  ;;  %v2364_v45 = vmul.f32 %v2332_v63, %v7648_v12  ;;  %v1121_v50 = vmul.f32 0.5, %v7649_v20  ;;  %2394 = vst [vmem:[%s6306_s15 + $0xa8] sm:$0xff] %v2362_v9 }
 0x24c   : > { %v2307_v30 = vsel %vm2243_vm15, %v2275_v7, %v7647_v44  ;;  %v7650_v46 = vmov %v7637_v21  ;;  %v2337_v25 = vadd.f32 1.0, %v2305_v18  ;;  %v2365_v19 = vmul.f32 %v2333_v35, %v7651_v16  ;;  %2395 = vst [vmem:[%s6306_s15 + $0xb0] sm:$0xff] %v2363_v26 }
 0x24d   : > { %v2308_v48 = vsel %vm2244_vm4, %v2276_v0, %v7650_v46  ;;  %v1122_v31 = vmul.f32 0.5, %v7652_v24  ;;  %v2338_v28 = vadd.f32 1.0, %v2306_v5  ;;  %v2366_v23 = vmul.f32 %v2334_v37, %v7653_v22  ;;  %2396 = vst [vmem:[%s6306_s15 + $0xb8] sm:$0xff] %v2364_v45 }
 0x24e   : > { %v1123_v29 = vmul.f32 0.5, %v7654_v60  ;;  %v2339_v40 = vadd.f32 1.0, %v2307_v30  ;;  %v2367_v2 = vmul.f32 %v2335_v11, %v1119_v47  ;;  %v1124_v8 = vmul.f32 0.5, %v7655_v49  ;;  %2397 = vst [vmem:[%s6306_s15 + $0xc0] sm:$0xff] %v2365_v19 }
 0x24f   : > { %v2340_v58 = vadd.f32 1.0, %v2308_v48  ;;  %v2368_v1 = vmul.f32 %v2336_v17, %v1120_v39  ;;  %v2369_v36 = vmul.f32 %v2337_v25, %v1121_v50  ;;  %v2370_v34 = vmul.f32 %v2338_v28, %v1122_v31  ;;  %2398 = vst [vmem:[%s6306_s15 + $0xc8] sm:$0xff] %v2366_v23 }
 0x250   : > { %v2371_v43 = vmul.f32 %v2339_v40, %v1123_v29  ;;  %2399 = vst [vmem:[%s6306_s15 + $0xd0] sm:$0xff] %v2367_v2 }
 0x251   : > { %v2372_v42 = vmul.f32 %v2340_v58, %v1124_v8  ;;  %2400 = vst [vmem:[%s6306_s15 + $0xd8] sm:$0xff] %v2368_v1 }
 0x252   : > { %2401 = vst [vmem:[%s6306_s15 + $0xe0] sm:$0xff] %v2369_v36 }
 0x253   : > { %2402 = vst [vmem:[%s6306_s15 + $0xe8] sm:$0xff] %v2370_v34 }
 0x254   : > { %2403 = vst [vmem:[%s6306_s15 + $0xf0] sm:$0xff] %v2371_v43 }
 0x255   : > { %2404 = vst [vmem:[%s6306_s15 + $0xf8] sm:$0xff] %v2372_v42 }
 0x256 PF: > { %s13_s12 = sadd.s32 1, %s2822_s12  }
 0x257   : > { %p10_p4 = scmp.ge.s32.totalorder %s13_s12, 4  }
 0x259   :  { %12 = sbr.rel (!%p10_p4) target bundleno = 1 (0x1), region = 66 }

</bundles_post_ra>
